<compile_context>
chip_gen: v6e
topology: v6e:2x2x1
jax: 0.10.0
libtpu: 0.0.40
codegen_flags: <defaults>
</compile_context>

<pallas_src>
import functools

import jax
import jax.numpy as jnp
from jax.experimental import pallas as pl
from jax.experimental.pallas import tpu as pltpu


_BN_EPS = 1e-5
_MXU_DTYPE = jnp.bfloat16     # matmul-operand / activation storage dtype
_TILE_M_MAX = 512             # rows per grid step in the conv kernel (VMEM-safe on v5e/v6e/v7x)


def _round_up(x, m):
    return (x + m - 1) // m * m


# ----------------------------------------------------------------------------
# Kernel 1: fused (im2col-matmul conv) + BatchNorm(batch stats) + ReLU
# ----------------------------------------------------------------------------
def _conv_bn_relu_kernel(x_ref, w_ref, g_ref, be_ref, o_ref, sum_ref, sq_ref,
                         *, inv_m, eps):
    """Two-phase, M-tiled conv block.

    grid = (2, n_tiles):
      phase 0: y = x @ w per tile; accumulate per-channel sum / sum-of-squares.
      phase 1: y = x @ w again; normalize with batch stats, gamma/beta, ReLU, store.

    x_ref : (TILE_M, K)   bf16  im2col patch rows
    w_ref : (K, Cout)     bf16
    g_ref, be_ref : (1, Cout) f32
    o_ref : (TILE_M, Cout) bf16
    sum_ref, sq_ref : (1, Cout) f32 VMEM scratch (persist across grid steps)
    """
    phase = pl.program_id(0)
    tile = pl.program_id(1)

    y = jnp.dot(x_ref[...], w_ref[...], preferred_element_type=jnp.float32)

    @pl.when(jnp.logical_and(phase == 0, tile == 0))
    def _init():
        sum_ref[...] = jnp.zeros_like(sum_ref)
        sq_ref[...] = jnp.zeros_like(sq_ref)

    @pl.when(phase == 0)
    def _stats():
        sum_ref[...] += jnp.sum(y, axis=0, keepdims=True)
        sq_ref[...] += jnp.sum(y * y, axis=0, keepdims=True)
        # Placeholder write (overwritten in phase 1) so every visited output
        # block is fully defined.
        o_ref[...] = y.astype(o_ref.dtype)

    @pl.when(phase == 1)
    def _normalize():
        mean = sum_ref[...] * inv_m
        var = sq_ref[...] * inv_m - mean * mean      # activations are O(1): safe in f32
        scale = g_ref[...] * jax.lax.rsqrt(var + eps)
        shift = be_ref[...] - mean * scale
        o_ref[...] = jnp.maximum(y * scale + shift, 0.0).astype(o_ref.dtype)


def conv_bn_relu(x_cols, w_mat, gamma, beta):
    """x_cols: (M, K) bf16, w_mat: (K, C) bf16, gamma/beta: (1, C) f32 -> (M, C) bf16."""
    m, k = x_cols.shape
    c = w_mat.shape[1]
    tile_m = min(_TILE_M_MAX, _round_up(m, 16))
    n_tiles = pl.cdiv(m, tile_m)
    m_pad = n_tiles * tile_m
    if m_pad != m:
        # Zero rows are exact for the BN statistics (they contribute 0 to both
        # sums and we divide by the true M); they are sliced off below.
        x_cols = jnp.pad(x_cols, ((0, m_pad - m), (0, 0)))

    kernel = functools.partial(_conv_bn_relu_kernel, inv_m=1.0 / m, eps=_BN_EPS)
    out = pl.pallas_call(
        kernel,
        out_shape=jax.ShapeDtypeStruct((m_pad, c), _MXU_DTYPE),
        grid=(2, n_tiles),
        in_specs=[
            pl.BlockSpec((tile_m, k), lambda p, i: (i, 0)),
            pl.BlockSpec((k, c), lambda p, i: (0, 0)),
            pl.BlockSpec((1, c), lambda p, i: (0, 0)),
            pl.BlockSpec((1, c), lambda p, i: (0, 0)),
        ],
        out_specs=pl.BlockSpec((tile_m, c), lambda p, i: (i, 0)),
        scratch_shapes=[pltpu.VMEM((1, c), jnp.float32),
                        pltpu.VMEM((1, c), jnp.float32)],
        compiler_params=pltpu.CompilerParams(
            # BN stats accumulate across tiles and phases -> both axes sequential.
            dimension_semantics=("arbitrary", "arbitrary")),
    )(x_cols, w_mat, gamma, beta)
    return out[:m] if m_pad != m else out


# ----------------------------------------------------------------------------
# Kernel 2: fused MLP head  q = fc5(relu(fc4(h_flat) + fc4_a(a)))
# ----------------------------------------------------------------------------
def _head_kernel(h_ref, a0_ref, a1_ref, w4_ref, b44_ref, w4a0_ref, w4a1_ref,
                 w5_ref, b5_ref, q_ref):
    # fc4: the one real matmul of the head (bf16 operands, f32 accumulate).
    h4 = jnp.dot(h_ref[...], w4_ref[...], preferred_element_type=jnp.float32)
    h4 = h4 + b44_ref[...]                                   # fc4 + fc4_a biases merged at init
    # fc4_a has contraction depth 2 -> two VPU broadcast MACs, no MXU round trip.
    h4 = h4 + a0_ref[...] * w4a0_ref[...] + a1_ref[...] * w4a1_ref[...]
    h4 = jnp.maximum(h4, 0.0)
    q_ref[...] = jnp.dot(h4, w5_ref[...],
                         preferred_element_type=jnp.float32) + b5_ref[...]


_VMEM = pl.BlockSpec(memory_space=pltpu.MemorySpace.VMEM)


def head(h_flat, a0, a1, w4, b44, w4a0, w4a1, w5, b5):
    n = h_flat.shape[0]
    return pl.pallas_call(
        _head_kernel,
        out_shape=jax.ShapeDtypeStruct((n, w5.shape[1]), jnp.float32),
        in_specs=[_VMEM] * 9,
        out_specs=_VMEM,
    )(h_flat, a0, a1, w4, b44, w4a0, w4a1, w5, b5)


# ----------------------------------------------------------------------------
# Glue: channels-last im2col (strided slicing / stacking only, no transposes)
# ----------------------------------------------------------------------------
def conv2d_size_out(size, kernel_size=5, stride=2):
    return (size - (kernel_size - 1) - 1) // stride + 1


def im2col_nhwc(x, k, stride):
    """x: (N, H, W, C) -> (N*OH*OW, KH*KW*C) with channels fastest (lane-dense)."""
    n, h, w, c = x.shape
    oh = (h - k) // stride + 1
    ow = (w - k) // stride + 1
    taps = []
    for i in range(k):
        for j in range(k):
            taps.append(x[:, i:i + stride * oh:stride, j:j + stride * ow:stride, :])
    p = jnp.stack(taps, axis=3)                       # (N, OH, OW, K*K, C)
    return p.reshape(n * oh * ow, k * k * c), oh, ow


# ----------------------------------------------------------------------------
# Parameter init: all layout work (transposes / reorders / merges) done here once
# ----------------------------------------------------------------------------
def init_params(key, feature_size=(64, 64)):
    convw = conv2d_size_out(conv2d_size_out(conv2d_size_out(feature_size[0])))
    convh = conv2d_size_out(conv2d_size_out(conv2d_size_out(feature_size[1])))
    p3 = convw * convh                    # conv3 spatial positions
    lin_in = p3 * 128

    def rnd(k, shape, fan_in):
        return jax.random.normal(k, shape, jnp.float32) / jnp.sqrt(fan_in)

    def conv_w(wt):
        # torch (Cout, Cin, KH, KW) -> matmul layout (KH*KW*Cin, Cout), Cin fastest,
        # matching im2col_nhwc column order.
        cout = wt.shape[0]
        return jnp.transpose(wt, (2, 3, 1, 0)).reshape(-1, cout).astype(_MXU_DTYPE)

    ks = jax.random.split(key, 9)
    w1_t = rnd(ks[0], (32, 3, 5, 5), 3 * 25)
    w2_t = rnd(ks[1], (64, 32, 5, 5), 32 * 25)
    w3_t = rnd(ks[2], (128, 64, 5, 5), 64 * 25)
    w4_t = rnd(ks[3], (128, lin_in), lin_in)
    b4_t = rnd(ks[4], (128,), lin_in)
    w4a_t = rnd(ks[5], (128, 2), 2)
    b4a_t = rnd(ks[6], (128,), 2)
    w5_t = rnd(ks[7], (2, 128), 128)
    b5_t = rnd(ks[8], (2,), 128)

    # fc4 columns reordered once so the NHWC flatten matches torch's NCHW .view:
    # torch column = c * P3 + p  ->  nhwc column = p * 128 + c.
    w4_mat = (w4_t.reshape(128, 128, p3).transpose(2, 1, 0)
              .reshape(p3 * 128, 128).astype(_MXU_DTYPE))

    return {
        # NOTE: conv biases are intentionally omitted: a per-channel constant is
        # exactly cancelled by the batch-mean subtraction of training-mode BN.
        "w1": conv_w(w1_t),
        "g1": jnp.ones((1, 32), jnp.float32), "be1": jnp.zeros((1, 32), jnp.float32),
        "w2": conv_w(w2_t),
        "g2": jnp.ones((1, 64), jnp.float32), "be2": jnp.zeros((1, 64), jnp.float32),
        "w3": conv_w(w3_t),
        "g3": jnp.ones((1, 128), jnp.float32), "be3": jnp.zeros((1, 128), jnp.float32),
        "w4": w4_mat,
        "b44": (b4_t + b4a_t).reshape(1, 128),          # fc4 + fc4_a biases merged
        "w4a0": w4a_t[:, 0].reshape(1, 128),
        "w4a1": w4a_t[:, 1].reshape(1, 128),
        "w5": w5_t.T,                                    # (128, 2) f32
        "b5": b5_t.reshape(1, 2),
    }


# ----------------------------------------------------------------------------
# Forward pass (NHWC end-to-end, no activation transposes)
# ----------------------------------------------------------------------------
@jax.jit
def critic_exp_forward(maps_nhwc, a, params):
    """maps_nhwc: (N, H, W, 3) float; a: (N, 2) float  ->  q: (N, 2) f32."""
    n = maps_nhwc.shape[0]
    x = maps_nhwc.astype(_MXU_DTYPE)      # bf16 activations end-to-end (f32 BN math)

    def conv_block(x_nhwc, w_key, g_key, b_key):
        cols, oh, ow = im2col_nhwc(x_nhwc, 5, 2)
        y = conv_bn_relu(cols, params[w_key], params[g_key], params[b_key])
        return y.reshape(n, oh, ow, params[w_key].shape[1])

    h1 = conv_block(x, "w1", "g1", "be1")
    h2 = conv_block(h1, "w2", "g2", "be2")
    h3 = conv_block(h2, "w3", "g3", "be3")

    # NHWC flatten is a free row-major reshape; fc4 weight columns were permuted
    # at init so this matches torch's NCHW .view(N, -1) semantics exactly.
    h_flat = h3.reshape(n, -1)

    a32 = a.astype(jnp.float32)
    return head(h_flat, a32[:, 0:1], a32[:, 1:2],
                params["w4"], params["b44"], params["w4a0"], params["w4a1"],
                params["w5"], params["b5"])


if __name__ == "__main__":
    key = jax.random.PRNGKey(0)
    k_params, k_map, k_act = jax.random.split(key, 3)

    feature_size = (64, 64)   # conv stack -> 5x5x128 = 3200 features
    batch = 2

    params = init_params(k_params, feature_size)
    # s = list of dicts with 'map' of shape (H, W, 3) -> stacked NHWC batch
    maps = jax.random.uniform(
        k_map, (batch, feature_size[0], feature_size[1], 3), jnp.float32)
    a = jax.random.normal(k_act, (batch, 2), jnp.float32)

    q = critic_exp_forward(maps, a, params)
    q = jax.block_until_ready(q)
    assert q.shape == (batch, 2) and q.dtype == jnp.float32
    print("KERNEL_OK")
</pallas_src>

<mosaic_0001>
module attributes {stable_mosaic.version = 11 : i64} {
  func.func @_conv_bn_relu_kernel(%arg0: i32, %arg1: i32, %arg2: memref<512x75xbf16, #tpu.memory_space<vmem>>, %arg3: memref<75x32xbf16, #tpu.memory_space<vmem>>, %arg4: memref<1x32xf32, #tpu.memory_space<vmem>>, %arg5: memref<1x32xf32, #tpu.memory_space<vmem>>, %arg6: memref<512x32xbf16, #tpu.memory_space<vmem>>, %arg7: memref<1x32xf32, #tpu.memory_space<vmem>>, %arg8: memref<1x32xf32, #tpu.memory_space<vmem>>) attributes {dimension_semantics = [#tpu.dimension_semantics<arbitrary>, #tpu.dimension_semantics<arbitrary>], iteration_bounds = array<i64: 2, 4>, scalar_prefetch = 0 : i64, scratch_operands = 2 : i64, tpu.core_type = #tpu.core_type<tc>, window_params = [{transform_indices = @transform_0, window_bounds = array<i64: 512, 75>}, {pipeline_mode = #tpu.pipeline_mode<synchronous>, transform_indices = @transform_1, window_bounds = array<i64: 75, 32>}, {pipeline_mode = #tpu.pipeline_mode<synchronous>, transform_indices = @transform_2, window_bounds = array<i64: 1, 32>}, {pipeline_mode = #tpu.pipeline_mode<synchronous>, transform_indices = @transform_3, window_bounds = array<i64: 1, 32>}, {transform_indices = @transform_4, window_bounds = array<i64: 512, 32>}]} {
    %c0 = arith.constant 0 : index
    %c0_0 = arith.constant 0 : index
    %0 = vector.load %arg2[%c0, %c0_0] : memref<512x75xbf16, #tpu.memory_space<vmem>>, vector<512x75xbf16>
    %c0_1 = arith.constant 0 : index
    %c0_2 = arith.constant 0 : index
    %1 = vector.load %arg3[%c0_1, %c0_2] : memref<75x32xbf16, #tpu.memory_space<vmem>>, vector<75x32xbf16>
    %cst = arith.constant dense<0.000000e+00> : vector<512x32xf32>
    %2 = tpu.matmul %0, %1, %cst {dimension_numbers = #tpu.dot_dimension_numbers<[1], [0], [0], [1], [0, 0, 1, 1], [], []>} : vector<512x75xbf16>, vector<75x32xbf16>, vector<512x32xf32> -> vector<512x32xf32>
    %c0_i32 = arith.constant 0 : i32
    %3 = arith.cmpi eq, %arg0, %c0_i32 : i32
    %c0_i32_3 = arith.constant 0 : i32
    %4 = arith.cmpi eq, %arg1, %c0_i32_3 : i32
    %5 = arith.andi %3, %4 : i1
    %6 = arith.extui %5 : i1 to i32
    %c0_i32_4 = arith.constant 0 : i32
    %7 = arith.cmpi ne, %6, %c0_i32_4 : i32
    scf.if %7 {
      %cst_8 = arith.constant 0.000000e+00 : f32
      %14 = vector.broadcast %cst_8 : f32 to vector<1x32xf32>
      %c0_9 = arith.constant 0 : index
      %c0_10 = arith.constant 0 : index
      %15 = vector.load %arg7[%c0_9, %c0_10] : memref<1x32xf32, #tpu.memory_space<vmem>>, vector<1x32xf32>
      tpu.vector_store %arg7[%c0_9, %c0_10], %14 {strides = array<i32>} : memref<1x32xf32, #tpu.memory_space<vmem>>, vector<1x32xf32>,
      %cst_11 = arith.constant 0.000000e+00 : f32
      %16 = vector.broadcast %cst_11 : f32 to vector<1x32xf32>
      %c0_12 = arith.constant 0 : index
      %c0_13 = arith.constant 0 : index
      %17 = vector.load %arg8[%c0_12, %c0_13] : memref<1x32xf32, #tpu.memory_space<vmem>>, vector<1x32xf32>
      tpu.vector_store %arg8[%c0_12, %c0_13], %16 {strides = array<i32>} : memref<1x32xf32, #tpu.memory_space<vmem>>, vector<1x32xf32>,
    } else {
    }
    %c0_i32_5 = arith.constant 0 : i32
    %8 = arith.cmpi eq, %arg0, %c0_i32_5 : i32
    %9 = arith.extui %8 : i1 to i32
    %c0_i32_6 = arith.constant 0 : i32
    %10 = arith.cmpi ne, %9, %c0_i32_6 : i32
    scf.if %10 {
      %c0_8 = arith.constant 0 : index
      %c0_9 = arith.constant 0 : index
      %14 = vector.load %arg7[%c0_8, %c0_9] : memref<1x32xf32, #tpu.memory_space<vmem>>, vector<1x32xf32>
      %cst_10 = arith.constant dense<0.000000e+00> : vector<32xf32>
      %15 = vector.multi_reduction <add>, %2, %cst_10 [0] : vector<512x32xf32> to vector<32xf32>
      %16 = vector.shape_cast %15 : vector<32xf32> to vector<1x32xf32>
      %17 = arith.addf %14, %16 : vector<1x32xf32>
      %c0_11 = arith.constant 0 : index
      %c0_12 = arith.constant 0 : index
      %18 = vector.load %arg7[%c0_11, %c0_12] : memref<1x32xf32, #tpu.memory_space<vmem>>, vector<1x32xf32>
      tpu.vector_store %arg7[%c0_11, %c0_12], %17 {strides = array<i32>} : memref<1x32xf32, #tpu.memory_space<vmem>>, vector<1x32xf32>,
      %c0_13 = arith.constant 0 : index
      %c0_14 = arith.constant 0 : index
      %19 = vector.load %arg8[%c0_13, %c0_14] : memref<1x32xf32, #tpu.memory_space<vmem>>, vector<1x32xf32>
      %20 = arith.mulf %2, %2 : vector<512x32xf32>
      %cst_15 = arith.constant dense<0.000000e+00> : vector<32xf32>
      %21 = vector.multi_reduction <add>, %20, %cst_15 [0] : vector<512x32xf32> to vector<32xf32>
      %22 = vector.shape_cast %21 : vector<32xf32> to vector<1x32xf32>
      %23 = arith.addf %19, %22 : vector<1x32xf32>
      %c0_16 = arith.constant 0 : index
      %c0_17 = arith.constant 0 : index
      %24 = vector.load %arg8[%c0_16, %c0_17] : memref<1x32xf32, #tpu.memory_space<vmem>>, vector<1x32xf32>
      tpu.vector_store %arg8[%c0_16, %c0_17], %23 {strides = array<i32>} : memref<1x32xf32, #tpu.memory_space<vmem>>, vector<1x32xf32>,
      %25 = arith.truncf %2 : vector<512x32xf32> to vector<512x32xbf16>
      %c0_18 = arith.constant 0 : index
      %c0_19 = arith.constant 0 : index
      %26 = vector.load %arg6[%c0_18, %c0_19] : memref<512x32xbf16, #tpu.memory_space<vmem>>, vector<512x32xbf16>
      tpu.vector_store %arg6[%c0_18, %c0_19], %25 {strides = array<i32>} : memref<512x32xbf16, #tpu.memory_space<vmem>>, vector<512x32xbf16>,
    } else {
    }
    %c1_i32 = arith.constant 1 : i32
    %11 = arith.cmpi eq, %arg0, %c1_i32 : i32
    %12 = arith.extui %11 : i1 to i32
    %c0_i32_7 = arith.constant 0 : i32
    %13 = arith.cmpi ne, %12, %c0_i32_7 : i32
    scf.if %13 {
      %c0_8 = arith.constant 0 : index
      %c0_9 = arith.constant 0 : index
      %14 = vector.load %arg7[%c0_8, %c0_9] : memref<1x32xf32, #tpu.memory_space<vmem>>, vector<1x32xf32>
      %cst_10 = arith.constant 5.55555569E-4 : f32
      %15 = vector.broadcast %cst_10 : f32 to vector<1x32xf32>
      %16 = arith.mulf %14, %15 : vector<1x32xf32>
      %c0_11 = arith.constant 0 : index
      %c0_12 = arith.constant 0 : index
      %17 = vector.load %arg8[%c0_11, %c0_12] : memref<1x32xf32, #tpu.memory_space<vmem>>, vector<1x32xf32>
      %cst_13 = arith.constant 5.55555569E-4 : f32
      %18 = vector.broadcast %cst_13 : f32 to vector<1x32xf32>
      %19 = arith.mulf %17, %18 : vector<1x32xf32>
      %20 = arith.mulf %16, %16 : vector<1x32xf32>
      %21 = arith.subf %19, %20 : vector<1x32xf32>
      %c0_14 = arith.constant 0 : index
      %c0_15 = arith.constant 0 : index
      %22 = vector.load %arg4[%c0_14, %c0_15] : memref<1x32xf32, #tpu.memory_space<vmem>>, vector<1x32xf32>
      %cst_16 = arith.constant 9.99999974E-6 : f32
      %23 = vector.broadcast %cst_16 : f32 to vector<1x32xf32>
      %24 = arith.addf %21, %23 : vector<1x32xf32>
      %25 = math.rsqrt %24 : vector<1x32xf32>
      %26 = arith.mulf %22, %25 : vector<1x32xf32>
      %c0_17 = arith.constant 0 : index
      %c0_18 = arith.constant 0 : index
      %27 = vector.load %arg5[%c0_17, %c0_18] : memref<1x32xf32, #tpu.memory_space<vmem>>, vector<1x32xf32>
      %28 = arith.mulf %16, %26 : vector<1x32xf32>
      %29 = arith.subf %27, %28 : vector<1x32xf32>
      %30 = vector.broadcast %26 : vector<1x32xf32> to vector<512x32xf32>
      %31 = arith.mulf %2, %30 : vector<512x32xf32>
      %32 = vector.broadcast %29 : vector<1x32xf32> to vector<512x32xf32>
      %33 = arith.addf %31, %32 : vector<512x32xf32>
      %cst_19 = arith.constant 0.000000e+00 : f32
      %34 = vector.broadcast %cst_19 : f32 to vector<512x32xf32>
      %35 = arith.maximumf %33, %34 : vector<512x32xf32>
      %36 = arith.truncf %35 : vector<512x32xf32> to vector<512x32xbf16>
      %c0_20 = arith.constant 0 : index
      %c0_21 = arith.constant 0 : index
      %37 = vector.load %arg6[%c0_20, %c0_21] : memref<512x32xbf16, #tpu.memory_space<vmem>>, vector<512x32xbf16>
      tpu.vector_store %arg6[%c0_20, %c0_21], %36 {strides = array<i32>} : memref<512x32xbf16, #tpu.memory_space<vmem>>, vector<512x32xbf16>,
    } else {
    }
    return
  }
  func.func @transform_0(%arg0: i32, %arg1: i32) -> (i32, i32) {
    %c0_i32 = arith.constant 0 : i32
    %c0_i32_0 = arith.constant 0 : i32
    return %arg1, %c0_i32 : i32, i32
  }
  func.func @transform_1(%arg0: i32, %arg1: i32) -> (i32, i32) {
    %c0_i32 = arith.constant 0 : i32
    %c0_i32_0 = arith.constant 0 : i32
    %c0_i32_1 = arith.constant 0 : i32
    return %c0_i32, %c0_i32_0 : i32, i32
  }
  func.func @transform_2(%arg0: i32, %arg1: i32) -> (i32, i32) {
    %c0_i32 = arith.constant 0 : i32
    %c0_i32_0 = arith.constant 0 : i32
    %c0_i32_1 = arith.constant 0 : i32
    return %c0_i32, %c0_i32_0 : i32, i32
  }
  func.func @transform_3(%arg0: i32, %arg1: i32) -> (i32, i32) {
    %c0_i32 = arith.constant 0 : i32
    %c0_i32_0 = arith.constant 0 : i32
    %c0_i32_1 = arith.constant 0 : i32
    return %c0_i32, %c0_i32_0 : i32, i32
  }
  func.func @transform_4(%arg0: i32, %arg1: i32) -> (i32, i32) {
    %c0_i32 = arith.constant 0 : i32
    %c0_i32_0 = arith.constant 0 : i32
    return %arg1, %c0_i32 : i32, i32
  }
}

module attributes {stable_mosaic.version = 11 : i64} {
  func.func @_conv_bn_relu_kernel(%arg0: i32, %arg1: i32, %arg2: memref<352x800xbf16, #tpu.memory_space<vmem>>, %arg3: memref<800x64xbf16, #tpu.memory_space<vmem>>, %arg4: memref<1x64xf32, #tpu.memory_space<vmem>>, %arg5: memref<1x64xf32, #tpu.memory_space<vmem>>, %arg6: memref<352x64xbf16, #tpu.memory_space<vmem>>, %arg7: memref<1x64xf32, #tpu.memory_space<vmem>>, %arg8: memref<1x64xf32, #tpu.memory_space<vmem>>) attributes {dimension_semantics = [#tpu.dimension_semantics<arbitrary>, #tpu.dimension_semantics<arbitrary>], iteration_bounds = array<i64: 2, 1>, scalar_prefetch = 0 : i64, scratch_operands = 2 : i64, tpu.core_type = #tpu.core_type<tc>, window_params = [{transform_indices = @transform_0, window_bounds = array<i64: 352, 800>}, {pipeline_mode = #tpu.pipeline_mode<synchronous>, transform_indices = @transform_1, window_bounds = array<i64: 800, 64>}, {pipeline_mode = #tpu.pipeline_mode<synchronous>, transform_indices = @transform_2, window_bounds = array<i64: 1, 64>}, {pipeline_mode = #tpu.pipeline_mode<synchronous>, transform_indices = @transform_3, window_bounds = array<i64: 1, 64>}, {transform_indices = @transform_4, window_bounds = array<i64: 352, 64>}]} {
    %c0 = arith.constant 0 : index
    %c0_0 = arith.constant 0 : index
    %0 = vector.load %arg2[%c0, %c0_0] : memref<352x800xbf16, #tpu.memory_space<vmem>>, vector<352x800xbf16>
    %c0_1 = arith.constant 0 : index
    %c0_2 = arith.constant 0 : index
    %1 = vector.load %arg3[%c0_1, %c0_2] : memref<800x64xbf16, #tpu.memory_space<vmem>>, vector<800x64xbf16>
    %cst = arith.constant dense<0.000000e+00> : vector<352x64xf32>
    %2 = tpu.matmul %0, %1, %cst {dimension_numbers = #tpu.dot_dimension_numbers<[1], [0], [0], [1], [0, 0, 1, 1], [], []>} : vector<352x800xbf16>, vector<800x64xbf16>, vector<352x64xf32> -> vector<352x64xf32>
    %c0_i32 = arith.constant 0 : i32
    %3 = arith.cmpi eq, %arg0, %c0_i32 : i32
    %c0_i32_3 = arith.constant 0 : i32
    %4 = arith.cmpi eq, %arg1, %c0_i32_3 : i32
    %5 = arith.andi %3, %4 : i1
    %6 = arith.extui %5 : i1 to i32
    %c0_i32_4 = arith.constant 0 : i32
    %7 = arith.cmpi ne, %6, %c0_i32_4 : i32
    scf.if %7 {
      %cst_8 = arith.constant 0.000000e+00 : f32
      %14 = vector.broadcast %cst_8 : f32 to vector<1x64xf32>
      %c0_9 = arith.constant 0 : index
      %c0_10 = arith.constant 0 : index
      %15 = vector.load %arg7[%c0_9, %c0_10] : memref<1x64xf32, #tpu.memory_space<vmem>>, vector<1x64xf32>
      tpu.vector_store %arg7[%c0_9, %c0_10], %14 {strides = array<i32>} : memref<1x64xf32, #tpu.memory_space<vmem>>, vector<1x64xf32>,
      %cst_11 = arith.constant 0.000000e+00 : f32
      %16 = vector.broadcast %cst_11 : f32 to vector<1x64xf32>
      %c0_12 = arith.constant 0 : index
      %c0_13 = arith.constant 0 : index
      %17 = vector.load %arg8[%c0_12, %c0_13] : memref<1x64xf32, #tpu.memory_space<vmem>>, vector<1x64xf32>
      tpu.vector_store %arg8[%c0_12, %c0_13], %16 {strides = array<i32>} : memref<1x64xf32, #tpu.memory_space<vmem>>, vector<1x64xf32>,
    } else {
    }
    %c0_i32_5 = arith.constant 0 : i32
    %8 = arith.cmpi eq, %arg0, %c0_i32_5 : i32
    %9 = arith.extui %8 : i1 to i32
    %c0_i32_6 = arith.constant 0 : i32
    %10 = arith.cmpi ne, %9, %c0_i32_6 : i32
    scf.if %10 {
      %c0_8 = arith.constant 0 : index
      %c0_9 = arith.constant 0 : index
      %14 = vector.load %arg7[%c0_8, %c0_9] : memref<1x64xf32, #tpu.memory_space<vmem>>, vector<1x64xf32>
      %cst_10 = arith.constant dense<0.000000e+00> : vector<64xf32>
      %15 = vector.multi_reduction <add>, %2, %cst_10 [0] : vector<352x64xf32> to vector<64xf32>
      %16 = vector.shape_cast %15 : vector<64xf32> to vector<1x64xf32>
      %17 = arith.addf %14, %16 : vector<1x64xf32>
      %c0_11 = arith.constant 0 : index
      %c0_12 = arith.constant 0 : index
      %18 = vector.load %arg7[%c0_11, %c0_12] : memref<1x64xf32, #tpu.memory_space<vmem>>, vector<1x64xf32>
      tpu.vector_store %arg7[%c0_11, %c0_12], %17 {strides = array<i32>} : memref<1x64xf32, #tpu.memory_space<vmem>>, vector<1x64xf32>,
      %c0_13 = arith.constant 0 : index
      %c0_14 = arith.constant 0 : index
      %19 = vector.load %arg8[%c0_13, %c0_14] : memref<1x64xf32, #tpu.memory_space<vmem>>, vector<1x64xf32>
      %20 = arith.mulf %2, %2 : vector<352x64xf32>
      %cst_15 = arith.constant dense<0.000000e+00> : vector<64xf32>
      %21 = vector.multi_reduction <add>, %20, %cst_15 [0] : vector<352x64xf32> to vector<64xf32>
      %22 = vector.shape_cast %21 : vector<64xf32> to vector<1x64xf32>
      %23 = arith.addf %19, %22 : vector<1x64xf32>
      %c0_16 = arith.constant 0 : index
      %c0_17 = arith.constant 0 : index
      %24 = vector.load %arg8[%c0_16, %c0_17] : memref<1x64xf32, #tpu.memory_space<vmem>>, vector<1x64xf32>
      tpu.vector_store %arg8[%c0_16, %c0_17], %23 {strides = array<i32>} : memref<1x64xf32, #tpu.memory_space<vmem>>, vector<1x64xf32>,
      %25 = arith.truncf %2 : vector<352x64xf32> to vector<352x64xbf16>
      %c0_18 = arith.constant 0 : index
      %c0_19 = arith.constant 0 : index
      %26 = vector.load %arg6[%c0_18, %c0_19] : memref<352x64xbf16, #tpu.memory_space<vmem>>, vector<352x64xbf16>
      tpu.vector_store %arg6[%c0_18, %c0_19], %25 {strides = array<i32>} : memref<352x64xbf16, #tpu.memory_space<vmem>>, vector<352x64xbf16>,
    } else {
    }
    %c1_i32 = arith.constant 1 : i32
    %11 = arith.cmpi eq, %arg0, %c1_i32 : i32
    %12 = arith.extui %11 : i1 to i32
    %c0_i32_7 = arith.constant 0 : i32
    %13 = arith.cmpi ne, %12, %c0_i32_7 : i32
    scf.if %13 {
      %c0_8 = arith.constant 0 : index
      %c0_9 = arith.constant 0 : index
      %14 = vector.load %arg7[%c0_8, %c0_9] : memref<1x64xf32, #tpu.memory_space<vmem>>, vector<1x64xf32>
      %cst_10 = arith.constant 2.958580e-03 : f32
      %15 = vector.broadcast %cst_10 : f32 to vector<1x64xf32>
      %16 = arith.mulf %14, %15 : vector<1x64xf32>
      %c0_11 = arith.constant 0 : index
      %c0_12 = arith.constant 0 : index
      %17 = vector.load %arg8[%c0_11, %c0_12] : memref<1x64xf32, #tpu.memory_space<vmem>>, vector<1x64xf32>
      %cst_13 = arith.constant 2.958580e-03 : f32
      %18 = vector.broadcast %cst_13 : f32 to vector<1x64xf32>
      %19 = arith.mulf %17, %18 : vector<1x64xf32>
      %20 = arith.mulf %16, %16 : vector<1x64xf32>
      %21 = arith.subf %19, %20 : vector<1x64xf32>
      %c0_14 = arith.constant 0 : index
      %c0_15 = arith.constant 0 : index
      %22 = vector.load %arg4[%c0_14, %c0_15] : memref<1x64xf32, #tpu.memory_space<vmem>>, vector<1x64xf32>
      %cst_16 = arith.constant 9.99999974E-6 : f32
      %23 = vector.broadcast %cst_16 : f32 to vector<1x64xf32>
      %24 = arith.addf %21, %23 : vector<1x64xf32>
      %25 = math.rsqrt %24 : vector<1x64xf32>
      %26 = arith.mulf %22, %25 : vector<1x64xf32>
      %c0_17 = arith.constant 0 : index
      %c0_18 = arith.constant 0 : index
      %27 = vector.load %arg5[%c0_17, %c0_18] : memref<1x64xf32, #tpu.memory_space<vmem>>, vector<1x64xf32>
      %28 = arith.mulf %16, %26 : vector<1x64xf32>
      %29 = arith.subf %27, %28 : vector<1x64xf32>
      %30 = vector.broadcast %26 : vector<1x64xf32> to vector<352x64xf32>
      %31 = arith.mulf %2, %30 : vector<352x64xf32>
      %32 = vector.broadcast %29 : vector<1x64xf32> to vector<352x64xf32>
      %33 = arith.addf %31, %32 : vector<352x64xf32>
      %cst_19 = arith.constant 0.000000e+00 : f32
      %34 = vector.broadcast %cst_19 : f32 to vector<352x64xf32>
      %35 = arith.maximumf %33, %34 : vector<352x64xf32>
      %36 = arith.truncf %35 : vector<352x64xf32> to vector<352x64xbf16>
      %c0_20 = arith.constant 0 : index
      %c0_21 = arith.constant 0 : index
      %37 = vector.load %arg6[%c0_20, %c0_21] : memref<352x64xbf16, #tpu.memory_space<vmem>>, vector<352x64xbf16>
      tpu.vector_store %arg6[%c0_20, %c0_21], %36 {strides = array<i32>} : memref<352x64xbf16, #tpu.memory_space<vmem>>, vector<352x64xbf16>,
    } else {
    }
    return
  }
  func.func @transform_0(%arg0: i32, %arg1: i32) -> (i32, i32) {
    %c0_i32 = arith.constant 0 : i32
    %c0_i32_0 = arith.constant 0 : i32
    return %arg1, %c0_i32 : i32, i32
  }
  func.func @transform_1(%arg0: i32, %arg1: i32) -> (i32, i32) {
    %c0_i32 = arith.constant 0 : i32
    %c0_i32_0 = arith.constant 0 : i32
    %c0_i32_1 = arith.constant 0 : i32
    return %c0_i32, %c0_i32_0 : i32, i32
  }
  func.func @transform_2(%arg0: i32, %arg1: i32) -> (i32, i32) {
    %c0_i32 = arith.constant 0 : i32
    %c0_i32_0 = arith.constant 0 : i32
    %c0_i32_1 = arith.constant 0 : i32
    return %c0_i32, %c0_i32_0 : i32, i32
  }
  func.func @transform_3(%arg0: i32, %arg1: i32) -> (i32, i32) {
    %c0_i32 = arith.constant 0 : i32
    %c0_i32_0 = arith.constant 0 : i32
    %c0_i32_1 = arith.constant 0 : i32
    return %c0_i32, %c0_i32_0 : i32, i32
  }
  func.func @transform_4(%arg0: i32, %arg1: i32) -> (i32, i32) {
    %c0_i32 = arith.constant 0 : i32
    %c0_i32_0 = arith.constant 0 : i32
    return %arg1, %c0_i32 : i32, i32
  }
}

module attributes {stable_mosaic.version = 11 : i64} {
  func.func @_conv_bn_relu_kernel(%arg0: i32, %arg1: i32, %arg2: memref<64x1600xbf16, #tpu.memory_space<vmem>>, %arg3: memref<1600x128xbf16, #tpu.memory_space<vmem>>, %arg4: memref<1x128xf32, #tpu.memory_space<vmem>>, %arg5: memref<1x128xf32, #tpu.memory_space<vmem>>, %arg6: memref<64x128xbf16, #tpu.memory_space<vmem>>, %arg7: memref<1x128xf32, #tpu.memory_space<vmem>>, %arg8: memref<1x128xf32, #tpu.memory_space<vmem>>) attributes {dimension_semantics = [#tpu.dimension_semantics<arbitrary>, #tpu.dimension_semantics<arbitrary>], iteration_bounds = array<i64: 2, 1>, scalar_prefetch = 0 : i64, scratch_operands = 2 : i64, tpu.core_type = #tpu.core_type<tc>, window_params = [{transform_indices = @transform_0, window_bounds = array<i64: 64, 1600>}, {pipeline_mode = #tpu.pipeline_mode<synchronous>, transform_indices = @transform_1, window_bounds = array<i64: 1600, 128>}, {pipeline_mode = #tpu.pipeline_mode<synchronous>, transform_indices = @transform_2, window_bounds = array<i64: 1, 128>}, {pipeline_mode = #tpu.pipeline_mode<synchronous>, transform_indices = @transform_3, window_bounds = array<i64: 1, 128>}, {transform_indices = @transform_4, window_bounds = array<i64: 64, 128>}]} {
    %c0 = arith.constant 0 : index
    %c0_0 = arith.constant 0 : index
    %0 = vector.load %arg2[%c0, %c0_0] : memref<64x1600xbf16, #tpu.memory_space<vmem>>, vector<64x1600xbf16>
    %c0_1 = arith.constant 0 : index
    %c0_2 = arith.constant 0 : index
    %1 = vector.load %arg3[%c0_1, %c0_2] : memref<1600x128xbf16, #tpu.memory_space<vmem>>, vector<1600x128xbf16>
    %cst = arith.constant dense<0.000000e+00> : vector<64x128xf32>
    %2 = tpu.matmul %0, %1, %cst {dimension_numbers = #tpu.dot_dimension_numbers<[1], [0], [0], [1], [0, 0, 1, 1], [], []>} : vector<64x1600xbf16>, vector<1600x128xbf16>, vector<64x128xf32> -> vector<64x128xf32>
    %c0_i32 = arith.constant 0 : i32
    %3 = arith.cmpi eq, %arg0, %c0_i32 : i32
    %c0_i32_3 = arith.constant 0 : i32
    %4 = arith.cmpi eq, %arg1, %c0_i32_3 : i32
    %5 = arith.andi %3, %4 : i1
    %6 = arith.extui %5 : i1 to i32
    %c0_i32_4 = arith.constant 0 : i32
    %7 = arith.cmpi ne, %6, %c0_i32_4 : i32
    scf.if %7 {
      %cst_8 = arith.constant 0.000000e+00 : f32
      %14 = vector.broadcast %cst_8 : f32 to vector<1x128xf32>
      %c0_9 = arith.constant 0 : index
      %c0_10 = arith.constant 0 : index
      %15 = vector.load %arg7[%c0_9, %c0_10] : memref<1x128xf32, #tpu.memory_space<vmem>>, vector<1x128xf32>
      tpu.vector_store %arg7[%c0_9, %c0_10], %14 {strides = array<i32>} : memref<1x128xf32, #tpu.memory_space<vmem>>, vector<1x128xf32>,
      %cst_11 = arith.constant 0.000000e+00 : f32
      %16 = vector.broadcast %cst_11 : f32 to vector<1x128xf32>
      %c0_12 = arith.constant 0 : index
      %c0_13 = arith.constant 0 : index
      %17 = vector.load %arg8[%c0_12, %c0_13] : memref<1x128xf32, #tpu.memory_space<vmem>>, vector<1x128xf32>
      tpu.vector_store %arg8[%c0_12, %c0_13], %16 {strides = array<i32>} : memref<1x128xf32, #tpu.memory_space<vmem>>, vector<1x128xf32>,
    } else {
    }
    %c0_i32_5 = arith.constant 0 : i32
    %8 = arith.cmpi eq, %arg0, %c0_i32_5 : i32
    %9 = arith.extui %8 : i1 to i32
    %c0_i32_6 = arith.constant 0 : i32
    %10 = arith.cmpi ne, %9, %c0_i32_6 : i32
    scf.if %10 {
      %c0_8 = arith.constant 0 : index
      %c0_9 = arith.constant 0 : index
      %14 = vector.load %arg7[%c0_8, %c0_9] : memref<1x128xf32, #tpu.memory_space<vmem>>, vector<1x128xf32>
      %cst_10 = arith.constant dense<0.000000e+00> : vector<128xf32>
      %15 = vector.multi_reduction <add>, %2, %cst_10 [0] : vector<64x128xf32> to vector<128xf32>
      %16 = vector.shape_cast %15 : vector<128xf32> to vector<1x128xf32>
      %17 = arith.addf %14, %16 : vector<1x128xf32>
      %c0_11 = arith.constant 0 : index
      %c0_12 = arith.constant 0 : index
      %18 = vector.load %arg7[%c0_11, %c0_12] : memref<1x128xf32, #tpu.memory_space<vmem>>, vector<1x128xf32>
      tpu.vector_store %arg7[%c0_11, %c0_12], %17 {strides = array<i32>} : memref<1x128xf32, #tpu.memory_space<vmem>>, vector<1x128xf32>,
      %c0_13 = arith.constant 0 : index
      %c0_14 = arith.constant 0 : index
      %19 = vector.load %arg8[%c0_13, %c0_14] : memref<1x128xf32, #tpu.memory_space<vmem>>, vector<1x128xf32>
      %20 = arith.mulf %2, %2 : vector<64x128xf32>
      %cst_15 = arith.constant dense<0.000000e+00> : vector<128xf32>
      %21 = vector.multi_reduction <add>, %20, %cst_15 [0] : vector<64x128xf32> to vector<128xf32>
      %22 = vector.shape_cast %21 : vector<128xf32> to vector<1x128xf32>
      %23 = arith.addf %19, %22 : vector<1x128xf32>
      %c0_16 = arith.constant 0 : index
      %c0_17 = arith.constant 0 : index
      %24 = vector.load %arg8[%c0_16, %c0_17] : memref<1x128xf32, #tpu.memory_space<vmem>>, vector<1x128xf32>
      tpu.vector_store %arg8[%c0_16, %c0_17], %23 {strides = array<i32>} : memref<1x128xf32, #tpu.memory_space<vmem>>, vector<1x128xf32>,
      %25 = arith.truncf %2 : vector<64x128xf32> to vector<64x128xbf16>
      %c0_18 = arith.constant 0 : index
      %c0_19 = arith.constant 0 : index
      %26 = vector.load %arg6[%c0_18, %c0_19] : memref<64x128xbf16, #tpu.memory_space<vmem>>, vector<64x128xbf16>
      tpu.vector_store %arg6[%c0_18, %c0_19], %25 {strides = array<i32>} : memref<64x128xbf16, #tpu.memory_space<vmem>>, vector<64x128xbf16>,
    } else {
    }
    %c1_i32 = arith.constant 1 : i32
    %11 = arith.cmpi eq, %arg0, %c1_i32 : i32
    %12 = arith.extui %11 : i1 to i32
    %c0_i32_7 = arith.constant 0 : i32
    %13 = arith.cmpi ne, %12, %c0_i32_7 : i32
    scf.if %13 {
      %c0_8 = arith.constant 0 : index
      %c0_9 = arith.constant 0 : index
      %14 = vector.load %arg7[%c0_8, %c0_9] : memref<1x128xf32, #tpu.memory_space<vmem>>, vector<1x128xf32>
      %cst_10 = arith.constant 2.000000e-02 : f32
      %15 = vector.broadcast %cst_10 : f32 to vector<1x128xf32>
      %16 = arith.mulf %14, %15 : vector<1x128xf32>
      %c0_11 = arith.constant 0 : index
      %c0_12 = arith.constant 0 : index
      %17 = vector.load %arg8[%c0_11, %c0_12] : memref<1x128xf32, #tpu.memory_space<vmem>>, vector<1x128xf32>
      %cst_13 = arith.constant 2.000000e-02 : f32
      %18 = vector.broadcast %cst_13 : f32 to vector<1x128xf32>
      %19 = arith.mulf %17, %18 : vector<1x128xf32>
      %20 = arith.mulf %16, %16 : vector<1x128xf32>
      %21 = arith.subf %19, %20 : vector<1x128xf32>
      %c0_14 = arith.constant 0 : index
      %c0_15 = arith.constant 0 : index
      %22 = vector.load %arg4[%c0_14, %c0_15] : memref<1x128xf32, #tpu.memory_space<vmem>>, vector<1x128xf32>
      %cst_16 = arith.constant 9.99999974E-6 : f32
      %23 = vector.broadcast %cst_16 : f32 to vector<1x128xf32>
      %24 = arith.addf %21, %23 : vector<1x128xf32>
      %25 = math.rsqrt %24 : vector<1x128xf32>
      %26 = arith.mulf %22, %25 : vector<1x128xf32>
      %c0_17 = arith.constant 0 : index
      %c0_18 = arith.constant 0 : index
      %27 = vector.load %arg5[%c0_17, %c0_18] : memref<1x128xf32, #tpu.memory_space<vmem>>, vector<1x128xf32>
      %28 = arith.mulf %16, %26 : vector<1x128xf32>
      %29 = arith.subf %27, %28 : vector<1x128xf32>
      %30 = vector.broadcast %26 : vector<1x128xf32> to vector<64x128xf32>
      %31 = arith.mulf %2, %30 : vector<64x128xf32>
      %32 = vector.broadcast %29 : vector<1x128xf32> to vector<64x128xf32>
      %33 = arith.addf %31, %32 : vector<64x128xf32>
      %cst_19 = arith.constant 0.000000e+00 : f32
      %34 = vector.broadcast %cst_19 : f32 to vector<64x128xf32>
      %35 = arith.maximumf %33, %34 : vector<64x128xf32>
      %36 = arith.truncf %35 : vector<64x128xf32> to vector<64x128xbf16>
      %c0_20 = arith.constant 0 : index
      %c0_21 = arith.constant 0 : index
      %37 = vector.load %arg6[%c0_20, %c0_21] : memref<64x128xbf16, #tpu.memory_space<vmem>>, vector<64x128xbf16>
      tpu.vector_store %arg6[%c0_20, %c0_21], %36 {strides = array<i32>} : memref<64x128xbf16, #tpu.memory_space<vmem>>, vector<64x128xbf16>,
    } else {
    }
    return
  }
  func.func @transform_0(%arg0: i32, %arg1: i32) -> (i32, i32) {
    %c0_i32 = arith.constant 0 : i32
    %c0_i32_0 = arith.constant 0 : i32
    return %arg1, %c0_i32 : i32, i32
  }
  func.func @transform_1(%arg0: i32, %arg1: i32) -> (i32, i32) {
    %c0_i32 = arith.constant 0 : i32
    %c0_i32_0 = arith.constant 0 : i32
    %c0_i32_1 = arith.constant 0 : i32
    return %c0_i32, %c0_i32_0 : i32, i32
  }
  func.func @transform_2(%arg0: i32, %arg1: i32) -> (i32, i32) {
    %c0_i32 = arith.constant 0 : i32
    %c0_i32_0 = arith.constant 0 : i32
    %c0_i32_1 = arith.constant 0 : i32
    return %c0_i32, %c0_i32_0 : i32, i32
  }
  func.func @transform_3(%arg0: i32, %arg1: i32) -> (i32, i32) {
    %c0_i32 = arith.constant 0 : i32
    %c0_i32_0 = arith.constant 0 : i32
    %c0_i32_1 = arith.constant 0 : i32
    return %c0_i32, %c0_i32_0 : i32, i32
  }
  func.func @transform_4(%arg0: i32, %arg1: i32) -> (i32, i32) {
    %c0_i32 = arith.constant 0 : i32
    %c0_i32_0 = arith.constant 0 : i32
    return %arg1, %c0_i32 : i32, i32
  }
}

module attributes {stable_mosaic.version = 11 : i64} {
  func.func @_head_kernel(%arg0: memref<2x3200xbf16, #tpu.memory_space<vmem>>, %arg1: memref<2x1xf32, #tpu.memory_space<vmem>>, %arg2: memref<2x1xf32, #tpu.memory_space<vmem>>, %arg3: memref<3200x128xbf16, #tpu.memory_space<vmem>>, %arg4: memref<1x128xf32, #tpu.memory_space<vmem>>, %arg5: memref<1x128xf32, #tpu.memory_space<vmem>>, %arg6: memref<1x128xf32, #tpu.memory_space<vmem>>, %arg7: memref<128x2xf32, #tpu.memory_space<vmem>>, %arg8: memref<1x2xf32, #tpu.memory_space<vmem>>, %arg9: memref<2x2xf32, #tpu.memory_space<vmem>>) attributes {dimension_semantics = [], scalar_prefetch = 0 : i64, scratch_operands = 0 : i64, tpu.core_type = #tpu.core_type<tc>} {
    %c0 = arith.constant 0 : index
    %c0_0 = arith.constant 0 : index
    %0 = vector.load %arg0[%c0, %c0_0] : memref<2x3200xbf16, #tpu.memory_space<vmem>>, vector<2x3200xbf16>
    %c0_1 = arith.constant 0 : index
    %c0_2 = arith.constant 0 : index
    %1 = vector.load %arg3[%c0_1, %c0_2] : memref<3200x128xbf16, #tpu.memory_space<vmem>>, vector<3200x128xbf16>
    %cst = arith.constant dense<0.000000e+00> : vector<2x128xf32>
    %2 = tpu.matmul %0, %1, %cst {dimension_numbers = #tpu.dot_dimension_numbers<[1], [0], [0], [1], [0, 0, 1, 1], [], []>} : vector<2x3200xbf16>, vector<3200x128xbf16>, vector<2x128xf32> -> vector<2x128xf32>
    %c0_3 = arith.constant 0 : index
    %c0_4 = arith.constant 0 : index
    %3 = vector.load %arg4[%c0_3, %c0_4] : memref<1x128xf32, #tpu.memory_space<vmem>>, vector<1x128xf32>
    %4 = vector.broadcast %3 : vector<1x128xf32> to vector<2x128xf32>
    %5 = arith.addf %2, %4 : vector<2x128xf32>
    %c0_5 = arith.constant 0 : index
    %c0_6 = arith.constant 0 : index
    %6 = vector.load %arg1[%c0_5, %c0_6] : memref<2x1xf32, #tpu.memory_space<vmem>>, vector<2x1xf32>
    %c0_7 = arith.constant 0 : index
    %c0_8 = arith.constant 0 : index
    %7 = vector.load %arg5[%c0_7, %c0_8] : memref<1x128xf32, #tpu.memory_space<vmem>>, vector<1x128xf32>
    %8 = vector.broadcast %6 : vector<2x1xf32> to vector<2x128xf32>
    %9 = vector.broadcast %7 : vector<1x128xf32> to vector<2x128xf32>
    %10 = arith.mulf %8, %9 : vector<2x128xf32>
    %11 = arith.addf %5, %10 : vector<2x128xf32>
    %c0_9 = arith.constant 0 : index
    %c0_10 = arith.constant 0 : index
    %12 = vector.load %arg2[%c0_9, %c0_10] : memref<2x1xf32, #tpu.memory_space<vmem>>, vector<2x1xf32>
    %c0_11 = arith.constant 0 : index
    %c0_12 = arith.constant 0 : index
    %13 = vector.load %arg6[%c0_11, %c0_12] : memref<1x128xf32, #tpu.memory_space<vmem>>, vector<1x128xf32>
    %14 = vector.broadcast %12 : vector<2x1xf32> to vector<2x128xf32>
    %15 = vector.broadcast %13 : vector<1x128xf32> to vector<2x128xf32>
    %16 = arith.mulf %14, %15 : vector<2x128xf32>
    %17 = arith.addf %11, %16 : vector<2x128xf32>
    %cst_13 = arith.constant 0.000000e+00 : f32
    %18 = vector.broadcast %cst_13 : f32 to vector<2x128xf32>
    %19 = arith.maximumf %17, %18 : vector<2x128xf32>
    %c0_14 = arith.constant 0 : index
    %c0_15 = arith.constant 0 : index
    %20 = vector.load %arg7[%c0_14, %c0_15] : memref<128x2xf32, #tpu.memory_space<vmem>>, vector<128x2xf32>
    %cst_16 = arith.constant dense<0.000000e+00> : vector<2x2xf32>
    %21 = tpu.matmul %19, %20, %cst_16 {dimension_numbers = #tpu.dot_dimension_numbers<[1], [0], [0], [1], [0, 0, 1, 1], [], []>} : vector<2x128xf32>, vector<128x2xf32>, vector<2x2xf32> -> vector<2x2xf32>
    %c0_17 = arith.constant 0 : index
    %c0_18 = arith.constant 0 : index
    %22 = vector.load %arg8[%c0_17, %c0_18] : memref<1x2xf32, #tpu.memory_space<vmem>>, vector<1x2xf32>
    %23 = vector.broadcast %22 : vector<1x2xf32> to vector<2x2xf32>
    %24 = arith.addf %21, %23 : vector<2x2xf32>
    %c0_19 = arith.constant 0 : index
    %c0_20 = arith.constant 0 : index
    %25 = vector.load %arg9[%c0_19, %c0_20] : memref<2x2xf32, #tpu.memory_space<vmem>>, vector<2x2xf32>
    tpu.vector_store %arg9[%c0_19, %c0_20], %24 {strides = array<i32>} : memref<2x2xf32, #tpu.memory_space<vmem>>, vector<2x2xf32>,
    return
  }
}

</mosaic_0001>

<bundles_post_ra>
// kernel: critic_exp_forward.4
= control target key start
LH: loop header
LB: loop body
LE: loop exit
PB: predicated region body
PF: predicated region fallthrough
CT: control target
= control target key end

     0   :  { %s2758_s15 = smov 0   ;;  %s2760_s16 = smov 0   ;;  %s4012_s0 = inlined_call_operand.vmem [shape: bf16[2048,75], index: 0, kind: input, shape index: {}]   ;;  %s4013_s1 = inlined_call_operand.vmem [shape: bf16[75,32], index: 1, kind: input, shape index: {}]   ;;  %s4014_s2 = inlined_call_operand.vmem [shape: f32[1,32], index: 2, kind: input, shape index: {}]   ;;  %s4015_s3 = inlined_call_operand.vmem [shape: f32[1,32], index: 3, kind: input, shape index: {}]   ;;  %s4016_s4 = inlined_call_operand.vmem [shape: bf16[2048,32], index: 4, kind: output, shape index: {}]  }
   0x1   :  { %s2762_s17 = smov 0   ;;  %s2764_s18 = smov 0  }
   0x2   :  { %s2766_s19 = smov 0  }
   0x3 LB: > { %s23_s20 = sadd.s32 1, %s2721_s17  ;;  %s26_s21 = sadd.s32 1, %s2725_s18  ;;  %s2729_s19 = sphi %s2766_s19, %s14_s19   ;;  %s2725_s18 = sphi %s2764_s18, %s4250_s18   ;;  %s2721_s17 = sphi %s2762_s17, %s4249_s17   ;;  %s2717_s16 = sphi %s2760_s16, %s4248_s16   ;;  %s2713_s15 = sphi %s2758_s15, %s4247_s15  }
   0x4   : > { %p24_p0 = scmp.ge.s32.totalorder %s23_s20, 4  ;;  %p2155_p1 = scmp.ge.s32.totalorder %s2729_s19, 1 }
   0x5   : > { %p175_p2 = scmp.lt.s32.totalorder %s2729_s19, 9 }
   0x6   : > { %s4252_s20 = smov (%p24_p0, %s23_s20), 0  ;;  %s4254_s21 = smov (!%p24_p0, %s26_s21), %s2725_s18 }
   0x7   : > { %p176_p3 = pnand %p2155_p1, %p175_p2  ;;  %p28_p4 = scmp.ge.s32.totalorder %s4254_s21, 2 }
   0x9   : > { %s4256_s21 = smov (%p28_p4, %s4254_s21), 0  ;;  %179 = sbr.rel (%p176_p3) target bundleno = 591 (0x24f), region = 36 }
   0xe   : > { %v2652_v0 = vld [vmem:[%s4013_s1 + $0x20] sm:$0x3f]   ;;  %vm574_vm0 = vcmask 1044480   ;;  %vm575_vm1 = vcmask 1045504   ;;  %v2731_v1 = vmov 65535   ;;  %v2653_v4 = vld [vmem:[%s4013_s1 + $0x18] sm:$0xff]  }
   0xf   : > { %v576_v2 = vsel %vm574_vm0, 4294967295, %v2731_v1  ;;  %s2156_s26 = sshll.u32 %s2713_s15, 6  ;;  %v2654_v6 = vld [vmem:[%s4013_s1 + $0x10] sm:$0xff]   ;;  %v2655_v7 = vld [vmem:[%s4013_s1 + $0x8] sm:$0xff]   ;;  %vm477_vm2 = vcmask 613376   ;;  %v2656_v10 = vld [vmem:[%s4013_s1] sm:$0xff]  }
  0x10   : > { %v577_v3 = vsel %vm575_vm1, %v576_v2, 0  ;;  %p202_p5 = scmp.lt.s32.totalorder %s2156_s26, 255  ;;  %p870_p6 = scmp.eq.s32.totalorder %s2717_s16, 0 }
  0x11   : > { %v579_v5 = vand.u32 %v2652_v0, %v577_v3  ;;  %p871_p7 = scmp.eq.s32.totalorder %s2713_s15, 0 }
  0x12   : > { %s4258_s26 = smov (!%p202_p5, %s2156_s26), 255 }
  0x13   : > { %2526 = vmatprep.subr.bf16.mxu0 %v579_v5  ;;  %2600 = vmatprep.subr.bf16.mxu1 %v579_v5  ;;  %s2157_s29 = sshll.u32 %s4258_s26, 2  ;;  %p2884_p8 = pnand %p871_p7, %p870_p6 }
  0x14   : > { %2527 = vmatpush3.bf16.msra.mxu0 %v579_v5  ;;  %2605 = vmatpush3.bf16.msra.mxu1 %v579_v5  ;;  %s2808_s8 = scalar_lea.vmem %s4012_s0, %s2157_s29  ;;  %s2813_s11 = scalar_lea.vmem %s4016_s4, %s2157_s29 }
  0x15   : > { %2528 = vmatprep.subr.bf16.mxu0 %v2653_v4  ;;  %2601 = vmatprep.subr.bf16.mxu1 %v2653_v4  ;;  %v2657_v8 = vld [vmem:[%s2808_s8] sm:$0xff]   ;;  %v2659_v11 = vld [vmem:[%s2808_s8 + $0x8] sm:$0xff]   ;;  %v2661_v13 = vld [vmem:[%s2808_s8 + $0x10] sm:$0xff]  }
  0x16   : > { %v2658_v9 = vld [vmem:[%s2808_s8 + $0x80] sm:$0xff]   ;;  %2536 = vmatprep.mubr.msk.bf16.mxu0 %vm477_vm2, %v2657_v8  ;;  %v2660_v12 = vld [vmem:[%s2808_s8 + $0x88] sm:$0xff]   ;;  %v2662_v14 = vld [vmem:[%s2808_s8 + $0x90] sm:$0xff]  }
  0x17   : > { %2568 = vmatprep.mubr.msk.bf16.mxu1 %vm477_vm2, %v2658_v9  ;;  %v2663_v15 = vld [vmem:[%s2808_s8 + $0x18] sm:$0xff]   ;;  %v2665_v17 = vld [vmem:[%s2808_s8 + $0x20] sm:$0xff]   ;;  %v2667_v19 = vld [vmem:[%s2808_s8 + $0x28] sm:$0xff]  }
  0x18   : > { %2529 = vmatpush3.bf16.msra.mxu0 %v2653_v4  ;;  %2606 = vmatpush3.bf16.msra.mxu1 %v2653_v4  ;;  %v2664_v16 = vld [vmem:[%s2808_s8 + $0x98] sm:$0xff]   ;;  %v2666_v18 = vld [vmem:[%s2808_s8 + $0xa0] sm:$0xff]   ;;  %v2668_v20 = vld [vmem:[%s2808_s8 + $0xa8] sm:$0xff]  }
  0x19   : > { %2530 = vmatprep.subr.bf16.mxu0 %v2654_v6  ;;  %2602 = vmatprep.subr.bf16.mxu1 %v2654_v6  ;;  %v2669_v21 = vld [vmem:[%s2808_s8 + $0x30] sm:$0xff]   ;;  %v2671_v23 = vld [vmem:[%s2808_s8 + $0x38] sm:$0xff]   ;;  %v2673_v25 = vld [vmem:[%s2808_s8 + $0x40] sm:$0xff]  }
  0x1a   : > { %v2670_v22 = vld [vmem:[%s2808_s8 + $0xb0] sm:$0xff]   ;;  %v2672_v24 = vld [vmem:[%s2808_s8 + $0xb8] sm:$0xff]   ;;  %v2674_v26 = vld [vmem:[%s2808_s8 + $0xc0] sm:$0xff]  }
  0x1b   : > { %v2675_v27 = vld [vmem:[%s2808_s8 + $0x48] sm:$0xff]   ;;  %v2677_v29 = vld [vmem:[%s2808_s8 + $0x50] sm:$0xff]   ;;  %v2679_v31 = vld [vmem:[%s2808_s8 + $0x58] sm:$0xff]  }
  0x1c   : > { %2531 = vmatpush3.bf16.msra.mxu0 %v2654_v6  ;;  %2607 = vmatpush3.bf16.msra.mxu1 %v2654_v6  ;;  %v2676_v28 = vld [vmem:[%s2808_s8 + $0xc8] sm:$0xff]   ;;  %v2678_v30 = vld [vmem:[%s2808_s8 + $0xd0] sm:$0xff]   ;;  %v2680_v32 = vld [vmem:[%s2808_s8 + $0xd8] sm:$0xff]  }
  0x1d   : > { %2532 = vmatprep.subr.bf16.mxu0 %v2655_v7  ;;  %2603 = vmatprep.subr.bf16.mxu1 %v2655_v7  ;;  %v2681_v33 = vld [vmem:[%s2808_s8 + $0x60] sm:$0xff]   ;;  %v2683_v35 = vld [vmem:[%s2808_s8 + $0x68] sm:$0xff]   ;;  %v2685_v37 = vld [vmem:[%s2808_s8 + $0x70] sm:$0xff]  }
  0x1e   : > { %v2682_v34 = vld [vmem:[%s2808_s8 + $0xe0] sm:$0xff]   ;;  %v2684_v36 = vld [vmem:[%s2808_s8 + $0xe8] sm:$0xff]   ;;  %v2686_v38 = vld [vmem:[%s2808_s8 + $0xf0] sm:$0xff]  }
  0x1f   : > { %v2687_v39 = vld [vmem:[%s2808_s8 + $0x78] sm:$0xff]  }
  0x20   : > { %2533 = vmatpush3.bf16.msra.mxu0 %v2655_v7  ;;  %2608 = vmatpush3.bf16.msra.mxu1 %v2655_v7  ;;  %v2688_v40 = vld [vmem:[%s2808_s8 + $0xf8] sm:$0xff]  }
  0x21   : > { %2534 = vmatprep.subr.bf16.mxu0 %v2656_v10  ;;  %2604 = vmatprep.subr.bf16.mxu1 %v2656_v10 }
  0x24   : > { %2535 = vmatpush3.bf16.msra.mxu0 %v2656_v10  ;;  %2609 = vmatpush3.bf16.msra.mxu1 %v2656_v10 }
  0x27   : > { %2537 = vmatmul.mubr.msk.bf16.vlgmr.msra.gmra.mxu0 %vm477_vm2, %v2659_v11  ;;  %2569 = vmatmul.mubr.msk.bf16.vlgmr.msra.gmra.mxu1 %vm477_vm2, %v2660_v12 }
  0x28   : > { %2540 = vmatprep.mubr.msk.bf16.mxu0 %vm477_vm2, %v2661_v13  ;;  %2572 = vmatprep.mubr.msk.bf16.mxu1 %vm477_vm2, %v2662_v14 }
  0x2f   : > { %2541 = vmatmul.mubr.msk.bf16.gmra.mxu0 %vm477_vm2, %v2663_v15  ;;  %2573 = vmatmul.mubr.msk.bf16.gmra.mxu1 %vm477_vm2, %v2664_v16 }
  0x30   : > { %2544 = vmatprep.mubr.msk.bf16.mxu0 %vm477_vm2, %v2665_v17  ;;  %2576 = vmatprep.mubr.msk.bf16.mxu1 %vm477_vm2, %v2666_v18 }
  0x37   : > { %2545 = vmatmul.mubr.msk.bf16.gmra.mxu0 %vm477_vm2, %v2667_v19  ;;  %2577 = vmatmul.mubr.msk.bf16.gmra.mxu1 %vm477_vm2, %v2668_v20 }
  0x38   : > { %2548 = vmatprep.mubr.msk.bf16.mxu0 %vm477_vm2, %v2669_v21  ;;  %2580 = vmatprep.mubr.msk.bf16.mxu1 %vm477_vm2, %v2670_v22 }
  0x3f   : > { %2549 = vmatmul.mubr.msk.bf16.gmra.mxu0 %vm477_vm2, %v2671_v23  ;;  %2581 = vmatmul.mubr.msk.bf16.gmra.mxu1 %vm477_vm2, %v2672_v24 }
  0x40   : > { %2552 = vmatprep.mubr.msk.bf16.mxu0 %vm477_vm2, %v2673_v25  ;;  %2584 = vmatprep.mubr.msk.bf16.mxu1 %vm477_vm2, %v2674_v26 }
  0x47   : > { %2553 = vmatmul.mubr.msk.bf16.gmra.mxu0 %vm477_vm2, %v2675_v27  ;;  %2585 = vmatmul.mubr.msk.bf16.gmra.mxu1 %vm477_vm2, %v2676_v28 }
  0x48   : > { %2556 = vmatprep.mubr.msk.bf16.mxu0 %vm477_vm2, %v2677_v29  ;;  %2588 = vmatprep.mubr.msk.bf16.mxu1 %vm477_vm2, %v2678_v30 }
  0x4f   : > { %2557 = vmatmul.mubr.msk.bf16.gmra.mxu0 %vm477_vm2, %v2679_v31  ;;  %2589 = vmatmul.mubr.msk.bf16.gmra.mxu1 %vm477_vm2, %v2680_v32 }
  0x50   : > { %2560 = vmatprep.mubr.msk.bf16.mxu0 %vm477_vm2, %v2681_v33  ;;  %2592 = vmatprep.mubr.msk.bf16.mxu1 %vm477_vm2, %v2682_v34 }
  0x57   : > { %2561 = vmatmul.mubr.msk.bf16.gmra.mxu0 %vm477_vm2, %v2683_v35  ;;  %2593 = vmatmul.mubr.msk.bf16.gmra.mxu1 %vm477_vm2, %v2684_v36 }
  0x58   : > { %2564 = vmatprep.mubr.msk.bf16.mxu0 %vm477_vm2, %v2685_v37  ;;  %2596 = vmatprep.mubr.msk.bf16.mxu1 %vm477_vm2, %v2686_v38 }
  0x5f   : > { %2565 = vmatmul.mubr.msk.bf16.gmra.mxu0 %vm477_vm2, %v2687_v39  ;;  %2597 = vmatmul.mubr.msk.bf16.gmra.mxu1 %vm477_vm2, %v2688_v40 }
  0xe7   : > { %v2888_v41 = vpop.f32.mrf.mxu0  ;;  %v2890_v42 = vpop.f32.mrf.mxu1 }
  0xe8   : > { %4084 = vst [vmem:[#allocation4_spill] sm:$0xff] %v2890_v42 }
  0xe9   : > { %v2892_v43 = vpop.f32.mrf.mxu0  ;;  %v2894_v44 = vpop.f32.mrf.mxu1 }
  0xea   : > { %4085 = vst [vmem:[#allocation5_spill] sm:$0xff] %v2894_v44 }
  0xeb   : > { %v2896_v45 = vpop.f32.mrf.mxu0  ;;  %v2898_v46 = vpop.f32.mrf.mxu1 }
  0xec   : > { %4086 = vst [vmem:[#allocation6_spill] sm:$0xff] %v2898_v46 }
  0xed   : > { %v2900_v47 = vpop.f32.mrf.mxu0  ;;  %v2902_v48 = vpop.f32.mrf.mxu1 }
  0xee   : > { %4087 = vst [vmem:[#allocation7_spill] sm:$0xff] %v2902_v48 }
  0xef   : > { %v2904_v49 = vpop.f32.mrf.mxu0  ;;  %v2906_v50 = vpop.f32.mrf.mxu1 }
  0xf0   : > { %4088 = vst [vmem:[#allocation8_spill] sm:$0xff] %v2906_v50 }
  0xf1   : > { %v2908_v51 = vpop.f32.mrf.mxu0  ;;  %v2910_v52 = vpop.f32.mrf.mxu1 }
  0xf2   : > { %4089 = vst [vmem:[#allocation9_spill] sm:$0xff] %v2910_v52 }
  0xf3   : > { %v2912_v53 = vpop.f32.mrf.mxu0  ;;  %v2914_v54 = vpop.f32.mrf.mxu1 }
  0xf4   : > { %4090 = vst [vmem:[#allocation10_spill] sm:$0xff] %v2914_v54 }
  0xf5   : > { %v2916_v55 = vpop.f32.mrf.mxu0  ;;  %v2918_v56 = vpop.f32.mrf.mxu1 }
  0xf6   : > { %4091 = vst [vmem:[#allocation11_spill] sm:$0xff] %v2918_v56 }
  0xf7   : > { %v2920_v57 = vpop.f32.mrf.mxu0  ;;  %v2922_v58 = vpop.f32.mrf.mxu1 }
  0xf8   : > { %4092 = vst [vmem:[#allocation12_spill] sm:$0xff] %v2920_v57  ;;  %4093 = vst [vmem:[#allocation13_spill] sm:$0xff] %v2922_v58 }
  0xf9   : > { %v2924_v59 = vpop.f32.mrf.mxu0  ;;  %v2926_v60 = vpop.f32.mrf.mxu1 }
  0xfa   : > { %4094 = vst [vmem:[#allocation14_spill] sm:$0xff] %v2926_v60 }
  0xfb   : > { %v2928_v61 = vpop.f32.mrf.mxu0  ;;  %v2930_v62 = vpop.f32.mrf.mxu1 }
  0xfc   : > { %4095 = vst [vmem:[#allocation15_spill] sm:$0xff] %v2928_v61  ;;  %4096 = vst [vmem:[#allocation16_spill] sm:$0xff] %v2930_v62 }
  0xfd   : > { %v2932_v63 = vpop.f32.mrf.mxu0  ;;  %v2934_v0 = vpop.f32.mrf.mxu1 }
  0xfe   : > { %4097 = vst [vmem:[#allocation17_spill] sm:$0xff] %v2932_v63  ;;  %4098 = vst [vmem:[#allocation18_spill] sm:$0xff] %v2934_v0 }
  0xff   : > { %v2936_v1 = vpop.f32.mrf.mxu0  ;;  %v2938_v2 = vpop.f32.mrf.mxu1 }
 0x100   : > { %4099 = vst [vmem:[#allocation19_spill] sm:$0xff] %v2936_v1  ;;  %4100 = vst [vmem:[#allocation20_spill] sm:$0xff] %v2938_v2 }
 0x101   : > { %v2940_v3 = vpop.f32.mrf.mxu0  ;;  %v2942_v4 = vpop.f32.mrf.mxu1 }
 0x102   : > { %4101 = vst [vmem:[#allocation21_spill] sm:$0xff] %v2940_v3  ;;  %4102 = vst [vmem:[#allocation22_spill] sm:$0xff] %v2942_v4 }
 0x103   : > { %v2944_v5 = vpop.f32.mrf.mxu0  ;;  %v2946_v6 = vpop.f32.mrf.mxu1 }
 0x104   : > { %4103 = vst [vmem:[#allocation23_spill] sm:$0xff] %v2944_v5  ;;  %4104 = vst [vmem:[#allocation24_spill] sm:$0xff] %v2946_v6 }
 0x105   : > { %v2948_v7 = vpop.f32.mrf.mxu0  ;;  %v2950_v8 = vpop.f32.mrf.mxu1 }
 0x106   : > { %4105 = vst [vmem:[#allocation25_spill] sm:$0xff] %v2948_v7  ;;  %4106 = vst [vmem:[#allocation26_spill] sm:$0xff] %v2950_v8 }
 0x107   : > { %v2952_v9 = vpop.f32.mrf.mxu0  ;;  %v2954_v10 = vpop.f32.mrf.mxu1 }
 0x108   : > { %4107 = vst [vmem:[#allocation27_spill] sm:$0xff] %v2952_v9  ;;  %4108 = vst [vmem:[#allocation28_spill] sm:$0xff] %v2954_v10 }
 0x109   : > { %v2956_v11 = vpop.f32.mrf.mxu0  ;;  %v2958_v12 = vpop.f32.mrf.mxu1 }
 0x10a   : > { %4109 = vst [vmem:[#allocation29_spill] sm:$0xff] %v2956_v11  ;;  %4110 = vst [vmem:[#allocation30_spill] sm:$0xff] %v2958_v12 }
 0x10b   : > { %v2960_v13 = vpop.f32.mrf.mxu0  ;;  %v2962_v14 = vpop.f32.mrf.mxu1 }
 0x10c   : > { %4111 = vst [vmem:[#allocation31_spill] sm:$0xff] %v2960_v13  ;;  %4112 = vst [vmem:[#allocation32_spill] sm:$0xff] %v2962_v14 }
 0x10d   : > { %v2964_v15 = vpop.f32.mrf.mxu0  ;;  %v2966_v16 = vpop.f32.mrf.mxu1 }
 0x10e   : > { %4113 = vst [vmem:[#allocation33_spill] sm:$0xff] %v2964_v15  ;;  %4114 = vst [vmem:[#allocation34_spill] sm:$0xff] %v2966_v16 }
 0x10f   : > { %v2968_v17 = vpop.f32.mrf.mxu0  ;;  %v2970_v18 = vpop.f32.mrf.mxu1 }
 0x110   : > { %4115 = vst [vmem:[#allocation35_spill] sm:$0xff] %v2968_v17  ;;  %4116 = vst [vmem:[#allocation36_spill] sm:$0xff] %v2970_v18 }
 0x111   : > { %v2972_v19 = vpop.f32.mrf.mxu0  ;;  %v2974_v20 = vpop.f32.mrf.mxu1 }
 0x112   : > { %4117 = vst [vmem:[#allocation37_spill] sm:$0xff] %v2972_v19  ;;  %4118 = vst [vmem:[#allocation38_spill] sm:$0xff] %v2974_v20 }
 0x113   : > { %v2976_v21 = vpop.f32.mrf.mxu0  ;;  %v2978_v22 = vpop.f32.mrf.mxu1 }
 0x114   : > { %4119 = vst [vmem:[#allocation39_spill] sm:$0xff] %v2976_v21  ;;  %4120 = vst [vmem:[#allocation40_spill] sm:$0xff] %v2978_v22 }
 0x115   : > { %v2980_v23 = vpop.f32.mrf.mxu0  ;;  %v2982_v24 = vpop.f32.mrf.mxu1 }
 0x116   : > { %4121 = vst [vmem:[#allocation41_spill] sm:$0xff] %v2980_v23  ;;  %4122 = vst [vmem:[#allocation42_spill] sm:$0xff] %v2982_v24 }
 0x117   : > { %v2984_v25 = vpop.f32.mrf.mxu0  ;;  %v2986_v26 = vpop.f32.mrf.mxu1 }
 0x118   : > { %4123 = vst [vmem:[#allocation43_spill] sm:$0xff] %v2984_v25  ;;  %4124 = vst [vmem:[#allocation44_spill] sm:$0xff] %v2986_v26 }
 0x119   : > { %v2988_v27 = vpop.f32.mrf.mxu0  ;;  %v2990_v28 = vpop.f32.mrf.mxu1 }
 0x11a   : > { %4125 = vst [vmem:[#allocation45_spill] sm:$0xff] %v2988_v27  ;;  %4126 = vst [vmem:[#allocation46_spill] sm:$0xff] %v2990_v28 }
 0x11b   : > { %v2992_v29 = vpop.f32.mrf.mxu0  ;;  %v2994_v30 = vpop.f32.mrf.mxu1 }
 0x11c   : > { %4127 = vst [vmem:[#allocation47_spill] sm:$0xff] %v2994_v30 }
 0x11d   : > { %v2996_v31 = vpop.f32.mrf.mxu0  ;;  %v2998_v32 = vpop.f32.mrf.mxu1 }
 0x11e   : > { %4128 = vst [vmem:[#allocation48_spill] sm:$0xff] %v2996_v31  ;;  %4129 = vst [vmem:[#allocation49_spill] sm:$0xff] %v2998_v32 }
 0x11f   : > { %v3000_v33 = vpop.f32.mrf.mxu0  ;;  %v3002_v34 = vpop.f32.mrf.mxu1 }
 0x120   : > { %4130 = vst [vmem:[#allocation50_spill] sm:$0xff] %v3000_v33  ;;  %4131 = vst [vmem:[#allocation51_spill] sm:$0xff] %v3002_v34 }
 0x121   : > { %v3004_v35 = vpop.f32.mrf.mxu0  ;;  %v3006_v36 = vpop.f32.mrf.mxu1 }
 0x122   : > { %4132 = vst [vmem:[#allocation52_spill] sm:$0xff] %v3006_v36  ;;  %875 = sbr.rel (%p2884_p8) target bundleno = 297 (0x129), region = 40 }
 0x123   : > { %v3008_v37 = vpop.f32.mrf.mxu0  ;;  %v3010_v38 = vpop.f32.mrf.mxu1 }
 0x124   : > { %4133 = vst [vmem:[#allocation53_spill] sm:$0xff] %v3008_v37  ;;  %4134 = vst [vmem:[#allocation54_spill] sm:$0xff] %v3010_v38 }
 0x125   : > { %v3012_v39 = vpop.f32.mrf.mxu0  ;;  %v3014_v40 = vpop.f32.mrf.mxu1 }
 0x126   : > { %4135 = vst [vmem:[#allocation55_spill] sm:$0xff] %v3012_v39  ;;  %4136 = vst [vmem:[#allocation56_spill] sm:$0xff] %v3014_v40 }
 0x127   : > { %vm876_vm3 = vcmask 253952   ;;  %v2732_v30 = vmov 0.0  }
 0x128   : > { %877 = vst.msk [vmem:[#allocation2] sm:$0x1] %vm876_vm3, %v2732_v30  ;;  %878 = vst.msk [vmem:[#allocation3] sm:$0x1] %vm876_vm3, %v2732_v30 }
 0x129 PF: > { %p2229_p9 = scmp.ne.s32.totalorder %s2717_s16, 0 }
 0x12b   : > { %881 = sbr.rel (%p2229_p9) target bundleno = 484 (0x1e4), region = 44 }
 0x130   : > { %vm883_vm4 = vcmask 261120   ;;  %v1025_v10 = vmul.f32 %v2908_v51, %v2908_v51  ;;  %v1027_v62 = vmul.f32 %v2904_v49, %v2904_v49  ;;  %vm1476_vm5 = vcmask 257024  }
 0x131   : > { %v884_v34 = vsel %vm883_vm4, %v2892_v43, 0.0  ;;  %v885_v38 = vsel %vm883_vm4, %v2900_v47, 0.0  ;;  %v887_v40 = vsel %vm883_vm4, %v2888_v41, 0.0  ;;  %v889_v26 = vsel %vm883_vm4, %v2896_v45, 0.0 }
 0x132   : > { %v886_v36 = vadd.f32 %v885_v38, %v884_v34  ;;  %v891_v30 = vsel %vm883_vm4, %v2908_v51, 0.0  ;;  %v893_v22 = vsel %vm883_vm4, %v2916_v55, 0.0  ;;  %v895_v24 = vsel %vm883_vm4, %v2904_v49, 0.0 }
 0x133   : > { %v897_v14 = vsel %vm883_vm4, %v2912_v53, 0.0  ;;  %v899_v38 = vsel %vm883_vm4, %v2924_v59, 0.0  ;;  %v933_v2 = vsel %vm883_vm4, %v2996_v31, 0.0  ;;  %v935_v8 = vsel %vm883_vm4, %v2984_v25, 0.0 }
 0x134   : > { %v888_v32 = vadd.f32 %v887_v40, %v886_v36  ;;  %v901_v40 = vsel %vm883_vm4, %v2932_v63, 0.0  ;;  %v3114_v58 = vsel %vm883_vm4, %v2902_v48, 0.0  ;;  %v3133_v48 = vsel %vm883_vm4, %v2918_v56, 0.0 }
 0x135   : > { %4140 = vst [vmem:[#allocation60_spill] sm:$0xff] %v3133_v48  ;;  %v3152_v48 = vsel %vm883_vm4, %v2934_v0, 0.0  ;;  %v1036_v0 = vmul.f32 %v2944_v5, %v2944_v5  ;;  %vm1018_vm6 = vcmask 253952  }
 0x136   : > { %v890_v28 = vadd.f32 %v889_v26, %v888_v32  ;;  %v903_v32 = vsel %vm883_vm4, %v2920_v57, 0.0  ;;  %4144 = vst [vmem:[#allocation64_spill] sm:$0xff] %v3152_v48  ;;  %v1035_v48 = vmul.f32 %v2936_v1, %v2936_v1 }
 0x138   : > { %v892_v18 = vadd.f32 %v891_v30, %v890_v28  ;;  %v905_v30 = vsel %vm883_vm4, %v2928_v61, 0.0 }
 0x13a   : > { %v894_v20 = vadd.f32 %v893_v22, %v892_v18  ;;  %v907_v22 = vsel %vm883_vm4, %v2940_v3, 0.0 }
 0x13c   : > { %v896_v34 = vadd.f32 %v895_v24, %v894_v20  ;;  %v909_v24 = vsel %vm883_vm4, %v2948_v7, 0.0 }
 0x13e   : > { %v898_v36 = vadd.f32 %v897_v14, %v896_v34  ;;  %v911_v34 = vsel %vm883_vm4, %v2936_v1, 0.0 }
 0x140   : > { %v900_v26 = vadd.f32 %v899_v38, %v898_v36  ;;  %v913_v36 = vsel %vm883_vm4, %v2944_v5, 0.0 }
 0x142   : > { %v902_v28 = vadd.f32 %v901_v40, %v900_v26  ;;  %v915_v26 = vsel %vm883_vm4, %v2956_v11, 0.0 }
 0x144   : > { %v904_v18 = vadd.f32 %v903_v32, %v902_v28  ;;  %v917_v28 = vsel %vm883_vm4, %v2964_v15, 0.0 }
 0x146   : > { %v906_v20 = vadd.f32 %v905_v30, %v904_v18  ;;  %v919_v18 = vsel %vm883_vm4, %v2952_v9, 0.0 }
 0x148   : > { %v908_v14 = vadd.f32 %v907_v22, %v906_v20  ;;  %v1021_v22 = vmul.f32 %v2892_v43, %v2892_v43  ;;  %v1022_v20 = vmul.f32 %v2900_v47, %v2900_v47 }
 0x14a   : > { %v910_v38 = vadd.f32 %v909_v24, %v908_v14  ;;  %v1023_v24 = vmul.f32 %v2888_v41, %v2888_v41 }
 0x14c   : > { %v912_v40 = vadd.f32 %v911_v34, %v910_v38  ;;  %v921_v34 = vsel %vm883_vm4, %v2960_v13, 0.0  ;;  %v1024_v38 = vmul.f32 %v2896_v45, %v2896_v45  ;;  %v1088_v16 = vsel %vm883_vm4, %v1023_v24, 0.0 }
 0x14e   : > { %v914_v32 = vadd.f32 %v913_v36, %v912_v40  ;;  %v923_v40 = vsel %vm883_vm4, %v2972_v19, 0.0 }
 0x150   : > { %v916_v30 = vadd.f32 %v915_v26, %v914_v32  ;;  %v925_v26 = vsel %vm883_vm4, %v2980_v23, 0.0  ;;  %v927_v32 = vsel %vm883_vm4, %v2968_v17, 0.0 }
 0x152   : > { %v918_v14 = vadd.f32 %v917_v28, %v916_v30  ;;  %v1085_v28 = vsel %vm883_vm4, %v1021_v22, 0.0  ;;  %v1086_v30 = vsel %vm883_vm4, %v1022_v20, 0.0  ;;  %v1026_v22 = vmul.f32 %v2916_v55, %v2916_v55 }
 0x153   : > { %v1087_v6 = vadd.f32 %v1086_v30, %v1085_v28  ;;  %v1090_v20 = vsel %vm883_vm4, %v1024_v38, 0.0  ;;  %v3095_v28 = vsel %vm883_vm4, %v3012_v39, 0.0  ;;  %v3099_v30 = vsel %vm883_vm4, %v3000_v33, 0.0 }
 0x154   : > { %v920_v36 = vadd.f32 %v919_v18, %v918_v14  ;;  %v929_v18 = vsel %vm883_vm4, %v2976_v21, 0.0  ;;  %v931_v14 = vsel %vm883_vm4, %v2988_v27, 0.0  ;;  %v3118_v33 = vsel %vm883_vm4, %v2890_v42, 0.0 }
 0x155   : > { %v1089_v4 = vadd.f32 %v1088_v16, %v1087_v6  ;;  %v3110_v6 = vsel %vm883_vm4, %v2894_v44, 0.0  ;;  %4137 = vst [vmem:[#allocation57_spill] sm:$0xff] %v3118_v33  ;;  %v3137_v42 = vsel %vm883_vm4, %v2906_v50, 0.0  ;;  %v1114_v44 = vsel %vm883_vm4, %v1036_v0, 0.0 }
 0x156   : > { %v922_v12 = vadd.f32 %v921_v34, %v920_v36  ;;  %v937_v34 = vsel %vm883_vm4, %v2992_v29, 0.0  ;;  %v939_v36 = vsel %vm883_vm4, %v3004_v35, 0.0  ;;  %4141 = vst [vmem:[#allocation61_spill] sm:$0xff] %v3137_v42  ;;  %v1030_v42 = vmul.f32 %v2932_v63, %v2932_v63 }
 0x157   : > { %v1091_v16 = vadd.f32 %v1090_v20, %v1089_v4  ;;  %v3129_v4 = vsel %vm883_vm4, %v2910_v52, 0.0  ;;  %v3195_v52 = vmul.f32 %v2996_v31, %v2996_v31 }
 0x158   : > { %v924_v24 = vadd.f32 %v923_v40, %v922_v12  ;;  %v1092_v12 = vsel %vm883_vm4, %v1025_v10, 0.0  ;;  %v3106_v40 = vsel %vm883_vm4, %v3008_v37, 0.0  ;;  %v1028_v10 = vmul.f32 %v2912_v53, %v2912_v53  ;;  %4139 = vst [vmem:[#allocation59_spill] sm:$0xff] %v3129_v4 }
 0x159   : > { %v3125_v37 = vsel %vm883_vm4, %v2898_v46, 0.0  ;;  %v1093_v20 = vadd.f32 %v1092_v12, %v1091_v16  ;;  %v3144_v46 = vsel %vm883_vm4, %v2914_v54, 0.0  ;;  %v3148_v12 = vsel %vm883_vm4, %v2926_v60, 0.0  ;;  %4147 = vst [vmem:[#allocation67_spill] sm:$0xff] %v3195_v52 }
 0x15a   : > { %v926_v38 = vadd.f32 %v925_v26, %v924_v24  ;;  %v1094_v26 = vsel %vm883_vm4, %v1026_v22, 0.0  ;;  %4138 = vst [vmem:[#allocation58_spill] sm:$0xff] %v3125_v37  ;;  %v1096_v22 = vsel %vm883_vm4, %v1027_v62, 0.0  ;;  %4142 = vst [vmem:[#allocation62_spill] sm:$0xff] %v3144_v46  ;;  %v1031_v62 = vmul.f32 %v2920_v57, %v2920_v57 }
 0x15b   : > { %4143 = vst [vmem:[#allocation63_spill] sm:$0xff] %v3148_v12  ;;  %v1095_v16 = vadd.f32 %v1094_v26, %v1093_v20  ;;  %v1032_v46 = vmul.f32 %v2928_v61, %v2928_v61  ;;  %v1033_v12 = vmul.f32 %v2940_v3, %v2940_v3  ;;  %v1034_v20 = vmul.f32 %v2948_v7, %v2948_v7 }
 0x15c   : > { %v928_v24 = vadd.f32 %v927_v32, %v926_v38  ;;  %v1029_v32 = vmul.f32 %v2924_v59, %v2924_v59  ;;  %v1041_v54 = vmul.f32 %v2972_v19, %v2972_v19  ;;  %v1102_v50 = vsel %vm883_vm4, %v1030_v42, 0.0 }
 0x15d   : > { %v1097_v26 = vadd.f32 %v1096_v22, %v1095_v16  ;;  %v1039_v22 = vmul.f32 %v2952_v9, %v2952_v9  ;;  %v1040_v16 = vmul.f32 %v2960_v13, %v2960_v13  ;;  %v1104_v42 = vsel %vm883_vm4, %v1031_v62, 0.0 }
 0x15e   : > { %v930_v38 = vadd.f32 %v929_v18, %v928_v24  ;;  %v1098_v18 = vsel %vm883_vm4, %v1028_v10, 0.0  ;;  %v1100_v4 = vsel %vm883_vm4, %v1029_v32, 0.0  ;;  %v1106_v37 = vsel %vm883_vm4, %v1032_v46, 0.0 }
 0x15f   : > { %v1099_v60 = vadd.f32 %v1098_v18, %v1097_v26  ;;  %v3187_v18 = vmul.f32 %v2976_v21, %v2976_v21  ;;  %v3191_v26 = vmul.f32 %v2988_v27, %v2988_v27  ;;  %v3213_v46 = vsel %vm883_vm4, %v1040_v16, 0.0 }
 0x160   : > { %v932_v24 = vadd.f32 %v931_v14, %v930_v38  ;;  %v1037_v14 = vmul.f32 %v2956_v11, %v2956_v11  ;;  %v1038_v38 = vmul.f32 %v2964_v15, %v2964_v15  ;;  %v2363_v62 = vpack.c.bf16 %v2888_v41, %v2888_v41 }
 0x161   : > { %v1101_v56 = vadd.f32 %v1100_v4, %v1099_v60  ;;  %4145 = vst [vmem:[#allocation65_spill] sm:$0xff] %v3187_v18  ;;  %4146 = vst [vmem:[#allocation66_spill] sm:$0xff] %v3191_v26  ;;  %v1108_v60 = vsel %vm883_vm4, %v1033_v12, 0.0  ;;  %v1110_v4 = vsel %vm883_vm4, %v1034_v20, 0.0  ;;  %v1112_v18 = vsel %vm883_vm4, %v1035_v48, 0.0 }
 0x162   : > { %v934_v10 = vadd.f32 %v933_v2, %v932_v24  ;;  %v1042_v2 = vmul.f32 %v2980_v23, %v2980_v23  ;;  %v1043_v24 = vmul.f32 %v2968_v17, %v2968_v17  ;;  %v3204_v26 = vsel %vm883_vm4, %v1037_v14, 0.0  ;;  %1479 = vst.msk [vmem:[%s2813_s11 + $0x8] sm:$0xf] %vm1476_vm5, %v2363_v62 }
 0x163   : > { %v3207_v52 = vsel %vm883_vm4, %v1038_v38, 0.0  ;;  %v2361_v12 = vpack.c.bf16 %v2892_v43, %v2892_v43  ;;  %v2364_v20 = vpack.c.bf16 %v2896_v45, %v2896_v45  ;;  %v2365_v14 = vpack.c.bf16 %v2908_v51, %v2908_v51 }
 0x164   : > { %v936_v32 = vadd.f32 %v935_v8, %v934_v10  ;;  %v1103_v10 = vadd.f32 %v1102_v50, %v1101_v56  ;;  %v3210_v50 = vsel %vm883_vm4, %v1039_v22, 0.0  ;;  %v3216_v56 = vsel %vm883_vm4, %v1041_v54, 0.0 }
 0x165   : > { %v3219_v48 = vsel %vm883_vm4, %v1042_v2, 0.0  ;;  %v3222_v0 = vsel %vm883_vm4, %v1043_v24, 0.0  ;;  %v2362_v54 = vpack.c.bf16 %v2900_v47, %v2900_v47  ;;  %1477 = vst.msk [vmem:[%s2813_s11] sm:$0xf] %vm1476_vm5, %v2361_v12  ;;  %1480 = vst.msk [vmem:[%s2813_s11 + $0xc] sm:$0xf] %vm1476_vm5, %v2364_v20  ;;  %v2369_v38 = vpack.c.bf16 %v2924_v59, %v2924_v59 }
 0x166   : > { %v938_v8 = vadd.f32 %v937_v34, %v936_v32  ;;  %v1105_v33 = vadd.f32 %v1104_v42, %v1103_v10  ;;  %1481 = vst.msk [vmem:[%s2813_s11 + $0x10] sm:$0xf] %vm1476_vm5, %v2365_v14  ;;  %v2370_v22 = vpack.c.bf16 %v2932_v63, %v2932_v63  ;;  %v2371_v16 = vpack.c.bf16 %v2920_v57, %v2920_v57 }
 0x167   : > { %1478 = vst.msk [vmem:[%s2813_s11 + $0x4] sm:$0xf] %vm1476_vm5, %v2362_v54  ;;  %v2372_v24 = vpack.c.bf16 %v2928_v61, %v2928_v61  ;;  %v2373_v42 = vpack.c.bf16 %v2940_v3, %v2940_v3  ;;  %1485 = vst.msk [vmem:[%s2813_s11 + $0x20] sm:$0xf] %vm1476_vm5, %v2369_v38  ;;  %v2376_v10 = vpack.c.bf16 %v2944_v5, %v2944_v5  ;;  %v4185_v5 = vld [vmem:[#allocation52_spill] sm:$0xff] }
 0x168   : > { %v940_v39 = vadd.f32 %v939_v36, %v938_v8  ;;  %v1107_v36 = vadd.f32 %v1106_v37, %v1105_v33  ;;  %v2366_v37 = vpack.c.bf16 %v2916_v55, %v2916_v55  ;;  %1486 = vst.msk [vmem:[%s2813_s11 + $0x24] sm:$0xf] %vm1476_vm5, %v2370_v22  ;;  %1487 = vst.msk [vmem:[%s2813_s11 + $0x28] sm:$0xf] %vm1476_vm5, %v2371_v16  ;;  %v4149_v16 = vld [vmem:[#allocation55_spill] sm:$0xff] }
 0x169   : > { %v2375_v8 = vpack.c.bf16 %v2936_v1, %v2936_v1  ;;  %1488 = vst.msk [vmem:[%s2813_s11 + $0x2c] sm:$0xf] %vm1476_vm5, %v2372_v24  ;;  %1489 = vst.msk [vmem:[%s2813_s11 + $0x30] sm:$0xf] %vm1476_vm5, %v2373_v42  ;;  %v2379_v12 = vpack.c.bf16 %v2952_v9, %v2952_v9  ;;  %v2382_v54 = vpack.c.bf16 %v2980_v23, %v2980_v23  ;;  %v4182_v9 = vld [vmem:[#allocation44_spill] sm:$0xff] }
 0x16a   : > { %v942_v34 = vadd.f32 %v3095_v28, %v940_v39  ;;  %v1109_v33 = vadd.f32 %v1108_v60, %v1107_v36  ;;  %v2367_v28 = vpack.c.bf16 %v2904_v49, %v2904_v49  ;;  %1482 = vst.msk [vmem:[%s2813_s11 + $0x14] sm:$0xf] %vm1476_vm5, %v2366_v37  ;;  %v2377_v60 = vpack.c.bf16 %v2956_v11, %v2956_v11 }
 0x16b   : > { %v2378_v36 = vpack.c.bf16 %v2964_v15, %v2964_v15  ;;  %1491 = vst.msk [vmem:[%s2813_s11 + $0x38] sm:$0xf] %vm1476_vm5, %v2375_v8  ;;  %1492 = vst.msk [vmem:[%s2813_s11 + $0x3c] sm:$0xf] %vm1476_vm5, %v2376_v10  ;;  %v2383_v62 = vpack.c.bf16 %v2968_v17, %v2968_v17  ;;  %v2388_v37 = vpack.c.bf16 %v2992_v29, %v2992_v29  ;;  %v4153_v10 = vld [vmem:[#allocation7_spill] sm:$0xff]  ;;  %v4176_v17 = vld [vmem:[#allocation61_spill] sm:$0xff] }
 0x16c   : > { %v944_v39 = vadd.f32 %v3099_v30, %v942_v34  ;;  %v2368_v30 = vpack.c.bf16 %v2912_v53, %v2912_v53  ;;  %v1111_v2 = vadd.f32 %v1110_v4, %v1109_v33  ;;  %1483 = vst.msk [vmem:[%s2813_s11 + $0x18] sm:$0xf] %vm1476_vm5, %v2367_v28  ;;  %1493 = vst.msk [vmem:[%s2813_s11 + $0x40] sm:$0xf] %vm1476_vm5, %v2377_v60  ;;  %v4183_v15 = vld [vmem:[#allocation62_spill] sm:$0xff] }
 0x16d   : > { %1494 = vst.msk [vmem:[%s2813_s11 + $0x44] sm:$0xf] %vm1476_vm5, %v2378_v36  ;;  %1495 = vst.msk [vmem:[%s2813_s11 + $0x48] sm:$0xf] %vm1476_vm5, %v2379_v12  ;;  %v2385_v33 = vpack.c.bf16 %v2988_v27, %v2988_v27  ;;  %v2389_v28 = vpack.c.bf16 %v3004_v35, %v3004_v35  ;;  %v2394_v60 = vpack.c.bf16 %v4153_v10, %v4153_v10  ;;  %v4155_v36 = vld [vmem:[#allocation58_spill] sm:$0xff] }
 0x16e   : > { %v946_v32 = vadd.f32 %v3106_v40, %v944_v39  ;;  %1484 = vst.msk [vmem:[%s2813_s11 + $0x1c] sm:$0xf] %vm1476_vm5, %v2368_v30  ;;  %v2374_v40 = vpack.c.bf16 %v2948_v7, %v2948_v7  ;;  %v1113_v34 = vadd.f32 %v1112_v18, %v1111_v2  ;;  %v2381_v18 = vpack.c.bf16 %v2972_v19, %v2972_v19  ;;  %v4148_v30 = vld [vmem:[#allocation57_spill] sm:$0xff]  ;;  %v4150_v2 = vld [vmem:[#allocation50_spill] sm:$0xff]  ;;  %v4178_v19 = vld [vmem:[#allocation36_spill] sm:$0xff] }
 0x16f   : > { %v2384_v39 = vpack.c.bf16 %v2976_v21, %v2976_v21  ;;  %1498 = vst.msk [vmem:[%s2813_s11 + $0x54] sm:$0xf] %vm1476_vm5, %v2382_v54  ;;  %1499 = vst.msk [vmem:[%s2813_s11 + $0x58] sm:$0xf] %vm1476_vm5, %v2383_v62  ;;  %v2391_v24 = vpack.c.bf16 %v4150_v2, %v4150_v2  ;;  %v4157_v62 = vld [vmem:[#allocation9_spill] sm:$0xff]  ;;  %v4175_v21 = vld [vmem:[#allocation38_spill] sm:$0xff]  ;;  %v2421_v1 = vpack.c.bf16 %v4185_v5, %v4185_v5 }
 0x170   : > { %v948_v4 = vadd.f32 %v3110_v6, %v946_v32  ;;  %1490 = vst.msk [vmem:[%s2813_s11 + $0x34] sm:$0xf] %vm1476_vm5, %v2374_v40  ;;  %v2380_v6 = vpack.c.bf16 %v2960_v13, %v2960_v13  ;;  %v1115_v14 = vadd.f32 %v1114_v44, %v1113_v34  ;;  %1497 = vst.msk [vmem:[%s2813_s11 + $0x50] sm:$0xf] %vm1476_vm5, %v2381_v18  ;;  %v4152_v40 = vld [vmem:[#allocation5_spill] sm:$0xff]  ;;  %v4156_v18 = vld [vmem:[#allocation6_spill] sm:$0xff] }
 0x171   : > { %v2386_v44 = vpack.c.bf16 %v2996_v31, %v2996_v31  ;;  %1500 = vst.msk [vmem:[%s2813_s11 + $0x5c] sm:$0xf] %vm1476_vm5, %v2384_v39  ;;  %1501 = vst.msk [vmem:[%s2813_s11 + $0x60] sm:$0xf] %vm1476_vm5, %v2385_v33  ;;  %v2390_v32 = vpack.c.bf16 %v4149_v16, %v4149_v16  ;;  %v2393_v8 = vpack.c.bf16 %v4152_v40, %v4152_v40  ;;  %v4159_v39 = vld [vmem:[#allocation8_spill] sm:$0xff]  ;;  %v4171_v31 = vld [vmem:[#allocation30_spill] sm:$0xff] }
 0x172   : > { %v950_v20 = vadd.f32 %v3114_v58, %v948_v4  ;;  %1496 = vst.msk [vmem:[%s2813_s11 + $0x4c] sm:$0xf] %vm1476_vm5, %v2380_v6  ;;  %v2387_v58 = vpack.c.bf16 %v2984_v25, %v2984_v25  ;;  %v1117_v22 = vadd.f32 %v3204_v26, %v1115_v14  ;;  %1504 = vst.msk [vmem:[%s2813_s11 + $0x6c] sm:$0xf] %vm1476_vm5, %v2388_v37  ;;  %v4151_v26 = vld [vmem:[#allocation53_spill] sm:$0xff]  ;;  %v4154_v4 = vld [vmem:[#allocation4_spill] sm:$0xff] }
 0x173   : > { %1502 = vst.msk [vmem:[%s2813_s11 + $0x64] sm:$0xf] %vm1476_vm5, %v2386_v44  ;;  %1505 = vst.msk [vmem:[%s2813_s11 + $0x70] sm:$0xf] %vm1476_vm5, %v2389_v28  ;;  %v2392_v42 = vpack.c.bf16 %v4151_v26, %v4151_v26  ;;  %v2395_v34 = vpack.c.bf16 %v4154_v4, %v4154_v4  ;;  %v2396_v54 = vpack.c.bf16 %v4156_v18, %v4156_v18  ;;  %v4160_v44 = vld [vmem:[#allocation10_spill] sm:$0xff]  ;;  %v4186_v7 = vld [vmem:[#allocation65_spill] sm:$0xff] }
 0x174   : > { %v952_v38 = vadd.f32 %v4148_v30, %v950_v20  ;;  %1503 = vst.msk [vmem:[%s2813_s11 + $0x68] sm:$0xf] %vm1476_vm5, %v2387_v58  ;;  %v1119_v6 = vadd.f32 %v3207_v52, %v1117_v22  ;;  %1506 = vst.msk [vmem:[%s2813_s11 + $0x74] sm:$0xf] %vm1476_vm5, %v2390_v32  ;;  %v2397_v20 = vpack.c.bf16 %v4157_v62, %v4157_v62  ;;  %v4158_v52 = vld [vmem:[#allocation11_spill] sm:$0xff]  ;;  %v4161_v37 = vld [vmem:[#allocation14_spill] sm:$0xff] }
 0x175   : > { %1507 = vst.msk [vmem:[%s2813_s11 + $0x78] sm:$0xf] %vm1476_vm5, %v2391_v24  ;;  %1508 = vst.msk [vmem:[%s2813_s11 + $0x7c] sm:$0xf] %vm1476_vm5, %v2392_v42  ;;  %v2398_v14 = vpack.c.bf16 %v4158_v52, %v4158_v52  ;;  %v2399_v33 = vpack.c.bf16 %v4159_v39, %v4159_v39  ;;  %v2400_v58 = vpack.c.bf16 %v4160_v44, %v4160_v44  ;;  %v4162_v30 = vld [vmem:[#allocation59_spill] sm:$0xff]  ;;  %v4163_v32 = vld [vmem:[#allocation18_spill] sm:$0xff] }
 0x176   : > { %v954_v12 = vadd.f32 %v4155_v36, %v952_v38  ;;  %1509 = vst.msk [vmem:[%s2813_s11 + $0x80] sm:$0xf] %vm1476_vm5, %v2393_v8  ;;  %1510 = vst.msk [vmem:[%s2813_s11 + $0x84] sm:$0xf] %vm1476_vm5, %v2394_v60  ;;  %v2401_v28 = vpack.c.bf16 %v4161_v37, %v4161_v37  ;;  %v1121_v22 = vadd.f32 %v3210_v50, %v1119_v6  ;;  %v4164_v42 = vld [vmem:[#allocation13_spill] sm:$0xff]  ;;  %v4165_v50 = vld [vmem:[#allocation16_spill] sm:$0xff] }
 0x177   : > { %1511 = vst.msk [vmem:[%s2813_s11 + $0x88] sm:$0xf] %vm1476_vm5, %v2395_v34  ;;  %1512 = vst.msk [vmem:[%s2813_s11 + $0x8c] sm:$0xf] %vm1476_vm5, %v2396_v54  ;;  %v2402_v24 = vpack.c.bf16 %v4163_v32, %v4163_v32  ;;  %v2403_v8 = vpack.c.bf16 %v4164_v42, %v4164_v42  ;;  %v2404_v60 = vpack.c.bf16 %v4165_v50, %v4165_v50  ;;  %v4166_v34 = vld [vmem:[#allocation22_spill] sm:$0xff]  ;;  %v4168_v54 = vld [vmem:[#allocation20_spill] sm:$0xff] }
 0x178   : > { %v956_v38 = vadd.f32 %v4162_v30, %v954_v12  ;;  %1513 = vst.msk [vmem:[%s2813_s11 + $0x90] sm:$0xf] %vm1476_vm5, %v2397_v20  ;;  %1514 = vst.msk [vmem:[%s2813_s11 + $0x94] sm:$0xf] %vm1476_vm5, %v2398_v14  ;;  %v2405_v36 = vpack.c.bf16 %v4166_v34, %v4166_v34  ;;  %v4167_v12 = vld [vmem:[#allocation26_spill] sm:$0xff]  ;;  %v2407_v20 = vpack.c.bf16 %v4168_v54, %v4168_v54  ;;  %v4169_v14 = vld [vmem:[#allocation60_spill] sm:$0xff] }
 0x179   : > { %1515 = vst.msk [vmem:[%s2813_s11 + $0x98] sm:$0xf] %vm1476_vm5, %v2399_v33  ;;  %1516 = vst.msk [vmem:[%s2813_s11 + $0x9c] sm:$0xf] %vm1476_vm5, %v2400_v58  ;;  %v2406_v6 = vpack.c.bf16 %v4167_v12, %v4167_v12  ;;  %v1123_v33 = vadd.f32 %v3213_v46, %v1121_v22  ;;  %v4170_v58 = vld [vmem:[#allocation24_spill] sm:$0xff]  ;;  %v2409_v27 = vpack.c.bf16 %v4171_v31, %v4171_v31  ;;  %v4172_v46 = vld [vmem:[#allocation34_spill] sm:$0xff] }
 0x17a   : > { %1517 = vst.msk [vmem:[%s2813_s11 + $0xa0] sm:$0xf] %vm1476_vm5, %v2401_v28  ;;  %v958_v30 = vadd.f32 %v4169_v14, %v956_v38  ;;  %1518 = vst.msk [vmem:[%s2813_s11 + $0xa4] sm:$0xf] %vm1476_vm5, %v2402_v24  ;;  %v2408_v28 = vpack.c.bf16 %v4170_v58, %v4170_v58  ;;  %v2410_v38 = vpack.c.bf16 %v4172_v46, %v4172_v46  ;;  %v4173_v22 = vld [vmem:[#allocation28_spill] sm:$0xff]  ;;  %v1130_v3 = vsel %vm883_vm4, %v4186_v7, 0.0 }
 0x17b   : > { %1519 = vst.msk [vmem:[%s2813_s11 + $0xa8] sm:$0xf] %vm1476_vm5, %v2403_v8  ;;  %1520 = vst.msk [vmem:[%s2813_s11 + $0xac] sm:$0xf] %vm1476_vm5, %v2404_v60  ;;  %v2411_v24 = vpack.c.bf16 %v4173_v22, %v4173_v22  ;;  %v4174_v8 = vld [vmem:[#allocation32_spill] sm:$0xff]  ;;  %v2413_v60 = vpack.c.bf16 %v4175_v21, %v4175_v21  ;;  %v2415_v13 = vpack.c.bf16 %v4178_v19, %v4178_v19  ;;  %v4190_v7 = vld [vmem:[#allocation63_spill] sm:$0xff] }
 0x17c   : > { %1521 = vst.msk [vmem:[%s2813_s11 + $0xb0] sm:$0xf] %vm1476_vm5, %v2405_v36  ;;  %1522 = vst.msk [vmem:[%s2813_s11 + $0xb4] sm:$0xf] %vm1476_vm5, %v2406_v6  ;;  %v2412_v14 = vpack.c.bf16 %v4174_v8, %v4174_v8  ;;  %v960_v23 = vadd.f32 %v4176_v17, %v958_v30  ;;  %v1125_v36 = vadd.f32 %v3216_v56, %v1123_v33  ;;  %v4177_v6 = vld [vmem:[#allocation42_spill] sm:$0xff]  ;;  %v4179_v17 = vld [vmem:[#allocation40_spill] sm:$0xff] }
 0x17d   : > { %1523 = vst.msk [vmem:[%s2813_s11 + $0xb8] sm:$0xf] %vm1476_vm5, %v2407_v20  ;;  %1524 = vst.msk [vmem:[%s2813_s11 + $0xbc] sm:$0xf] %vm1476_vm5, %v2408_v28  ;;  %v2414_v20 = vpack.c.bf16 %v4177_v6, %v4177_v6  ;;  %v4180_v56 = vld [vmem:[#allocation46_spill] sm:$0xff]  ;;  %v4181_v33 = vld [vmem:[#allocation49_spill] sm:$0xff] }
 0x17e   : > { %1525 = vst.msk [vmem:[%s2813_s11 + $0xc0] sm:$0xf] %vm1476_vm5, %v2409_v27  ;;  %1526 = vst.msk [vmem:[%s2813_s11 + $0xc4] sm:$0xf] %vm1476_vm5, %v2410_v38  ;;  %v2416_v27 = vpack.c.bf16 %v4179_v17, %v4179_v17  ;;  %v2417_v30 = vpack.c.bf16 %v4180_v56, %v4180_v56  ;;  %v2418_v28 = vpack.c.bf16 %v4181_v33, %v4181_v33 }
 0x17f   : > { %1527 = vst.msk [vmem:[%s2813_s11 + $0xc8] sm:$0xf] %vm1476_vm5, %v2411_v24  ;;  %1528 = vst.msk [vmem:[%s2813_s11 + $0xcc] sm:$0xf] %vm1476_vm5, %v2412_v14  ;;  %v2419_v38 = vpack.c.bf16 %v4182_v9, %v4182_v9  ;;  %v962_v24 = vadd.f32 %v4183_v15, %v960_v23  ;;  %v1127_v14 = vadd.f32 %v3219_v48, %v1125_v36  ;;  %v4188_v23 = vld [vmem:[#allocation51_spill] sm:$0xff]  ;;  %v4189_v36 = vld [vmem:[#allocation54_spill] sm:$0xff] }
 0x180   : > { %1529 = vst.msk [vmem:[%s2813_s11 + $0xd0] sm:$0xf] %vm1476_vm5, %v2413_v60  ;;  %1530 = vst.msk [vmem:[%s2813_s11 + $0xd4] sm:$0xf] %vm1476_vm5, %v2414_v20  ;;  %v4184_v60 = vld [vmem:[#allocation47_spill] sm:$0xff]  ;;  %v2423_v48 = vpack.c.bf16 %v4188_v23, %v4188_v23  ;;  %v2424_v20 = vpack.c.bf16 %v4189_v36, %v4189_v36 }
 0x181   : > { %1531 = vst.msk [vmem:[%s2813_s11 + $0xd8] sm:$0xf] %vm1476_vm5, %v2415_v13  ;;  %v2420_v11 = vpack.c.bf16 %v4184_v60, %v4184_v60  ;;  %1532 = vst.msk [vmem:[%s2813_s11 + $0xdc] sm:$0xf] %vm1476_vm5, %v2416_v27  ;;  %v4187_v13 = vld [vmem:[#allocation56_spill] sm:$0xff]  ;;  %v964_v61 = vadd.f32 %v4190_v7, %v962_v24  ;;  %v1129_v27 = vadd.f32 %v3222_v0, %v1127_v14  ;;  %v4193_v7 = vld [vmem:[#allocation67_spill] sm:$0xff] }
 0x182   : > { %1533 = vst.msk [vmem:[%s2813_s11 + $0xe0] sm:$0xf] %vm1476_vm5, %v2417_v30  ;;  %1534 = vst.msk [vmem:[%s2813_s11 + $0xe4] sm:$0xf] %vm1476_vm5, %v2418_v28  ;;  %v2422_v15 = vpack.c.bf16 %v4187_v13, %v4187_v13  ;;  %v967_v30 = vsel %vm883_vm4, %v4164_v42, 0.0  ;;  %v1047_v28 = vmul.f32 %v2984_v25, %v2984_v25  ;;  %v4192_v0 = vld [vmem:[#allocation64_spill] sm:$0xff]  ;;  %v1048_v14 = vmul.f32 %v2992_v29, %v2992_v29 }
 0x183   : > { %1535 = vst.msk [vmem:[%s2813_s11 + $0xe8] sm:$0xf] %vm1476_vm5, %v2419_v38  ;;  %1536 = vst.msk [vmem:[%s2813_s11 + $0xec] sm:$0xf] %vm1476_vm5, %v2420_v11  ;;  %v4191_v38 = vld [vmem:[#allocation66_spill] sm:$0xff]  ;;  %v966_v24 = vadd.f32 %v4192_v0, %v964_v61  ;;  %v1131_v11 = vadd.f32 %v1130_v3, %v1129_v27  ;;  %v1134_v25 = vsel %vm883_vm4, %v4193_v7, 0.0  ;;  %v1050_v0 = vmul.f32 %v4149_v16, %v4149_v16 }
 0x184   : > { %1537 = vst.msk [vmem:[%s2813_s11 + $0xf0] sm:$0xf] %vm1476_vm5, %v2421_v1  ;;  %v1132_v57 = vsel %vm883_vm4, %v4191_v38, 0.0  ;;  %1538 = vst.msk [vmem:[%s2813_s11 + $0xf4] sm:$0xf] %vm1476_vm5, %v2422_v15  ;;  %v969_v1 = vsel %vm883_vm4, %v4165_v50, 0.0  ;;  %v1052_v16 = vmul.f32 %v4151_v26, %v4151_v26  ;;  %v1054_v26 = vmul.f32 %v4153_v10, %v4153_v10 }
 0x185   : > { %1539 = vst.msk [vmem:[%s2813_s11 + $0xf8] sm:$0xf] %vm1476_vm5, %v2423_v48  ;;  %1540 = vst.msk [vmem:[%s2813_s11 + $0xfc] sm:$0xf] %vm1476_vm5, %v2424_v20  ;;  %v968_v63 = vadd.f32 %v967_v30, %v966_v24  ;;  %v1133_v38 = vadd.f32 %v1132_v57, %v1131_v11  ;;  %v971_v15 = vsel %vm883_vm4, %v4166_v34, 0.0  ;;  %v1049_v48 = vmul.f32 %v3004_v35, %v3004_v35 }
 0x186   : > { %v1136_v61 = vsel %vm883_vm4, %v1047_v28, 0.0  ;;  %v973_v27 = vsel %vm883_vm4, %v4167_v12, 0.0  ;;  %v1138_v7 = vsel %vm883_vm4, %v1048_v14, 0.0  ;;  %v975_v24 = vsel %vm883_vm4, %v4168_v54, 0.0 }
 0x187   : > { %v970_v3 = vadd.f32 %v969_v1, %v968_v63  ;;  %v1135_v20 = vadd.f32 %v1134_v25, %v1133_v38  ;;  %v1051_v11 = vmul.f32 %v4150_v2, %v4150_v2  ;;  %v1140_v28 = vsel %vm883_vm4, %v1049_v48, 0.0 }
 0x188   : > { %v977_v1 = vsel %vm883_vm4, %v4170_v58, 0.0  ;;  %v1142_v14 = vsel %vm883_vm4, %v1050_v0, 0.0  ;;  %v1053_v2 = vmul.f32 %v4152_v40, %v4152_v40  ;;  %v1146_v0 = vsel %vm883_vm4, %v1052_v16, 0.0 }
 0x189   : > { %v972_v30 = vadd.f32 %v971_v15, %v970_v3  ;;  %v1137_v57 = vadd.f32 %v1136_v61, %v1135_v20  ;;  %v979_v61 = vsel %vm883_vm4, %v4171_v31, 0.0  ;;  %v1144_v48 = vsel %vm883_vm4, %v1051_v11, 0.0 }
 0x18a   : > { %v1055_v40 = vmul.f32 %v4154_v4, %v4154_v4  ;;  %v1056_v10 = vmul.f32 %v4156_v18, %v4156_v18  ;;  %v1057_v4 = vmul.f32 %v4157_v62, %v4157_v62  ;;  %v1058_v18 = vmul.f32 %v4158_v52, %v4158_v52 }
 0x18b   : > { %v974_v63 = vadd.f32 %v973_v27, %v972_v30  ;;  %v1139_v25 = vadd.f32 %v1138_v7, %v1137_v57  ;;  %v981_v27 = vsel %vm883_vm4, %v4172_v46, 0.0  ;;  %v983_v57 = vsel %vm883_vm4, %v4173_v22, 0.0 }
 0x18c   : > { %v1059_v62 = vmul.f32 %v4159_v39, %v4159_v39  ;;  %v1060_v52 = vmul.f32 %v4160_v44, %v4160_v44  ;;  %v1061_v39 = vmul.f32 %v4161_v37, %v4161_v37  ;;  %v1062_v44 = vmul.f32 %v4163_v32, %v4163_v32 }
 0x18d   : > { %v976_v38 = vadd.f32 %v975_v24, %v974_v63  ;;  %v1141_v15 = vadd.f32 %v1140_v28, %v1139_v25  ;;  %v1148_v24 = vsel %vm883_vm4, %v1053_v2, 0.0  ;;  %v985_v63 = vsel %vm883_vm4, %v4174_v8, 0.0 }
 0x18e   : > { %v1150_v25 = vsel %vm883_vm4, %v1054_v26, 0.0  ;;  %v989_v2 = vsel %vm883_vm4, %v4177_v6, 0.0  ;;  %v1156_v26 = vsel %vm883_vm4, %v1057_v4, 0.0  ;;  %v999_v4 = vsel %vm883_vm4, %v4182_v9, 0.0 }
 0x18f   : > { %v978_v3 = vadd.f32 %v977_v1, %v976_v38  ;;  %v1143_v20 = vadd.f32 %v1142_v14, %v1141_v15  ;;  %v987_v14 = vsel %vm883_vm4, %v4175_v21, 0.0  ;;  %v1152_v38 = vsel %vm883_vm4, %v1055_v40, 0.0 }
 0x190   : > { %v1063_v37 = vmul.f32 %v4164_v42, %v4164_v42  ;;  %v1064_v32 = vmul.f32 %v4165_v50, %v4165_v50  ;;  %v1065_v42 = vmul.f32 %v4166_v34, %v4166_v34  ;;  %v1066_v50 = vmul.f32 %v4167_v12, %v4167_v12 }
 0x191   : > { %v980_v7 = vadd.f32 %v979_v61, %v978_v3  ;;  %v1145_v30 = vadd.f32 %v1144_v48, %v1143_v20  ;;  %v1154_v48 = vsel %vm883_vm4, %v1056_v10, 0.0  ;;  %v1067_v34 = vmul.f32 %v4168_v54, %v4168_v54 }
 0x192   : > { %v1068_v12 = vmul.f32 %v4170_v58, %v4170_v58  ;;  %v1071_v58 = vmul.f32 %v4173_v22, %v4173_v22  ;;  %v1074_v22 = vmul.f32 %v4177_v6, %v4177_v6 }
 0x193   : > { %v982_v11 = vadd.f32 %v981_v27, %v980_v7  ;;  %v1147_v28 = vadd.f32 %v1146_v0, %v1145_v30  ;;  %v991_v27 = vsel %vm883_vm4, %v4178_v19, 0.0  ;;  %v993_v30 = vsel %vm883_vm4, %v4179_v17, 0.0 }
 0x195   : > { %v984_v1 = vadd.f32 %v983_v57, %v982_v11  ;;  %v1149_v16 = vadd.f32 %v1148_v24, %v1147_v28  ;;  %v1158_v57 = vsel %vm883_vm4, %v1058_v18, 0.0  ;;  %v995_v11 = vsel %vm883_vm4, %v4180_v56, 0.0 }
 0x196   : > { %v1160_v28 = vsel %vm883_vm4, %v1059_v62, 0.0  ;;  %v1166_v18 = vsel %vm883_vm4, %v1062_v44, 0.0  ;;  %v1176_v44 = vsel %vm883_vm4, %v1067_v34, 0.0 }
 0x197   : > { %v986_v15 = vadd.f32 %v985_v63, %v984_v1  ;;  %v1151_v61 = vadd.f32 %v1150_v25, %v1149_v16  ;;  %v997_v25 = vsel %vm883_vm4, %v4181_v33, 0.0  ;;  %v1162_v1 = vsel %vm883_vm4, %v1060_v52, 0.0 }
 0x199   : > { %v988_v3 = vadd.f32 %v987_v14, %v986_v15  ;;  %v1153_v20 = vadd.f32 %v1152_v38, %v1151_v61  ;;  %v1164_v38 = vsel %vm883_vm4, %v1061_v39, 0.0  ;;  %v1009_v39 = vsel %vm883_vm4, %v4189_v36, 0.0 }
 0x19b   : > { %v990_v0 = vadd.f32 %v989_v2, %v988_v3  ;;  %v1155_v7 = vadd.f32 %v1154_v48, %v1153_v20  ;;  %v1001_v2 = vsel %vm883_vm4, %v4184_v60, 0.0  ;;  %v1003_v20 = vsel %vm883_vm4, %v4185_v5, 0.0 }
 0x19d   : > { %v992_v40 = vadd.f32 %v991_v27, %v990_v0  ;;  %v1157_v24 = vadd.f32 %v1156_v26, %v1155_v7  ;;  %v1168_v27 = vsel %vm883_vm4, %v1063_v37, 0.0  ;;  %v1005_v0 = vsel %vm883_vm4, %v4187_v13, 0.0 }
 0x19e   : > { %v1170_v7 = vsel %vm883_vm4, %v1064_v32, 0.0 }
 0x19f   : > { %v994_v63 = vadd.f32 %v993_v30, %v992_v40  ;;  %v1159_v10 = vadd.f32 %v1158_v57, %v1157_v24  ;;  %v1007_v57 = vsel %vm883_vm4, %v4188_v23, 0.0  ;;  %v1172_v40 = vsel %vm883_vm4, %v1065_v42, 0.0 }
 0x1a1   : > { %v996_v16 = vadd.f32 %v995_v11, %v994_v63  ;;  %v1161_v14 = vadd.f32 %v1160_v28, %v1159_v10  ;;  %v1174_v28 = vsel %vm883_vm4, %v1066_v50, 0.0 }
 0x1a3   : > { %v998_v15 = vadd.f32 %v997_v25, %v996_v16  ;;  %v1163_v61 = vadd.f32 %v1162_v1, %v1161_v14  ;;  %v1069_v25 = vmul.f32 %v4171_v31, %v4171_v31  ;;  %v1070_v16 = vmul.f32 %v4172_v46, %v4172_v46 }
 0x1a4   : > { %v1178_v14 = vsel %vm883_vm4, %v1068_v12, 0.0  ;;  %v1072_v31 = vmul.f32 %v4174_v8, %v4174_v8  ;;  %v1073_v46 = vmul.f32 %v4175_v21, %v4175_v21  ;;  %v1075_v8 = vmul.f32 %v4178_v19, %v4178_v19 }
 0x1a5   : > { %v1000_v48 = vadd.f32 %v999_v4, %v998_v15  ;;  %v1165_v3 = vadd.f32 %v1164_v38, %v1163_v61  ;;  %v1180_v38 = vsel %vm883_vm4, %v1069_v25, 0.0  ;;  %v1076_v21 = vmul.f32 %v4179_v17, %v4179_v17 }
 0x1a6   : > { %v1186_v42 = vsel %vm883_vm4, %v1072_v31, 0.0  ;;  %v1192_v34 = vsel %vm883_vm4, %v1075_v8, 0.0  ;;  %v1079_v17 = vmul.f32 %v4182_v9, %v4182_v9 }
 0x1a7   : > { %v1002_v62 = vadd.f32 %v1001_v2, %v1000_v48  ;;  %v1167_v26 = vadd.f32 %v1166_v18, %v1165_v3  ;;  %v1182_v2 = vsel %vm883_vm4, %v1070_v16, 0.0  ;;  %v1184_v48 = vsel %vm883_vm4, %v1071_v58, 0.0 }
 0x1a9   : > { %v1004_v30 = vadd.f32 %v1003_v20, %v1002_v62  ;;  %v1169_v52 = vadd.f32 %v1168_v27, %v1167_v26  ;;  %v882_v26 = vld [vmem:[#allocation2] sm:$0x1] }
 0x1ab   : > { %v1006_v24 = vadd.f32 %v1005_v0, %v1004_v30  ;;  %v1171_v11 = vadd.f32 %v1170_v7, %v1169_v52  ;;  %v1188_v0 = vsel %vm883_vm4, %v1073_v46, 0.0  ;;  %v1190_v30 = vsel %vm883_vm4, %v1074_v22, 0.0 }
 0x1ad   : > { %v1008_v63 = vadd.f32 %v1007_v57, %v1006_v24  ;;  %v1173_v10 = vadd.f32 %v1172_v40, %v1171_v11  ;;  %v1077_v57 = vmul.f32 %v4180_v56, %v4180_v56  ;;  %v1078_v40 = vmul.f32 %v4181_v33, %v4181_v33 }
 0x1ae   : > { %v1194_v24 = vsel %vm883_vm4, %v1076_v21, 0.0  ;;  %v1080_v56 = vmul.f32 %v4184_v60, %v4184_v60  ;;  %v1200_v33 = vsel %vm883_vm4, %v1079_v17, 0.0 }
 0x1af   : > { %v1010_v54 = vadd.f32 %v1009_v39, %v1008_v63  ;;  %v1175_v1 = vadd.f32 %v1174_v28, %v1173_v10  ;;  %v1196_v39 = vsel %vm883_vm4, %v1077_v57, 0.0  ;;  %v1198_v28 = vsel %vm883_vm4, %v1078_v40, 0.0 }
 0x1b0   : > { %v1081_v10 = vmul.f32 %v4185_v5, %v4185_v5  ;;  %v1202_v9 = vsel %vm883_vm4, %v1080_v56, 0.0 }
 0x1b1   : > { %v1011_v4 = vrot.slane %v1010_v54, 4  ;;  %v1177_v37 = vadd.f32 %v1176_v44, %v1175_v1  ;;  %v1082_v44 = vmul.f32 %v4187_v13, %v4187_v13  ;;  %v1083_v1 = vmul.f32 %v4188_v23, %v4188_v23 }
 0x1b2   : > { %v1204_v60 = vsel %vm883_vm4, %v1081_v10, 0.0 }
 0x1b3   : > { %v1012_v15 = vadd.f32 %v1011_v4, %v1010_v54  ;;  %v1179_v61 = vadd.f32 %v1178_v14, %v1177_v37  ;;  %v1084_v14 = vmul.f32 %v4189_v36, %v4189_v36  ;;  %v1206_v5 = vsel %vm883_vm4, %v1082_v44, 0.0 }
 0x1b4   : > { %v1208_v37 = vsel %vm883_vm4, %v1083_v1, 0.0 }
 0x1b5   : > { %v1013_v32 = vrot.slane %v1012_v15, 2  ;;  %v1181_v18 = vadd.f32 %v1180_v38, %v1179_v61  ;;  %v1210_v13 = vsel %vm883_vm4, %v1084_v14, 0.0 }
 0x1b7   : > { %v1014_v3 = vadd.f32 %v1013_v32, %v1012_v15  ;;  %v1183_v20 = vadd.f32 %v1182_v2, %v1181_v18  ;;  %v1020_v18 = vld [vmem:[#allocation3] sm:$0x1] }
 0x1b9   : > { %v1015_v27 = vrot.slane %v1014_v3, 1  ;;  %v1185_v62 = vadd.f32 %v1184_v48, %v1183_v20 }
 0x1bb   : > { %v1016_v50 = vadd.f32 %v1015_v27, %v1014_v3  ;;  %v1187_v7 = vadd.f32 %v1186_v42, %v1185_v62 }
 0x1bd   : > { %v1017_v52 = vadd.f32 %v1016_v50, %v882_v26  ;;  %v1189_v6 = vadd.f32 %v1188_v0, %v1187_v7 }
 0x1bf   : > { %1019 = vst.msk [vmem:[#allocation2] sm:$0x1] %vm1018_vm6, %v1017_v52  ;;  %v1191_v19 = vadd.f32 %v1190_v30, %v1189_v6 }
 0x1c1   : > { %v1193_v11 = vadd.f32 %v1192_v34, %v1191_v19 }
 0x1c3   : > { %v1195_v12 = vadd.f32 %v1194_v24, %v1193_v11 }
 0x1c5   : > { %v1197_v63 = vadd.f32 %v1196_v39, %v1195_v12 }
 0x1c7   : > { %v1199_v25 = vadd.f32 %v1198_v28, %v1197_v63 }
 0x1c9   : > { %v1201_v54 = vadd.f32 %v1200_v33, %v1199_v25 }
 0x1cb   : > { %v1203_v16 = vadd.f32 %v1202_v9, %v1201_v54 }
 0x1cd   : > { %v1205_v4 = vadd.f32 %v1204_v60, %v1203_v16 }
 0x1cf   : > { %v1207_v58 = vadd.f32 %v1206_v5, %v1205_v4 }
 0x1d1   : > { %v1209_v38 = vadd.f32 %v1208_v37, %v1207_v58 }
 0x1d3   : > { %v1211_v15 = vadd.f32 %v1210_v13, %v1209_v38 }
 0x1d5   : > { %v1212_v61 = vrot.slane %v1211_v15, 4 }
 0x1d7   : > { %v1213_v31 = vadd.f32 %v1212_v61, %v1211_v15 }
 0x1d9   : > { %v1214_v2 = vrot.slane %v1213_v31, 2 }
 0x1db   : > { %v1215_v23 = vadd.f32 %v1214_v2, %v1213_v31 }
 0x1dd   : > { %v1216_v32 = vrot.slane %v1215_v23, 1 }
 0x1df   : > { %v1217_v46 = vadd.f32 %v1216_v32, %v1215_v23 }
 0x1e1   : > { %v1218_v48 = vadd.f32 %v1217_v46, %v1020_v18 }
 0x1e3   : > { %1219 = vst.msk [vmem:[#allocation3] sm:$0x1] %vm1018_vm6, %v1218_v48 }
 0x1e4 PF: > { %p2294_p10 = scmp.ne.s32.totalorder %s2717_s16, 1 }
 0x1e6   : > { %1544 = sbr.rel (%p2294_p10) target bundleno = 591 (0x24f), region = 48 }
 0x1eb   : > { %v1545_v36 = vld [vmem:[#allocation2] sm:$0x1]  ;;  %v1547_v3 = vld [vmem:[#allocation3] sm:$0x1]  ;;  %v1559_v26 = vlaneseq  ;;  %vm2018_vm7 = vcmask 257024   ;;  %v4195_v56 = vld [vmem:[#allocation12_spill] sm:$0xff] }
 0x1ec   : > { %v1546_v20 = vmul.f32 0.00055555557, %v1545_v36  ;;  %v1548_v22 = vmul.f32 0.00055555557, %v1547_v3  ;;  %v1551_v0 = vld [vmem:[%s4014_s2] sm:$0x1] }
 0x1ed   : > { %v1560_v8 = vshrl.u32 %v1559_v26, 7  ;;  %v1555_v30 = vld [vmem:[%s4015_s3] sm:$0x1]  ;;  %v4197_v63 = vld [vmem:[#allocation21_spill] sm:$0xff] }
 0x1ee   : > { %v1549_v42 = vmul.f32 %v1546_v20, %v1546_v20  ;;  %v4196_v28 = vld [vmem:[#allocation15_spill] sm:$0xff]  ;;  %v4198_v10 = vld [vmem:[#allocation25_spill] sm:$0xff] }
 0x1ef   : > { %v1561_v50 = vsub.s32 0, %v1560_v8  ;;  %v4200_v26 = vld [vmem:[#allocation23_spill] sm:$0xff] }
 0x1f0   : > { %v1550_v27 = vsub.f32 %v1548_v22, %v1549_v42 }
 0x1f2   : > { %v1552_v62 = vadd.f32 1e-05, %v1550_v27  ;;  %v4199_v27 = vld [vmem:[#allocation19_spill] sm:$0xff] }
 0x1f4   : > { %2689 = vrsqrt.f32 %v1552_v62 }
 0x201   : > { %v2690_v7 = vpop.eup %2689 }
 0x202   : > { %v1554_v21 = vmul.f32 %v2690_v7, %v1551_v0 }
 0x204   : > { %v1556_v52 = vmul.f32 %v1554_v21, %v1546_v20  ;;  %v3673_v6 = vrot.slane %v1554_v21, %v1561_v50 }
 0x206   : > { %v1557_v57 = vsub.f32 %v1555_v30, %v1556_v52  ;;  %v1564_v34 = vmul.f32 %v3673_v6, %v2892_v43  ;;  %v1565_v19 = vmul.f32 %v3673_v6, %v2900_v47  ;;  %v1566_v40 = vmul.f32 %v2888_v41, %v3673_v6  ;;  %v4194_v47 = vld [vmem:[#allocation17_spill] sm:$0xff] }
 0x207   : > { %v1567_v24 = vmul.f32 %v2896_v45, %v3673_v6  ;;  %v1568_v11 = vmul.f32 %v3673_v6, %v2908_v51  ;;  %v1569_v17 = vmul.f32 %v3673_v6, %v2916_v55  ;;  %v1570_v39 = vmul.f32 %v2904_v49, %v3673_v6 }
 0x208   : > { %v3689_v12 = vrot.slane %v1557_v57, %v1561_v50  ;;  %v1571_v43 = vmul.f32 %v2912_v53, %v3673_v6  ;;  %v1572_v41 = vmul.f32 %v3673_v6, %v2924_v59  ;;  %v1573_v45 = vmul.f32 %v3673_v6, %v4194_v47  ;;  %v4201_v47 = vld [vmem:[#allocation29_spill] sm:$0xff] }
 0x209   : > { %v1574_v51 = vmul.f32 %v4195_v56, %v3673_v6  ;;  %v1575_v55 = vmul.f32 %v4196_v28, %v3673_v6  ;;  %v1576_v49 = vmul.f32 %v3673_v6, %v4197_v63  ;;  %v1577_v33 = vmul.f32 %v3673_v6, %v4198_v10  ;;  %v4202_v56 = vld [vmem:[#allocation33_spill] sm:$0xff]  ;;  %v4203_v28 = vld [vmem:[#allocation27_spill] sm:$0xff] }
 0x20a   : > { %v1634_v53 = vadd.f32 %v3689_v12, %v1564_v34  ;;  %v1635_v25 = vadd.f32 %v3689_v12, %v1565_v19  ;;  %v1636_v59 = vadd.f32 %v3689_v12, %v1566_v40  ;;  %v1637_v44 = vadd.f32 %v3689_v12, %v1567_v24  ;;  %v4204_v63 = vld [vmem:[#allocation31_spill] sm:$0xff] }
 0x20b   : > { %v1638_v9 = vadd.f32 %v3689_v12, %v1568_v11  ;;  %v1639_v54 = vadd.f32 %v3689_v12, %v1569_v17  ;;  %v1640_v1 = vadd.f32 %v3689_v12, %v1570_v39  ;;  %v1641_v60 = vadd.f32 %v3689_v12, %v1571_v43 }
 0x20c   : > { %v1698_v16 = vmax.f32 %v1634_v53, 0.0  ;;  %v1699_v14 = vmax.f32 %v1635_v25, 0.0  ;;  %v1700_v5 = vmax.f32 %v1636_v59, 0.0  ;;  %v1701_v4 = vmax.f32 %v1637_v44, 0.0  ;;  %v4205_v53 = vld [vmem:[#allocation37_spill] sm:$0xff] }
 0x20d   : > { %v1702_v37 = vmax.f32 %v1638_v9, 0.0  ;;  %v1703_v58 = vmax.f32 %v1639_v54, 0.0  ;;  %v1704_v13 = vmax.f32 %v1640_v1, 0.0  ;;  %v1705_v38 = vmax.f32 %v1641_v60, 0.0  ;;  %v4206_v59 = vld [vmem:[#allocation41_spill] sm:$0xff] }
 0x20e   : > { %v2425_v15 = vpack.c.bf16 %v1698_v16, %v1698_v16  ;;  %v2426_v61 = vpack.c.bf16 %v1699_v14, %v1699_v14  ;;  %v2427_v31 = vpack.c.bf16 %v1700_v5, %v1700_v5  ;;  %v2428_v2 = vpack.c.bf16 %v1701_v4, %v1701_v4  ;;  %v4207_v5 = vld [vmem:[#allocation35_spill] sm:$0xff] }
 0x20f   : > { %v2429_v23 = vpack.c.bf16 %v1702_v37, %v1702_v37  ;;  %v2430_v32 = vpack.c.bf16 %v1703_v58, %v1703_v58  ;;  %v2431_v18 = vpack.c.bf16 %v1704_v13, %v1704_v13  ;;  %v2432_v46 = vpack.c.bf16 %v1705_v38, %v1705_v38  ;;  %v4208_v37 = vld [vmem:[#allocation39_spill] sm:$0xff] }
 0x210   : > { %2019 = vst.msk [vmem:[%s2813_s11] sm:$0xf] %vm2018_vm7, %v2425_v15  ;;  %2020 = vst.msk [vmem:[%s2813_s11 + $0x4] sm:$0xf] %vm2018_vm7, %v2426_v61  ;;  %v1642_v48 = vadd.f32 %v3689_v12, %v1572_v41  ;;  %v1643_v36 = vadd.f32 %v3689_v12, %v1573_v45  ;;  %v1644_v3 = vadd.f32 %v3689_v12, %v1574_v51 }
 0x211   : > { %2021 = vst.msk [vmem:[%s2813_s11 + $0x8] sm:$0xf] %vm2018_vm7, %v2427_v31  ;;  %2022 = vst.msk [vmem:[%s2813_s11 + $0xc] sm:$0xf] %vm2018_vm7, %v2428_v2  ;;  %v1645_v20 = vadd.f32 %v3689_v12, %v1575_v55  ;;  %v1646_v22 = vadd.f32 %v3689_v12, %v1576_v49  ;;  %v1647_v42 = vadd.f32 %v3689_v12, %v1577_v33 }
 0x212   : > { %2023 = vst.msk [vmem:[%s2813_s11 + $0x10] sm:$0xf] %vm2018_vm7, %v2429_v23  ;;  %2024 = vst.msk [vmem:[%s2813_s11 + $0x14] sm:$0xf] %vm2018_vm7, %v2430_v32  ;;  %v1578_v62 = vmul.f32 %v4199_v27, %v3673_v6  ;;  %v1579_v8 = vmul.f32 %v4200_v26, %v3673_v6  ;;  %v1706_v0 = vmax.f32 %v1642_v48, 0.0  ;;  %v1707_v50 = vmax.f32 %v1643_v36, 0.0 }
 0x213   : > { %2025 = vst.msk [vmem:[%s2813_s11 + $0x18] sm:$0xf] %vm2018_vm7, %v2431_v18  ;;  %2026 = vst.msk [vmem:[%s2813_s11 + $0x1c] sm:$0xf] %vm2018_vm7, %v2432_v46  ;;  %v1708_v7 = vmax.f32 %v1644_v3, 0.0  ;;  %v1709_v21 = vmax.f32 %v1645_v20, 0.0  ;;  %v1580_v45 = vmul.f32 %v3673_v6, %v4201_v47  ;;  %v1581_v51 = vmul.f32 %v3673_v6, %v4202_v56 }
 0x214   : > { %v1710_v30 = vmax.f32 %v1646_v22, 0.0  ;;  %v1711_v52 = vmax.f32 %v1647_v42, 0.0  ;;  %v1648_v57 = vadd.f32 %v3689_v12, %v1578_v62  ;;  %v1649_v34 = vadd.f32 %v3689_v12, %v1579_v8  ;;  %v4209_v27 = vld [vmem:[#allocation45_spill] sm:$0xff]  ;;  %v4210_v26 = vld [vmem:[#allocation48_spill] sm:$0xff] }
 0x215   : > { %v2433_v19 = vpack.c.bf16 %v1706_v0, %v1706_v0  ;;  %v2434_v40 = vpack.c.bf16 %v1707_v50, %v1707_v50  ;;  %v2435_v24 = vpack.c.bf16 %v1708_v7, %v1708_v7  ;;  %v2436_v11 = vpack.c.bf16 %v1709_v21, %v1709_v21  ;;  %v4211_v0 = vld [vmem:[#allocation43_spill] sm:$0xff] }
 0x216   : > { %v2437_v17 = vpack.c.bf16 %v1710_v30, %v1710_v30  ;;  %v2438_v39 = vpack.c.bf16 %v1711_v52, %v1711_v52  ;;  %v1712_v43 = vmax.f32 %v1648_v57, 0.0  ;;  %v1713_v41 = vmax.f32 %v1649_v34, 0.0  ;;  %v4212_v57 = vld [vmem:[#allocation55_spill] sm:$0xff] }
 0x217   : > { %2027 = vst.msk [vmem:[%s2813_s11 + $0x20] sm:$0xf] %vm2018_vm7, %v2433_v19  ;;  %2028 = vst.msk [vmem:[%s2813_s11 + $0x24] sm:$0xf] %vm2018_vm7, %v2434_v40  ;;  %v1582_v55 = vmul.f32 %v4203_v28, %v3673_v6  ;;  %v1583_v49 = vmul.f32 %v4204_v63, %v3673_v6  ;;  %v1584_v25 = vmul.f32 %v3673_v6, %v4205_v53 }
 0x218   : > { %2029 = vst.msk [vmem:[%s2813_s11 + $0x28] sm:$0xf] %vm2018_vm7, %v2435_v24  ;;  %2030 = vst.msk [vmem:[%s2813_s11 + $0x2c] sm:$0xf] %vm2018_vm7, %v2436_v11  ;;  %v2439_v10 = vpack.c.bf16 %v1712_v43, %v1712_v43  ;;  %v2440_v33 = vpack.c.bf16 %v1713_v41, %v1713_v41  ;;  %v1585_v44 = vmul.f32 %v3673_v6, %v4206_v59  ;;  %v4214_v43 = vld [vmem:[#allocation53_spill] sm:$0xff] }
 0x219   : > { %2031 = vst.msk [vmem:[%s2813_s11 + $0x30] sm:$0xf] %vm2018_vm7, %v2437_v17  ;;  %2032 = vst.msk [vmem:[%s2813_s11 + $0x34] sm:$0xf] %vm2018_vm7, %v2438_v39  ;;  %v1650_v9 = vadd.f32 %v3689_v12, %v1580_v45  ;;  %v1651_v54 = vadd.f32 %v3689_v12, %v1581_v51  ;;  %v1652_v1 = vadd.f32 %v3689_v12, %v1582_v55 }
 0x21a   : > { %v1653_v60 = vadd.f32 %v3689_v12, %v1583_v49  ;;  %2033 = vst.msk [vmem:[%s2813_s11 + $0x38] sm:$0xf] %vm2018_vm7, %v2439_v10  ;;  %2034 = vst.msk [vmem:[%s2813_s11 + $0x3c] sm:$0xf] %vm2018_vm7, %v2440_v33  ;;  %v1654_v16 = vadd.f32 %v3689_v12, %v1584_v25  ;;  %v1655_v14 = vadd.f32 %v3689_v12, %v1585_v44 }
 0x21b   : > { %v1586_v4 = vmul.f32 %v4207_v5, %v3673_v6  ;;  %v1587_v58 = vmul.f32 %v4208_v37, %v3673_v6  ;;  %v1714_v13 = vmax.f32 %v1650_v9, 0.0  ;;  %v1715_v38 = vmax.f32 %v1651_v54, 0.0  ;;  %v4217_v5 = vld [vmem:[#allocation4_spill] sm:$0xff]  ;;  %v4218_v37 = vld [vmem:[#allocation6_spill] sm:$0xff] }
 0x21c   : > { %v1716_v15 = vmax.f32 %v1652_v1, 0.0  ;;  %v1717_v61 = vmax.f32 %v1653_v60, 0.0  ;;  %v1718_v31 = vmax.f32 %v1654_v16, 0.0  ;;  %v1719_v2 = vmax.f32 %v1655_v14, 0.0  ;;  %v4215_v1 = vld [vmem:[#allocation5_spill] sm:$0xff]  ;;  %v4216_v16 = vld [vmem:[#allocation7_spill] sm:$0xff] }
 0x21d   : > { %v1656_v23 = vadd.f32 %v3689_v12, %v1586_v4  ;;  %v1657_v32 = vadd.f32 %v3689_v12, %v1587_v58  ;;  %v2441_v18 = vpack.c.bf16 %v1714_v13, %v1714_v13  ;;  %v2442_v46 = vpack.c.bf16 %v1715_v38, %v1715_v38 }
 0x21e   : > { %v2443_v48 = vpack.c.bf16 %v1716_v15, %v1716_v15  ;;  %v2444_v36 = vpack.c.bf16 %v1717_v61, %v1717_v61  ;;  %v2445_v3 = vpack.c.bf16 %v1718_v31, %v1718_v31  ;;  %v2446_v20 = vpack.c.bf16 %v1719_v2, %v1719_v2  ;;  %v4219_v15 = vld [vmem:[#allocation9_spill] sm:$0xff]  ;;  %v4220_v31 = vld [vmem:[#allocation11_spill] sm:$0xff] }
 0x21f   : > { %v1720_v22 = vmax.f32 %v1656_v23, 0.0  ;;  %v1721_v42 = vmax.f32 %v1657_v32, 0.0  ;;  %2035 = vst.msk [vmem:[%s2813_s11 + $0x40] sm:$0xf] %vm2018_vm7, %v2441_v18  ;;  %2036 = vst.msk [vmem:[%s2813_s11 + $0x44] sm:$0xf] %vm2018_vm7, %v2442_v46  ;;  %v1588_v62 = vmul.f32 %v3673_v6, %v4209_v27  ;;  %v1589_v8 = vmul.f32 %v3673_v6, %v4210_v26 }
 0x220   : > { %2037 = vst.msk [vmem:[%s2813_s11 + $0x48] sm:$0xf] %vm2018_vm7, %v2443_v48  ;;  %2038 = vst.msk [vmem:[%s2813_s11 + $0x4c] sm:$0xf] %vm2018_vm7, %v2444_v36  ;;  %v1590_v50 = vmul.f32 %v4211_v0, %v3673_v6  ;;  %v1591_v7 = vmul.f32 %v2992_v29, %v3673_v6  ;;  %v1592_v52 = vmul.f32 %v3673_v6, %v3004_v35  ;;  %v4213_v35 = vld [vmem:[#allocation50_spill] sm:$0xff] }
 0x221   : > { %2039 = vst.msk [vmem:[%s2813_s11 + $0x50] sm:$0xf] %vm2018_vm7, %v2445_v3  ;;  %2040 = vst.msk [vmem:[%s2813_s11 + $0x54] sm:$0xf] %vm2018_vm7, %v2446_v20  ;;  %v2447_v21 = vpack.c.bf16 %v1720_v22, %v1720_v22  ;;  %v2448_v30 = vpack.c.bf16 %v1721_v42, %v1721_v42  ;;  %v1593_v34 = vmul.f32 %v3673_v6, %v4212_v57  ;;  %v4221_v3 = vld [vmem:[#allocation8_spill] sm:$0xff]  ;;  %v4222_v22 = vld [vmem:[#allocation10_spill] sm:$0xff] }
 0x222   : > { %v1658_v19 = vadd.f32 %v3689_v12, %v1588_v62  ;;  %v1659_v40 = vadd.f32 %v3689_v12, %v1589_v8  ;;  %v1660_v24 = vadd.f32 %v3689_v12, %v1590_v50  ;;  %v1661_v29 = vadd.f32 %v3689_v12, %v1591_v7 }
 0x223   : > { %2041 = vst.msk [vmem:[%s2813_s11 + $0x58] sm:$0xf] %vm2018_vm7, %v2447_v21  ;;  %2042 = vst.msk [vmem:[%s2813_s11 + $0x5c] sm:$0xf] %vm2018_vm7, %v2448_v30  ;;  %v1662_v11 = vadd.f32 %v3689_v12, %v1592_v52  ;;  %v1663_v17 = vadd.f32 %v3689_v12, %v1593_v34  ;;  %v1594_v39 = vmul.f32 %v4213_v35, %v3673_v6  ;;  %v4224_v35 = vld [vmem:[#allocation18_spill] sm:$0xff] }
 0x224   : > { %v1595_v41 = vmul.f32 %v4214_v43, %v3673_v6  ;;  %v1722_v47 = vmax.f32 %v1658_v19, 0.0  ;;  %v1723_v45 = vmax.f32 %v1659_v40, 0.0  ;;  %v1724_v56 = vmax.f32 %v1660_v24, 0.0  ;;  %v4225_v43 = vld [vmem:[#allocation13_spill] sm:$0xff] }
 0x225   : > { %v1725_v51 = vmax.f32 %v1661_v29, 0.0  ;;  %v1726_v28 = vmax.f32 %v1662_v11, 0.0  ;;  %v1727_v55 = vmax.f32 %v1663_v17, 0.0  ;;  %v1664_v63 = vadd.f32 %v3689_v12, %v1594_v39  ;;  %v4223_v11 = vld [vmem:[#allocation14_spill] sm:$0xff] }
 0x226   : > { %v1665_v49 = vadd.f32 %v3689_v12, %v1595_v41  ;;  %v2449_v10 = vpack.c.bf16 %v1722_v47, %v1722_v47  ;;  %v2450_v33 = vpack.c.bf16 %v1723_v45, %v1723_v45  ;;  %v2451_v53 = vpack.c.bf16 %v1724_v56, %v1724_v56  ;;  %v4226_v47 = vld [vmem:[#allocation16_spill] sm:$0xff] }
 0x227   : > { %v2452_v25 = vpack.c.bf16 %v1725_v51, %v1725_v51  ;;  %v2453_v59 = vpack.c.bf16 %v1726_v28, %v1726_v28  ;;  %v2454_v44 = vpack.c.bf16 %v1727_v55, %v1727_v55  ;;  %v1728_v9 = vmax.f32 %v1664_v63, 0.0  ;;  %v4227_v28 = vld [vmem:[#allocation22_spill] sm:$0xff] }
 0x228   : > { %v1729_v54 = vmax.f32 %v1665_v49, 0.0  ;;  %2043 = vst.msk [vmem:[%s2813_s11 + $0x60] sm:$0xf] %vm2018_vm7, %v2449_v10  ;;  %2044 = vst.msk [vmem:[%s2813_s11 + $0x64] sm:$0xf] %vm2018_vm7, %v2450_v33  ;;  %v1596_v60 = vmul.f32 %v3673_v6, %v4215_v1  ;;  %v1597_v14 = vmul.f32 %v3673_v6, %v4216_v16  ;;  %v1598_v4 = vmul.f32 %v4217_v5, %v3673_v6  ;;  %v4228_v63 = vld [vmem:[#allocation26_spill] sm:$0xff] }
 0x229   : > { %2045 = vst.msk [vmem:[%s2813_s11 + $0x68] sm:$0xf] %vm2018_vm7, %v2451_v53  ;;  %2046 = vst.msk [vmem:[%s2813_s11 + $0x6c] sm:$0xf] %vm2018_vm7, %v2452_v25  ;;  %v1599_v58 = vmul.f32 %v4218_v37, %v3673_v6  ;;  %v2455_v13 = vpack.c.bf16 %v1728_v9, %v1728_v9  ;;  %v1600_v61 = vmul.f32 %v3673_v6, %v4219_v15  ;;  %v4229_v9 = vld [vmem:[#allocation20_spill] sm:$0xff] }
 0x22a   : > { %2047 = vst.msk [vmem:[%s2813_s11 + $0x70] sm:$0xf] %vm2018_vm7, %v2453_v59  ;;  %2048 = vst.msk [vmem:[%s2813_s11 + $0x74] sm:$0xf] %vm2018_vm7, %v2454_v44  ;;  %v2456_v38 = vpack.c.bf16 %v1729_v54, %v1729_v54  ;;  %v1601_v2 = vmul.f32 %v3673_v6, %v4220_v31  ;;  %v1666_v23 = vadd.f32 %v3689_v12, %v1596_v60  ;;  %v4230_v1 = vld [vmem:[#allocation24_spill] sm:$0xff] }
 0x22b   : > { %v1667_v32 = vadd.f32 %v3689_v12, %v1597_v14  ;;  %v1668_v18 = vadd.f32 %v3689_v12, %v1598_v4  ;;  %v1669_v46 = vadd.f32 %v3689_v12, %v1599_v58  ;;  %2049 = vst.msk [vmem:[%s2813_s11 + $0x78] sm:$0xf] %vm2018_vm7, %v2455_v13  ;;  %v1670_v48 = vadd.f32 %v3689_v12, %v1600_v61 }
 0x22c   : > { %2050 = vst.msk [vmem:[%s2813_s11 + $0x7c] sm:$0xf] %vm2018_vm7, %v2456_v38  ;;  %v1671_v36 = vadd.f32 %v3689_v12, %v1601_v2  ;;  %v1602_v20 = vmul.f32 %v4221_v3, %v3673_v6  ;;  %v1603_v42 = vmul.f32 %v4222_v22, %v3673_v6  ;;  %v1730_v27 = vmax.f32 %v1666_v23, 0.0  ;;  %v4232_v3 = vld [vmem:[#allocation34_spill] sm:$0xff]  ;;  %v4233_v22 = vld [vmem:[#allocation28_spill] sm:$0xff] }
 0x22d   : > { %v1731_v62 = vmax.f32 %v1667_v32, 0.0  ;;  %v1732_v26 = vmax.f32 %v1668_v18, 0.0  ;;  %v1733_v8 = vmax.f32 %v1669_v46, 0.0  ;;  %v1734_v0 = vmax.f32 %v1670_v48, 0.0  ;;  %v4231_v48 = vld [vmem:[#allocation30_spill] sm:$0xff] }
 0x22e   : > { %v1735_v50 = vmax.f32 %v1671_v36, 0.0  ;;  %v1672_v7 = vadd.f32 %v3689_v12, %v1602_v20  ;;  %v1673_v21 = vadd.f32 %v3689_v12, %v1603_v42  ;;  %v2457_v30 = vpack.c.bf16 %v1730_v27, %v1730_v27  ;;  %v4234_v27 = vld [vmem:[#allocation32_spill] sm:$0xff] }
 0x22f   : > { %v2458_v52 = vpack.c.bf16 %v1731_v62, %v1731_v62  ;;  %v2459_v57 = vpack.c.bf16 %v1732_v26, %v1732_v26  ;;  %v2460_v34 = vpack.c.bf16 %v1733_v8, %v1733_v8  ;;  %v2461_v19 = vpack.c.bf16 %v1734_v0, %v1734_v0  ;;  %v4235_v0 = vld [vmem:[#allocation38_spill] sm:$0xff] }
 0x230   : > { %v2462_v40 = vpack.c.bf16 %v1735_v50, %v1735_v50  ;;  %v1736_v24 = vmax.f32 %v1672_v7, 0.0  ;;  %v1737_v29 = vmax.f32 %v1673_v21, 0.0  ;;  %2051 = vst.msk [vmem:[%s2813_s11 + $0x80] sm:$0xf] %vm2018_vm7, %v2457_v30  ;;  %v1604_v17 = vmul.f32 %v3673_v6, %v4223_v11  ;;  %v4236_v7 = vld [vmem:[#allocation42_spill] sm:$0xff]  ;;  %v4238_v11 = vld [vmem:[#allocation40_spill] sm:$0xff] }
 0x231   : > { %2052 = vst.msk [vmem:[%s2813_s11 + $0x84] sm:$0xf] %vm2018_vm7, %v2458_v52  ;;  %2053 = vst.msk [vmem:[%s2813_s11 + $0x88] sm:$0xf] %vm2018_vm7, %v2459_v57  ;;  %v1605_v39 = vmul.f32 %v3673_v6, %v4224_v35  ;;  %v1606_v41 = vmul.f32 %v4225_v43, %v3673_v6  ;;  %v1607_v45 = vmul.f32 %v4226_v47, %v3673_v6 }
 0x232   : > { %2054 = vst.msk [vmem:[%s2813_s11 + $0x8c] sm:$0xf] %vm2018_vm7, %v2460_v34  ;;  %2055 = vst.msk [vmem:[%s2813_s11 + $0x90] sm:$0xf] %vm2018_vm7, %v2461_v19  ;;  %v2463_v56 = vpack.c.bf16 %v1736_v24, %v1736_v24  ;;  %v2464_v51 = vpack.c.bf16 %v1737_v29, %v1737_v29  ;;  %v1608_v55 = vmul.f32 %v3673_v6, %v4227_v28  ;;  %v4237_v24 = vld [vmem:[#allocation36_spill] sm:$0xff] }
 0x233   : > { %2056 = vst.msk [vmem:[%s2813_s11 + $0x94] sm:$0xf] %vm2018_vm7, %v2462_v40  ;;  %v1609_v49 = vmul.f32 %v3673_v6, %v4228_v63  ;;  %v1674_v10 = vadd.f32 %v3689_v12, %v1604_v17  ;;  %v1675_v33 = vadd.f32 %v3689_v12, %v1605_v39  ;;  %v1676_v53 = vadd.f32 %v3689_v12, %v1606_v41 }
 0x234   : > { %v1677_v25 = vadd.f32 %v3689_v12, %v1607_v45  ;;  %2057 = vst.msk [vmem:[%s2813_s11 + $0x98] sm:$0xf] %vm2018_vm7, %v2463_v56  ;;  %2058 = vst.msk [vmem:[%s2813_s11 + $0x9c] sm:$0xf] %vm2018_vm7, %v2464_v51  ;;  %v1678_v59 = vadd.f32 %v3689_v12, %v1608_v55  ;;  %v1610_v54 = vmul.f32 %v4229_v9, %v3673_v6  ;;  %v4240_v9 = vld [vmem:[#allocation49_spill] sm:$0xff] }
 0x235   : > { %v1679_v44 = vadd.f32 %v3689_v12, %v1609_v49  ;;  %v1611_v60 = vmul.f32 %v4230_v1, %v3673_v6  ;;  %v1738_v16 = vmax.f32 %v1674_v10, 0.0  ;;  %v1739_v14 = vmax.f32 %v1675_v33, 0.0  ;;  %v4241_v1 = vld [vmem:[#allocation44_spill] sm:$0xff] }
 0x236   : > { %v1740_v5 = vmax.f32 %v1676_v53, 0.0  ;;  %v1741_v4 = vmax.f32 %v1677_v25, 0.0  ;;  %v1742_v37 = vmax.f32 %v1678_v59, 0.0  ;;  %v1680_v13 = vadd.f32 %v3689_v12, %v1610_v54  ;;  %v4239_v59 = vld [vmem:[#allocation46_spill] sm:$0xff] }
 0x237   : > { %v1743_v58 = vmax.f32 %v1679_v44, 0.0  ;;  %v1681_v38 = vadd.f32 %v3689_v12, %v1611_v60  ;;  %v2465_v15 = vpack.c.bf16 %v1738_v16, %v1738_v16  ;;  %v2466_v61 = vpack.c.bf16 %v1739_v14, %v1739_v14  ;;  %v4242_v16 = vld [vmem:[#allocation47_spill] sm:$0xff] }
 0x238   : > { %v2467_v31 = vpack.c.bf16 %v1740_v5, %v1740_v5  ;;  %v2468_v2 = vpack.c.bf16 %v1741_v4, %v1741_v4  ;;  %v2469_v23 = vpack.c.bf16 %v1742_v37, %v1742_v37  ;;  %v1744_v18 = vmax.f32 %v1680_v13, 0.0  ;;  %v4243_v37 = vld [vmem:[#allocation52_spill] sm:$0xff] }
 0x239   : > { %v2470_v32 = vpack.c.bf16 %v1743_v58, %v1743_v58  ;;  %v1745_v46 = vmax.f32 %v1681_v38, 0.0  ;;  %2059 = vst.msk [vmem:[%s2813_s11 + $0xa0] sm:$0xf] %vm2018_vm7, %v2465_v15  ;;  %2060 = vst.msk [vmem:[%s2813_s11 + $0xa4] sm:$0xf] %vm2018_vm7, %v2466_v61  ;;  %v1612_v36 = vmul.f32 %v3673_v6, %v4231_v48  ;;  %v1613_v20 = vmul.f32 %v3673_v6, %v4232_v3  ;;  %v4244_v13 = vld [vmem:[#allocation56_spill] sm:$0xff] }
 0x23a   : > { %2061 = vst.msk [vmem:[%s2813_s11 + $0xa8] sm:$0xf] %vm2018_vm7, %v2467_v31  ;;  %2062 = vst.msk [vmem:[%s2813_s11 + $0xac] sm:$0xf] %vm2018_vm7, %v2468_v2  ;;  %v1614_v42 = vmul.f32 %v4233_v22, %v3673_v6  ;;  %v1615_v62 = vmul.f32 %v4234_v27, %v3673_v6  ;;  %v2471_v26 = vpack.c.bf16 %v1744_v18, %v1744_v18  ;;  %v4245_v18 = vld [vmem:[#allocation51_spill] sm:$0xff]  ;;  %v4246_v48 = vld [vmem:[#allocation54_spill] sm:$0xff] }
 0x23b   : > { %2063 = vst.msk [vmem:[%s2813_s11 + $0xb0] sm:$0xf] %vm2018_vm7, %v2469_v23  ;;  %2064 = vst.msk [vmem:[%s2813_s11 + $0xb4] sm:$0xf] %vm2018_vm7, %v2470_v32  ;;  %v2472_v8 = vpack.c.bf16 %v1745_v46, %v1745_v46  ;;  %v1616_v50 = vmul.f32 %v3673_v6, %v4235_v0  ;;  %v1617_v21 = vmul.f32 %v3673_v6, %v4236_v7 }
 0x23c   : > { %v1682_v30 = vadd.f32 %v3689_v12, %v1612_v36  ;;  %v1683_v52 = vadd.f32 %v3689_v12, %v1613_v20  ;;  %v1684_v57 = vadd.f32 %v3689_v12, %v1614_v42  ;;  %v1685_v34 = vadd.f32 %v3689_v12, %v1615_v62  ;;  %2065 = vst.msk [vmem:[%s2813_s11 + $0xb8] sm:$0xf] %vm2018_vm7, %v2471_v26 }
 0x23d   : > { %2066 = vst.msk [vmem:[%s2813_s11 + $0xbc] sm:$0xf] %vm2018_vm7, %v2472_v8  ;;  %v1686_v19 = vadd.f32 %v3689_v12, %v1616_v50  ;;  %v1687_v40 = vadd.f32 %v3689_v12, %v1617_v21  ;;  %v1618_v29 = vmul.f32 %v4237_v24, %v3673_v6  ;;  %v1619_v17 = vmul.f32 %v4238_v11, %v3673_v6 }
 0x23e   : > { %v1746_v35 = vmax.f32 %v1682_v30, 0.0  ;;  %v1747_v39 = vmax.f32 %v1683_v52, 0.0  ;;  %v1748_v43 = vmax.f32 %v1684_v57, 0.0  ;;  %v1749_v41 = vmax.f32 %v1685_v34, 0.0 }
 0x23f   : > { %v1750_v47 = vmax.f32 %v1686_v19, 0.0  ;;  %v1751_v45 = vmax.f32 %v1687_v40, 0.0  ;;  %v1688_v56 = vadd.f32 %v3689_v12, %v1618_v29  ;;  %v1689_v51 = vadd.f32 %v3689_v12, %v1619_v17 }
 0x240   : > { %v2473_v28 = vpack.c.bf16 %v1746_v35, %v1746_v35  ;;  %v2474_v55 = vpack.c.bf16 %v1747_v39, %v1747_v39  ;;  %v2475_v63 = vpack.c.bf16 %v1748_v43, %v1748_v43  ;;  %v2476_v49 = vpack.c.bf16 %v1749_v41, %v1749_v41 }
 0x241   : > { %v2477_v10 = vpack.c.bf16 %v1750_v47, %v1750_v47  ;;  %v2478_v33 = vpack.c.bf16 %v1751_v45, %v1751_v45  ;;  %v1752_v53 = vmax.f32 %v1688_v56, 0.0  ;;  %v1753_v25 = vmax.f32 %v1689_v51, 0.0 }
 0x242   : > { %2067 = vst.msk [vmem:[%s2813_s11 + $0xc0] sm:$0xf] %vm2018_vm7, %v2473_v28  ;;  %2068 = vst.msk [vmem:[%s2813_s11 + $0xc4] sm:$0xf] %vm2018_vm7, %v2474_v55  ;;  %v1620_v44 = vmul.f32 %v3673_v6, %v4239_v59  ;;  %v1621_v54 = vmul.f32 %v3673_v6, %v4240_v9  ;;  %v1622_v60 = vmul.f32 %v4241_v1, %v3673_v6 }
 0x243   : > { %2069 = vst.msk [vmem:[%s2813_s11 + $0xc8] sm:$0xf] %vm2018_vm7, %v2475_v63  ;;  %2070 = vst.msk [vmem:[%s2813_s11 + $0xcc] sm:$0xf] %vm2018_vm7, %v2476_v49  ;;  %v1623_v14 = vmul.f32 %v4242_v16, %v3673_v6  ;;  %v2479_v5 = vpack.c.bf16 %v1752_v53, %v1752_v53  ;;  %v2480_v4 = vpack.c.bf16 %v1753_v25, %v1753_v25 }
 0x244   : > { %2071 = vst.msk [vmem:[%s2813_s11 + $0xd0] sm:$0xf] %vm2018_vm7, %v2477_v10  ;;  %2072 = vst.msk [vmem:[%s2813_s11 + $0xd4] sm:$0xf] %vm2018_vm7, %v2478_v33  ;;  %v1624_v58 = vmul.f32 %v3673_v6, %v4243_v37  ;;  %v1625_v38 = vmul.f32 %v3673_v6, %v4244_v13  ;;  %v1690_v15 = vadd.f32 %v3689_v12, %v1620_v44 }
 0x245   : > { %v1691_v61 = vadd.f32 %v3689_v12, %v1621_v54  ;;  %v1692_v31 = vadd.f32 %v3689_v12, %v1622_v60  ;;  %v1693_v2 = vadd.f32 %v3689_v12, %v1623_v14  ;;  %2073 = vst.msk [vmem:[%s2813_s11 + $0xd8] sm:$0xf] %vm2018_vm7, %v2479_v5  ;;  %2074 = vst.msk [vmem:[%s2813_s11 + $0xdc] sm:$0xf] %vm2018_vm7, %v2480_v4 }
 0x246   : > { %v1694_v23 = vadd.f32 %v3689_v12, %v1624_v58  ;;  %v1695_v32 = vadd.f32 %v3689_v12, %v1625_v38  ;;  %v1626_v46 = vmul.f32 %v4245_v18, %v3673_v6  ;;  %v1627_v36 = vmul.f32 %v4246_v48, %v3673_v6 }
 0x247   : > { %v1754_v3 = vmax.f32 %v1690_v15, 0.0  ;;  %v1755_v20 = vmax.f32 %v1691_v61, 0.0  ;;  %v1756_v22 = vmax.f32 %v1692_v31, 0.0  ;;  %v1757_v42 = vmax.f32 %v1693_v2, 0.0 }
 0x248   : > { %v1758_v27 = vmax.f32 %v1694_v23, 0.0  ;;  %v1759_v62 = vmax.f32 %v1695_v32, 0.0  ;;  %v1696_v26 = vadd.f32 %v3689_v12, %v1626_v46  ;;  %v1697_v8 = vadd.f32 %v3689_v12, %v1627_v36 }
 0x249   : > { %v2481_v0 = vpack.c.bf16 %v1754_v3, %v1754_v3  ;;  %v2482_v50 = vpack.c.bf16 %v1755_v20, %v1755_v20  ;;  %v2483_v6 = vpack.c.bf16 %v1756_v22, %v1756_v22  ;;  %v2484_v7 = vpack.c.bf16 %v1757_v42, %v1757_v42 }
 0x24a   : > { %v2485_v21 = vpack.c.bf16 %v1758_v27, %v1758_v27  ;;  %v2486_v30 = vpack.c.bf16 %v1759_v62, %v1759_v62  ;;  %v1760_v52 = vmax.f32 %v1696_v26, 0.0  ;;  %v1761_v57 = vmax.f32 %v1697_v8, 0.0 }
 0x24b   : > { %2075 = vst.msk [vmem:[%s2813_s11 + $0xe0] sm:$0xf] %vm2018_vm7, %v2481_v0  ;;  %2076 = vst.msk [vmem:[%s2813_s11 + $0xe4] sm:$0xf] %vm2018_vm7, %v2482_v50 }
 0x24c   : > { %2077 = vst.msk [vmem:[%s2813_s11 + $0xe8] sm:$0xf] %vm2018_vm7, %v2483_v6  ;;  %2078 = vst.msk [vmem:[%s2813_s11 + $0xec] sm:$0xf] %vm2018_vm7, %v2484_v7  ;;  %v2487_v12 = vpack.c.bf16 %v1760_v52, %v1760_v52  ;;  %v2488_v34 = vpack.c.bf16 %v1761_v57, %v1761_v57 }
 0x24d   : > { %2079 = vst.msk [vmem:[%s2813_s11 + $0xf0] sm:$0xf] %vm2018_vm7, %v2485_v21  ;;  %2080 = vst.msk [vmem:[%s2813_s11 + $0xf4] sm:$0xf] %vm2018_vm7, %v2486_v30 }
 0x24e   : > { %2081 = vst.msk [vmem:[%s2813_s11 + $0xf8] sm:$0xf] %vm2018_vm7, %v2487_v12  ;;  %2082 = vst.msk [vmem:[%s2813_s11 + $0xfc] sm:$0xf] %vm2018_vm7, %v2488_v34 }
 0x24f PF: > { %s14_s19 = sadd.s32 1, %s2729_s19   ;;  %s4247_s15 = smov %s2721_s17 }
 0x250   : > { %p11_p11 = scmp.ge.s32.totalorder %s14_s19, 10   ;;  %s4248_s16 = smov %s2725_s18 }
 0x251   : > { %s4249_s17 = smov %s4252_s20  ;;  %s4250_s18 = smov %s4256_s21 }
 0x252   :  { %13 = sbr.rel (!%p11_p11) target bundleno = 3 (0x3), region = 78 }

// kernel: critic_exp_forward.5
= control target key start
LH: loop header
LB: loop body
LE: loop exit
PB: predicated region body
PF: predicated region fallthrough
CT: control target
= control target key end

     0   :  { %s4251_s15 = smov 0   ;;  %s4253_s16 = smov 0   ;;  %s6056_s0 = inlined_call_operand.vmem [shape: bf16[352,800], index: 0, kind: input, shape index: {}]   ;;  %s6057_s1 = inlined_call_operand.vmem [shape: bf16[800,64], index: 1, kind: input, shape index: {}]   ;;  %s6058_s2 = inlined_call_operand.vmem [shape: f32[1,64], index: 2, kind: input, shape index: {}]   ;;  %s6059_s3 = inlined_call_operand.vmem [shape: f32[1,64], index: 3, kind: input, shape index: {}]   ;;  %s6060_s4 = inlined_call_operand.vmem [shape: bf16[352,64], index: 4, kind: output, shape index: {}]  }
   0x1   :  { %s4255_s17 = smov 0  }
   0x2 LB: > { %s26_s18 = sadd.s32 1, %s4218_s16  ;;  %p3387_p0 = scmp.ge.s32.totalorder %s4222_s17, 1  ;;  %s4222_s17 = sphi %s4255_s17, %s14_s17   ;;  %s4218_s16 = sphi %s4253_s16, %s6112_s16   ;;  %s4214_s15 = sphi %s4251_s15, %s6111_s15  }
   0x3   : > { %p28_p1 = scmp.ge.s32.totalorder %s26_s18, 2  ;;  %p176_p2 = scmp.lt.s32.totalorder %s4222_s17, 3 }
   0x5   : > { %s6114_s18 = smov (%p28_p1, %s26_s18), 0  ;;  %p177_p3 = pnand %p3387_p0, %p176_p2 }
   0x7   : > { %180 = sbr.rel (%p177_p3) target bundleno = 803 (0x323), region = 36 }
   0xc   : > { %v3928_v0 = vld [vmem:[%s6057_s1 + $0x38] sm:$0xff]   ;;  %v4224_v1 = vmov 0   ;;  %v3930_v3 = vld [vmem:[%s6057_s1 + $0x30] sm:$0xff]   ;;  %v3932_v5 = vld [vmem:[%s6057_s1 + $0x28] sm:$0xff]   ;;  %vm1563_vm0 = vcmask 261120   ;;  %p2466_p4 = scmp.eq.s32.totalorder %s4214_s15, 0 }
   0xd   : > { %1630 = vmatprep.subr.bf16.mxu0 %v4224_v1  ;;  %1839 = vmatprep.subr.bf16.mxu1 %v4224_v1  ;;  %v3929_v2 = vld [vmem:[%s6057_s1 + $0xb8] sm:$0xff]   ;;  %v3931_v4 = vld [vmem:[%s6057_s1 + $0xb0] sm:$0xff]   ;;  %v3933_v6 = vld [vmem:[%s6057_s1 + $0xa8] sm:$0xff]   ;;  %vm2472_vm1 = vcmask (%p2466_p4), 516096  }
   0xe   : > { %1631 = vmatpush1.bf16.msra.mxu0 %v3928_v0  ;;  %1840 = vmatpush1.bf16.msra.mxu1 %v3929_v2  ;;  %v3934_v7 = vld [vmem:[%s6057_s1 + $0x20] sm:$0xff]   ;;  %v3936_v9 = vld [vmem:[%s6057_s1 + $0x18] sm:$0xff]   ;;  %v3938_v11 = vld [vmem:[%s6057_s1 + $0x10] sm:$0xff]  }
   0xf   : > { %1632 = vmatprep.subr.bf16.mxu0 %v4224_v1  ;;  %1841 = vmatprep.subr.bf16.mxu1 %v4224_v1  ;;  %v3935_v8 = vld [vmem:[%s6057_s1 + $0xa0] sm:$0xff]   ;;  %v3937_v10 = vld [vmem:[%s6057_s1 + $0x98] sm:$0xff]   ;;  %v3939_v12 = vld [vmem:[%s6057_s1 + $0x90] sm:$0xff]  }
  0x10   : > { %v3940_v13 = vld [vmem:[%s6057_s1 + $0x8] sm:$0xff]   ;;  %v3942_v15 = vld [vmem:[%s6057_s1] sm:$0xff]   ;;  %v3944_v17 = vld [vmem:[%s6057_s1 + $0x78] sm:$0xff]  }
  0x11   : > { %v3941_v14 = vld [vmem:[%s6057_s1 + $0x88] sm:$0xff]   ;;  %v3943_v16 = vld [vmem:[%s6057_s1 + $0x80] sm:$0xff]   ;;  %v3945_v18 = vld [vmem:[%s6057_s1 + $0xf8] sm:$0xff]  }
  0x12   : > { %1633 = vmatpush1.bf16.msra.mxu0 %v3930_v3  ;;  %1842 = vmatpush1.bf16.msra.mxu1 %v3931_v4  ;;  %v3962_v19 = vld [vmem:[%s6056_s0 + $0x4] ss:$28 sps:$4 sm:$0xff]   ;;  %v3946_v20 = vld [vmem:[%s6057_s1 + $0x70] sm:$0xff]   ;;  %v3965_v21 = vld [vmem:[%s6056_s0 + $0xc] ss:$28 sps:$4 sm:$0xff]  }
  0x13   : > { %1634 = vmatprep.subr.bf16.mxu0 %v4224_v1  ;;  %1843 = vmatprep.subr.bf16.mxu1 %v4224_v1  ;;  %v3947_v22 = vld [vmem:[%s6057_s1 + $0xf0] sm:$0xff]   ;;  %v3948_v23 = vld [vmem:[%s6057_s1 + $0x68] sm:$0xff]   ;;  %v3950_v25 = vld [vmem:[%s6057_s1 + $0x60] sm:$0xff]  }
  0x14   : > { %1662 = vmatprep.mubr.bf16.mxu0 %v3962_v19  ;;  %1871 = vmatprep.mubr.bf16.mxu1 %v3965_v21  ;;  %v3949_v24 = vld [vmem:[%s6057_s1 + $0xe8] sm:$0xff]   ;;  %v3951_v26 = vld [vmem:[%s6057_s1 + $0xe0] sm:$0xff]   ;;  %v3952_v27 = vld [vmem:[%s6057_s1 + $0x58] sm:$0xff]  }
  0x15   : > { %v3953_v28 = vld [vmem:[%s6057_s1 + $0xd8] sm:$0xff]   ;;  %v3954_v29 = vld [vmem:[%s6057_s1 + $0x50] sm:$0xff]   ;;  %v3956_v31 = vld [vmem:[%s6057_s1 + $0x48] sm:$0xff]  }
  0x16   : > { %1635 = vmatpush1.bf16.msra.mxu0 %v3932_v5  ;;  %1844 = vmatpush1.bf16.msra.mxu1 %v3933_v6  ;;  %v3955_v30 = vld [vmem:[%s6057_s1 + $0xd0] sm:$0xff]   ;;  %v3957_v32 = vld [vmem:[%s6057_s1 + $0xc8] sm:$0xff]   ;;  %v3958_v33 = vld [vmem:[%s6057_s1 + $0x40] sm:$0xff]  }
  0x17   : > { %1636 = vmatprep.subr.bf16.mxu0 %v4224_v1  ;;  %1845 = vmatprep.subr.bf16.mxu1 %v4224_v1  ;;  %v3959_v34 = vld [vmem:[%s6057_s1 + $0xc0] sm:$0xff]   ;;  %v3966_v37 = vld [vmem:[%s6057_s1 + $0x138] sm:$0xff]   ;;  %v3973_v40 = vld [vmem:[%s6057_s1 + $0x130] sm:$0xff]  }
  0x18   : > { %v3960_v35 = vld [vmem:[%s6056_s0] ss:$28 sps:$4 sm:$0xff]   ;;  %v3963_v36 = vld [vmem:[%s6056_s0 + $0x8] ss:$28 sps:$4 sm:$0xff]   ;;  %v3971_v41 = vld [vmem:[%s6056_s0 + $0x38] ss:$28 sps:$4 sm:$0xff]  }
  0x19   : > { %v3967_v38 = vld [vmem:[%s6056_s0 + $0x3c] ss:$28 sps:$4 sm:$0xff]   ;;  %v3969_v39 = vld [vmem:[%s6056_s0 + $0x44] ss:$28 sps:$4 sm:$0xff]   ;;  %v3974_v43 = vld [vmem:[%s6056_s0 + $0x74] ss:$28 sps:$4 sm:$0xff]  }
  0x1a   : > { %1637 = vmatpush1.bf16.msra.mxu0 %v3934_v7  ;;  %1846 = vmatpush1.bf16.msra.mxu1 %v3935_v8  ;;  %v3972_v42 = vld [vmem:[%s6056_s0 + $0x40] ss:$28 sps:$4 sm:$0xff]   ;;  %v3984_v45 = vld [vmem:[%s6057_s1 + $0x128] sm:$0xff]   ;;  %v3979_v48 = vld [vmem:[%s6056_s0 + $0x78] ss:$28 sps:$4 sm:$0xff]  }
  0x1b   : > { %1638 = vmatprep.subr.bf16.mxu0 %v4224_v1  ;;  %1847 = vmatprep.subr.bf16.mxu1 %v4224_v1  ;;  %v3976_v44 = vld [vmem:[%s6056_s0 + $0x7c] ss:$28 sps:$4 sm:$0xff]   ;;  %v3993_v46 = vld [vmem:[%s6057_s1 + $0x120] sm:$0xff]   ;;  %v3978_v47 = vld [vmem:[%s6056_s0 + $0x70] ss:$28 sps:$4 sm:$0xff]  }
  0x1c   : > { %v3980_v49 = vld [vmem:[%s6056_s0 + $0xac] ss:$28 sps:$4 sm:$0xff]   ;;  %v3982_v50 = vld [vmem:[%s6056_s0 + $0xb4] ss:$28 sps:$4 sm:$0xff]   ;;  %v4000_v51 = vld [vmem:[%s6057_s1 + $0x118] sm:$0xff]  }
  0x1d   : > { %v4013_v52 = vld [vmem:[%s6057_s1 + $0x110] sm:$0xff]   ;;  %v3985_v53 = vld [vmem:[%s6056_s0 + $0xa8] ss:$28 sps:$4 sm:$0xff]   ;;  %v3991_v59 = vld [vmem:[%s6056_s0 + $0xe0] ss:$28 sps:$4 sm:$0xff]  }
  0x1e   : > { %1639 = vmatpush1.bf16.msra.mxu0 %v3936_v9  ;;  %1848 = vmatpush1.bf16.msra.mxu1 %v3937_v10  ;;  %v3986_v54 = vld [vmem:[%s6056_s0 + $0xb0] ss:$28 sps:$4 sm:$0xff]   ;;  %v3987_v55 = vld [vmem:[%s6056_s0 + $0xe4] ss:$28 sps:$4 sm:$0xff]   ;;  %v3994_v61 = vld [vmem:[%s6056_s0 + $0x11c] ss:$28 sps:$4 sm:$0xff]  }
  0x1f   : > { %1640 = vmatprep.subr.bf16.mxu0 %v4224_v1  ;;  %1849 = vmatprep.subr.bf16.mxu1 %v4224_v1  ;;  %v3989_v56 = vld [vmem:[%s6056_s0 + $0xec] ss:$28 sps:$4 sm:$0xff]   ;;  %v4027_v58 = vld [vmem:[%s6057_s1 + $0x100] sm:$0xff]   ;;  %v4040_v63 = vld [vmem:[%s6057_s1 + $0x178] sm:$0xff]  }
  0x20   : > { %v4020_v57 = vld [vmem:[%s6057_s1 + $0x108] sm:$0xff]   ;;  %v3996_v62 = vld [vmem:[%s6056_s0 + $0x124] ss:$28 sps:$4 sm:$0xff]   ;;  %v4047_v0 = vld [vmem:[%s6057_s1 + $0x170] sm:$0xff]  }
  0x21   : > { %v3992_v60 = vld [vmem:[%s6056_s0 + $0xe8] ss:$28 sps:$4 sm:$0xff]   ;;  %v3998_v2 = vld [vmem:[%s6056_s0 + $0x118] ss:$28 sps:$4 sm:$0xff]   ;;  %v3999_v3 = vld [vmem:[%s6056_s0 + $0x120] ss:$28 sps:$4 sm:$0xff]  }
  0x22   : > { %1641 = vmatpush1.bf16.msra.mxu0 %v3938_v11  ;;  %1850 = vmatpush1.bf16.msra.mxu1 %v3939_v12  ;;  %v4001_v4 = vld [vmem:[%s6056_s0 + $0x154] ss:$28 sps:$4 sm:$0xff]   ;;  %v4003_v5 = vld [vmem:[%s6056_s0 + $0x15c] ss:$28 sps:$4 sm:$0xff]   ;;  %v4058_v6 = vld [vmem:[%s6057_s1 + $0x168] sm:$0xff]  }
  0x23   : > { %1642 = vmatprep.subr.bf16.mxu0 %v4224_v1  ;;  %1851 = vmatprep.subr.bf16.mxu1 %v4224_v1  ;;  %v4005_v7 = vld [vmem:[%s6056_s0 + $0x150] ss:$28 sps:$4 sm:$0xff]   ;;  %v4067_v8 = vld [vmem:[%s6057_s1 + $0x160] sm:$0xff]   ;;  %v4006_v9 = vld [vmem:[%s6056_s0 + $0x158] ss:$28 sps:$4 sm:$0xff]  }
  0x24   : > { %v4007_v10 = vld [vmem:[%s6056_s0 + $0x18c] ss:$28 sps:$4 sm:$0xff]   ;;  %v4009_v11 = vld [vmem:[%s6056_s0 + $0x194] ss:$28 sps:$4 sm:$0xff]   ;;  %v4074_v12 = vld [vmem:[%s6057_s1 + $0x158] sm:$0xff]  }
  0x25   : > { %v4101_v19 = vld [vmem:[%s6057_s1 + $0x140] sm:$0xff]   ;;  %v4585_v21 = vld [vmem:[%s6057_s1 + $0x188] sm:$0xff]  }
  0x26   : > { %1643 = vmatpush1.bf16.msra.mxu0 %v3940_v13  ;;  %1852 = vmatpush1.bf16.msra.mxu1 %v3941_v14  ;;  %v4011_v13 = vld [vmem:[%s6056_s0 + $0x188] ss:$28 sps:$4 sm:$0xff]   ;;  %v4087_v14 = vld [vmem:[%s6057_s1 + $0x150] sm:$0xff]  }
  0x27   : > { %1644 = vmatprep.subr.bf16.mxu0 %v4224_v1  ;;  %1853 = vmatprep.subr.bf16.mxu1 %v4224_v1 }
  0x2a   : > { %1645 = vmatpush1.bf16.msra.mxu0 %v3942_v15  ;;  %1854 = vmatpush1.bf16.msra.mxu1 %v3943_v16  ;;  %v4012_v15 = vld [vmem:[%s6056_s0 + $0x190] ss:$28 sps:$4 sm:$0xff]   ;;  %v4014_v16 = vld [vmem:[%s6056_s0 + $0x1c4] ss:$28 sps:$4 sm:$0xff]  }
  0x2b   : > { %1646 = vmatprep.subr.bf16.mxu0 %v4224_v1  ;;  %1855 = vmatprep.subr.bf16.mxu1 %v4224_v1 }
  0x2e   : > { %1647 = vmatpush2.bf16.msra.mxu0 %v3944_v17  ;;  %1856 = vmatpush2.bf16.msra.mxu1 %v3945_v18  ;;  %v4016_v17 = vld [vmem:[%s6056_s0 + $0x1cc] ss:$28 sps:$4 sm:$0xff]  }
  0x2f   : > { %1648 = vmatprep.subr.bf16.mxu0 %v4224_v1  ;;  %1857 = vmatprep.subr.bf16.mxu1 %v4224_v1  ;;  %v4094_v18 = vld [vmem:[%s6057_s1 + $0x148] sm:$0xff]  }
  0x32   : > { %1649 = vmatpush2.bf16.msra.mxu0 %v3946_v20  ;;  %1858 = vmatpush2.bf16.msra.mxu1 %v3947_v22  ;;  %v4018_v20 = vld [vmem:[%s6056_s0 + $0x1c0] ss:$28 sps:$4 sm:$0xff]   ;;  %v4019_v22 = vld [vmem:[%s6056_s0 + $0x1c8] ss:$28 sps:$4 sm:$0xff]  }
  0x33   : > { %1650 = vmatprep.subr.bf16.mxu0 %v4224_v1  ;;  %1859 = vmatprep.subr.bf16.mxu1 %v4224_v1 }
  0x36   : > { %1651 = vmatpush2.bf16.msra.mxu0 %v3948_v23  ;;  %1860 = vmatpush2.bf16.msra.mxu1 %v3949_v24  ;;  %v4021_v23 = vld [vmem:[%s6056_s0 + $0x1fc] ss:$28 sps:$4 sm:$0xff]   ;;  %v4023_v24 = vld [vmem:[%s6056_s0 + $0x204] ss:$28 sps:$4 sm:$0xff]  }
  0x37   : > { %1652 = vmatprep.subr.bf16.mxu0 %v4224_v1  ;;  %1861 = vmatprep.subr.bf16.mxu1 %v4224_v1 }
  0x3a   : > { %1653 = vmatpush2.bf16.msra.mxu0 %v3950_v25  ;;  %1862 = vmatpush2.bf16.msra.mxu1 %v3951_v26  ;;  %v4025_v25 = vld [vmem:[%s6056_s0 + $0x1f8] ss:$28 sps:$4 sm:$0xff]   ;;  %v4026_v26 = vld [vmem:[%s6056_s0 + $0x200] ss:$28 sps:$4 sm:$0xff]  }
  0x3b   : > { %1654 = vmatprep.subr.bf16.mxu0 %v4224_v1  ;;  %1863 = vmatprep.subr.bf16.mxu1 %v4224_v1 }
  0x3e   : > { %1655 = vmatpush2.bf16.msra.mxu0 %v3952_v27  ;;  %1864 = vmatpush2.bf16.msra.mxu1 %v3953_v28  ;;  %v4030_v27 = vld [vmem:[%s6056_s0 + $0x23c] ss:$28 sps:$4 sm:$0xff]   ;;  %v4032_v28 = vld [vmem:[%s6056_s0 + $0x230] ss:$28 sps:$4 sm:$0xff]  }
  0x3f   : > { %1656 = vmatprep.subr.bf16.mxu0 %v4224_v1  ;;  %1865 = vmatprep.subr.bf16.mxu1 %v4224_v1 }
  0x42   : > { %1657 = vmatpush2.bf16.msra.mxu0 %v3954_v29  ;;  %1866 = vmatpush2.bf16.msra.mxu1 %v3955_v30  ;;  %v4033_v29 = vld [vmem:[%s6056_s0 + $0x238] ss:$28 sps:$4 sm:$0xff]   ;;  %v4034_v30 = vld [vmem:[%s6056_s0 + $0x26c] ss:$28 sps:$4 sm:$0xff]  }
  0x43   : > { %1658 = vmatprep.subr.bf16.mxu0 %v4224_v1  ;;  %1867 = vmatprep.subr.bf16.mxu1 %v4224_v1 }
  0x46   : > { %1659 = vmatpush2.bf16.msra.mxu0 %v3956_v31  ;;  %1868 = vmatpush2.bf16.msra.mxu1 %v3957_v32  ;;  %v4036_v31 = vld [vmem:[%s6056_s0 + $0x274] ss:$28 sps:$4 sm:$0xff]   ;;  %v4038_v32 = vld [vmem:[%s6056_s0 + $0x268] ss:$28 sps:$4 sm:$0xff]  }
  0x47   : > { %1660 = vmatprep.subr.bf16.mxu0 %v4224_v1  ;;  %1869 = vmatprep.subr.bf16.mxu1 %v4224_v1 }
  0x4a   : > { %1661 = vmatpush2.bf16.msra.mxu0 %v3958_v33  ;;  %1870 = vmatpush2.bf16.msra.mxu1 %v3959_v34  ;;  %v4039_v33 = vld [vmem:[%s6056_s0 + $0x270] ss:$28 sps:$4 sm:$0xff]   ;;  %v4041_v34 = vld [vmem:[%s6056_s0 + $0x2a4] ss:$28 sps:$4 sm:$0xff]  }
  0x4b   : > { %2048 = vmatprep.subr.bf16.mxu0 %v4224_v1  ;;  %3870 = vmatprep.subr.bf16.mxu1 %v4224_v1 }
  0x4d   : > { %1663 = vmatmul.mubr.bf16.vlgmr.msra.gmra.mxu0 %v3960_v35  ;;  %1872 = vmatmul.mubr.bf16.vlgmr.msra.gmra.mxu1 %v3963_v36  ;;  %v4043_v35 = vld [vmem:[%s6056_s0 + $0x2ac] ss:$28 sps:$4 sm:$0xff]   ;;  %v4045_v36 = vld [vmem:[%s6056_s0 + $0x2a0] ss:$28 sps:$4 sm:$0xff]  }
  0x4e   : > { %2049 = vmatpush1.bf16.msra.mxu0 %v3966_v37  ;;  %1670 = vmatprep.mubr.bf16.mxu0 %v3967_v38  ;;  %v4048_v38 = vld [vmem:[%s6056_s0 + $0x2dc] ss:$28 sps:$4 sm:$0xff]  }
  0x4f   : > { %1879 = vmatprep.mubr.bf16.mxu1 %v3969_v39  ;;  %3886 = vmatpush1.bf16.msra.mxu1 %v3966_v37  ;;  %v4046_v37 = vld [vmem:[%s6056_s0 + $0x2a8] ss:$28 sps:$4 sm:$0xff]  }
  0x50   : > { %2050 = vmatprep.subr.bf16.mxu0 %v4224_v1  ;;  %3871 = vmatprep.subr.bf16.mxu1 %v4224_v1  ;;  %v4050_v39 = vld [vmem:[%s6056_s0 + $0x2e4] ss:$28 sps:$4 sm:$0xff]  }
  0x52   : > { %2051 = vmatpush1.bf16.msra.mxu0 %v3973_v40 }
  0x53   : > { %2052 = vmatprep.subr.bf16.mxu0 %v4224_v1  ;;  %3887 = vmatpush1.bf16.msra.mxu1 %v3973_v40  ;;  %v4052_v40 = vld [vmem:[%s6056_s0 + $0x2d8] ss:$28 sps:$4 sm:$0xff]  }
  0x54   : > { %3872 = vmatprep.subr.bf16.mxu1 %v4224_v1 }
  0x55   : > { %1671 = vmatmul.mubr.bf16.gmra.mxu0 %v3971_v41  ;;  %1880 = vmatmul.mubr.bf16.gmra.mxu1 %v3972_v42  ;;  %v4053_v41 = vld [vmem:[%s6056_s0 + $0x2e0] ss:$28 sps:$4 sm:$0xff]   ;;  %v4054_v42 = vld [vmem:[%s6056_s0 + $0x314] ss:$28 sps:$4 sm:$0xff]  }
  0x56   : > { %1678 = vmatprep.mubr.bf16.mxu0 %v3974_v43  ;;  %1887 = vmatprep.mubr.bf16.mxu1 %v3976_v44  ;;  %v4056_v43 = vld [vmem:[%s6056_s0 + $0x31c] ss:$28 sps:$4 sm:$0xff]   ;;  %v4059_v44 = vld [vmem:[%s6056_s0 + $0x310] ss:$28 sps:$4 sm:$0xff]  }
  0x57   : > { %2053 = vmatpush1.bf16.msra.mxu0 %v3984_v45  ;;  %3888 = vmatpush1.bf16.msra.mxu1 %v3984_v45  ;;  %v4060_v45 = vld [vmem:[%s6056_s0 + $0x318] ss:$28 sps:$4 sm:$0xff]  }
  0x58   : > { %2054 = vmatprep.subr.bf16.mxu0 %v4224_v1  ;;  %3873 = vmatprep.subr.bf16.mxu1 %v4224_v1 }
  0x5b   : > { %2055 = vmatpush1.bf16.msra.mxu0 %v3993_v46  ;;  %3889 = vmatpush1.bf16.msra.mxu1 %v3993_v46  ;;  %v4061_v46 = vld [vmem:[%s6056_s0 + $0x34c] ss:$28 sps:$4 sm:$0xff]  }
  0x5c   : > { %2056 = vmatprep.subr.bf16.mxu0 %v4224_v1  ;;  %3874 = vmatprep.subr.bf16.mxu1 %v4224_v1 }
  0x5d   : > { %1679 = vmatmul.mubr.bf16.gmra.mxu0 %v3978_v47  ;;  %1888 = vmatmul.mubr.bf16.gmra.mxu1 %v3979_v48  ;;  %v4063_v47 = vld [vmem:[%s6056_s0 + $0x354] ss:$28 sps:$4 sm:$0xff]   ;;  %v4065_v48 = vld [vmem:[%s6056_s0 + $0x348] ss:$28 sps:$4 sm:$0xff]  }
  0x5e   : > { %1686 = vmatprep.mubr.bf16.mxu0 %v3980_v49  ;;  %1895 = vmatprep.mubr.bf16.mxu1 %v3982_v50  ;;  %v4066_v49 = vld [vmem:[%s6056_s0 + $0x350] ss:$28 sps:$4 sm:$0xff]   ;;  %v4068_v50 = vld [vmem:[%s6056_s0 + $0x384] ss:$28 sps:$4 sm:$0xff]  }
  0x5f   : > { %2057 = vmatpush1.bf16.msra.mxu0 %v4000_v51  ;;  %3890 = vmatpush1.bf16.msra.mxu1 %v4000_v51  ;;  %v4070_v51 = vld [vmem:[%s6056_s0 + $0x38c] ss:$28 sps:$4 sm:$0xff]  }
  0x60   : > { %2058 = vmatprep.subr.bf16.mxu0 %v4224_v1  ;;  %3875 = vmatprep.subr.bf16.mxu1 %v4224_v1 }
  0x63   : > { %2059 = vmatpush1.bf16.msra.mxu0 %v4013_v52  ;;  %3891 = vmatpush1.bf16.msra.mxu1 %v4013_v52  ;;  %v4072_v52 = vld [vmem:[%s6056_s0 + $0x380] ss:$28 sps:$4 sm:$0xff]  }
  0x64   : > { %2060 = vmatprep.subr.bf16.mxu0 %v4224_v1  ;;  %3876 = vmatprep.subr.bf16.mxu1 %v4224_v1 }
  0x65   : > { %1687 = vmatmul.mubr.bf16.gmra.mxu0 %v3985_v53  ;;  %1896 = vmatmul.mubr.bf16.gmra.mxu1 %v3986_v54  ;;  %v4073_v53 = vld [vmem:[%s6056_s0 + $0x388] ss:$28 sps:$4 sm:$0xff]   ;;  %v4075_v54 = vld [vmem:[%s6056_s0 + $0x3bc] ss:$28 sps:$4 sm:$0xff]  }
  0x66   : > { %1694 = vmatprep.mubr.bf16.mxu0 %v3987_v55  ;;  %1903 = vmatprep.mubr.bf16.mxu1 %v3989_v56  ;;  %v4077_v55 = vld [vmem:[%s6056_s0 + $0x3c4] ss:$28 sps:$4 sm:$0xff]   ;;  %v4079_v56 = vld [vmem:[%s6056_s0 + $0x3b8] ss:$28 sps:$4 sm:$0xff]  }
  0x67   : > { %2061 = vmatpush1.bf16.msra.mxu0 %v4020_v57  ;;  %3892 = vmatpush1.bf16.msra.mxu1 %v4020_v57  ;;  %v4080_v57 = vld [vmem:[%s6056_s0 + $0x3c0] ss:$28 sps:$4 sm:$0xff]  }
  0x68   : > { %2062 = vmatprep.subr.bf16.mxu0 %v4224_v1  ;;  %3877 = vmatprep.subr.bf16.mxu1 %v4224_v1 }
  0x6b   : > { %2063 = vmatpush1.bf16.msra.mxu0 %v4027_v58  ;;  %3893 = vmatpush1.bf16.msra.mxu1 %v4027_v58  ;;  %v4081_v58 = vld [vmem:[%s6056_s0 + $0x3f4] ss:$28 sps:$4 sm:$0xff]  }
  0x6c   : > { %2064 = vmatprep.subr.bf16.mxu0 %v4224_v1  ;;  %3878 = vmatprep.subr.bf16.mxu1 %v4224_v1 }
  0x6d   : > { %1695 = vmatmul.mubr.bf16.gmra.mxu0 %v3991_v59  ;;  %1904 = vmatmul.mubr.bf16.gmra.mxu1 %v3992_v60  ;;  %v4083_v59 = vld [vmem:[%s6056_s0 + $0x3fc] ss:$28 sps:$4 sm:$0xff]   ;;  %v4085_v60 = vld [vmem:[%s6056_s0 + $0x3f0] ss:$28 sps:$4 sm:$0xff]  }
  0x6e   : > { %1702 = vmatprep.mubr.bf16.mxu0 %v3994_v61  ;;  %1911 = vmatprep.mubr.bf16.mxu1 %v3996_v62  ;;  %v4086_v61 = vld [vmem:[%s6056_s0 + $0x3f8] ss:$28 sps:$4 sm:$0xff]   ;;  %v4088_v62 = vld [vmem:[%s6056_s0 + $0x42c] ss:$28 sps:$4 sm:$0xff]  }
  0x6f   : > { %2065 = vmatpush2.bf16.msra.mxu0 %v4040_v63  ;;  %3894 = vmatpush2.bf16.msra.mxu1 %v4040_v63  ;;  %v4090_v63 = vld [vmem:[%s6056_s0 + $0x434] ss:$28 sps:$4 sm:$0xff]  }
  0x70   : > { %2066 = vmatprep.subr.bf16.mxu0 %v4224_v1  ;;  %3879 = vmatprep.subr.bf16.mxu1 %v4224_v1 }
  0x73   : > { %2067 = vmatpush2.bf16.msra.mxu0 %v4047_v0  ;;  %3895 = vmatpush2.bf16.msra.mxu1 %v4047_v0  ;;  %v4092_v0 = vld [vmem:[%s6056_s0 + $0x428] ss:$28 sps:$4 sm:$0xff]  }
  0x74   : > { %2068 = vmatprep.subr.bf16.mxu0 %v4224_v1  ;;  %3880 = vmatprep.subr.bf16.mxu1 %v4224_v1 }
  0x75   : > { %1703 = vmatmul.mubr.bf16.gmra.mxu0 %v3998_v2  ;;  %1912 = vmatmul.mubr.bf16.gmra.mxu1 %v3999_v3  ;;  %v4093_v2 = vld [vmem:[%s6056_s0 + $0x430] ss:$28 sps:$4 sm:$0xff]   ;;  %v4095_v3 = vld [vmem:[%s6056_s0 + $0x464] ss:$28 sps:$4 sm:$0xff]  }
  0x76   : > { %1710 = vmatprep.mubr.bf16.mxu0 %v4001_v4  ;;  %1919 = vmatprep.mubr.bf16.mxu1 %v4003_v5  ;;  %v4097_v4 = vld [vmem:[%s6056_s0 + $0x46c] ss:$28 sps:$4 sm:$0xff]   ;;  %v4099_v5 = vld [vmem:[%s6056_s0 + $0x460] ss:$28 sps:$4 sm:$0xff]  }
  0x77   : > { %2069 = vmatpush2.bf16.msra.mxu0 %v4058_v6  ;;  %3896 = vmatpush2.bf16.msra.mxu1 %v4058_v6  ;;  %v4100_v6 = vld [vmem:[%s6056_s0 + $0x468] ss:$28 sps:$4 sm:$0xff]  }
  0x78   : > { %2070 = vmatprep.subr.bf16.mxu0 %v4224_v1  ;;  %3881 = vmatprep.subr.bf16.mxu1 %v4224_v1 }
  0x7b   : > { %2071 = vmatpush2.bf16.msra.mxu0 %v4067_v8  ;;  %3897 = vmatpush2.bf16.msra.mxu1 %v4067_v8  ;;  %v4104_v8 = vld [vmem:[%s6056_s0 + $0x4a4] ss:$28 sps:$4 sm:$0xff]  }
  0x7c   : > { %2072 = vmatprep.subr.bf16.mxu0 %v4224_v1  ;;  %3882 = vmatprep.subr.bf16.mxu1 %v4224_v1 }
  0x7d   : > { %1711 = vmatmul.mubr.bf16.gmra.mxu0 %v4005_v7  ;;  %1920 = vmatmul.mubr.bf16.gmra.mxu1 %v4006_v9  ;;  %v4102_v7 = vld [vmem:[%s6056_s0 + $0x49c] ss:$28 sps:$4 sm:$0xff]  }
  0x7e   : > { %1718 = vmatprep.mubr.bf16.mxu0 %v4007_v10  ;;  %1927 = vmatprep.mubr.bf16.mxu1 %v4009_v11  ;;  %v4106_v9 = vld [vmem:[%s6056_s0 + $0x498] ss:$28 sps:$4 sm:$0xff]   ;;  %v4107_v10 = vld [vmem:[%s6056_s0 + $0x4a0] ss:$28 sps:$4 sm:$0xff]  }
  0x7f   : > { %2073 = vmatpush2.bf16.msra.mxu0 %v4074_v12  ;;  %3898 = vmatpush2.bf16.msra.mxu1 %v4074_v12  ;;  %v4110_v11 = vld [vmem:[%s6056_s0 + $0x14] ss:$28 sps:$4 sm:$0xff]   ;;  %v4113_v12 = vld [vmem:[%s6056_s0 + $0x3cc] ss:$28 sps:$4 sm:$0xff]  }
  0x80   : > { %2074 = vmatprep.subr.bf16.mxu0 %v4224_v1  ;;  %3883 = vmatprep.subr.bf16.mxu1 %v4224_v1 }
  0x83   : > { %2075 = vmatpush2.bf16.msra.mxu0 %v4087_v14  ;;  %3899 = vmatpush2.bf16.msra.mxu1 %v4087_v14  ;;  %v4111_v14 = vld [vmem:[%s6056_s0 + $0x3c8] ss:$28 sps:$4 sm:$0xff]  }
  0x84   : > { %2076 = vmatprep.subr.bf16.mxu0 %v4224_v1  ;;  %3884 = vmatprep.subr.bf16.mxu1 %v4224_v1 }
  0x85   : > { %1719 = vmatmul.mubr.bf16.gmra.mxu0 %v4011_v13  ;;  %1928 = vmatmul.mubr.bf16.gmra.mxu1 %v4012_v15  ;;  %v4108_v13 = vld [vmem:[%s6056_s0 + $0x10] ss:$28 sps:$4 sm:$0xff]  }
  0x86   : > { %1726 = vmatprep.mubr.bf16.mxu0 %v4014_v16  ;;  %1935 = vmatprep.mubr.bf16.mxu1 %v4016_v17  ;;  %v4114_v15 = vld [vmem:[%s6056_s0 + $0x4c] ss:$28 sps:$4 sm:$0xff]   ;;  %v4116_v16 = vld [vmem:[%s6056_s0 + $0x404] ss:$28 sps:$4 sm:$0xff]  }
  0x87   : > { %2077 = vmatpush2.bf16.msra.mxu0 %v4094_v18  ;;  %3900 = vmatpush2.bf16.msra.mxu1 %v4094_v18  ;;  %v4133_v17 = vld [vmem:[%s6057_s1 + $0x180] sm:$0xff]  }
  0x88   : > { %2078 = vmatprep.subr.bf16.mxu0 %v4224_v1  ;;  %3885 = vmatprep.subr.bf16.mxu1 %v4224_v1  ;;  %v4028_v1 = vld [vmem:[%s6056_s0 + $0x234] ss:$28 sps:$4 sm:$0xff]   ;;  %v4118_v18 = vld [vmem:[%s6056_s0 + $0x48] ss:$28 sps:$4 sm:$0xff]  }
  0x8b   : > { %2079 = vmatpush2.bf16.msra.mxu0 %v4101_v19  ;;  %3901 = vmatpush2.bf16.msra.mxu1 %v4101_v19  ;;  %v4119_v19 = vld [vmem:[%s6056_s0 + $0x400] ss:$28 sps:$4 sm:$0xff]  }
  0x8c   : > { %3822 = vmatprep.subr.bf16.mxu1 %v4585_v21 }
  0x8d   : > { %1727 = vmatmul.mubr.bf16.gmra.mxu0 %v4018_v20  ;;  %1936 = vmatmul.mubr.bf16.gmra.mxu1 %v4019_v22  ;;  %v4121_v20 = vld [vmem:[%s6056_s0 + $0x84] ss:$28 sps:$4 sm:$0xff]   ;;  %v4123_v22 = vld [vmem:[%s6056_s0 + $0x43c] ss:$28 sps:$4 sm:$0xff]  }
  0x8e   : > { %1734 = vmatprep.mubr.bf16.mxu0 %v4021_v23  ;;  %1943 = vmatprep.mubr.bf16.mxu1 %v4023_v24  ;;  %v4126_v23 = vld [vmem:[%s6056_s0 + $0x438] ss:$28 sps:$4 sm:$0xff]  }
  0x8f   : > { %v4127_v24 = vld [vmem:[%s6056_s0 + $0xbc] ss:$28 sps:$4 sm:$0xff]  }
  0x95   : > { %1735 = vmatmul.mubr.bf16.gmra.mxu0 %v4025_v25  ;;  %1944 = vmatmul.mubr.bf16.gmra.mxu1 %v4026_v26  ;;  %v4129_v25 = vld [vmem:[%s6056_s0 + $0x474] ss:$28 sps:$4 sm:$0xff]  }
  0x96   : > { %1742 = vmatprep.mubr.bf16.mxu0 %v4028_v1  ;;  %1951 = vmatprep.mubr.bf16.mxu1 %v4030_v27 }
  0x9d   : > { %1743 = vmatmul.mubr.bf16.gmra.mxu0 %v4032_v28  ;;  %1952 = vmatmul.mubr.bf16.gmra.mxu1 %v4033_v29 }
  0x9e   : > { %1750 = vmatprep.mubr.bf16.mxu0 %v4034_v30  ;;  %1959 = vmatprep.mubr.bf16.mxu1 %v4036_v31  ;;  %v4131_v31 = vld [vmem:[%s6056_s0 + $0xb8] ss:$28 sps:$4 sm:$0xff]  }
  0xa5   : > { %1751 = vmatmul.mubr.bf16.gmra.mxu0 %v4038_v32  ;;  %1960 = vmatmul.mubr.bf16.gmra.mxu1 %v4039_v33  ;;  %v4132_v33 = vld [vmem:[%s6056_s0 + $0x470] ss:$28 sps:$4 sm:$0xff]  }
  0xa6   : > { %1758 = vmatprep.mubr.bf16.mxu0 %v4041_v34  ;;  %1967 = vmatprep.mubr.bf16.mxu1 %v4043_v35  ;;  %v4134_v34 = vld [vmem:[%s6056_s0 + $0xf4] ss:$28 sps:$4 sm:$0xff]  }
  0xad   : > { %1759 = vmatmul.mubr.bf16.gmra.mxu0 %v4045_v36  ;;  %1968 = vmatmul.mubr.bf16.gmra.mxu1 %v4046_v37  ;;  %v4136_v37 = vld [vmem:[%s6056_s0 + $0x4ac] ss:$28 sps:$4 sm:$0xff]  }
  0xae   : > { %1766 = vmatprep.mubr.bf16.mxu0 %v4048_v38  ;;  %1975 = vmatprep.mubr.bf16.mxu1 %v4050_v39 }
  0xb5   : > { %1767 = vmatmul.mubr.bf16.gmra.mxu0 %v4052_v40  ;;  %1976 = vmatmul.mubr.bf16.gmra.mxu1 %v4053_v41 }
  0xb6   : > { %1774 = vmatprep.mubr.bf16.mxu0 %v4054_v42  ;;  %1983 = vmatprep.mubr.bf16.mxu1 %v4056_v43 }
  0xbd   : > { %1775 = vmatmul.mubr.bf16.gmra.mxu0 %v4059_v44  ;;  %1984 = vmatmul.mubr.bf16.gmra.mxu1 %v4060_v45  ;;  %v4138_v45 = vld [vmem:[%s6056_s0 + $0xf0] ss:$28 sps:$4 sm:$0xff]  }
  0xbe   : > { %1782 = vmatprep.mubr.bf16.mxu0 %v4061_v46  ;;  %1991 = vmatprep.mubr.bf16.mxu1 %v4063_v47  ;;  %v4139_v47 = vld [vmem:[%s6056_s0 + $0x4a8] ss:$28 sps:$4 sm:$0xff]  }
  0xc5   : > { %1783 = vmatmul.mubr.bf16.gmra.mxu0 %v4065_v48  ;;  %1992 = vmatmul.mubr.bf16.gmra.mxu1 %v4066_v49  ;;  %v4140_v48 = vld [vmem:[%s6056_s0 + $0x12c] ss:$28 sps:$4 sm:$0xff]  }
  0xc6   : > { %1790 = vmatprep.mubr.bf16.mxu0 %v4068_v50  ;;  %1999 = vmatprep.mubr.bf16.mxu1 %v4070_v51  ;;  %v4142_v51 = vld [vmem:[%s6056_s0 + $0x18] ss:$28 sps:$4 sm:$0xff]  }
  0xcd   : > { %1791 = vmatmul.mubr.bf16.gmra.mxu0 %v4072_v52  ;;  %2000 = vmatmul.mubr.bf16.gmra.mxu1 %v4073_v53 }
  0xce   : > { %1798 = vmatprep.mubr.bf16.mxu0 %v4075_v54  ;;  %2007 = vmatprep.mubr.bf16.mxu1 %v4077_v55 }
  0xd5   : > { %1799 = vmatmul.mubr.bf16.gmra.mxu0 %v4079_v56  ;;  %2008 = vmatmul.mubr.bf16.gmra.mxu1 %v4080_v57 }
  0xd6   : > { %1806 = vmatprep.mubr.bf16.mxu0 %v4081_v58  ;;  %2015 = vmatprep.mubr.bf16.mxu1 %v4083_v59  ;;  %v4143_v59 = vld [vmem:[%s6056_s0 + $0x128] ss:$28 sps:$4 sm:$0xff]  }
  0xdd   : > { %1807 = vmatmul.mubr.bf16.gmra.mxu0 %v4085_v60  ;;  %2016 = vmatmul.mubr.bf16.gmra.mxu1 %v4086_v61  ;;  %v4144_v61 = vld [vmem:[%s6056_s0 + $0x50] ss:$28 sps:$4 sm:$0xff]  }
  0xde   : > { %1814 = vmatprep.mubr.bf16.mxu0 %v4088_v62  ;;  %2023 = vmatprep.mubr.bf16.mxu1 %v4090_v63  ;;  %v4147_v62 = vld [vmem:[%s6056_s0 + $0x164] ss:$28 sps:$4 sm:$0xff]  }
  0xe5   : > { %1815 = vmatmul.mubr.bf16.gmra.mxu0 %v4092_v0  ;;  %2024 = vmatmul.mubr.bf16.gmra.mxu1 %v4093_v2  ;;  %v4148_v2 = vld [vmem:[%s6056_s0 + $0x88] ss:$28 sps:$4 sm:$0xff]  }
  0xe6   : > { %1822 = vmatprep.mubr.bf16.mxu0 %v4095_v3  ;;  %2031 = vmatprep.mubr.bf16.mxu1 %v4097_v4 }
  0xed   : > { %1823 = vmatmul.mubr.bf16.gmra.mxu0 %v4099_v5  ;;  %2032 = vmatmul.mubr.bf16.gmra.mxu1 %v4100_v6 }
  0xee   : > { %1830 = vmatprep.mubr.bf16.mxu0 %v4102_v7  ;;  %2039 = vmatprep.mubr.bf16.mxu1 %v4104_v8 }
  0xf5   : > { %1831 = vmatmul.mubr.bf16.gmra.mxu0 %v4106_v9  ;;  %2040 = vmatmul.mubr.bf16.gmra.mxu1 %v4107_v10  ;;  %v4145_v10 = vld [vmem:[%s6056_s0 + $0x160] ss:$28 sps:$4 sm:$0xff]  }
  0xf6   : > { %2080 = vmatprep.mubr.bf16.mxu0 %v4110_v11  ;;  %2216 = vmatprep.mubr.bf16.mxu1 %v4113_v12  ;;  %v4149_v12 = vld [vmem:[%s6056_s0 + $0xc0] ss:$28 sps:$4 sm:$0xff]  }
  0xfd   : > { %2081 = vmatmul.mubr.bf16.vlgmr.msra.gmra.mxu0 %v4108_v13  ;;  %2217 = vmatmul.mubr.bf16.vlgmr.msra.gmra.mxu1 %v4111_v14  ;;  %v4152_v13 = vld [vmem:[%s6056_s0 + $0x19c] ss:$28 sps:$4 sm:$0xff]  }
  0xfe   : > { %2088 = vmatprep.mubr.bf16.mxu0 %v4114_v15  ;;  %2224 = vmatprep.mubr.bf16.mxu1 %v4116_v16  ;;  %v4153_v16 = vld [vmem:[%s6056_s0 + $0xf8] ss:$28 sps:$4 sm:$0xff]  }
  0xff   : > { %3823 = vmatpush3.bf16.msra.mxu1 %v4585_v21  ;;  %v4125_v21 = vld [vmem:[%s6056_s0 + $0x80] ss:$28 sps:$4 sm:$0xff]  }
 0x100   : > { %3824 = vmatprep.subr.bf16.mxu1 %v4133_v17 }
 0x103   : > { %3825 = vmatpush3.bf16.msra.mxu1 %v4133_v17 }
 0x105   : > { %2089 = vmatmul.mubr.bf16.gmra.mxu0 %v4118_v18  ;;  %2225 = vmatmul.mubr.bf16.gmra.mxu1 %v4119_v19 }
 0x106   : > { %2096 = vmatprep.mubr.bf16.mxu0 %v4121_v20  ;;  %2232 = vmatprep.mubr.bf16.mxu1 %v4123_v22 }
 0x10d   : > { %v1664_v26 = vpop.f32.mrf.mxu0  ;;  %2097 = vmatmul.mubr.bf16.gmra.mxu0 %v4125_v21  ;;  %v1873_v1 = vpop.f32.mrf.mxu1  ;;  %2233 = vmatmul.mubr.bf16.gmra.mxu1 %v4126_v23 }
 0x10e   : > { %2104 = vmatprep.mubr.bf16.mxu0 %v4127_v24  ;;  %v4795_v27 = vadd.f32 %v1873_v1, %v1664_v26  ;;  %2240 = vmatprep.mubr.bf16.mxu1 %v4129_v25  ;;  %v4150_v24 = vld [vmem:[%s6056_s0 + $0x198] ss:$28 sps:$4 sm:$0xff]   ;;  %v4154_v26 = vld [vmem:[%s6056_s0 + $0x130] ss:$28 sps:$4 sm:$0xff]  }
 0x10f   : > { %v1666_v28 = vpop.f32.mrf.mxu0  ;;  %v1875_v29 = vpop.f32.mrf.mxu1  ;;  %v4157_v1 = vld [vmem:[%s6056_s0 + $0x1d4] ss:$28 sps:$4 sm:$0xff]  }
 0x111   : > { %v1667_v30 = vpop.f32.mrf.mxu0  ;;  %v1876_v32 = vpop.f32.mrf.mxu1 }
 0x112   : > { %v4806_v35 = vadd.f32 %v1876_v32, %v1667_v30  ;;  %v4158_v30 = vld [vmem:[%s6056_s0 + $0x168] ss:$28 sps:$4 sm:$0xff]  }
 0x113   : > { %v1669_v36 = vpop.f32.mrf.mxu0  ;;  %v1878_v38 = vpop.f32.mrf.mxu1 }
 0x115   : > { %v1672_v39 = vpop.f32.mrf.mxu0  ;;  %2105 = vmatmul.mubr.bf16.gmra.mxu0 %v4131_v31  ;;  %v1881_v40 = vpop.f32.mrf.mxu1  ;;  %2241 = vmatmul.mubr.bf16.gmra.mxu1 %v4132_v33 }
 0x116   : > { %2112 = vmatprep.mubr.bf16.mxu0 %v4134_v34  ;;  %v4811_v41 = vadd.f32 %v1881_v40, %v1672_v39  ;;  %2248 = vmatprep.mubr.bf16.mxu1 %v4136_v37  ;;  %v4155_v39 = vld [vmem:[%s6056_s0 + $0x1d0] ss:$28 sps:$4 sm:$0xff]  }
 0x117   : > { %v1674_v42 = vpop.f32.mrf.mxu0  ;;  %v1883_v43 = vpop.f32.mrf.mxu1 }
 0x118   : > { %v4159_v42 = vld [vmem:[%s6056_s0 + $0x1a0] ss:$28 sps:$4 sm:$0xff]   ;;  %v4162_v43 = vld [vmem:[%s6056_s0 + $0x20c] ss:$28 sps:$4 sm:$0xff]  }
 0x119   : > { %v1675_v44 = vpop.f32.mrf.mxu0  ;;  %v1884_v46 = vpop.f32.mrf.mxu1 }
 0x11a   : > { %v4822_v49 = vadd.f32 %v1884_v46, %v1675_v44  ;;  %v4163_v46 = vld [vmem:[%s6056_s0 + $0x1d8] ss:$28 sps:$4 sm:$0xff]  }
 0x11b   : > { %v1677_v50 = vpop.f32.mrf.mxu0  ;;  %v1886_v52 = vpop.f32.mrf.mxu1 }
 0x11d   : > { %v1680_v53 = vpop.f32.mrf.mxu0  ;;  %2113 = vmatmul.mubr.bf16.gmra.mxu0 %v4138_v45  ;;  %v1889_v54 = vpop.f32.mrf.mxu1  ;;  %2249 = vmatmul.mubr.bf16.gmra.mxu1 %v4139_v47 }
 0x11e   : > { %2120 = vmatprep.mubr.bf16.mxu0 %v4140_v48  ;;  %v4827_v55 = vadd.f32 %v1889_v54, %v1680_v53  ;;  %3826 = vmatprep.mubr.msk.bf16.mxu1 %vm1563_vm0, %v4142_v51 }
 0x11f   : > { %v1682_v56 = vpop.f32.mrf.mxu0  ;;  %v1891_v57 = vpop.f32.mrf.mxu1 }
 0x120   : > { %v4160_v56 = vld [vmem:[%s6056_s0 + $0x208] ss:$28 sps:$4 sm:$0xff]  }
 0x121   : > { %v1683_v58 = vpop.f32.mrf.mxu0  ;;  %v1892_v60 = vpop.f32.mrf.mxu1 }
 0x122   : > { %v4839_v63 = vadd.f32 %v1892_v60, %v1683_v58  ;;  %v4164_v58 = vld [vmem:[%s6056_s0 + $0x210] ss:$28 sps:$4 sm:$0xff]  }
 0x123   : > { %v1685_v0 = vpop.f32.mrf.mxu0  ;;  %v1894_v3 = vpop.f32.mrf.mxu1 }
 0x125   : > { %v1688_v4 = vpop.f32.mrf.mxu0  ;;  %2121 = vmatmul.mubr.bf16.gmra.mxu0 %v4143_v59  ;;  %v1897_v5 = vpop.f32.mrf.mxu1  ;;  %3827 = vmatmul.mubr.msk.bf16.vlgmr.msra.gmra.mxu1 %vm1563_vm0, %v4144_v61  ;;  %v4167_v59 = vld [vmem:[%s6056_s0 + $0x244] ss:$28 sps:$4 sm:$0xff]  }
 0x126   : > { %2128 = vmatprep.mubr.bf16.mxu0 %v4147_v62  ;;  %v4845_v6 = vadd.f32 %v1897_v5, %v1688_v4  ;;  %3830 = vmatprep.mubr.msk.bf16.mxu1 %vm1563_vm0, %v4148_v2  ;;  %v4168_v62 = vld [vmem:[%s6056_s0 + $0x248] ss:$28 sps:$4 sm:$0xff]  }
 0x127   : > { %v1690_v7 = vpop.f32.mrf.mxu0  ;;  %v1899_v8 = vpop.f32.mrf.mxu1 }
 0x129   : > { %v1691_v9 = vpop.f32.mrf.mxu0  ;;  %v1900_v11 = vpop.f32.mrf.mxu1 }
 0x12a   : > { %v4857_v14 = vadd.f32 %v1900_v11, %v1691_v9  ;;  %v4165_v9 = vld [vmem:[%s6056_s0 + $0x240] ss:$28 sps:$4 sm:$0xff]  }
 0x12b   : > { %v1693_v15 = vpop.f32.mrf.mxu0  ;;  %v1902_v17 = vpop.f32.mrf.mxu1  ;;  %v4169_v11 = vld [vmem:[%s6056_s0 + $0x280] ss:$28 sps:$4 sm:$0xff]  }
 0x12d   : > { %v1696_v18 = vpop.f32.mrf.mxu0  ;;  %2129 = vmatmul.mubr.bf16.gmra.mxu0 %v4145_v10  ;;  %v1905_v19 = vpop.f32.mrf.mxu1  ;;  %3831 = vmatmul.mubr.msk.bf16.gmra.mxu1 %vm1563_vm0, %v4149_v12  ;;  %v4172_v12 = vld [vmem:[%s6056_s0 + $0x27c] ss:$28 sps:$4 sm:$0xff]  }
 0x12e   : > { %2136 = vmatprep.mubr.bf16.mxu0 %v4152_v13  ;;  %v4863_v20 = vadd.f32 %v1905_v19, %v1696_v18  ;;  %3834 = vmatprep.mubr.msk.bf16.mxu1 %vm1563_vm0, %v4153_v16  ;;  %v4173_v16 = vld [vmem:[%s6056_s0 + $0x2b8] ss:$28 sps:$4 sm:$0xff]  }
 0x12f   : > { %v1698_v22 = vpop.f32.mrf.mxu0  ;;  %v1907_v21 = vpop.f32.mrf.mxu1 }
 0x131   : > { %v1699_v23 = vpop.f32.mrf.mxu0  ;;  %v1908_v25 = vpop.f32.mrf.mxu1 }
 0x132   : > { %v4875_v28 = vadd.f32 %v1908_v25, %v1699_v23  ;;  %v4170_v25 = vld [vmem:[%s6056_s0 + $0x278] ss:$28 sps:$4 sm:$0xff]  }
 0x133   : > { %v1701_v29 = vpop.f32.mrf.mxu0  ;;  %v1910_v31 = vpop.f32.mrf.mxu1 }
 0x134   : > { %v4177_v29 = vld [vmem:[%s6056_s0 + $0x2b4] ss:$28 sps:$4 sm:$0xff]  }
 0x135   : > { %v1704_v32 = vpop.f32.mrf.mxu0  ;;  %2137 = vmatmul.mubr.bf16.gmra.mxu0 %v4150_v24  ;;  %v1913_v33 = vpop.f32.mrf.mxu1  ;;  %3835 = vmatmul.mubr.msk.bf16.gmra.mxu1 %vm1563_vm0, %v4154_v26 }
 0x136   : > { %2144 = vmatprep.mubr.bf16.mxu0 %v4157_v1  ;;  %v4881_v34 = vadd.f32 %v1913_v33, %v1704_v32  ;;  %3838 = vmatprep.mubr.msk.bf16.mxu1 %vm1563_vm0, %v4158_v30  ;;  %v4174_v1 = vld [vmem:[%s6056_s0 + $0x2f0] ss:$28 sps:$4 sm:$0xff]   ;;  %v4178_v32 = vld [vmem:[%s6056_s0 + $0x328] ss:$28 sps:$4 sm:$0xff]  }
 0x137   : > { %v1706_v36 = vpop.f32.mrf.mxu0  ;;  %v1915_v37 = vpop.f32.mrf.mxu1 }
 0x139   : > { %v1707_v38 = vpop.f32.mrf.mxu0  ;;  %v1916_v40 = vpop.f32.mrf.mxu1 }
 0x13a   : > { %v4893_v44 = vadd.f32 %v1916_v40, %v1707_v38 }
 0x13b   : > { %v1709_v45 = vpop.f32.mrf.mxu0  ;;  %v1918_v47 = vpop.f32.mrf.mxu1 }
 0x13c   : > { %v4182_v47 = vld [vmem:[%s6056_s0 + $0x2ec] ss:$28 sps:$4 sm:$0xff]  }
 0x13d   : > { %v1712_v48 = vpop.f32.mrf.mxu0  ;;  %2145 = vmatmul.mubr.bf16.gmra.mxu0 %v4155_v39  ;;  %v1921_v50 = vpop.f32.mrf.mxu1  ;;  %3839 = vmatmul.mubr.msk.bf16.gmra.mxu1 %vm1563_vm0, %v4159_v42 }
 0x13e   : > { %2152 = vmatprep.mubr.bf16.mxu0 %v4162_v43  ;;  %v4899_v51 = vadd.f32 %v1921_v50, %v1712_v48  ;;  %3842 = vmatprep.mubr.msk.bf16.mxu1 %vm1563_vm0, %v4163_v46  ;;  %v4175_v43 = vld [vmem:[%s6056_s0 + $0x2b0] ss:$28 sps:$4 sm:$0xff]   ;;  %v4179_v46 = vld [vmem:[%s6056_s0 + $0x360] ss:$28 sps:$4 sm:$0xff]  }
 0x13f   : > { %v1714_v52 = vpop.f32.mrf.mxu0  ;;  %v1923_v53 = vpop.f32.mrf.mxu1 }
 0x140   : > { %v4183_v52 = vld [vmem:[%s6056_s0 + $0x398] ss:$28 sps:$4 sm:$0xff]  }
 0x141   : > { %v1715_v54 = vpop.f32.mrf.mxu0  ;;  %v1924_v57 = vpop.f32.mrf.mxu1 }
 0x142   : > { %v4911_v60 = vadd.f32 %v1924_v57, %v1715_v54 }
 0x143   : > { %v1717_v61 = vpop.f32.mrf.mxu0  ;;  %v1926_v0 = vpop.f32.mrf.mxu1 }
 0x145   : > { %v1720_v2 = vpop.f32.mrf.mxu0  ;;  %2153 = vmatmul.mubr.bf16.gmra.mxu0 %v4160_v56  ;;  %v1929_v3 = vpop.f32.mrf.mxu1  ;;  %3843 = vmatmul.mubr.msk.bf16.gmra.mxu1 %vm1563_vm0, %v4164_v58 }
 0x146   : > { %2160 = vmatprep.mubr.bf16.mxu0 %v4167_v59  ;;  %v4917_v4 = vadd.f32 %v1929_v3, %v1720_v2  ;;  %3846 = vmatprep.mubr.msk.bf16.mxu1 %vm1563_vm0, %v4168_v62  ;;  %v4180_v62 = vld [vmem:[%s6056_s0 + $0x2e8] ss:$28 sps:$4 sm:$0xff]   ;;  %v4184_v2 = vld [vmem:[%s6056_s0 + $0x3d0] ss:$28 sps:$4 sm:$0xff]  }
 0x147   : > { %v1722_v5 = vpop.f32.mrf.mxu0  ;;  %v1931_v7 = vpop.f32.mrf.mxu1  ;;  %v4187_v3 = vld [vmem:[%s6056_s0 + $0x324] ss:$28 sps:$4 sm:$0xff]  }
 0x149   : > { %v1723_v8 = vpop.f32.mrf.mxu0  ;;  %v1932_v10 = vpop.f32.mrf.mxu1 }
 0x14a   : > { %v4929_v13 = vadd.f32 %v1932_v10, %v1723_v8  ;;  %v4188_v8 = vld [vmem:[%s6056_s0 + $0x408] ss:$28 sps:$4 sm:$0xff]  }
 0x14b   : > { %v1725_v15 = vpop.f32.mrf.mxu0  ;;  %v1934_v17 = vpop.f32.mrf.mxu1 }
 0x14d   : > { %v1728_v18 = vpop.f32.mrf.mxu0  ;;  %2161 = vmatmul.mubr.bf16.gmra.mxu0 %v4165_v9  ;;  %v1937_v19 = vpop.f32.mrf.mxu1  ;;  %3847 = vmatmul.mubr.msk.bf16.gmra.mxu1 %vm1563_vm0, %v4169_v11 }
 0x14e   : > { %2168 = vmatprep.mubr.bf16.mxu0 %v4172_v12  ;;  %v4935_v22 = vadd.f32 %v1937_v19, %v1728_v18  ;;  %3850 = vmatprep.mubr.msk.bf16.mxu1 %vm1563_vm0, %v4173_v16  ;;  %v4185_v18 = vld [vmem:[%s6056_s0 + $0x320] ss:$28 sps:$4 sm:$0xff]  }
 0x14f   : > { %v1730_v21 = vpop.f32.mrf.mxu0  ;;  %v1939_v23 = vpop.f32.mrf.mxu1 }
 0x150   : > { %v4189_v21 = vld [vmem:[%s6056_s0 + $0x440] ss:$28 sps:$4 sm:$0xff]  }
 0x151   : > { %v1731_v24 = vpop.f32.mrf.mxu0  ;;  %v1940_v26 = vpop.f32.mrf.mxu1  ;;  %v4192_v23 = vld [vmem:[%s6056_s0 + $0x35c] ss:$28 sps:$4 sm:$0xff]  }
 0x152   : > { %v4947_v30 = vadd.f32 %v1940_v26, %v1731_v24  ;;  %v4193_v26 = vld [vmem:[%s6056_s0 + $0x478] ss:$28 sps:$4 sm:$0xff]  }
 0x153   : > { %v1733_v31 = vpop.f32.mrf.mxu0  ;;  %v1942_v33 = vpop.f32.mrf.mxu1 }
 0x155   : > { %v1736_v36 = vpop.f32.mrf.mxu0  ;;  %2169 = vmatmul.mubr.bf16.gmra.mxu0 %v4170_v25  ;;  %v1945_v37 = vpop.f32.mrf.mxu1  ;;  %3851 = vmatmul.mubr.msk.bf16.gmra.mxu1 %vm1563_vm0, %v4174_v1 }
 0x156   : > { %2176 = vmatprep.mubr.bf16.mxu0 %v4177_v29  ;;  %v4953_v38 = vadd.f32 %v1945_v37, %v1736_v36  ;;  %3854 = vmatprep.mubr.msk.bf16.mxu1 %vm1563_vm0, %v4178_v32 }
 0x157   : > { %v1738_v39 = vpop.f32.mrf.mxu0  ;;  %v1947_v40 = vpop.f32.mrf.mxu1 }
 0x158   : > { %v4190_v39 = vld [vmem:[%s6056_s0 + $0x358] ss:$28 sps:$4 sm:$0xff]  }
 0x159   : > { %v1739_v42 = vpop.f32.mrf.mxu0  ;;  %v1948_v45 = vpop.f32.mrf.mxu1 }
 0x15a   : > { %v4965_v48 = vadd.f32 %v1948_v45, %v1739_v42  ;;  %v4194_v42 = vld [vmem:[%s6056_s0 + $0x4b0] ss:$28 sps:$4 sm:$0xff]  }
 0x15b   : > { %v1741_v50 = vpop.f32.mrf.mxu0  ;;  %v1950_v53 = vpop.f32.mrf.mxu1 }
 0x15d   : > { %v1744_v54 = vpop.f32.mrf.mxu0  ;;  %2177 = vmatmul.mubr.bf16.gmra.mxu0 %v4175_v43  ;;  %v1953_v56 = vpop.f32.mrf.mxu1  ;;  %3855 = vmatmul.mubr.msk.bf16.gmra.mxu1 %vm1563_vm0, %v4179_v46  ;;  %v4197_v43 = vld [vmem:[%s6056_s0 + $0x394] ss:$28 sps:$4 sm:$0xff]  }
 0x15e   : > { %2184 = vmatprep.mubr.bf16.mxu0 %v4182_v47  ;;  %v4971_v57 = vadd.f32 %v1953_v56, %v1744_v54  ;;  %3858 = vmatprep.mubr.msk.bf16.mxu1 %vm1563_vm0, %v4183_v52 }
 0x15f   : > { %v1746_v58 = vpop.f32.mrf.mxu0  ;;  %v1955_v59 = vpop.f32.mrf.mxu1 }
 0x160   : > { %v4195_v59 = vld [vmem:[%s6056_s0 + $0x390] ss:$28 sps:$4 sm:$0xff]  }
 0x161   : > { %v1747_v61 = vpop.f32.mrf.mxu0  ;;  %v1956_v0 = vpop.f32.mrf.mxu1 }
 0x162   : > { %v4983_v5 = vadd.f32 %v1956_v0, %v1747_v61 }
 0x163   : > { %v1749_v7 = vpop.f32.mrf.mxu0  ;;  %v1958_v9 = vpop.f32.mrf.mxu1 }
 0x165   : > { %v1752_v10 = vpop.f32.mrf.mxu0  ;;  %2185 = vmatmul.mubr.bf16.gmra.mxu0 %v4180_v62  ;;  %v1961_v11 = vpop.f32.mrf.mxu1  ;;  %3859 = vmatmul.mubr.msk.bf16.gmra.mxu1 %vm1563_vm0, %v4184_v2 }
 0x166   : > { %2192 = vmatprep.mubr.bf16.mxu0 %v4187_v3  ;;  %v4989_v12 = vadd.f32 %v1961_v11, %v1752_v10  ;;  %3862 = vmatprep.mubr.msk.bf16.mxu1 %vm1563_vm0, %v4188_v8 }
 0x167   : > { %v1754_v15 = vpop.f32.mrf.mxu0  ;;  %v1963_v16 = vpop.f32.mrf.mxu1 }
 0x169   : > { %v1755_v17 = vpop.f32.mrf.mxu0  ;;  %v1964_v19 = vpop.f32.mrf.mxu1 }
 0x16a   : > { %v5001_v24 = vadd.f32 %v1964_v19, %v1755_v17 }
 0x16b   : > { %v1757_v25 = vpop.f32.mrf.mxu0  ;;  %v1966_v1 = vpop.f32.mrf.mxu1 }
 0x16d   : > { %v1760_v29 = vpop.f32.mrf.mxu0  ;;  %2193 = vmatmul.mubr.bf16.gmra.mxu0 %v4185_v18  ;;  %v1969_v31 = vpop.f32.mrf.mxu1  ;;  %3863 = vmatmul.mubr.msk.bf16.gmra.mxu1 %vm1563_vm0, %v4189_v21 }
 0x16e   : > { %2200 = vmatprep.mubr.bf16.mxu0 %v4192_v23  ;;  %v5007_v32 = vadd.f32 %v1969_v31, %v1760_v29  ;;  %3866 = vmatprep.mubr.msk.bf16.mxu1 %vm1563_vm0, %v4193_v26 }
 0x16f   : > { %v1762_v33 = vpop.f32.mrf.mxu0  ;;  %v1971_v36 = vpop.f32.mrf.mxu1 }
 0x171   : > { %v1763_v37 = vpop.f32.mrf.mxu0  ;;  %v1972_v40 = vpop.f32.mrf.mxu1 }
 0x172   : > { %v5019_v45 = vadd.f32 %v1972_v40, %v1763_v37 }
 0x173   : > { %v1765_v46 = vpop.f32.mrf.mxu0  ;;  %v1974_v47 = vpop.f32.mrf.mxu1 }
 0x175   : > { %v1768_v50 = vpop.f32.mrf.mxu0  ;;  %2201 = vmatmul.mubr.bf16.gmra.mxu0 %v4190_v39  ;;  %v1977_v52 = vpop.f32.mrf.mxu1  ;;  %3867 = vmatmul.mubr.msk.bf16.gmra.mxu1 %vm1563_vm0, %v4194_v42 }
 0x176   : > { %2208 = vmatprep.mubr.bf16.mxu0 %v4197_v43  ;;  %v5022_v53 = vadd.f32 %v1977_v52, %v1768_v50 }
 0x177   : > { %v1770_v54 = vpop.f32.mrf.mxu0  ;;  %v1979_v56 = vpop.f32.mrf.mxu1 }
 0x179   : > { %v1771_v58 = vpop.f32.mrf.mxu0  ;;  %v1980_v61 = vpop.f32.mrf.mxu1 }
 0x17a   : > { %v5027_v62 = vadd.f32 %v1980_v61, %v1771_v58 }
 0x17b   : > { %v1773_v0 = vpop.f32.mrf.mxu0  ;;  %v1982_v2 = vpop.f32.mrf.mxu1 }
 0x17d   : > { %v1776_v3 = vpop.f32.mrf.mxu0  ;;  %2209 = vmatmul.mubr.bf16.gmra.mxu0 %v4195_v59  ;;  %v1985_v7 = vpop.f32.mrf.mxu1 }
 0x17e   : > { %v5029_v8 = vadd.f32 %v1985_v7, %v1776_v3 }
 0x17f   : > { %v1778_v9 = vpop.f32.mrf.mxu0  ;;  %v1987_v10 = vpop.f32.mrf.mxu1 }
 0x181   : > { %v1779_v11 = vpop.f32.mrf.mxu0  ;;  %v1988_v15 = vpop.f32.mrf.mxu1 }
 0x182   : > { %v5031_v16 = vadd.f32 %v1988_v15, %v1779_v11 }
 0x183   : > { %v1781_v17 = vpop.f32.mrf.mxu0  ;;  %v1990_v18 = vpop.f32.mrf.mxu1 }
 0x185   : > { %v1784_v19 = vpop.f32.mrf.mxu0  ;;  %v1993_v21 = vpop.f32.mrf.mxu1 }
 0x186   : > { %v5033_v23 = vadd.f32 %v1993_v21, %v1784_v19 }
 0x187   : > { %v1786_v25 = vpop.f32.mrf.mxu0  ;;  %v1995_v26 = vpop.f32.mrf.mxu1 }
 0x189   : > { %v1787_v1 = vpop.f32.mrf.mxu0  ;;  %v1996_v29 = vpop.f32.mrf.mxu1 }
 0x18a   : > { %v5035_v31 = vadd.f32 %v1996_v29, %v1787_v1 }
 0x18b   : > { %v1789_v33 = vpop.f32.mrf.mxu0  ;;  %v1998_v36 = vpop.f32.mrf.mxu1 }
 0x18d   : > { %v1792_v37 = vpop.f32.mrf.mxu0  ;;  %v2001_v39 = vpop.f32.mrf.mxu1 }
 0x18e   : > { %v5037_v40 = vadd.f32 %v2001_v39, %v1792_v37 }
 0x18f   : > { %v1794_v42 = vpop.f32.mrf.mxu0  ;;  %v2003_v43 = vpop.f32.mrf.mxu1 }
 0x191   : > { %v1795_v46 = vpop.f32.mrf.mxu0  ;;  %v2004_v47 = vpop.f32.mrf.mxu1 }
 0x192   : > { %v5039_v50 = vadd.f32 %v2004_v47, %v1795_v46 }
 0x193   : > { %v1797_v52 = vpop.f32.mrf.mxu0  ;;  %v2006_v54 = vpop.f32.mrf.mxu1 }
 0x195   : > { %v1800_v56 = vpop.f32.mrf.mxu0  ;;  %v2009_v58 = vpop.f32.mrf.mxu1 }
 0x196   : > { %v2010_v59 = vadd.f32 %v2009_v58, %v1800_v56 }
 0x197   : > { %v1802_v61 = vpop.f32.mrf.mxu0  ;;  %v2011_v0 = vpop.f32.mrf.mxu1 }
 0x199   : > { %v1803_v2 = vpop.f32.mrf.mxu0  ;;  %v2012_v3 = vpop.f32.mrf.mxu1 }
 0x19a   : > { %v2013_v7 = vadd.f32 %v2012_v3, %v1803_v2 }
 0x19b   : > { %v1805_v9 = vpop.f32.mrf.mxu0  ;;  %v2014_v10 = vpop.f32.mrf.mxu1 }
 0x19d   : > { %v1808_v11 = vpop.f32.mrf.mxu0  ;;  %v2017_v15 = vpop.f32.mrf.mxu1 }
 0x19e   : > { %v2018_v17 = vadd.f32 %v2017_v15, %v1808_v11 }
 0x19f   : > { %v1810_v18 = vpop.f32.mrf.mxu0  ;;  %v2019_v19 = vpop.f32.mrf.mxu1 }
 0x1a1   : > { %v1811_v21 = vpop.f32.mrf.mxu0  ;;  %v2020_v25 = vpop.f32.mrf.mxu1 }
 0x1a2   : > { %v2021_v26 = vadd.f32 %v2020_v25, %v1811_v21 }
 0x1a3   : > { %v1813_v1 = vpop.f32.mrf.mxu0  ;;  %v2022_v29 = vpop.f32.mrf.mxu1 }
 0x1a5   : > { %v1816_v33 = vpop.f32.mrf.mxu0  ;;  %v2025_v36 = vpop.f32.mrf.mxu1 }
 0x1a6   : > { %v2026_v37 = vadd.f32 %v2025_v36, %v1816_v33 }
 0x1a7   : > { %v1818_v39 = vpop.f32.mrf.mxu0  ;;  %v2027_v42 = vpop.f32.mrf.mxu1 }
 0x1a9   : > { %v1819_v43 = vpop.f32.mrf.mxu0  ;;  %v2028_v46 = vpop.f32.mrf.mxu1 }
 0x1aa   : > { %v2029_v47 = vadd.f32 %v2028_v46, %v1819_v43 }
 0x1ab   : > { %v1821_v52 = vpop.f32.mrf.mxu0  ;;  %v2030_v54 = vpop.f32.mrf.mxu1 }
 0x1ad   : > { %v1824_v56 = vpop.f32.mrf.mxu0  ;;  %v2033_v58 = vpop.f32.mrf.mxu1 }
 0x1ae   : > { %v2034_v61 = vadd.f32 %v2033_v58, %v1824_v56 }
 0x1af   : > { %v1826_v0 = vpop.f32.mrf.mxu0  ;;  %v2035_v2 = vpop.f32.mrf.mxu1 }
 0x1b1   : > { %v1827_v3 = vpop.f32.mrf.mxu0  ;;  %v2036_v9 = vpop.f32.mrf.mxu1 }
 0x1b2   : > { %v2037_v10 = vadd.f32 %v2036_v9, %v1827_v3 }
 0x1b3   : > { %v1829_v11 = vpop.f32.mrf.mxu0  ;;  %v2038_v15 = vpop.f32.mrf.mxu1 }
 0x1b5   : > { %v1832_v18 = vpop.f32.mrf.mxu0  ;;  %v2041_v19 = vpop.f32.mrf.mxu1 }
 0x1b6   : > { %v2042_v21 = vadd.f32 %v2041_v19, %v1832_v18 }
 0x1b7   : > { %v1834_v25 = vpop.f32.mrf.mxu0  ;;  %v2043_v1 = vpop.f32.mrf.mxu1 }
 0x1b9   : > { %v1835_v29 = vpop.f32.mrf.mxu0  ;;  %v2044_v33 = vpop.f32.mrf.mxu1 }
 0x1ba   : > { %v2045_v36 = vadd.f32 %v2044_v33, %v1835_v29 }
 0x1bb   : > { %v1837_v39 = vpop.f32.mrf.mxu0  ;;  %v2046_v42 = vpop.f32.mrf.mxu1 }
 0x1bd   : > { %v2082_v43 = vpop.f32.mrf.mxu0  ;;  %v2218_v52 = vpop.f32.mrf.mxu1 }
 0x1be   : > { %v5042_v46 = vadd.f32 %v2082_v43, %v4795_v27  ;;  %v5044_v54 = vadd.f32 %v2218_v52, %v2010_v59 }
 0x1bf   : > { %v2084_v56 = vpop.f32.mrf.mxu0  ;;  %v2220_v58 = vpop.f32.mrf.mxu1 }
 0x1c1   : > { %v2085_v0 = vpop.f32.mrf.mxu0  ;;  %v2221_v3 = vpop.f32.mrf.mxu1 }
 0x1c2   : > { %v5047_v2 = vadd.f32 %v2085_v0, %v4806_v35  ;;  %v5049_v9 = vadd.f32 %v2221_v3, %v2013_v7 }
 0x1c3   : > { %v2087_v11 = vpop.f32.mrf.mxu0  ;;  %v2223_v15 = vpop.f32.mrf.mxu1 }
 0x1c5   : > { %v2090_v18 = vpop.f32.mrf.mxu0  ;;  %v2226_v27 = vpop.f32.mrf.mxu1 }
 0x1c6   : > { %v2091_v19 = vadd.f32 %v2090_v18, %v4811_v41  ;;  %v5053_v25 = vadd.f32 %v2226_v27, %v2018_v17 }
 0x1c7   : > { %v2092_v59 = vpop.f32.mrf.mxu0  ;;  %v2228_v1 = vpop.f32.mrf.mxu1 }
 0x1c9   : > { %v2093_v29 = vpop.f32.mrf.mxu0  ;;  %v2229_v39 = vpop.f32.mrf.mxu1 }
 0x1ca   : > { %v2094_v33 = vadd.f32 %v2093_v29, %v4822_v49  ;;  %v5056_v35 = vadd.f32 %v2229_v39, %v2021_v26 }
 0x1cb   : > { %v2095_v42 = vpop.f32.mrf.mxu0  ;;  %v2231_v7 = vpop.f32.mrf.mxu1 }
 0x1cd   : > { %v2098_v43 = vpop.f32.mrf.mxu0  ;;  %v2234_v56 = vpop.f32.mrf.mxu1 }
 0x1ce   : > { %v2099_v52 = vadd.f32 %v2098_v43, %v4827_v55  ;;  %v5059_v58 = vadd.f32 %v2234_v56, %v2026_v37 }
 0x1cf   : > { %v2100_v41 = vpop.f32.mrf.mxu0  ;;  %v2236_v0 = vpop.f32.mrf.mxu1 }
 0x1d1   : > { %v2101_v17 = vpop.f32.mrf.mxu0  ;;  %v2237_v11 = vpop.f32.mrf.mxu1 }
 0x1d2   : > { %v2102_v3 = vadd.f32 %v2101_v17, %v4839_v63  ;;  %v5062_v15 = vadd.f32 %v2237_v11, %v2029_v47 }
 0x1d3   : > { %v2103_v49 = vpop.f32.mrf.mxu0  ;;  %v2239_v18 = vpop.f32.mrf.mxu1 }
 0x1d5   : > { %v2106_v26 = vpop.f32.mrf.mxu0  ;;  %v2242_v59 = vpop.f32.mrf.mxu1 }
 0x1d6   : > { %v2107_v27 = vadd.f32 %v2106_v26, %v4845_v6  ;;  %v5065_v1 = vadd.f32 %v2242_v59, %v2034_v61 }
 0x1d7   : > { %v2108_v55 = vpop.f32.mrf.mxu0  ;;  %v2244_v29 = vpop.f32.mrf.mxu1 }
 0x1d9   : > { %v2109_v37 = vpop.f32.mrf.mxu0  ;;  %v2245_v42 = vpop.f32.mrf.mxu1 }
 0x1da   : > { %v2110_v39 = vadd.f32 %v2109_v37, %v4857_v14  ;;  %v5068_v7 = vadd.f32 %v2245_v42, %v2037_v10 }
 0x1db   : > { %v2111_v63 = vpop.f32.mrf.mxu0  ;;  %v2247_v43 = vpop.f32.mrf.mxu1 }
 0x1dd   : > { %v2114_v47 = vpop.f32.mrf.mxu0  ;;  %v2250_v41 = vpop.f32.mrf.mxu1 }
 0x1de   : > { %v2115_v56 = vadd.f32 %v2114_v47, %v4863_v20  ;;  %v5071_v0 = vadd.f32 %v2250_v41, %v2042_v21 }
 0x1df   : > { %v2116_v6 = vpop.f32.mrf.mxu0  ;;  %v2252_v17 = vpop.f32.mrf.mxu1 }
 0x1e1   : > { %v2117_v61 = vpop.f32.mrf.mxu0  ;;  %v2253_v49 = vpop.f32.mrf.mxu1 }
 0x1e2   : > { %v2118_v11 = vadd.f32 %v2117_v61, %v4875_v28  ;;  %v5074_v18 = vadd.f32 %v2253_v49, %v2045_v36 }
 0x1e3   : > { %v2119_v14 = vpop.f32.mrf.mxu0  ;;  %v2255_v26 = vpop.f32.mrf.mxu1 }
 0x1e5   : > { %v2122_v10 = vpop.f32.mrf.mxu0  ;;  %v3828_v55 = vpop.f32.mrf.mxu1 }
 0x1e6   : > { %v2123_v59 = vadd.f32 %v2122_v10, %v4881_v34  ;;  %v5077_v29 = vadd.f32 %v3828_v55, %v2091_v19 }
 0x1e7   : > { %v2124_v20 = vpop.f32.mrf.mxu0  ;;  %v2291_v37 = vpop.f32.mrf.mxu1 }
 0x1e8   : > { %v5080_v21 = vadd.f32 %v2291_v37, %v5042_v46 }
 0x1e9   : > { %v2125_v42 = vpop.f32.mrf.mxu0  ;;  %v3829_v28 = vpop.f32.mrf.mxu1 }
 0x1ea   : > { %v2126_v63 = vadd.f32 %v2125_v42, %v4893_v44  ;;  %v5083_v43 = vadd.f32 %v3829_v28, %v2094_v33 }
 0x1eb   : > { %v2127_v36 = vpop.f32.mrf.mxu0  ;;  %v2294_v47 = vpop.f32.mrf.mxu1 }
 0x1ec   : > { %v5086_v41 = vadd.f32 %v2294_v47, %v5047_v2 }
 0x1ed   : > { %v2130_v34 = vpop.f32.mrf.mxu0  ;;  %v3832_v6 = vpop.f32.mrf.mxu1 }
 0x1ee   : > { %v2131_v19 = vadd.f32 %v2130_v34, %v4899_v51  ;;  %v5089_v17 = vadd.f32 %v3832_v6, %v2107_v27 }
 0x1ef   : > { %v2132_v61 = vpop.f32.mrf.mxu0  ;;  %v2307_v46 = vpop.f32.mrf.mxu1 }
 0x1f0   : > { %v5091_v49 = vadd.f32 %v2307_v46, %v2099_v52 }
 0x1f1   : > { %v2133_v14 = vpop.f32.mrf.mxu0  ;;  %v3833_v33 = vpop.f32.mrf.mxu1 }
 0x1f2   : > { %v2134_v44 = vadd.f32 %v2133_v14, %v4911_v60  ;;  %v5094_v26 = vadd.f32 %v3833_v33, %v2110_v39 }
 0x1f3   : > { %v2135_v10 = vpop.f32.mrf.mxu0  ;;  %v2310_v55 = vpop.f32.mrf.mxu1 }
 0x1f4   : > { %v5096_v2 = vadd.f32 %v2310_v55, %v2102_v3 }
 0x1f5   : > { %v2138_v20 = vpop.f32.mrf.mxu0  ;;  %v3836_v37 = vpop.f32.mrf.mxu1 }
 0x1f6   : > { %v2139_v51 = vadd.f32 %v2138_v20, %v4917_v4  ;;  %v5099_v27 = vadd.f32 %v3836_v37, %v2123_v59 }
 0x1f7   : > { %v2140_v42 = vpop.f32.mrf.mxu0  ;;  %v2323_v28 = vpop.f32.mrf.mxu1 }
 0x1f8   : > { %v5101_v52 = vadd.f32 %v2323_v28, %v2115_v56 }
 0x1f9   : > { %v2141_v36 = vpop.f32.mrf.mxu0  ;;  %v3837_v47 = vpop.f32.mrf.mxu1 }
 0x1fa   : > { %v2142_v60 = vadd.f32 %v2141_v36, %v4929_v13  ;;  %v5104_v39 = vadd.f32 %v3837_v47, %v2126_v63 }
 0x1fb   : > { %v2143_v34 = vpop.f32.mrf.mxu0  ;;  %v2326_v6 = vpop.f32.mrf.mxu1 }
 0x1fc   : > { %v5106_v3 = vadd.f32 %v2326_v6, %v2118_v11 }
 0x1fd   : > { %v2146_v61 = vpop.f32.mrf.mxu0  ;;  %v3840_v46 = vpop.f32.mrf.mxu1 }
 0x1fe   : > { %v2147_v4 = vadd.f32 %v2146_v61, %v4935_v22  ;;  %v5109_v59 = vadd.f32 %v3840_v46, %v2139_v51 }
 0x1ff   : > { %v2148_v14 = vpop.f32.mrf.mxu0  ;;  %v2339_v33 = vpop.f32.mrf.mxu1 }
 0x200   : > { %v5111_v56 = vadd.f32 %v2339_v33, %v2131_v19 }
 0x201   : > { %v2149_v10 = vpop.f32.mrf.mxu0  ;;  %v3841_v55 = vpop.f32.mrf.mxu1 }
 0x202   : > { %v2150_v13 = vadd.f32 %v2149_v10, %v4947_v30  ;;  %v5114_v63 = vadd.f32 %v3841_v55, %v2142_v60 }
 0x203   : > { %v2151_v20 = vpop.f32.mrf.mxu0  ;;  %v2342_v37 = vpop.f32.mrf.mxu1 }
 0x204   : > { %v5116_v11 = vadd.f32 %v2342_v37, %v2134_v44 }
 0x205   : > { %v2154_v42 = vpop.f32.mrf.mxu0  ;;  %v3844_v28 = vpop.f32.mrf.mxu1 }
 0x206   : > { %v2155_v22 = vadd.f32 %v2154_v42, %v4953_v38 }
 0x207   : > { %v2156_v51 = vpop.f32.mrf.mxu0  ;;  %v2355_v47 = vpop.f32.mrf.mxu1 }
 0x208   : > { %v5119_v36 = vadd.f32 %v3844_v28, %v2155_v22  ;;  %v5121_v19 = vadd.f32 %v2355_v47, %v2147_v4 }
 0x209   : > { %v2157_v34 = vpop.f32.mrf.mxu0  ;;  %v3845_v6 = vpop.f32.mrf.mxu1 }
 0x20a   : > { %v2158_v30 = vadd.f32 %v2157_v34, %v4965_v48 }
 0x20b   : > { %v2159_v60 = vpop.f32.mrf.mxu0  ;;  %v2358_v46 = vpop.f32.mrf.mxu1 }
 0x20c   : > { %v5124_v61 = vadd.f32 %v3845_v6, %v2158_v30  ;;  %v5126_v44 = vadd.f32 %v2358_v46, %v2150_v13 }
 0x20d   : > { %v2162_v14 = vpop.f32.mrf.mxu0  ;;  %v3848_v33 = vpop.f32.mrf.mxu1 }
 0x20e   : > { %v2163_v38 = vadd.f32 %v2162_v14, %v4971_v57 }
 0x20f   : > { %v2164_v10 = vpop.f32.mrf.mxu0  ;;  %v2371_v55 = vpop.f32.mrf.mxu1 }
 0x210   : > { %v5129_v20 = vadd.f32 %v2371_v55, %v2163_v38 }
 0x211   : > { %v2165_v4 = vpop.f32.mrf.mxu0  ;;  %v3849_v42 = vpop.f32.mrf.mxu1 }
 0x212   : > { %v2166_v37 = vadd.f32 %v2165_v4, %v4983_v5 }
 0x213   : > { %v2167_v48 = vpop.f32.mrf.mxu0  ;;  %v2374_v22 = vpop.f32.mrf.mxu1 }
 0x214   : > { %v5132_v28 = vadd.f32 %v2374_v22, %v2166_v37 }
 0x215   : > { %v2170_v51 = vpop.f32.mrf.mxu0  ;;  %v3852_v47 = vpop.f32.mrf.mxu1 }
 0x216   : > { %v2171_v13 = vadd.f32 %v2170_v51, %v4989_v12 }
 0x217   : > { %v2172_v34 = vpop.f32.mrf.mxu0  ;;  %v2387_v57 = vpop.f32.mrf.mxu1 }
 0x218   : > { %v5135_v30 = vadd.f32 %v3848_v33, %v2171_v13 }
 0x219   : > { %v2173_v6 = vpop.f32.mrf.mxu0  ;;  %v3853_v46 = vpop.f32.mrf.mxu1 }
 0x21a   : > { %v2174_v60 = vadd.f32 %v2173_v6, %v5001_v24 }
 0x21b   : > { %v2175_v14 = vpop.f32.mrf.mxu0  ;;  %v2390_v5 = vpop.f32.mrf.mxu1 }
 0x21c   : > { %v5138_v38 = vadd.f32 %v3849_v42, %v2174_v60 }
 0x21d   : > { %v2178_v10 = vpop.f32.mrf.mxu0  ;;  %v3856_v4 = vpop.f32.mrf.mxu1 }
 0x21e   : > { %v2179_v55 = vadd.f32 %v2178_v10, %v5007_v32 }
 0x21f   : > { %v2180_v37 = vpop.f32.mrf.mxu0  ;;  %v2403_v12 = vpop.f32.mrf.mxu1 }
 0x220   : > { %v5141_v48 = vadd.f32 %v2387_v57, %v2179_v55 }
 0x221   : > { %v2181_v22 = vpop.f32.mrf.mxu0  ;;  %v3857_v51 = vpop.f32.mrf.mxu1 }
 0x222   : > { %v2182_v33 = vadd.f32 %v2181_v22, %v5019_v45 }
 0x223   : > { %v2183_v13 = vpop.f32.mrf.mxu0  ;;  %v2406_v24 = vpop.f32.mrf.mxu1 }
 0x224   : > { %v5144_v34 = vadd.f32 %v2390_v5, %v2182_v33 }
 0x225   : > { %v2186_v6 = vpop.f32.mrf.mxu0  ;;  %v3860_v60 = vpop.f32.mrf.mxu1 }
 0x226   : > { %v2187_v42 = vadd.f32 %v2186_v6, %v5022_v53  ;;  %v5148_v14 = vadd.f32 %v3860_v60, %v5044_v54 }
 0x227   : > { %v2188_v32 = vpop.f32.mrf.mxu0  ;;  %v2419_v57 = vpop.f32.mrf.mxu1 }
 0x228   : > { %6072 = vst [vmem:[#allocation4_spill] sm:$0xff] %v5148_v14  ;;  %v5150_v10 = vadd.f32 %v3852_v47, %v2187_v42 }
 0x229   : > { %v2189_v55 = vpop.f32.mrf.mxu0  ;;  %v3861_v45 = vpop.f32.mrf.mxu1 }
 0x22a   : > { %v2190_v37 = vadd.f32 %v2189_v55, %v5027_v62  ;;  %v5154_v22 = vadd.f32 %v3861_v45, %v5049_v9 }
 0x22b   : > { %v2191_v5 = vpop.f32.mrf.mxu0  ;;  %v2422_v13 = vpop.f32.mrf.mxu1 }
 0x22c   : > { %6073 = vst [vmem:[#allocation5_spill] sm:$0xff] %v5154_v22  ;;  %v5156_v33 = vadd.f32 %v3853_v46, %v2190_v37 }
 0x22d   : > { %v2194_v53 = vpop.f32.mrf.mxu0  ;;  %v3864_v54 = vpop.f32.mrf.mxu1 }
 0x22e   : > { %v2195_v6 = vadd.f32 %v2194_v53, %v5029_v8  ;;  %v5160_v60 = vadd.f32 %v3864_v54, %v5059_v58 }
 0x22f   : > { %v2196_v47 = vpop.f32.mrf.mxu0  ;;  %v2435_v32 = vpop.f32.mrf.mxu1 }
 0x230   : > { %6074 = vst [vmem:[#allocation6_spill] sm:$0xff] %v5160_v60  ;;  %v5162_v42 = vadd.f32 %v2403_v12, %v2195_v6  ;;  %v5165_v62 = vadd.f32 %v2435_v32, %v5053_v25 }
 0x231   : > { %v2197_v9 = vpop.f32.mrf.mxu0  ;;  %v3865_v46 = vpop.f32.mrf.mxu1 }
 0x232   : > { %6075 = vst [vmem:[#allocation7_spill] sm:$0xff] %v5165_v62  ;;  %v2198_v55 = vadd.f32 %v2197_v9, %v5031_v16  ;;  %v5169_v37 = vadd.f32 %v3865_v46, %v5062_v15 }
 0x233   : > { %v2199_v45 = vpop.f32.mrf.mxu0  ;;  %v2438_v5 = vpop.f32.mrf.mxu1 }
 0x234   : > { %6076 = vst [vmem:[#allocation8_spill] sm:$0xff] %v5169_v37  ;;  %v5171_v8 = vadd.f32 %v2406_v24, %v2198_v55  ;;  %v5174_v58 = vadd.f32 %v2438_v5, %v5056_v35 }
 0x235   : > { %v2202_v12 = vpop.f32.mrf.mxu0  ;;  %v3868_v6 = vpop.f32.mrf.mxu1 }
 0x236   : > { %6077 = vst [vmem:[#allocation9_spill] sm:$0xff] %v5174_v58  ;;  %v2203_v53 = vadd.f32 %v2202_v12, %v5033_v23  ;;  %v5178_v25 = vadd.f32 %v3868_v6, %v5071_v0 }
 0x237   : > { %v2204_v54 = vpop.f32.mrf.mxu0  ;;  %v2451_v47 = vpop.f32.mrf.mxu1 }
 0x238   : > { %6078 = vst [vmem:[#allocation10_spill] sm:$0xff] %v5178_v25  ;;  %v5180_v16 = vadd.f32 %v3856_v4, %v2203_v53  ;;  %v5183_v15 = vadd.f32 %v2451_v47, %v5065_v1 }
 0x239   : > { %v2205_v24 = vpop.f32.mrf.mxu0  ;;  %v3869_v9 = vpop.f32.mrf.mxu1 }
 0x23a   : > { %6079 = vst [vmem:[#allocation11_spill] sm:$0xff] %v5183_v15  ;;  %v2206_v32 = vadd.f32 %v2205_v24, %v5035_v31  ;;  %v5187_v35 = vadd.f32 %v3869_v9, %v5074_v18  ;;  %v4225_v18 = vmov (%p2466_p4), 0.0  }
 0x23b   : > { %v2207_v55 = vpop.f32.mrf.mxu0  ;;  %v2454_v46 = vpop.f32.mrf.mxu1  ;;  %2473 = vst.msk [vmem:[#allocation2] sm:$0x1] (%p2466_p4), %vm2472_vm1, %v4225_v18  ;;  %2474 = vst.msk [vmem:[#allocation3] sm:$0x1] (%p2466_p4), %vm2472_vm1, %v4225_v18 }
 0x23c   : > { %6080 = vst [vmem:[#allocation12_spill] sm:$0xff] %v5187_v35  ;;  %v5189_v23 = vadd.f32 %v3857_v51, %v2206_v32  ;;  %v5192_v0 = vadd.f32 %v2454_v46, %v5068_v7 }
 0x23d   : > { %v2210_v4 = vpop.f32.mrf.mxu0 }
 0x23e   : > { %6081 = vst [vmem:[#allocation13_spill] sm:$0xff] %v5192_v0  ;;  %v2211_v45 = vadd.f32 %v2210_v4, %v5037_v40 }
 0x23f   : > { %v2212_v5 = vpop.f32.mrf.mxu0 }
 0x240   : > { %v5195_v1 = vadd.f32 %v2419_v57, %v2211_v45 }
 0x241   : > { %v2213_v12 = vpop.f32.mrf.mxu0 }
 0x242   : > { %v2214_v31 = vadd.f32 %v2213_v12, %v5039_v50  ;;  %2471 = sbr.rel (!%p2466_p4) target bundleno = 583 (0x247), region = 40 }
 0x243   : > { %v2215_v53 = vpop.f32.mrf.mxu0 }
 0x244   : > { %v5198_v6 = vadd.f32 %v2422_v13, %v2214_v31 }
 0x246   : > { %6082 = vst [vmem:[#allocation14_spill] sm:$0xff] %v5198_v6 }
 0x247 PF: > { %p3615_p5 = scmp.ne.s32.totalorder %s4214_s15, 0 }
 0x249   : > { %2477 = sbr.rel (%p3615_p5) target bundleno = 716 (0x2cc), region = 44 }
 0x24e   : > { %vm2479_vm2 = vcmask 523264   ;;  %v2586_v0 = vmul.f32 %v5106_v3, %v5106_v3  ;;  %v2587_v15 = vmul.f32 %v5099_v27, %v5099_v27  ;;  %v2588_v37 = vmul.f32 %v5104_v39, %v5104_v39 }
 0x24f   : > { %v2480_v40 = vsel %vm2479_vm2, %v5080_v21, 0.0  ;;  %v2481_v50 = vsel %vm2479_vm2, %v5086_v41, 0.0  ;;  %v2483_v7 = vsel %vm2479_vm2, %v5077_v29, 0.0  ;;  %v2485_v57 = vsel %vm2479_vm2, %v5083_v43, 0.0 }
 0x250   : > { %v2482_v51 = vadd.f32 %v2481_v50, %v2480_v40  ;;  %v2487_v54 = vsel %vm2479_vm2, %v5091_v49, 0.0  ;;  %v2489_v24 = vsel %vm2479_vm2, %v5096_v2, 0.0  ;;  %v2491_v9 = vsel %vm2479_vm2, %v5089_v17, 0.0 }
 0x251   : > { %v2493_v46 = vsel %vm2479_vm2, %v5094_v26, 0.0  ;;  %v2495_v45 = vsel %vm2479_vm2, %v5101_v52, 0.0  ;;  %v2497_v12 = vsel %vm2479_vm2, %v5106_v3, 0.0  ;;  %v2499_v53 = vsel %vm2479_vm2, %v5099_v27, 0.0 }
 0x252   : > { %v2484_v13 = vadd.f32 %v2483_v7, %v2482_v51  ;;  %v2501_v40 = vsel %vm2479_vm2, %v5104_v39, 0.0  ;;  %v2503_v7 = vsel %vm2479_vm2, %v5111_v56, 0.0  ;;  %v2577_v51 = vmul.f32 %v5080_v21, %v5080_v21 }
 0x253   : > { %v5284_v35 = vsel %vm2479_vm2, %v5150_v10, 0.0  ;;  %v5291_v25 = vsel %vm2479_vm2, %v5156_v33, 0.0  ;;  %v2593_v58 = vmul.f32 %v5121_v19, %v5121_v19  ;;  %v2642_v14 = vsel %vm2479_vm2, %v2588_v37, 0.0 }
 0x254   : > { %v2486_v47 = vadd.f32 %v2485_v57, %v2484_v13  ;;  %v2578_v57 = vmul.f32 %v5086_v41, %v5086_v41  ;;  %6083 = vst [vmem:[#allocation15_spill] sm:$0xff] %v5284_v35  ;;  %6084 = vst [vmem:[#allocation16_spill] sm:$0xff] %v5291_v25  ;;  %v2590_v25 = vmul.f32 %v5116_v11, %v5116_v11  ;;  %v2638_v35 = vsel %vm2479_vm2, %v2586_v0, 0.0 }
 0x255   : > { %vm2892_vm3 = vcmask 519168   ;;  %v3711_v37 = vpack.c.bf16 %v5086_v41, %v5086_v41  ;;  %vm2574_vm4 = vcmask 516096  }
 0x256   : > { %v2488_v32 = vadd.f32 %v2487_v54, %v2486_v47  ;;  %v2579_v54 = vmul.f32 %v5077_v29, %v5077_v29  ;;  %v2505_v47 = vsel %vm2479_vm2, %v5116_v11, 0.0  ;;  %v5331_v6 = vsel %vm2479_vm2, %v2590_v25, 0.0 }
 0x257   : > { %v3712_v25 = vpack.c.bf16 %v5077_v29, %v5077_v29  ;;  %2894 = vst.msk [vmem:[%s6060_s4 + $0x4] sm:$0xf] %vm2892_vm3, %v3711_v37 }
 0x258   : > { %v2490_v55 = vadd.f32 %v2489_v24, %v2488_v32  ;;  %v2580_v24 = vmul.f32 %v5083_v43, %v5083_v43 }
 0x259   : > { %2895 = vst.msk [vmem:[%s6060_s4 + $0x8] sm:$0xf] %vm2892_vm3, %v3712_v25 }
 0x25a   : > { %v2492_v4 = vadd.f32 %v2491_v9, %v2490_v55  ;;  %v2507_v9 = vsel %vm2479_vm2, %v5109_v59, 0.0  ;;  %v2509_v55 = vsel %vm2479_vm2, %v5114_v63, 0.0 }
 0x25c   : > { %v2494_v5 = vadd.f32 %v2493_v46, %v2492_v4  ;;  %v2581_v46 = vmul.f32 %v5091_v49, %v5091_v49  ;;  %v2621_v4 = vsel %vm2479_vm2, %v2577_v51, 0.0 }
 0x25e   : > { %v2496_v31 = vadd.f32 %v2495_v45, %v2494_v5  ;;  %v2622_v45 = vsel %vm2479_vm2, %v2578_v57, 0.0  ;;  %v2517_v57 = vsel %vm2479_vm2, %v5124_v61, 0.0 }
 0x260   : > { %v2498_v18 = vadd.f32 %v2497_v12, %v2496_v31  ;;  %v2511_v12 = vsel %vm2479_vm2, %v5121_v19, 0.0  ;;  %v2623_v31 = vadd.f32 %v2622_v45, %v2621_v4  ;;  %v2583_v4 = vmul.f32 %v5089_v17, %v5089_v17 }
 0x261   : > { %v5272_v45 = vsel %vm2479_vm2, %v5138_v38, 0.0 }
 0x262   : > { %v2500_v50 = vadd.f32 %v2499_v53, %v2498_v18  ;;  %v2624_v53 = vsel %vm2479_vm2, %v2579_v54, 0.0  ;;  %v2513_v18 = vsel %vm2479_vm2, %v5126_v44, 0.0  ;;  %v2521_v54 = vsel %vm2479_vm2, %v5132_v28, 0.0 }
 0x264   : > { %v2502_v13 = vadd.f32 %v2501_v40, %v2500_v50  ;;  %v2515_v40 = vsel %vm2479_vm2, %v5119_v36, 0.0  ;;  %v2582_v50 = vmul.f32 %v5096_v2, %v5096_v2 }
 0x266   : > { %v2504_v32 = vadd.f32 %v2503_v7, %v2502_v13  ;;  %v2626_v7 = vsel %vm2479_vm2, %v2580_v24, 0.0  ;;  %v2519_v13 = vsel %vm2479_vm2, %v5129_v20, 0.0  ;;  %v2628_v24 = vsel %vm2479_vm2, %v2581_v46, 0.0 }
 0x267   : > { %v2630_v46 = vsel %vm2479_vm2, %v2582_v50, 0.0  ;;  %v2632_v50 = vsel %vm2479_vm2, %v2583_v4, 0.0 }
 0x268   : > { %v2506_v5 = vadd.f32 %v2505_v47, %v2504_v32  ;;  %v2625_v47 = vadd.f32 %v2624_v53, %v2623_v31  ;;  %v5265_v32 = vsel %vm2479_vm2, %v5135_v30, 0.0  ;;  %v5280_v53 = vsel %vm2479_vm2, %v5144_v34, 0.0 }
 0x26a   : > { %v2508_v51 = vadd.f32 %v2507_v9, %v2506_v5  ;;  %v5276_v5 = vsel %vm2479_vm2, %v5141_v48, 0.0  ;;  %v2627_v31 = vadd.f32 %v2626_v7, %v2625_v47  ;;  %v2585_v7 = vmul.f32 %v5101_v52, %v5101_v52 }
 0x26c   : > { %v2510_v9 = vadd.f32 %v2509_v55, %v2508_v51  ;;  %v2584_v55 = vmul.f32 %v5094_v26, %v5094_v26  ;;  %v2629_v47 = vadd.f32 %v2628_v24, %v2627_v31  ;;  %v2591_v24 = vmul.f32 %v5109_v59, %v5109_v59 }
 0x26d   : > { %v2592_v31 = vmul.f32 %v5114_v63, %v5114_v63  ;;  %v2636_v22 = vsel %vm2479_vm2, %v2585_v7, 0.0  ;;  %v5340_v7 = vsel %vm2479_vm2, %v2593_v58, 0.0 }
 0x26e   : > { %v2512_v51 = vadd.f32 %v2511_v12, %v2510_v9  ;;  %v2589_v9 = vmul.f32 %v5111_v56, %v5111_v56  ;;  %v2631_v60 = vadd.f32 %v2630_v46, %v2629_v47  ;;  %v2634_v62 = vsel %vm2479_vm2, %v2584_v55, 0.0 }
 0x26f   : > { %v5323_v47 = vmul.f32 %v5119_v36, %v5119_v36  ;;  %v2640_v55 = vsel %vm2479_vm2, %v2587_v15, 0.0 }
 0x270   : > { %v2514_v12 = vadd.f32 %v2513_v18, %v2512_v51  ;;  %v5315_v18 = vsel %vm2479_vm2, %v5162_v42, 0.0  ;;  %v5319_v51 = vmul.f32 %v5126_v44, %v5126_v44  ;;  %v2633_v46 = vadd.f32 %v2632_v50, %v2631_v60 }
 0x271   : > { %6085 = vst [vmem:[#allocation17_spill] sm:$0xff] %v5315_v18  ;;  %v2644_v18 = vsel %vm2479_vm2, %v2589_v9, 0.0  ;;  %v5334_v60 = vsel %vm2479_vm2, %v2591_v24, 0.0  ;;  %v5337_v50 = vsel %vm2479_vm2, %v2592_v31, 0.0  ;;  %v3714_v9 = vpack.c.bf16 %v5091_v49, %v5091_v49 }
 0x272   : > { %v2516_v4 = vadd.f32 %v2515_v40, %v2514_v12  ;;  %v2635_v12 = vadd.f32 %v2634_v62, %v2633_v46  ;;  %v3710_v62 = vpack.c.bf16 %v5080_v21, %v5080_v21  ;;  %v3719_v31 = vpack.c.bf16 %v5106_v3, %v5106_v3 }
 0x273   : > { %2897 = vst.msk [vmem:[%s6060_s4 + $0x10] sm:$0xf] %vm2892_vm3, %v3714_v9  ;;  %v3728_v9 = vpack.c.bf16 %v5119_v36, %v5119_v36 }
 0x274   : > { %v2518_v40 = vadd.f32 %v2517_v57, %v2516_v4  ;;  %v2637_v15 = vadd.f32 %v2636_v22, %v2635_v12  ;;  %v3713_v57 = vpack.c.bf16 %v5083_v43, %v5083_v43  ;;  %2893 = vst.msk [vmem:[%s6060_s4] sm:$0xf] %vm2892_vm3, %v3710_v62  ;;  %v3715_v22 = vpack.c.bf16 %v5096_v2, %v5096_v2 }
 0x275   : > { %v3720_v4 = vpack.c.bf16 %v5099_v27, %v5099_v27  ;;  %v3721_v12 = vpack.c.bf16 %v5104_v39, %v5104_v39  ;;  %2902 = vst.msk [vmem:[%s6060_s4 + $0x24] sm:$0xf] %vm2892_vm3, %v3719_v31  ;;  %v3726_v62 = vpack.c.bf16 %v5121_v19, %v5121_v19  ;;  %2911 = vst.msk [vmem:[%s6060_s4 + $0x48] sm:$0xf] %vm2892_vm3, %v3728_v9  ;;  %v6089_v9 = vld [vmem:[#allocation5_spill] sm:$0xff] }
 0x276   : > { %v2520_v0 = vadd.f32 %v2519_v13, %v2518_v40  ;;  %v2639_v24 = vadd.f32 %v2638_v35, %v2637_v15  ;;  %v3716_v13 = vpack.c.bf16 %v5089_v17, %v5089_v17  ;;  %2896 = vst.msk [vmem:[%s6060_s4 + $0xc] sm:$0xf] %vm2892_vm3, %v3713_v57  ;;  %v3717_v35 = vpack.c.bf16 %v5094_v26, %v5094_v26 }
 0x277   : > { %2898 = vst.msk [vmem:[%s6060_s4 + $0x14] sm:$0xf] %vm2892_vm3, %v3715_v22  ;;  %2903 = vst.msk [vmem:[%s6060_s4 + $0x28] sm:$0xf] %vm2892_vm3, %v3720_v4  ;;  %v3725_v15 = vpack.c.bf16 %v5114_v63, %v5114_v63  ;;  %v3727_v57 = vpack.c.bf16 %v5126_v44, %v5126_v44  ;;  %v3737_v31 = vpack.c.bf16 %v5156_v33, %v5156_v33 }
 0x278   : > { %v2522_v58 = vadd.f32 %v2521_v54, %v2520_v0  ;;  %v3718_v54 = vpack.c.bf16 %v5101_v52, %v5101_v52  ;;  %v2641_v40 = vadd.f32 %v2640_v55, %v2639_v24  ;;  %2899 = vst.msk [vmem:[%s6060_s4 + $0x18] sm:$0xf] %vm2892_vm3, %v3716_v13  ;;  %v3722_v0 = vpack.c.bf16 %v5111_v56, %v5111_v56 }
 0x279   : > { %2900 = vst.msk [vmem:[%s6060_s4 + $0x1c] sm:$0xf] %vm2892_vm3, %v3717_v35  ;;  %v3724_v55 = vpack.c.bf16 %v5109_v59, %v5109_v59  ;;  %2904 = vst.msk [vmem:[%s6060_s4 + $0x2c] sm:$0xf] %vm2892_vm3, %v3721_v12  ;;  %v3732_v24 = vpack.c.bf16 %v5135_v30, %v5135_v30  ;;  %v3733_v35 = vpack.c.bf16 %v5138_v38, %v5138_v38 }
 0x27a   : > { %v2524_v46 = vadd.f32 %v5265_v32, %v2522_v58  ;;  %2901 = vst.msk [vmem:[%s6060_s4 + $0x20] sm:$0xf] %vm2892_vm3, %v3718_v54  ;;  %v3723_v32 = vpack.c.bf16 %v5116_v11, %v5116_v11  ;;  %v2643_v25 = vadd.f32 %v2642_v14, %v2641_v40  ;;  %2905 = vst.msk [vmem:[%s6060_s4 + $0x30] sm:$0xf] %vm2892_vm3, %v3722_v0 }
 0x27b   : > { %2907 = vst.msk [vmem:[%s6060_s4 + $0x38] sm:$0xf] %vm2892_vm3, %v3724_v55  ;;  %2908 = vst.msk [vmem:[%s6060_s4 + $0x3c] sm:$0xf] %vm2892_vm3, %v3725_v15  ;;  %v3729_v14 = vpack.c.bf16 %v5124_v61, %v5124_v61  ;;  %v3731_v58 = vpack.c.bf16 %v5132_v28, %v5132_v28  ;;  %v3734_v54 = vpack.c.bf16 %v5141_v48, %v5141_v48  ;;  %v6087_v15 = vld [vmem:[#allocation4_spill] sm:$0xff] }
 0x27c   : > { %v2526_v37 = vadd.f32 %v5272_v45, %v2524_v46  ;;  %2906 = vst.msk [vmem:[%s6060_s4 + $0x34] sm:$0xf] %vm2892_vm3, %v3723_v32  ;;  %2909 = vst.msk [vmem:[%s6060_s4 + $0x40] sm:$0xf] %vm2892_vm3, %v3726_v62  ;;  %v3730_v45 = vpack.c.bf16 %v5129_v20, %v5129_v20  ;;  %v2645_v13 = vadd.f32 %v2644_v18, %v2643_v25  ;;  %v6086_v32 = vld [vmem:[#allocation14_spill] sm:$0xff] }
 0x27d   : > { %2910 = vst.msk [vmem:[%s6060_s4 + $0x44] sm:$0xf] %vm2892_vm3, %v3727_v57  ;;  %2912 = vst.msk [vmem:[%s6060_s4 + $0x4c] sm:$0xf] %vm2892_vm3, %v3729_v14  ;;  %v3736_v18 = vpack.c.bf16 %v5150_v10, %v5150_v10  ;;  %v3738_v4 = vpack.c.bf16 %v5162_v42, %v5162_v42  ;;  %v3739_v12 = vpack.c.bf16 %v5171_v8, %v5171_v8 }
 0x27e   : > { %v2528_v22 = vadd.f32 %v5276_v5, %v2526_v37  ;;  %2913 = vst.msk [vmem:[%s6060_s4 + $0x50] sm:$0xf] %vm2892_vm3, %v3730_v45  ;;  %2914 = vst.msk [vmem:[%s6060_s4 + $0x54] sm:$0xf] %vm2892_vm3, %v3731_v58  ;;  %v3735_v5 = vpack.c.bf16 %v5144_v34, %v5144_v34  ;;  %v2647_v40 = vadd.f32 %v5331_v6, %v2645_v13  ;;  %v6088_v37 = vld [vmem:[#allocation15_spill] sm:$0xff] }
 0x27f   : > { %2915 = vst.msk [vmem:[%s6060_s4 + $0x58] sm:$0xf] %vm2892_vm3, %v3732_v24  ;;  %2916 = vst.msk [vmem:[%s6060_s4 + $0x5c] sm:$0xf] %vm2892_vm3, %v3733_v35  ;;  %v3740_v0 = vpack.c.bf16 %v5180_v16, %v5180_v16  ;;  %v3741_v6 = vpack.c.bf16 %v5189_v23, %v5189_v23  ;;  %v3743_v55 = vpack.c.bf16 %v6086_v32, %v6086_v32  ;;  %v6090_v45 = vld [vmem:[#allocation7_spill] sm:$0xff]  ;;  %v6093_v35 = vld [vmem:[#allocation8_spill] sm:$0xff] }
 0x280   : > { %v2530_v46 = vadd.f32 %v5280_v53, %v2528_v22  ;;  %2917 = vst.msk [vmem:[%s6060_s4 + $0x60] sm:$0xf] %vm2892_vm3, %v3734_v54  ;;  %2918 = vst.msk [vmem:[%s6060_s4 + $0x64] sm:$0xf] %vm2892_vm3, %v3735_v5  ;;  %v3742_v53 = vpack.c.bf16 %v5195_v1, %v5195_v1  ;;  %v3744_v62 = vpack.c.bf16 %v6087_v15, %v6087_v15  ;;  %v6092_v22 = vld [vmem:[#allocation6_spill] sm:$0xff]  ;;  %v6094_v5 = vld [vmem:[#allocation11_spill] sm:$0xff] }
 0x281   : > { %2919 = vst.msk [vmem:[%s6060_s4 + $0x68] sm:$0xf] %vm2892_vm3, %v3736_v18  ;;  %2920 = vst.msk [vmem:[%s6060_s4 + $0x6c] sm:$0xf] %vm2892_vm3, %v3737_v31  ;;  %v2649_v57 = vadd.f32 %v5334_v60, %v2647_v40  ;;  %v3745_v14 = vpack.c.bf16 %v6089_v9, %v6089_v9  ;;  %v3746_v58 = vpack.c.bf16 %v6090_v45, %v6090_v45  ;;  %v6091_v60 = vld [vmem:[#allocation9_spill] sm:$0xff]  ;;  %v6095_v31 = vld [vmem:[#allocation16_spill] sm:$0xff] }
 0x282   : > { %2921 = vst.msk [vmem:[%s6060_s4 + $0x70] sm:$0xf] %vm2892_vm3, %v3738_v4  ;;  %v2532_v25 = vadd.f32 %v6088_v37, %v2530_v46  ;;  %2922 = vst.msk [vmem:[%s6060_s4 + $0x74] sm:$0xf] %vm2892_vm3, %v3739_v12  ;;  %v3747_v24 = vpack.c.bf16 %v6091_v60, %v6091_v60  ;;  %v3748_v13 = vpack.c.bf16 %v6092_v22, %v6092_v22  ;;  %v6096_v40 = vld [vmem:[#allocation13_spill] sm:$0xff] }
 0x283   : > { %2923 = vst.msk [vmem:[%s6060_s4 + $0x78] sm:$0xf] %vm2892_vm3, %v3740_v0  ;;  %2924 = vst.msk [vmem:[%s6060_s4 + $0x7c] sm:$0xf] %vm2892_vm3, %v3741_v6  ;;  %v3749_v54 = vpack.c.bf16 %v6093_v35, %v6093_v35  ;;  %v3750_v18 = vpack.c.bf16 %v6094_v5, %v6094_v5  ;;  %v2651_v46 = vadd.f32 %v5337_v50, %v2649_v57  ;;  %v6097_v0 = vld [vmem:[#allocation10_spill] sm:$0xff]  ;;  %v6099_v37 = vld [vmem:[#allocation17_spill] sm:$0xff] }
 0x284   : > { %2925 = vst.msk [vmem:[%s6060_s4 + $0x80] sm:$0xf] %vm2892_vm3, %v3742_v53  ;;  %2926 = vst.msk [vmem:[%s6060_s4 + $0x84] sm:$0xf] %vm2892_vm3, %v3743_v55  ;;  %v2534_v4 = vadd.f32 %v6095_v31, %v2532_v25  ;;  %v3751_v12 = vpack.c.bf16 %v6096_v40, %v6096_v40  ;;  %v3752_v6 = vpack.c.bf16 %v6097_v0, %v6097_v0  ;;  %v2537_v53 = vsel %vm2479_vm2, %v5171_v8, 0.0 }
 0x285   : > { %2927 = vst.msk [vmem:[%s6060_s4 + $0x88] sm:$0xf] %vm2892_vm3, %v3744_v62  ;;  %2928 = vst.msk [vmem:[%s6060_s4 + $0x8c] sm:$0xf] %vm2892_vm3, %v3745_v14  ;;  %v2596_v50 = vmul.f32 %v5124_v61, %v5124_v61  ;;  %v2654_v55 = vsel %vm2479_vm2, %v5319_v51, 0.0  ;;  %v6098_v51 = vld [vmem:[#allocation12_spill] sm:$0xff]  ;;  %v2653_v57 = vadd.f32 %v5340_v7, %v2651_v46 }
 0x286   : > { %2929 = vst.msk [vmem:[%s6060_s4 + $0x90] sm:$0xf] %vm2892_vm3, %v3746_v58  ;;  %2930 = vst.msk [vmem:[%s6060_s4 + $0x94] sm:$0xf] %vm2892_vm3, %v3747_v24  ;;  %v3753_v62 = vpack.c.bf16 %v6098_v51, %v6098_v51  ;;  %v2536_v25 = vadd.f32 %v6099_v37, %v2534_v4  ;;  %v2539_v14 = vsel %vm2479_vm2, %v5180_v16, 0.0  ;;  %v2597_v58 = vmul.f32 %v5129_v20, %v5129_v20 }
 0x287   : > { %2931 = vst.msk [vmem:[%s6060_s4 + $0x98] sm:$0xf] %vm2892_vm3, %v3748_v13  ;;  %2932 = vst.msk [vmem:[%s6060_s4 + $0x9c] sm:$0xf] %vm2892_vm3, %v3749_v54  ;;  %v2656_v24 = vsel %vm2479_vm2, %v5323_v47, 0.0  ;;  %v2655_v13 = vadd.f32 %v2654_v55, %v2653_v57  ;;  %v2541_v54 = vsel %vm2479_vm2, %v5189_v23, 0.0  ;;  %v2600_v37 = vmul.f32 %v5138_v38, %v5138_v38 }
 0x288   : > { %2933 = vst.msk [vmem:[%s6060_s4 + $0xa0] sm:$0xf] %vm2892_vm3, %v3750_v18  ;;  %2934 = vst.msk [vmem:[%s6060_s4 + $0xa4] sm:$0xf] %vm2892_vm3, %v3751_v12  ;;  %v2538_v7 = vadd.f32 %v2537_v53, %v2536_v25  ;;  %v2598_v18 = vmul.f32 %v5132_v28, %v5132_v28  ;;  %v2658_v31 = vsel %vm2479_vm2, %v2596_v50, 0.0  ;;  %v2543_v47 = vsel %vm2479_vm2, %v5195_v1, 0.0 }
 0x289   : > { %2935 = vst.msk [vmem:[%s6060_s4 + $0xa8] sm:$0xf] %vm2892_vm3, %v3752_v6  ;;  %2936 = vst.msk [vmem:[%s6060_s4 + $0xac] sm:$0xf] %vm2892_vm3, %v3753_v62  ;;  %v2657_v46 = vadd.f32 %v2656_v24, %v2655_v13  ;;  %v2599_v12 = vmul.f32 %v5135_v30, %v5135_v30  ;;  %v2660_v6 = vsel %vm2479_vm2, %v2597_v58, 0.0  ;;  %v2545_v62 = vsel %vm2479_vm2, %v6086_v32, 0.0 }
 0x28a   : > { %v2540_v4 = vadd.f32 %v2539_v14, %v2538_v7  ;;  %v2662_v50 = vsel %vm2479_vm2, %v2598_v18, 0.0  ;;  %v2547_v14 = vsel %vm2479_vm2, %v6087_v15, 0.0  ;;  %v2601_v24 = vmul.f32 %v5141_v48, %v5141_v48 }
 0x28b   : > { %v2659_v55 = vadd.f32 %v2658_v31, %v2657_v46  ;;  %v2664_v58 = vsel %vm2479_vm2, %v2599_v12, 0.0  ;;  %v2602_v31 = vmul.f32 %v5144_v34, %v5144_v34  ;;  %v2666_v18 = vsel %vm2479_vm2, %v2600_v37, 0.0 }
 0x28c   : > { %v2542_v53 = vadd.f32 %v2541_v54, %v2540_v4  ;;  %v2549_v54 = vsel %vm2479_vm2, %v6089_v9, 0.0  ;;  %v2668_v12 = vsel %vm2479_vm2, %v2601_v24, 0.0 }
 0x28d   : > { %v2661_v57 = vadd.f32 %v2660_v6, %v2659_v55  ;;  %v2603_v6 = vmul.f32 %v5150_v10, %v5150_v10  ;;  %v2670_v37 = vsel %vm2479_vm2, %v2602_v31, 0.0 }
 0x28e   : > { %v2544_v25 = vadd.f32 %v2543_v47, %v2542_v53  ;;  %v2551_v47 = vsel %vm2479_vm2, %v6090_v45, 0.0 }
 0x28f   : > { %v2663_v13 = vadd.f32 %v2662_v50, %v2661_v57  ;;  %v2604_v50 = vmul.f32 %v5156_v33, %v5156_v33  ;;  %v2672_v24 = vsel %vm2479_vm2, %v2603_v6, 0.0 }
 0x290   : > { %v2546_v7 = vadd.f32 %v2545_v62, %v2544_v25  ;;  %v2553_v62 = vsel %vm2479_vm2, %v6091_v60, 0.0 }
 0x291   : > { %v2665_v46 = vadd.f32 %v2664_v58, %v2663_v13  ;;  %v2605_v58 = vmul.f32 %v5162_v42, %v5162_v42  ;;  %v2674_v31 = vsel %vm2479_vm2, %v2604_v50, 0.0 }
 0x292   : > { %v2548_v4 = vadd.f32 %v2547_v14, %v2546_v7  ;;  %v2555_v14 = vsel %vm2479_vm2, %v6092_v22, 0.0 }
 0x293   : > { %v2667_v55 = vadd.f32 %v2666_v18, %v2665_v46  ;;  %v2606_v18 = vmul.f32 %v5171_v8, %v5171_v8  ;;  %v2676_v6 = vsel %vm2479_vm2, %v2605_v58, 0.0 }
 0x294   : > { %v2550_v53 = vadd.f32 %v2549_v54, %v2548_v4  ;;  %v2557_v54 = vsel %vm2479_vm2, %v6093_v35, 0.0 }
 0x295   : > { %v2669_v57 = vadd.f32 %v2668_v12, %v2667_v55  ;;  %v2607_v12 = vmul.f32 %v5180_v16, %v5180_v16  ;;  %v2678_v50 = vsel %vm2479_vm2, %v2606_v18, 0.0 }
 0x296   : > { %v2552_v25 = vadd.f32 %v2551_v47, %v2550_v53  ;;  %v2559_v47 = vsel %vm2479_vm2, %v6094_v5, 0.0 }
 0x297   : > { %v2671_v13 = vadd.f32 %v2670_v37, %v2669_v57  ;;  %v2608_v37 = vmul.f32 %v5189_v23, %v5189_v23  ;;  %v2680_v58 = vsel %vm2479_vm2, %v2607_v12, 0.0  ;;  %v2612_v12 = vmul.f32 %v6089_v9, %v6089_v9 }
 0x298   : > { %v2554_v7 = vadd.f32 %v2553_v62, %v2552_v25  ;;  %v2561_v62 = vsel %vm2479_vm2, %v6096_v40, 0.0  ;;  %v2615_v9 = vmul.f32 %v6092_v22, %v6092_v22  ;;  %v2618_v22 = vmul.f32 %v6096_v40, %v6096_v40 }
 0x299   : > { %v2673_v46 = vadd.f32 %v2672_v24, %v2671_v13  ;;  %v2609_v24 = vmul.f32 %v5195_v1, %v5195_v1  ;;  %v2682_v18 = vsel %vm2479_vm2, %v2608_v37, 0.0 }
 0x29a   : > { %v2556_v4 = vadd.f32 %v2555_v14, %v2554_v7  ;;  %v2563_v14 = vsel %vm2479_vm2, %v6097_v0, 0.0 }
 0x29b   : > { %v2675_v55 = vadd.f32 %v2674_v31, %v2673_v46  ;;  %v2610_v31 = vmul.f32 %v6086_v32, %v6086_v32  ;;  %v2613_v32 = vmul.f32 %v6090_v45, %v6090_v45  ;;  %v2616_v45 = vmul.f32 %v6093_v35, %v6093_v35 }
 0x29c   : > { %v2558_v53 = vadd.f32 %v2557_v54, %v2556_v4  ;;  %v2565_v54 = vsel %vm2479_vm2, %v6098_v51, 0.0 }
 0x29d   : > { %v2677_v57 = vadd.f32 %v2676_v6, %v2675_v55  ;;  %v2684_v6 = vsel %vm2479_vm2, %v2609_v24, 0.0  ;;  %v2690_v24 = vsel %vm2479_vm2, %v2612_v12, 0.0  ;;  %v2698_v12 = vsel %vm2479_vm2, %v2616_v45, 0.0 }
 0x29e   : > { %v2560_v25 = vadd.f32 %v2559_v47, %v2558_v53  ;;  %v2611_v47 = vmul.f32 %v6087_v15, %v6087_v15  ;;  %v2614_v15 = vmul.f32 %v6091_v60, %v6091_v60  ;;  %v2617_v60 = vmul.f32 %v6094_v5, %v6094_v5 }
 0x29f   : > { %v2679_v13 = vadd.f32 %v2678_v50, %v2677_v57 }
 0x2a0   : > { %v2562_v7 = vadd.f32 %v2561_v62, %v2560_v25  ;;  %v2686_v62 = vsel %vm2479_vm2, %v2610_v31, 0.0  ;;  %v2688_v37 = vsel %vm2479_vm2, %v2611_v47, 0.0  ;;  %v2478_v47 = vld [vmem:[#allocation2] sm:$0x1] }
 0x2a1   : > { %v2681_v46 = vadd.f32 %v2680_v58, %v2679_v13  ;;  %v2692_v13 = vsel %vm2479_vm2, %v2613_v32, 0.0  ;;  %v2620_v32 = vmul.f32 %v6098_v51, %v6098_v51 }
 0x2a2   : > { %v2564_v4 = vadd.f32 %v2563_v14, %v2562_v7 }
 0x2a3   : > { %v2683_v55 = vadd.f32 %v2682_v18, %v2681_v46  ;;  %v2694_v18 = vsel %vm2479_vm2, %v2614_v15, 0.0  ;;  %v2706_v15 = vsel %vm2479_vm2, %v2620_v32, 0.0 }
 0x2a4   : > { %v2566_v53 = vadd.f32 %v2565_v54, %v2564_v4 }
 0x2a5   : > { %v2685_v25 = vadd.f32 %v2684_v6, %v2683_v55  ;;  %v2696_v6 = vsel %vm2479_vm2, %v2615_v9, 0.0 }
 0x2a6   : > { %v2567_v50 = vrot.slane %v2566_v53, 4 }
 0x2a7   : > { %v2687_v14 = vadd.f32 %v2686_v62, %v2685_v25  ;;  %v2700_v25 = vsel %vm2479_vm2, %v2617_v60, 0.0 }
 0x2a8   : > { %v2568_v57 = vadd.f32 %v2567_v50, %v2566_v53  ;;  %v2619_v50 = vmul.f32 %v6097_v0, %v6097_v0 }
 0x2a9   : > { %v2689_v7 = vadd.f32 %v2688_v37, %v2687_v14  ;;  %v2702_v37 = vsel %vm2479_vm2, %v2618_v22, 0.0 }
 0x2aa   : > { %v2569_v58 = vrot.slane %v2568_v57, 2  ;;  %v2704_v40 = vsel %vm2479_vm2, %v2619_v50, 0.0 }
 0x2ab   : > { %v2691_v31 = vadd.f32 %v2690_v24, %v2689_v7 }
 0x2ac   : > { %v2570_v54 = vadd.f32 %v2569_v58, %v2568_v57 }
 0x2ad   : > { %v2693_v46 = vadd.f32 %v2692_v13, %v2691_v31  ;;  %v2576_v31 = vld [vmem:[#allocation3] sm:$0x1] }
 0x2ae   : > { %v2571_v4 = vrot.slane %v2570_v54, 1 }
 0x2af   : > { %v2695_v55 = vadd.f32 %v2694_v18, %v2693_v46 }
 0x2b0   : > { %v2572_v53 = vadd.f32 %v2571_v4, %v2570_v54 }
 0x2b1   : > { %v2697_v35 = vadd.f32 %v2696_v6, %v2695_v55 }
 0x2b2   : > { %v2573_v62 = vadd.f32 %v2572_v53, %v2478_v47 }
 0x2b3   : > { %v2699_v5 = vadd.f32 %v2698_v12, %v2697_v35 }
 0x2b4   : > { %2575 = vst.msk [vmem:[#allocation2] sm:$0x1] %vm2574_vm4, %v2573_v62 }
 0x2b5   : > { %v2701_v57 = vadd.f32 %v2700_v25, %v2699_v5 }
 0x2b7   : > { %v2703_v14 = vadd.f32 %v2702_v37, %v2701_v57 }
 0x2b9   : > { %v2705_v24 = vadd.f32 %v2704_v40, %v2703_v14 }
 0x2bb   : > { %v2707_v58 = vadd.f32 %v2706_v15, %v2705_v24 }
 0x2bd   : > { %v2708_v7 = vrot.slane %v2707_v58, 4 }
 0x2bf   : > { %v2709_v0 = vadd.f32 %v2708_v7, %v2707_v58 }
 0x2c1   : > { %v2710_v9 = vrot.slane %v2709_v0, 2 }
 0x2c3   : > { %v2711_v13 = vadd.f32 %v2710_v9, %v2709_v0 }
 0x2c5   : > { %v2712_v54 = vrot.slane %v2711_v13, 1 }
 0x2c7   : > { %v2713_v45 = vadd.f32 %v2712_v54, %v2711_v13 }
 0x2c9   : > { %v2714_v18 = vadd.f32 %v2713_v45, %v2576_v31 }
 0x2cb   : > { %2715 = vst.msk [vmem:[#allocation3] sm:$0x1] %vm2574_vm4, %v2714_v18 }
 0x2cc PF: > { %p3660_p6 = scmp.ne.s32.totalorder %s4214_s15, 1 }
 0x2ce   : > { %2940 = sbr.rel (%p3660_p6) target bundleno = 803 (0x323), region = 48 }
 0x2d3   : > { %v2941_v51 = vld [vmem:[#allocation2] sm:$0x1]  ;;  %v2943_v4 = vld [vmem:[#allocation3] sm:$0x1]  ;;  %v2955_v55 = vlaneseq  ;;  %vm3274_vm5 = vcmask 519168  }
 0x2d4   : > { %v2942_v46 = vmul.f32 0.00295858, %v2941_v51  ;;  %v2944_v47 = vmul.f32 0.00295858, %v2943_v4  ;;  %v2947_v12 = vld [vmem:[%s6058_s2] sm:$0x1] }
 0x2d5   : > { %v2956_v22 = vshrl.u32 %v2955_v55, 7  ;;  %v2951_v25 = vld [vmem:[%s6059_s3] sm:$0x1] }
 0x2d6   : > { %v2945_v60 = vmul.f32 %v2942_v46, %v2942_v46 }
 0x2d7   : > { %v2957_v62 = vsub.s32 0, %v2956_v22 }
 0x2d8   : > { %v2946_v6 = vsub.f32 %v2944_v47, %v2945_v60 }
 0x2da   : > { %v2948_v53 = vadd.f32 1e-05, %v2946_v6 }
 0x2dc   : > { %4198 = vrsqrt.f32 %v2948_v53 }
 0x2e9   : > { %v4199_v35 = vpop.eup %4198 }
 0x2ea   : > { %v2950_v50 = vmul.f32 %v4199_v35, %v2947_v12 }
 0x2ec   : > { %v2952_v5 = vmul.f32 %v2950_v50, %v2942_v46  ;;  %v5735_v32 = vrot.slane %v2950_v50, %v2957_v62 }
 0x2ee   : > { %v2953_v37 = vsub.f32 %v2951_v25, %v2952_v5  ;;  %v2960_v57 = vmul.f32 %v5735_v32, %v5080_v21  ;;  %v2961_v40 = vmul.f32 %v5735_v32, %v5086_v41  ;;  %v2962_v14 = vmul.f32 %v5735_v32, %v5077_v29 }
 0x2ef   : > { %v2963_v15 = vmul.f32 %v5735_v32, %v5083_v43  ;;  %v2964_v24 = vmul.f32 %v5735_v32, %v5091_v49  ;;  %v2965_v58 = vmul.f32 %v5735_v32, %v5096_v2  ;;  %v2966_v7 = vmul.f32 %v5735_v32, %v5089_v17 }
 0x2f0   : > { %v5751_v0 = vrot.slane %v2953_v37, %v2957_v62  ;;  %v2967_v21 = vmul.f32 %v5735_v32, %v5094_v26  ;;  %v2968_v29 = vmul.f32 %v5735_v32, %v5101_v52  ;;  %v2969_v43 = vmul.f32 %v5735_v32, %v5106_v3 }
 0x2f1   : > { %v2970_v41 = vmul.f32 %v5735_v32, %v5099_v27  ;;  %v2971_v49 = vmul.f32 %v5735_v32, %v5104_v39  ;;  %v2972_v17 = vmul.f32 %v5735_v32, %v5111_v56  ;;  %v2973_v2 = vmul.f32 %v5735_v32, %v5116_v11 }
 0x2f2   : > { %v3010_v26 = vadd.f32 %v5751_v0, %v2960_v57  ;;  %v3011_v9 = vadd.f32 %v5751_v0, %v2961_v40  ;;  %v3012_v52 = vadd.f32 %v5751_v0, %v2962_v14  ;;  %v3013_v3 = vadd.f32 %v5751_v0, %v2963_v15 }
 0x2f3   : > { %v3014_v13 = vadd.f32 %v5751_v0, %v2964_v24  ;;  %v3015_v27 = vadd.f32 %v5751_v0, %v2965_v58  ;;  %v3016_v39 = vadd.f32 %v5751_v0, %v2966_v7  ;;  %v3017_v54 = vadd.f32 %v5751_v0, %v2967_v21 }
 0x2f4   : > { %v3054_v56 = vmax.f32 %v3010_v26, 0.0  ;;  %v3055_v31 = vmax.f32 %v3011_v9, 0.0  ;;  %v3056_v45 = vmax.f32 %v3012_v52, 0.0  ;;  %v3057_v11 = vmax.f32 %v3013_v3, 0.0 }
 0x2f5   : > { %v3058_v18 = vmax.f32 %v3014_v13, 0.0  ;;  %v3059_v51 = vmax.f32 %v3015_v27, 0.0  ;;  %v3060_v4 = vmax.f32 %v3016_v39, 0.0  ;;  %v3061_v46 = vmax.f32 %v3017_v54, 0.0 }
 0x2f6   : > { %v3754_v47 = vpack.c.bf16 %v3054_v56, %v3054_v56  ;;  %v3755_v60 = vpack.c.bf16 %v3055_v31, %v3055_v31  ;;  %v3756_v6 = vpack.c.bf16 %v3056_v45, %v3056_v45  ;;  %v3757_v53 = vpack.c.bf16 %v3057_v11, %v3057_v11 }
 0x2f7   : > { %v3758_v55 = vpack.c.bf16 %v3058_v18, %v3058_v18  ;;  %v3759_v22 = vpack.c.bf16 %v3059_v51, %v3059_v51  ;;  %v3760_v12 = vpack.c.bf16 %v3060_v4, %v3060_v4  ;;  %v3761_v62 = vpack.c.bf16 %v3061_v46, %v3061_v46 }
 0x2f8   : > { %3275 = vst.msk [vmem:[%s6060_s4] sm:$0xf] %vm3274_vm5, %v3754_v47  ;;  %3276 = vst.msk [vmem:[%s6060_s4 + $0x4] sm:$0xf] %vm3274_vm5, %v3755_v60  ;;  %v3018_v35 = vadd.f32 %v5751_v0, %v2968_v29  ;;  %v3019_v50 = vadd.f32 %v5751_v0, %v2969_v43  ;;  %v3020_v25 = vadd.f32 %v5751_v0, %v2970_v41 }
 0x2f9   : > { %3277 = vst.msk [vmem:[%s6060_s4 + $0x8] sm:$0xf] %vm3274_vm5, %v3756_v6  ;;  %3278 = vst.msk [vmem:[%s6060_s4 + $0xc] sm:$0xf] %vm3274_vm5, %v3757_v53  ;;  %v3021_v5 = vadd.f32 %v5751_v0, %v2971_v49  ;;  %v3022_v37 = vadd.f32 %v5751_v0, %v2972_v17  ;;  %v3023_v57 = vadd.f32 %v5751_v0, %v2973_v2 }
 0x2fa   : > { %3279 = vst.msk [vmem:[%s6060_s4 + $0x10] sm:$0xf] %vm3274_vm5, %v3758_v55  ;;  %3280 = vst.msk [vmem:[%s6060_s4 + $0x14] sm:$0xf] %vm3274_vm5, %v3759_v22  ;;  %v2974_v40 = vmul.f32 %v5735_v32, %v5109_v59  ;;  %v2975_v14 = vmul.f32 %v5735_v32, %v5114_v63  ;;  %v3062_v15 = vmax.f32 %v3018_v35, 0.0  ;;  %v3063_v24 = vmax.f32 %v3019_v50, 0.0 }
 0x2fb   : > { %3281 = vst.msk [vmem:[%s6060_s4 + $0x18] sm:$0xf] %vm3274_vm5, %v3760_v12  ;;  %3282 = vst.msk [vmem:[%s6060_s4 + $0x1c] sm:$0xf] %vm3274_vm5, %v3761_v62  ;;  %v3064_v58 = vmax.f32 %v3020_v25, 0.0  ;;  %v3065_v7 = vmax.f32 %v3021_v5, 0.0  ;;  %v2976_v63 = vmul.f32 %v5735_v32, %v5121_v19  ;;  %v2977_v13 = vmul.f32 %v5735_v32, %v5126_v44 }
 0x2fc   : > { %v3066_v21 = vmax.f32 %v3022_v37, 0.0  ;;  %v3067_v29 = vmax.f32 %v3023_v57, 0.0  ;;  %v3024_v43 = vadd.f32 %v5751_v0, %v2974_v40  ;;  %v3025_v41 = vadd.f32 %v5751_v0, %v2975_v14 }
 0x2fd   : > { %v3762_v49 = vpack.c.bf16 %v3062_v15, %v3062_v15  ;;  %v3763_v17 = vpack.c.bf16 %v3063_v24, %v3063_v24  ;;  %v3764_v26 = vpack.c.bf16 %v3064_v58, %v3064_v58  ;;  %v3765_v2 = vpack.c.bf16 %v3065_v7, %v3065_v7 }
 0x2fe   : > { %v3766_v9 = vpack.c.bf16 %v3066_v21, %v3066_v21  ;;  %v3767_v52 = vpack.c.bf16 %v3067_v29, %v3067_v29  ;;  %v3068_v59 = vmax.f32 %v3024_v43, 0.0  ;;  %v3069_v3 = vmax.f32 %v3025_v41, 0.0 }
 0x2ff   : > { %3283 = vst.msk [vmem:[%s6060_s4 + $0x20] sm:$0xf] %vm3274_vm5, %v3762_v49  ;;  %3284 = vst.msk [vmem:[%s6060_s4 + $0x24] sm:$0xf] %vm3274_vm5, %v3763_v17  ;;  %v2978_v27 = vmul.f32 %v5735_v32, %v5119_v36  ;;  %v2979_v39 = vmul.f32 %v5735_v32, %v5124_v61  ;;  %v2980_v44 = vmul.f32 %v5735_v32, %v5129_v20 }
 0x300   : > { %3285 = vst.msk [vmem:[%s6060_s4 + $0x28] sm:$0xf] %vm3274_vm5, %v3764_v26  ;;  %3286 = vst.msk [vmem:[%s6060_s4 + $0x2c] sm:$0xf] %vm3274_vm5, %v3765_v2  ;;  %v3768_v19 = vpack.c.bf16 %v3068_v59, %v3068_v59  ;;  %v3769_v54 = vpack.c.bf16 %v3069_v3, %v3069_v3  ;;  %v2981_v36 = vmul.f32 %v5735_v32, %v5132_v28 }
 0x301   : > { %3287 = vst.msk [vmem:[%s6060_s4 + $0x30] sm:$0xf] %vm3274_vm5, %v3766_v9  ;;  %3288 = vst.msk [vmem:[%s6060_s4 + $0x34] sm:$0xf] %vm3274_vm5, %v3767_v52  ;;  %v3026_v61 = vadd.f32 %v5751_v0, %v2976_v63  ;;  %v3027_v56 = vadd.f32 %v5751_v0, %v2977_v13  ;;  %v3028_v31 = vadd.f32 %v5751_v0, %v2978_v27 }
 0x302   : > { %v3029_v45 = vadd.f32 %v5751_v0, %v2979_v39  ;;  %3289 = vst.msk [vmem:[%s6060_s4 + $0x38] sm:$0xf] %vm3274_vm5, %v3768_v19  ;;  %3290 = vst.msk [vmem:[%s6060_s4 + $0x3c] sm:$0xf] %vm3274_vm5, %v3769_v54  ;;  %v3030_v20 = vadd.f32 %v5751_v0, %v2980_v44  ;;  %v3031_v28 = vadd.f32 %v5751_v0, %v2981_v36  ;;  %v6100_v19 = vld [vmem:[#allocation14_spill] sm:$0xff]  ;;  %v6101_v44 = vld [vmem:[#allocation4_spill] sm:$0xff] }
 0x303   : > { %v2982_v11 = vmul.f32 %v5735_v32, %v5135_v30  ;;  %v2983_v18 = vmul.f32 %v5735_v32, %v5138_v38  ;;  %v3070_v51 = vmax.f32 %v3026_v61, 0.0  ;;  %v3071_v4 = vmax.f32 %v3027_v56, 0.0  ;;  %v6102_v61 = vld [vmem:[#allocation5_spill] sm:$0xff] }
 0x304   : > { %v3072_v46 = vmax.f32 %v3028_v31, 0.0  ;;  %v3073_v47 = vmax.f32 %v3029_v45, 0.0  ;;  %v3074_v60 = vmax.f32 %v3030_v20, 0.0  ;;  %v3075_v6 = vmax.f32 %v3031_v28, 0.0  ;;  %v6103_v45 = vld [vmem:[#allocation7_spill] sm:$0xff]  ;;  %v6104_v28 = vld [vmem:[#allocation9_spill] sm:$0xff] }
 0x305   : > { %v3032_v53 = vadd.f32 %v5751_v0, %v2982_v11  ;;  %v3033_v55 = vadd.f32 %v5751_v0, %v2983_v18  ;;  %v3770_v22 = vpack.c.bf16 %v3070_v51, %v3070_v51  ;;  %v3771_v12 = vpack.c.bf16 %v3071_v4, %v3071_v4 }
 0x306   : > { %v3772_v62 = vpack.c.bf16 %v3072_v46, %v3072_v46  ;;  %v3773_v35 = vpack.c.bf16 %v3073_v47, %v3073_v47  ;;  %v3774_v50 = vpack.c.bf16 %v3074_v60, %v3074_v60  ;;  %v3775_v25 = vpack.c.bf16 %v3075_v6, %v3075_v6  ;;  %v6105_v6 = vld [vmem:[#allocation6_spill] sm:$0xff] }
 0x307   : > { %v3076_v30 = vmax.f32 %v3032_v53, 0.0  ;;  %v3077_v5 = vmax.f32 %v3033_v55, 0.0  ;;  %3291 = vst.msk [vmem:[%s6060_s4 + $0x40] sm:$0xf] %vm3274_vm5, %v3770_v22  ;;  %3292 = vst.msk [vmem:[%s6060_s4 + $0x44] sm:$0xf] %vm3274_vm5, %v3771_v12  ;;  %v2984_v38 = vmul.f32 %v5735_v32, %v5141_v48  ;;  %v2985_v37 = vmul.f32 %v5735_v32, %v5144_v34 }
 0x308   : > { %3293 = vst.msk [vmem:[%s6060_s4 + $0x48] sm:$0xf] %vm3274_vm5, %v3772_v62  ;;  %3294 = vst.msk [vmem:[%s6060_s4 + $0x4c] sm:$0xf] %vm3274_vm5, %v3773_v35  ;;  %v2986_v57 = vmul.f32 %v5735_v32, %v5150_v10  ;;  %v2987_v40 = vmul.f32 %v5735_v32, %v5156_v33  ;;  %v2988_v34 = vmul.f32 %v5735_v32, %v5162_v42  ;;  %v6106_v55 = vld [vmem:[#allocation8_spill] sm:$0xff] }
 0x309   : > { %3295 = vst.msk [vmem:[%s6060_s4 + $0x50] sm:$0xf] %vm3274_vm5, %v3774_v50  ;;  %3296 = vst.msk [vmem:[%s6060_s4 + $0x54] sm:$0xf] %vm3274_vm5, %v3775_v25  ;;  %v3776_v48 = vpack.c.bf16 %v3076_v30, %v3076_v30  ;;  %v3777_v14 = vpack.c.bf16 %v3077_v5, %v3077_v5  ;;  %v2989_v10 = vmul.f32 %v5735_v32, %v5171_v8 }
 0x30a   : > { %v3034_v33 = vadd.f32 %v5751_v0, %v2984_v38  ;;  %v3035_v15 = vadd.f32 %v5751_v0, %v2985_v37  ;;  %v3036_v24 = vadd.f32 %v5751_v0, %v2986_v57  ;;  %v3037_v58 = vadd.f32 %v5751_v0, %v2987_v40 }
 0x30b   : > { %3297 = vst.msk [vmem:[%s6060_s4 + $0x58] sm:$0xf] %vm3274_vm5, %v3776_v48  ;;  %3298 = vst.msk [vmem:[%s6060_s4 + $0x5c] sm:$0xf] %vm3274_vm5, %v3777_v14  ;;  %v3038_v42 = vadd.f32 %v5751_v0, %v2988_v34  ;;  %v3039_v8 = vadd.f32 %v5751_v0, %v2989_v10  ;;  %v2990_v7 = vmul.f32 %v5735_v32, %v5180_v16 }
 0x30c   : > { %v2991_v21 = vmul.f32 %v5735_v32, %v5189_v23  ;;  %v3078_v29 = vmax.f32 %v3034_v33, 0.0  ;;  %v3079_v43 = vmax.f32 %v3035_v15, 0.0  ;;  %v3080_v41 = vmax.f32 %v3036_v24, 0.0  ;;  %v6107_v15 = vld [vmem:[#allocation11_spill] sm:$0xff] }
 0x30d   : > { %v3081_v49 = vmax.f32 %v3037_v58, 0.0  ;;  %v3082_v17 = vmax.f32 %v3038_v42, 0.0  ;;  %v3083_v26 = vmax.f32 %v3039_v8, 0.0  ;;  %v3040_v2 = vadd.f32 %v5751_v0, %v2990_v7  ;;  %v6108_v58 = vld [vmem:[#allocation13_spill] sm:$0xff]  ;;  %v6109_v8 = vld [vmem:[#allocation10_spill] sm:$0xff] }
 0x30e   : > { %v3041_v9 = vadd.f32 %v5751_v0, %v2991_v21  ;;  %v3778_v52 = vpack.c.bf16 %v3078_v29, %v3078_v29  ;;  %v3779_v59 = vpack.c.bf16 %v3079_v43, %v3079_v43  ;;  %v3780_v3 = vpack.c.bf16 %v3080_v41, %v3080_v41  ;;  %v6110_v21 = vld [vmem:[#allocation12_spill] sm:$0xff] }
 0x30f   : > { %v3781_v63 = vpack.c.bf16 %v3081_v49, %v3081_v49  ;;  %v3782_v13 = vpack.c.bf16 %v3082_v17, %v3082_v17  ;;  %v3783_v27 = vpack.c.bf16 %v3083_v26, %v3083_v26  ;;  %v3084_v16 = vmax.f32 %v3040_v2, 0.0 }
 0x310   : > { %v3085_v39 = vmax.f32 %v3041_v9, 0.0  ;;  %3299 = vst.msk [vmem:[%s6060_s4 + $0x60] sm:$0xf] %vm3274_vm5, %v3778_v52  ;;  %3300 = vst.msk [vmem:[%s6060_s4 + $0x64] sm:$0xf] %vm3274_vm5, %v3779_v59  ;;  %v2992_v23 = vmul.f32 %v5735_v32, %v5195_v1  ;;  %v2993_v54 = vmul.f32 %v5735_v32, %v6100_v19  ;;  %v2994_v36 = vmul.f32 %v5735_v32, %v6101_v44 }
 0x311   : > { %3301 = vst.msk [vmem:[%s6060_s4 + $0x68] sm:$0xf] %vm3274_vm5, %v3780_v3  ;;  %3302 = vst.msk [vmem:[%s6060_s4 + $0x6c] sm:$0xf] %vm3274_vm5, %v3781_v63  ;;  %v2995_v56 = vmul.f32 %v5735_v32, %v6102_v61  ;;  %v3784_v1 = vpack.c.bf16 %v3084_v16, %v3084_v16  ;;  %v2996_v20 = vmul.f32 %v5735_v32, %v6103_v45 }
 0x312   : > { %3303 = vst.msk [vmem:[%s6060_s4 + $0x70] sm:$0xf] %vm3274_vm5, %v3782_v13  ;;  %3304 = vst.msk [vmem:[%s6060_s4 + $0x74] sm:$0xf] %vm3274_vm5, %v3783_v27  ;;  %v3785_v31 = vpack.c.bf16 %v3085_v39, %v3085_v39  ;;  %v2997_v11 = vmul.f32 %v5735_v32, %v6104_v28  ;;  %v3042_v18 = vadd.f32 %v5751_v0, %v2992_v23 }
 0x313   : > { %v3043_v51 = vadd.f32 %v5751_v0, %v2993_v54  ;;  %v3044_v4 = vadd.f32 %v5751_v0, %v2994_v36  ;;  %v3045_v46 = vadd.f32 %v5751_v0, %v2995_v56  ;;  %3305 = vst.msk [vmem:[%s6060_s4 + $0x78] sm:$0xf] %vm3274_vm5, %v3784_v1  ;;  %v3046_v47 = vadd.f32 %v5751_v0, %v2996_v20 }
 0x314   : > { %3306 = vst.msk [vmem:[%s6060_s4 + $0x7c] sm:$0xf] %vm3274_vm5, %v3785_v31  ;;  %v3047_v60 = vadd.f32 %v5751_v0, %v2997_v11  ;;  %v2998_v53 = vmul.f32 %v5735_v32, %v6105_v6  ;;  %v2999_v22 = vmul.f32 %v5735_v32, %v6106_v55  ;;  %v3086_v12 = vmax.f32 %v3042_v18, 0.0 }
 0x315   : > { %v3087_v62 = vmax.f32 %v3043_v51, 0.0  ;;  %v3088_v35 = vmax.f32 %v3044_v4, 0.0  ;;  %v3089_v50 = vmax.f32 %v3045_v46, 0.0  ;;  %v3090_v25 = vmax.f32 %v3046_v47, 0.0 }
 0x316   : > { %v3091_v30 = vmax.f32 %v3047_v60, 0.0  ;;  %v3048_v5 = vadd.f32 %v5751_v0, %v2998_v53  ;;  %v3049_v38 = vadd.f32 %v5751_v0, %v2999_v22  ;;  %v3786_v37 = vpack.c.bf16 %v3086_v12, %v3086_v12 }
 0x317   : > { %v3787_v57 = vpack.c.bf16 %v3087_v62, %v3087_v62  ;;  %v3788_v40 = vpack.c.bf16 %v3088_v35, %v3088_v35  ;;  %v3789_v48 = vpack.c.bf16 %v3089_v50, %v3089_v50  ;;  %v3790_v14 = vpack.c.bf16 %v3090_v25, %v3090_v25 }
 0x318   : > { %v3791_v34 = vpack.c.bf16 %v3091_v30, %v3091_v30  ;;  %v3092_v10 = vmax.f32 %v3048_v5, 0.0  ;;  %v3093_v33 = vmax.f32 %v3049_v38, 0.0  ;;  %3307 = vst.msk [vmem:[%s6060_s4 + $0x80] sm:$0xf] %vm3274_vm5, %v3786_v37  ;;  %v3000_v24 = vmul.f32 %v5735_v32, %v6107_v15 }
 0x319   : > { %3308 = vst.msk [vmem:[%s6060_s4 + $0x84] sm:$0xf] %vm3274_vm5, %v3787_v57  ;;  %3309 = vst.msk [vmem:[%s6060_s4 + $0x88] sm:$0xf] %vm3274_vm5, %v3788_v40  ;;  %v3001_v42 = vmul.f32 %v5735_v32, %v6108_v58  ;;  %v3002_v7 = vmul.f32 %v5735_v32, %v6109_v8  ;;  %v3003_v29 = vmul.f32 %v5735_v32, %v6110_v21 }
 0x31a   : > { %3310 = vst.msk [vmem:[%s6060_s4 + $0x8c] sm:$0xf] %vm3274_vm5, %v3789_v48  ;;  %3311 = vst.msk [vmem:[%s6060_s4 + $0x90] sm:$0xf] %vm3274_vm5, %v3790_v14  ;;  %v3792_v43 = vpack.c.bf16 %v3092_v10, %v3092_v10  ;;  %v3793_v41 = vpack.c.bf16 %v3093_v33, %v3093_v33  ;;  %v3050_v49 = vadd.f32 %v5751_v0, %v3000_v24 }
 0x31b   : > { %3312 = vst.msk [vmem:[%s6060_s4 + $0x94] sm:$0xf] %vm3274_vm5, %v3791_v34  ;;  %v3051_v17 = vadd.f32 %v5751_v0, %v3001_v42  ;;  %v3052_v26 = vadd.f32 %v5751_v0, %v3002_v7  ;;  %v3053_v32 = vadd.f32 %v5751_v0, %v3003_v29 }
 0x31c   : > { %3313 = vst.msk [vmem:[%s6060_s4 + $0x98] sm:$0xf] %vm3274_vm5, %v3792_v43  ;;  %3314 = vst.msk [vmem:[%s6060_s4 + $0x9c] sm:$0xf] %vm3274_vm5, %v3793_v41  ;;  %v3094_v2 = vmax.f32 %v3050_v49, 0.0 }
 0x31d   : > { %v3095_v9 = vmax.f32 %v3051_v17, 0.0  ;;  %v3096_v52 = vmax.f32 %v3052_v26, 0.0  ;;  %v3097_v59 = vmax.f32 %v3053_v32, 0.0 }
 0x31e   : > { %v3794_v3 = vpack.c.bf16 %v3094_v2, %v3094_v2 }
 0x31f   : > { %v3795_v63 = vpack.c.bf16 %v3095_v9, %v3095_v9  ;;  %v3796_v13 = vpack.c.bf16 %v3096_v52, %v3096_v52  ;;  %v3797_v27 = vpack.c.bf16 %v3097_v59, %v3097_v59 }
 0x320   : > { %3315 = vst.msk [vmem:[%s6060_s4 + $0xa0] sm:$0xf] %vm3274_vm5, %v3794_v3 }
 0x321   : > { %3316 = vst.msk [vmem:[%s6060_s4 + $0xa4] sm:$0xf] %vm3274_vm5, %v3795_v63  ;;  %3317 = vst.msk [vmem:[%s6060_s4 + $0xa8] sm:$0xf] %vm3274_vm5, %v3796_v13 }
 0x322   : > { %3318 = vst.msk [vmem:[%s6060_s4 + $0xac] sm:$0xf] %vm3274_vm5, %v3797_v27 }
 0x323 PF: > { %s14_s17 = sadd.s32 1, %s4222_s17   ;;  %s6111_s15 = smov %s4218_s16 }
 0x324   : > { %p11_p7 = scmp.ge.s32.totalorder %s14_s17, 4   ;;  %s6112_s16 = smov %s6114_s18 }
 0x326   :  { %13 = sbr.rel (!%p11_p7) target bundleno = 2 (0x2), region = 78 }

// kernel: critic_exp_forward.6
= control target key start
LH: loop header
LB: loop body
LE: loop exit
PB: predicated region body
PF: predicated region fallthrough
CT: control target
= control target key end

     0   :  { %s2821_s15 = smov 0   ;;  %s2823_s16 = smov 0   ;;  %s3475_s0 = inlined_call_operand.vmem [shape: bf16[64,1600], index: 0, kind: input, shape index: {}]   ;;  %s3476_s1 = inlined_call_operand.vmem [shape: bf16[1600,128], index: 1, kind: input, shape index: {}]   ;;  %s3477_s2 = inlined_call_operand.vmem [shape: f32[1,128], index: 2, kind: input, shape index: {}]   ;;  %s3478_s3 = inlined_call_operand.vmem [shape: f32[1,128], index: 3, kind: input, shape index: {}]   ;;  %s3479_s4 = inlined_call_operand.vmem [shape: bf16[64,128], index: 4, kind: output, shape index: {}]  }
   0x1   :  { %s2825_s17 = smov 0  }
   0x2 LB: > { %s26_s18 = sadd.s32 1, %s2789_s16  ;;  %p2053_p0 = scmp.ge.s32.totalorder %s2793_s17, 1  ;;  %s2793_s17 = sphi %s2825_s17, %s14_s17   ;;  %s2789_s16 = sphi %s2823_s16, %s3503_s16   ;;  %s2785_s15 = sphi %s2821_s15, %s3502_s15  }
   0x3   : > { %p28_p1 = scmp.ge.s32.totalorder %s26_s18, 2  ;;  %p176_p2 = scmp.lt.s32.totalorder %s2793_s17, 3 }
   0x5   : > { %s3505_s18 = smov (%p28_p1, %s26_s18), 0  ;;  %p177_p3 = pnand %p2053_p0, %p176_p2 }
   0x7   : > { %180 = sbr.rel (%p177_p3) target bundleno = 427 (0x1ab), region = 36 }
   0xc   : > { %v2593_v0 = vld [vmem:[%s3476_s1 + $0x78] sm:$0xff]   ;;  %v2597_v4 = vld [vmem:[%s3476_s1 + $0x70] sm:$0xff]   ;;  %v2601_v8 = vld [vmem:[%s3476_s1 + $0x68] sm:$0xff]   ;;  %vm1333_vm0 = vcmask 523264   ;;  %p1801_p4 = scmp.eq.s32.totalorder %s2785_s15, 0 }
   0xd   : > { %v2594_v1 = vld [vmem:[%s3476_s1 + $0xf8] sm:$0xff]   ;;  %2296 = vmatprep.subr.bf16.mxu0 %v2593_v0  ;;  %v2598_v5 = vld [vmem:[%s3476_s1 + $0xf0] sm:$0xff]   ;;  %v2602_v9 = vld [vmem:[%s3476_s1 + $0xe8] sm:$0xff]  }
   0xe   : > { %v2595_v2 = vld [vmem:[%s3476_s1 + $0x38] sm:$0xff]   ;;  %2336 = vmatprep.subr.bf16.mxu1 %v2594_v1  ;;  %v2599_v6 = vld [vmem:[%s3476_s1 + $0x30] sm:$0xff]   ;;  %v2603_v10 = vld [vmem:[%s3476_s1 + $0x28] sm:$0xff]  }
   0xf   : > { %v2596_v3 = vld [vmem:[%s3476_s1 + $0xb8] sm:$0xff]   ;;  %2297 = vmatpush3.bf16.msra.mxu0 %v2595_v2  ;;  %v2600_v7 = vld [vmem:[%s3476_s1 + $0xb0] sm:$0xff]   ;;  %v2604_v11 = vld [vmem:[%s3476_s1 + $0xa8] sm:$0xff]  }
  0x10   : > { %2337 = vmatpush3.bf16.msra.mxu1 %v2596_v3  ;;  %2298 = vmatprep.subr.bf16.mxu0 %v2597_v4  ;;  %v2605_v12 = vld [vmem:[%s3476_s1 + $0x60] sm:$0xff]   ;;  %v2609_v16 = vld [vmem:[%s3476_s1 + $0x58] sm:$0xff]   ;;  %v2613_v20 = vld [vmem:[%s3476_s1 + $0x50] sm:$0xff]  }
  0x11   : > { %2338 = vmatprep.subr.bf16.mxu1 %v2598_v5  ;;  %v2606_v13 = vld [vmem:[%s3476_s1 + $0xe0] sm:$0xff]   ;;  %v2610_v17 = vld [vmem:[%s3476_s1 + $0xd8] sm:$0xff]   ;;  %v2614_v21 = vld [vmem:[%s3476_s1 + $0xd0] sm:$0xff]  }
  0x12   : > { %v2607_v14 = vld [vmem:[%s3476_s1 + $0x20] sm:$0xff]   ;;  %v2611_v18 = vld [vmem:[%s3476_s1 + $0x18] sm:$0xff]   ;;  %v2615_v22 = vld [vmem:[%s3476_s1 + $0x10] sm:$0xff]  }
  0x13   : > { %2299 = vmatpush3.bf16.msra.mxu0 %v2599_v6  ;;  %v2608_v15 = vld [vmem:[%s3476_s1 + $0xa0] sm:$0xff]   ;;  %v2612_v19 = vld [vmem:[%s3476_s1 + $0x98] sm:$0xff]   ;;  %v2616_v23 = vld [vmem:[%s3476_s1 + $0x90] sm:$0xff]  }
  0x14   : > { %2339 = vmatpush3.bf16.msra.mxu1 %v2600_v7  ;;  %2300 = vmatprep.subr.bf16.mxu0 %v2601_v8  ;;  %v2617_v24 = vld [vmem:[%s3476_s1 + $0x48] sm:$0xff]   ;;  %v2621_v28 = vld [vmem:[%s3476_s1 + $0x40] sm:$0xff]   ;;  %v2631_v36 = vld [vmem:[%s3476_s1 + $0x178] sm:$0xff]  }
  0x15   : > { %2340 = vmatprep.subr.bf16.mxu1 %v2602_v9  ;;  %v2618_v25 = vld [vmem:[%s3476_s1 + $0xc8] sm:$0xff]   ;;  %v2622_v29 = vld [vmem:[%s3476_s1 + $0xc0] sm:$0xff]   ;;  %v2632_v37 = vld [vmem:[%s3476_s1 + $0x1f8] sm:$0xff]  }
  0x16   : > { %v2619_v26 = vld [vmem:[%s3476_s1 + $0x8] sm:$0xff]   ;;  %v2623_v30 = vld [vmem:[%s3476_s1] sm:$0xff]   ;;  %v2633_v38 = vld [vmem:[%s3476_s1 + $0x138] sm:$0xff]  }
  0x17   : > { %2301 = vmatpush3.bf16.msra.mxu0 %v2603_v10  ;;  %v2620_v27 = vld [vmem:[%s3476_s1 + $0x88] sm:$0xff]   ;;  %v2624_v31 = vld [vmem:[%s3476_s1 + $0x80] sm:$0xff]   ;;  %v2634_v39 = vld [vmem:[%s3476_s1 + $0x1b8] sm:$0xff]  }
  0x18   : > { %2341 = vmatpush3.bf16.msra.mxu1 %v2604_v11  ;;  %2302 = vmatprep.subr.bf16.mxu0 %v2605_v12  ;;  %v2625_v32 = vld [vmem:[%s3475_s0] ss:$52 sps:$4 sm:$0xff]   ;;  %v2627_v33 = vld [vmem:[%s3475_s0 + $0x4] ss:$52 sps:$4 sm:$0xff]   ;;  %v2628_v34 = vld [vmem:[%s3475_s0 + $0x8] ss:$52 sps:$4 sm:$0xff]  }
  0x19   : > { %2342 = vmatprep.subr.bf16.mxu1 %v2606_v13  ;;  %v2630_v35 = vld [vmem:[%s3475_s0 + $0xc] ss:$52 sps:$4 sm:$0xff]   ;;  %1378 = vmatprep.mubr.bf16.mxu0 %v2627_v33  ;;  %v2635_v40 = vld [vmem:[%s3476_s1 + $0x170] sm:$0xff]   ;;  %v2643_v46 = vld [vmem:[%s3475_s0 + $0x68] ss:$52 sps:$4 sm:$0xff]  }
  0x1a   : > { %1443 = vmatprep.mubr.bf16.mxu1 %v2630_v35  ;;  %v2636_v41 = vld [vmem:[%s3476_s1 + $0x1f0] sm:$0xff]   ;;  %v2639_v44 = vld [vmem:[%s3475_s0 + $0x6c] ss:$52 sps:$4 sm:$0xff]   ;;  %v2659_v60 = vld [vmem:[%s3476_s1 + $0x158] sm:$0xff]  }
  0x1b   : > { %2303 = vmatpush3.bf16.msra.mxu0 %v2607_v14  ;;  %v2637_v42 = vld [vmem:[%s3476_s1 + $0x130] sm:$0xff]   ;;  %v2645_v48 = vld [vmem:[%s3476_s1 + $0x168] sm:$0xff]   ;;  %v2649_v52 = vld [vmem:[%s3476_s1 + $0x160] sm:$0xff]  }
  0x1c   : > { %2343 = vmatpush3.bf16.msra.mxu1 %v2608_v15  ;;  %2304 = vmatprep.subr.bf16.mxu0 %v2609_v16  ;;  %v2638_v43 = vld [vmem:[%s3476_s1 + $0x1b0] sm:$0xff]   ;;  %v2646_v49 = vld [vmem:[%s3476_s1 + $0x1e8] sm:$0xff]   ;;  %v2650_v53 = vld [vmem:[%s3476_s1 + $0x1e0] sm:$0xff]  }
  0x1d   : > { %2344 = vmatprep.subr.bf16.mxu1 %v2610_v17  ;;  %v2641_v45 = vld [vmem:[%s3475_s0 + $0x74] ss:$52 sps:$4 sm:$0xff]   ;;  %v2644_v47 = vld [vmem:[%s3475_s0 + $0x70] ss:$52 sps:$4 sm:$0xff]   ;;  %v2658_v59 = vld [vmem:[%s3475_s0 + $0xd8] ss:$52 sps:$4 sm:$0xff]  }
  0x1e   : > { %v2647_v50 = vld [vmem:[%s3476_s1 + $0x128] sm:$0xff]   ;;  %v2651_v54 = vld [vmem:[%s3476_s1 + $0x120] sm:$0xff]   ;;  %v2655_v57 = vld [vmem:[%s3475_s0 + $0xdc] ss:$52 sps:$4 sm:$0xff]  }
  0x1f   : > { %2305 = vmatpush3.bf16.msra.mxu0 %v2611_v18  ;;  %v2648_v51 = vld [vmem:[%s3476_s1 + $0x1a8] sm:$0xff]   ;;  %v2652_v55 = vld [vmem:[%s3476_s1 + $0x1a0] sm:$0xff]   ;;  %v2660_v61 = vld [vmem:[%s3476_s1 + $0x1d8] sm:$0xff]  }
  0x20   : > { %2345 = vmatpush3.bf16.msra.mxu1 %v2612_v19  ;;  %2306 = vmatprep.subr.bf16.mxu0 %v2613_v20  ;;  %v2653_v56 = vld [vmem:[%s3475_s0 + $0xd4] ss:$52 sps:$4 sm:$0xff]   ;;  %v2657_v58 = vld [vmem:[%s3475_s0 + $0xd0] ss:$52 sps:$4 sm:$0xff]   ;;  %v2661_v62 = vld [vmem:[%s3476_s1 + $0x118] sm:$0xff]  }
  0x21   : > { %2346 = vmatprep.subr.bf16.mxu1 %v2614_v21  ;;  %v2662_v63 = vld [vmem:[%s3476_s1 + $0x198] sm:$0xff]   ;;  %v2663_v0 = vld [vmem:[%s3476_s1 + $0x150] sm:$0xff]   ;;  %v2673_v8 = vld [vmem:[%s3476_s1 + $0x148] sm:$0xff]  }
  0x22   : > { %v2664_v1 = vld [vmem:[%s3476_s1 + $0x1d0] sm:$0xff]   ;;  %v2669_v5 = vld [vmem:[%s3475_s0 + $0x144] ss:$52 sps:$4 sm:$0xff]   ;;  %v2674_v9 = vld [vmem:[%s3476_s1 + $0x1c8] sm:$0xff]  }
  0x23   : > { %2307 = vmatpush3.bf16.msra.mxu0 %v2615_v22  ;;  %v2665_v2 = vld [vmem:[%s3476_s1 + $0x110] sm:$0xff]   ;;  %v2671_v6 = vld [vmem:[%s3475_s0 + $0x138] ss:$52 sps:$4 sm:$0xff]   ;;  %v2677_v12 = vld [vmem:[%s3476_s1 + $0x140] sm:$0xff]  }
  0x24   : > { %2347 = vmatpush3.bf16.msra.mxu1 %v2616_v23  ;;  %2308 = vmatprep.subr.bf16.mxu0 %v2617_v24  ;;  %v2666_v3 = vld [vmem:[%s3476_s1 + $0x190] sm:$0xff]   ;;  %v2675_v10 = vld [vmem:[%s3476_s1 + $0x108] sm:$0xff]   ;;  %v2678_v13 = vld [vmem:[%s3476_s1 + $0x1c0] sm:$0xff]  }
  0x25   : > { %2348 = vmatprep.subr.bf16.mxu1 %v2618_v25  ;;  %v2667_v4 = vld [vmem:[%s3475_s0 + $0x13c] ss:$52 sps:$4 sm:$0xff]   ;;  %v2672_v7 = vld [vmem:[%s3475_s0 + $0x140] ss:$52 sps:$4 sm:$0xff]   ;;  %v2676_v11 = vld [vmem:[%s3476_s1 + $0x188] sm:$0xff]  }
  0x26   : > { %v2679_v14 = vld [vmem:[%s3476_s1 + $0x100] sm:$0xff]   ;;  %v2683_v17 = vld [vmem:[%s3475_s0 + $0x14] ss:$52 sps:$4 sm:$0xff]   ;;  %v2684_v18 = vld [vmem:[%s3475_s0 + $0x18] ss:$52 sps:$4 sm:$0xff]  }
  0x27   : > { %2309 = vmatpush3.bf16.msra.mxu0 %v2619_v26  ;;  %v2680_v15 = vld [vmem:[%s3476_s1 + $0x180] sm:$0xff]   ;;  %v2686_v19 = vld [vmem:[%s3475_s0 + $0x1c] ss:$52 sps:$4 sm:$0xff]   ;;  %v2702_v33 = vld [vmem:[%s3476_s1 + $0x2e8] sm:$0xff]  }
  0x28   : > { %2349 = vmatpush3.bf16.msra.mxu1 %v2620_v27  ;;  %2310 = vmatprep.subr.bf16.mxu0 %v2621_v28  ;;  %v2681_v16 = vld [vmem:[%s3475_s0 + $0x10] ss:$52 sps:$4 sm:$0xff]   ;;  %v2687_v20 = vld [vmem:[%s3476_s1 + $0x278] sm:$0xff]   ;;  %v2704_v35 = vld [vmem:[%s3476_s1 + $0x2a8] sm:$0xff]  }
  0x29   : > { %2350 = vmatprep.subr.bf16.mxu1 %v2622_v29  ;;  %v2688_v21 = vld [vmem:[%s3476_s1 + $0x2f8] sm:$0xff]   ;;  %v2691_v24 = vld [vmem:[%s3476_s1 + $0x270] sm:$0xff]  }
  0x2a   : > { %v2689_v22 = vld [vmem:[%s3476_s1 + $0x238] sm:$0xff]   ;;  %v2692_v25 = vld [vmem:[%s3476_s1 + $0x2f0] sm:$0xff]  }
  0x2b   : > { %2311 = vmatpush3.bf16.msra.mxu0 %v2623_v30  ;;  %v2690_v23 = vld [vmem:[%s3476_s1 + $0x2b8] sm:$0xff]   ;;  %v2693_v26 = vld [vmem:[%s3476_s1 + $0x230] sm:$0xff]  }
  0x2c   : > { %2351 = vmatpush3.bf16.msra.mxu1 %v2624_v31  ;;  %2376 = vmatprep.subr.bf16.mxu0 %v2631_v36  ;;  %v2694_v27 = vld [vmem:[%s3476_s1 + $0x2b0] sm:$0xff]   ;;  %v2697_v29 = vld [vmem:[%s3475_s0 + $0x84] ss:$52 sps:$4 sm:$0xff]  }
  0x2d   : > { %2416 = vmatprep.subr.bf16.mxu1 %v2632_v37  ;;  %v2695_v28 = vld [vmem:[%s3475_s0 + $0x7c] ss:$52 sps:$4 sm:$0xff]   ;;  %v2699_v30 = vld [vmem:[%s3475_s0 + $0x78] ss:$52 sps:$4 sm:$0xff]   ;;  %v2700_v31 = vld [vmem:[%s3475_s0 + $0x80] ss:$52 sps:$4 sm:$0xff]  }
  0x2e   : > { %1379 = vmatmul.mubr.bf16.vlgmr.msra.gmra.mxu0 %v2625_v32  ;;  %v2701_v32 = vld [vmem:[%s3476_s1 + $0x268] sm:$0xff]   ;;  %v2705_v36 = vld [vmem:[%s3476_s1 + $0x260] sm:$0xff]  }
  0x2f   : > { %1444 = vmatmul.mubr.bf16.vlgmr.msra.gmra.mxu1 %v2628_v34  ;;  %2377 = vmatpush3.bf16.msra.mxu0 %v2633_v38  ;;  %v2703_v34 = vld [vmem:[%s3476_s1 + $0x228] sm:$0xff]   ;;  %v2706_v37 = vld [vmem:[%s3476_s1 + $0x2e0] sm:$0xff]  }
  0x30   : > { %2417 = vmatpush3.bf16.msra.mxu1 %v2634_v39  ;;  %2378 = vmatprep.subr.bf16.mxu0 %v2635_v40  ;;  %v2707_v38 = vld [vmem:[%s3476_s1 + $0x220] sm:$0xff]  }
  0x31   : > { %2418 = vmatprep.subr.bf16.mxu1 %v2636_v41  ;;  %1386 = vmatprep.mubr.bf16.mxu0 %v2639_v44  ;;  %v2708_v39 = vld [vmem:[%s3476_s1 + $0x2a0] sm:$0xff]   ;;  %v2715_v44 = vld [vmem:[%s3476_s1 + $0x258] sm:$0xff]  }
  0x32   : > { %1451 = vmatprep.mubr.bf16.mxu1 %v2641_v45  ;;  %v2709_v40 = vld [vmem:[%s3475_s0 + $0xe4] ss:$52 sps:$4 sm:$0xff]   ;;  %v2711_v41 = vld [vmem:[%s3475_s0 + $0xec] ss:$52 sps:$4 sm:$0xff]  }
  0x33   : > { %2379 = vmatpush3.bf16.msra.mxu0 %v2637_v42  ;;  %v2713_v42 = vld [vmem:[%s3475_s0 + $0xe0] ss:$52 sps:$4 sm:$0xff]   ;;  %v2716_v45 = vld [vmem:[%s3476_s1 + $0x2d8] sm:$0xff]  }
  0x34   : > { %2419 = vmatpush3.bf16.msra.mxu1 %v2638_v43  ;;  %2380 = vmatprep.subr.bf16.mxu0 %v2645_v48  ;;  %v2714_v43 = vld [vmem:[%s3475_s0 + $0xe8] ss:$52 sps:$4 sm:$0xff]   ;;  %v2719_v48 = vld [vmem:[%s3476_s1 + $0x250] sm:$0xff]  }
  0x35   : > { %2420 = vmatprep.subr.bf16.mxu1 %v2646_v49  ;;  %v2720_v49 = vld [vmem:[%s3476_s1 + $0x2d0] sm:$0xff]  }
  0x36   : > { %1387 = vmatmul.mubr.bf16.gmra.mxu0 %v2643_v46  ;;  %v2717_v46 = vld [vmem:[%s3476_s1 + $0x218] sm:$0xff]  }
  0x37   : > { %1452 = vmatmul.mubr.bf16.gmra.mxu1 %v2644_v47  ;;  %2381 = vmatpush3.bf16.msra.mxu0 %v2647_v50  ;;  %v2718_v47 = vld [vmem:[%s3476_s1 + $0x298] sm:$0xff]   ;;  %v2721_v50 = vld [vmem:[%s3476_s1 + $0x210] sm:$0xff]  }
  0x38   : > { %2421 = vmatpush3.bf16.msra.mxu1 %v2648_v51  ;;  %2382 = vmatprep.subr.bf16.mxu0 %v2649_v52  ;;  %v2722_v51 = vld [vmem:[%s3476_s1 + $0x290] sm:$0xff]   ;;  %v2723_v52 = vld [vmem:[%s3475_s0 + $0x14c] ss:$52 sps:$4 sm:$0xff]  }
  0x39   : > { %2422 = vmatprep.subr.bf16.mxu1 %v2650_v53  ;;  %1394 = vmatprep.mubr.bf16.mxu0 %v2653_v56  ;;  %v2725_v53 = vld [vmem:[%s3475_s0 + $0x154] ss:$52 sps:$4 sm:$0xff]  }
  0x3a   : > { %1459 = vmatprep.mubr.bf16.mxu1 %v2655_v57  ;;  %v2729_v56 = vld [vmem:[%s3476_s1 + $0x248] sm:$0xff]  }
  0x3b   : > { %2383 = vmatpush3.bf16.msra.mxu0 %v2651_v54  ;;  %v2727_v54 = vld [vmem:[%s3475_s0 + $0x148] ss:$52 sps:$4 sm:$0xff]  }
  0x3c   : > { %2423 = vmatpush3.bf16.msra.mxu1 %v2652_v55  ;;  %2384 = vmatprep.subr.bf16.mxu0 %v2659_v60  ;;  %v2728_v55 = vld [vmem:[%s3475_s0 + $0x150] ss:$52 sps:$4 sm:$0xff]   ;;  %v2730_v57 = vld [vmem:[%s3476_s1 + $0x2c8] sm:$0xff]  }
  0x3d   : > { %2424 = vmatprep.subr.bf16.mxu1 %v2660_v61  ;;  %v2733_v60 = vld [vmem:[%s3476_s1 + $0x240] sm:$0xff]  }
  0x3e   : > { %1395 = vmatmul.mubr.bf16.gmra.mxu0 %v2657_v58  ;;  %v2731_v58 = vld [vmem:[%s3476_s1 + $0x208] sm:$0xff]   ;;  %v2734_v61 = vld [vmem:[%s3476_s1 + $0x2c0] sm:$0xff]  }
  0x3f   : > { %1460 = vmatmul.mubr.bf16.gmra.mxu1 %v2658_v59  ;;  %2385 = vmatpush3.bf16.msra.mxu0 %v2661_v62  ;;  %v2732_v59 = vld [vmem:[%s3476_s1 + $0x288] sm:$0xff]   ;;  %v2735_v62 = vld [vmem:[%s3476_s1 + $0x200] sm:$0xff]  }
  0x40   : > { %2425 = vmatpush3.bf16.msra.mxu1 %v2662_v63  ;;  %2386 = vmatprep.subr.bf16.mxu0 %v2663_v0  ;;  %v2736_v63 = vld [vmem:[%s3476_s1 + $0x280] sm:$0xff]  }
  0x41   : > { %2426 = vmatprep.subr.bf16.mxu1 %v2664_v1  ;;  %1402 = vmatprep.mubr.bf16.mxu0 %v2667_v4  ;;  %v2737_v0 = vld [vmem:[%s3475_s0 + $0x20] ss:$52 sps:$4 sm:$0xff]   ;;  %v2739_v1 = vld [vmem:[%s3475_s0 + $0x24] ss:$52 sps:$4 sm:$0xff]  }
  0x42   : > { %1467 = vmatprep.mubr.bf16.mxu1 %v2669_v5  ;;  %v2743_v4 = vld [vmem:[%s3476_s1 + $0x318] sm:$0xff]   ;;  %v2744_v5 = vld [vmem:[%s3475_s0 + $0x8c] ss:$52 sps:$4 sm:$0xff]  }
  0x43   : > { %2387 = vmatpush3.bf16.msra.mxu0 %v2665_v2  ;;  %v2740_v2 = vld [vmem:[%s3475_s0 + $0x28] ss:$52 sps:$4 sm:$0xff]  }
  0x44   : > { %2427 = vmatpush3.bf16.msra.mxu1 %v2666_v3  ;;  %2388 = vmatprep.subr.bf16.mxu0 %v2673_v8  ;;  %v2742_v3 = vld [vmem:[%s3475_s0 + $0x2c] ss:$52 sps:$4 sm:$0xff]   ;;  %v2748_v8 = vld [vmem:[%s3475_s0 + $0x88] ss:$52 sps:$4 sm:$0xff]  }
  0x45   : > { %2428 = vmatprep.subr.bf16.mxu1 %v2674_v9  ;;  %v2749_v9 = vld [vmem:[%s3475_s0 + $0x90] ss:$52 sps:$4 sm:$0xff]  }
  0x46   : > { %1403 = vmatmul.mubr.bf16.gmra.mxu0 %v2671_v6  ;;  %v2746_v6 = vld [vmem:[%s3475_s0 + $0x94] ss:$52 sps:$4 sm:$0xff]  }
  0x47   : > { %1468 = vmatmul.mubr.bf16.gmra.mxu1 %v2672_v7  ;;  %2389 = vmatpush3.bf16.msra.mxu0 %v2675_v10  ;;  %v2750_v7 = vld [vmem:[%s3476_s1 + $0x310] sm:$0xff]  }
  0x48   : > { %2429 = vmatpush3.bf16.msra.mxu1 %v2676_v11  ;;  %2390 = vmatprep.subr.bf16.mxu0 %v2677_v12  ;;  %v2751_v10 = vld [vmem:[%s3475_s0 + $0xf4] ss:$52 sps:$4 sm:$0xff]   ;;  %v2753_v11 = vld [vmem:[%s3475_s0 + $0xfc] ss:$52 sps:$4 sm:$0xff]  }
  0x49   : > { %2430 = vmatprep.subr.bf16.mxu1 %v2678_v13  ;;  %1508 = vmatprep.mubr.bf16.mxu0 %v2683_v17  ;;  %v2757_v12 = vld [vmem:[%s3476_s1 + $0x308] sm:$0xff]   ;;  %v2764_v13 = vld [vmem:[%s3476_s1 + $0x300] sm:$0xff]  }
  0x4a   : > { %1573 = vmatprep.mubr.bf16.mxu1 %v2686_v19  ;;  %v2760_v17 = vld [vmem:[%s3475_s0 + $0x164] ss:$52 sps:$4 sm:$0xff]   ;;  %v2763_v19 = vld [vmem:[%s3475_s0 + $0x160] ss:$52 sps:$4 sm:$0xff]  }
  0x4b   : > { %2391 = vmatpush3.bf16.msra.mxu0 %v2679_v14  ;;  %v2755_v14 = vld [vmem:[%s3475_s0 + $0xf0] ss:$52 sps:$4 sm:$0xff]  }
  0x4c   : > { %2431 = vmatpush3.bf16.msra.mxu1 %v2680_v15  ;;  %2456 = vmatprep.subr.bf16.mxu0 %v2687_v20  ;;  %v2756_v15 = vld [vmem:[%s3475_s0 + $0xf8] ss:$52 sps:$4 sm:$0xff]   ;;  %v2765_v20 = vld [vmem:[%s3475_s0 + $0x30] ss:$52 sps:$4 sm:$0xff]  }
  0x4d   : > { %2496 = vmatprep.subr.bf16.mxu1 %v2688_v21  ;;  %v2766_v21 = vld [vmem:[%s3475_s0 + $0x100] ss:$52 sps:$4 sm:$0xff]  }
  0x4e   : > { %1509 = vmatmul.mubr.bf16.vlgmr.msra.gmra.mxu0 %v2681_v16  ;;  %v2758_v16 = vld [vmem:[%s3475_s0 + $0x15c] ss:$52 sps:$4 sm:$0xff]  }
  0x4f   : > { %1574 = vmatmul.mubr.bf16.vlgmr.msra.gmra.mxu1 %v2684_v18  ;;  %2457 = vmatpush3.bf16.msra.mxu0 %v2689_v22  ;;  %v2762_v18 = vld [vmem:[%s3475_s0 + $0x158] ss:$52 sps:$4 sm:$0xff]  }
  0x50   : > { %2497 = vmatpush3.bf16.msra.mxu1 %v2690_v23  ;;  %2458 = vmatprep.subr.bf16.mxu0 %v2691_v24  ;;  %v2767_v22 = vld [vmem:[%s3475_s0 + $0x98] ss:$52 sps:$4 sm:$0xff]   ;;  %v2768_v23 = vld [vmem:[%s3475_s0 + $0x168] ss:$52 sps:$4 sm:$0xff]  }
  0x51   : > { %2498 = vmatprep.subr.bf16.mxu1 %v2692_v25  ;;  %1516 = vmatprep.mubr.bf16.mxu0 %v2695_v28 }
  0x52   : > { %1581 = vmatprep.mubr.bf16.mxu1 %v2697_v29 }
  0x53   : > { %2459 = vmatpush3.bf16.msra.mxu0 %v2693_v26 }
  0x54   : > { %2499 = vmatpush3.bf16.msra.mxu1 %v2694_v27  ;;  %2460 = vmatprep.subr.bf16.mxu0 %v2701_v32 }
  0x55   : > { %2500 = vmatprep.subr.bf16.mxu1 %v2702_v33 }
  0x56   : > { %1517 = vmatmul.mubr.bf16.gmra.mxu0 %v2699_v30 }
  0x57   : > { %1582 = vmatmul.mubr.bf16.gmra.mxu1 %v2700_v31  ;;  %2461 = vmatpush3.bf16.msra.mxu0 %v2703_v34 }
  0x58   : > { %2501 = vmatpush3.bf16.msra.mxu1 %v2704_v35  ;;  %2462 = vmatprep.subr.bf16.mxu0 %v2705_v36 }
  0x59   : > { %2502 = vmatprep.subr.bf16.mxu1 %v2706_v37  ;;  %1524 = vmatprep.mubr.bf16.mxu0 %v2709_v40 }
  0x5a   : > { %1589 = vmatprep.mubr.bf16.mxu1 %v2711_v41 }
  0x5b   : > { %2463 = vmatpush3.bf16.msra.mxu0 %v2707_v38 }
  0x5c   : > { %2503 = vmatpush3.bf16.msra.mxu1 %v2708_v39  ;;  %2464 = vmatprep.subr.bf16.mxu0 %v2715_v44 }
  0x5d   : > { %2504 = vmatprep.subr.bf16.mxu1 %v2716_v45 }
  0x5e   : > { %1525 = vmatmul.mubr.bf16.gmra.mxu0 %v2713_v42 }
  0x5f   : > { %1590 = vmatmul.mubr.bf16.gmra.mxu1 %v2714_v43  ;;  %2465 = vmatpush3.bf16.msra.mxu0 %v2717_v46 }
  0x60   : > { %2505 = vmatpush3.bf16.msra.mxu1 %v2718_v47  ;;  %2466 = vmatprep.subr.bf16.mxu0 %v2719_v48 }
  0x61   : > { %2506 = vmatprep.subr.bf16.mxu1 %v2720_v49  ;;  %1532 = vmatprep.mubr.bf16.mxu0 %v2723_v52 }
  0x62   : > { %1597 = vmatprep.mubr.bf16.mxu1 %v2725_v53 }
  0x63   : > { %2467 = vmatpush3.bf16.msra.mxu0 %v2721_v50 }
  0x64   : > { %2507 = vmatpush3.bf16.msra.mxu1 %v2722_v51  ;;  %2468 = vmatprep.subr.bf16.mxu0 %v2729_v56 }
  0x65   : > { %2508 = vmatprep.subr.bf16.mxu1 %v2730_v57 }
  0x66   : > { %1533 = vmatmul.mubr.bf16.gmra.mxu0 %v2727_v54 }
  0x67   : > { %1598 = vmatmul.mubr.bf16.gmra.mxu1 %v2728_v55  ;;  %2469 = vmatpush3.bf16.msra.mxu0 %v2731_v58 }
  0x68   : > { %2509 = vmatpush3.bf16.msra.mxu1 %v2732_v59  ;;  %2470 = vmatprep.subr.bf16.mxu0 %v2733_v60 }
  0x69   : > { %2510 = vmatprep.subr.bf16.mxu1 %v2734_v61  ;;  %1638 = vmatprep.mubr.bf16.mxu0 %v2739_v1 }
  0x6a   : > { %1703 = vmatprep.mubr.bf16.mxu1 %v2742_v3 }
  0x6b   : > { %2471 = vmatpush3.bf16.msra.mxu0 %v2735_v62 }
  0x6c   : > { %2511 = vmatpush3.bf16.msra.mxu1 %v2736_v63  ;;  %2544 = vmatprep.subr.bf16.mxu0 %v2743_v4 }
  0x6d   : > { %2560 = vmatprep.subr.bf16.mxu1 %v2743_v4 }
  0x6e   : > { %1639 = vmatmul.mubr.bf16.vlgmr.msra.gmra.mxu0 %v2737_v0 }
  0x6f   : > { %1704 = vmatmul.mubr.bf16.vlgmr.msra.gmra.mxu1 %v2740_v2  ;;  %2545 = vmatpush3.bf16.msra.mxu0 %v2743_v4 }
  0x70   : > { %2564 = vmatpush3.bf16.msra.mxu1 %v2743_v4  ;;  %1646 = vmatprep.mubr.bf16.mxu0 %v2744_v5 }
  0x71   : > { %1711 = vmatprep.mubr.bf16.mxu1 %v2746_v6  ;;  %2546 = vmatprep.subr.bf16.mxu0 %v2750_v7 }
  0x72   : > { %2561 = vmatprep.subr.bf16.mxu1 %v2750_v7 }
  0x73   : > { %2547 = vmatpush3.bf16.msra.mxu0 %v2750_v7 }
  0x74   : > { %2565 = vmatpush3.bf16.msra.mxu1 %v2750_v7  ;;  %2548 = vmatprep.subr.bf16.mxu0 %v2757_v12 }
  0x75   : > { %2562 = vmatprep.subr.bf16.mxu1 %v2757_v12 }
  0x76   : > { %1647 = vmatmul.mubr.bf16.gmra.mxu0 %v2748_v8 }
  0x77   : > { %1712 = vmatmul.mubr.bf16.gmra.mxu1 %v2749_v9  ;;  %1654 = vmatprep.mubr.bf16.mxu0 %v2751_v10 }
  0x78   : > { %1719 = vmatprep.mubr.bf16.mxu1 %v2753_v11  ;;  %2549 = vmatpush3.bf16.msra.mxu0 %v2757_v12 }
  0x79   : > { %2566 = vmatpush3.bf16.msra.mxu1 %v2757_v12  ;;  %2550 = vmatprep.subr.bf16.mxu0 %v2764_v13 }
  0x7a   : > { %2563 = vmatprep.subr.bf16.mxu1 %v2764_v13 }
  0x7c   : > { %2551 = vmatpush3.bf16.msra.mxu0 %v2764_v13 }
  0x7d   : > { %2567 = vmatpush3.bf16.msra.mxu1 %v2764_v13 }
  0x7e   : > { %1655 = vmatmul.mubr.bf16.gmra.mxu0 %v2755_v14 }
  0x7f   : > { %1720 = vmatmul.mubr.bf16.gmra.mxu1 %v2756_v15  ;;  %1662 = vmatprep.mubr.bf16.mxu0 %v2758_v16 }
  0x80   : > { %1727 = vmatprep.mubr.bf16.mxu1 %v2760_v17 }
  0x86   : > { %1663 = vmatmul.mubr.bf16.gmra.mxu0 %v2762_v18 }
  0x87   : > { %1728 = vmatmul.mubr.bf16.gmra.mxu1 %v2763_v19  ;;  %2552 = vmatprep.mubr.msk.bf16.mxu0 %vm1333_vm0, %v2765_v20 }
  0x88   : > { %2556 = vmatprep.mubr.msk.bf16.mxu1 %vm1333_vm0, %v2766_v21 }
  0x8e   : > { %2553 = vmatmul.mubr.msk.bf16.vlgmr.msra.gmra.mxu0 %vm1333_vm0, %v2767_v22 }
  0x8f   : > { %2557 = vmatmul.mubr.msk.bf16.vlgmr.msra.gmra.mxu1 %vm1333_vm0, %v2768_v23 }
  0xee   : > { %v2312_v24 = vpop.f32.mrf.mxu0 }
  0xef   : > { %v2352_v25 = vpop.f32.mrf.mxu1 }
  0xf0   : > { %v2313_v26 = vpop.f32.mrf.mxu0 }
  0xf1   : > { %v2314_v27 = vadd.f32 %v2313_v26, %v2312_v24  ;;  %v2353_v28 = vpop.f32.mrf.mxu1 }
  0xf2   : > { %v2354_v29 = vadd.f32 %v2353_v28, %v2352_v25  ;;  %v2315_v30 = vpop.f32.mrf.mxu0 }
  0xf3   : > { %v2355_v31 = vpop.f32.mrf.mxu1 }
  0xf4   : > { %v3298_v32 = vadd.f32 %v2354_v29, %v2314_v27  ;;  %v2316_v33 = vpop.f32.mrf.mxu0 }
  0xf5   : > { %v2317_v34 = vadd.f32 %v2316_v33, %v2315_v30  ;;  %v2356_v35 = vpop.f32.mrf.mxu1 }
  0xf6   : > { %v2357_v36 = vadd.f32 %v2356_v35, %v2355_v31  ;;  %v2318_v38 = vpop.f32.mrf.mxu0 }
  0xf7   : > { %v2358_v39 = vpop.f32.mrf.mxu1 }
  0xf8   : > { %v3300_v37 = vadd.f32 %v2357_v36, %v2317_v34  ;;  %v2319_v40 = vpop.f32.mrf.mxu0 }
  0xf9   : > { %v2320_v41 = vadd.f32 %v2319_v40, %v2318_v38  ;;  %v2359_v42 = vpop.f32.mrf.mxu1 }
  0xfa   : > { %v2360_v43 = vadd.f32 %v2359_v42, %v2358_v39  ;;  %v2321_v44 = vpop.f32.mrf.mxu0 }
  0xfb   : > { %v2361_v45 = vpop.f32.mrf.mxu1 }
  0xfc   : > { %v3302_v46 = vadd.f32 %v2360_v43, %v2320_v41  ;;  %v2322_v47 = vpop.f32.mrf.mxu0 }
  0xfd   : > { %v2323_v48 = vadd.f32 %v2322_v47, %v2321_v44  ;;  %v2362_v49 = vpop.f32.mrf.mxu1 }
  0xfe   : > { %v2363_v50 = vadd.f32 %v2362_v49, %v2361_v45  ;;  %v2324_v52 = vpop.f32.mrf.mxu0 }
  0xff   : > { %v2364_v53 = vpop.f32.mrf.mxu1 }
 0x100   : > { %v3304_v51 = vadd.f32 %v2363_v50, %v2323_v48  ;;  %v2325_v54 = vpop.f32.mrf.mxu0 }
 0x101   : > { %v2326_v55 = vadd.f32 %v2325_v54, %v2324_v52  ;;  %v2365_v56 = vpop.f32.mrf.mxu1 }
 0x102   : > { %v2366_v57 = vadd.f32 %v2365_v56, %v2364_v53  ;;  %v2327_v58 = vpop.f32.mrf.mxu0 }
 0x103   : > { %v2367_v59 = vpop.f32.mrf.mxu1 }
 0x104   : > { %v3306_v60 = vadd.f32 %v2366_v57, %v2326_v55  ;;  %v2328_v61 = vpop.f32.mrf.mxu0 }
 0x105   : > { %v2329_v62 = vadd.f32 %v2328_v61, %v2327_v58  ;;  %v2368_v63 = vpop.f32.mrf.mxu1 }
 0x106   : > { %v2369_v0 = vadd.f32 %v2368_v63, %v2367_v59  ;;  %v2330_v2 = vpop.f32.mrf.mxu0 }
 0x107   : > { %v2370_v3 = vpop.f32.mrf.mxu1 }
 0x108   : > { %v3308_v1 = vadd.f32 %v2369_v0, %v2329_v62  ;;  %v2331_v4 = vpop.f32.mrf.mxu0 }
 0x109   : > { %v2371_v5 = vpop.f32.mrf.mxu1  ;;  %v2332_v6 = vadd.f32 %v2331_v4, %v2330_v2 }
 0x10a   : > { %3480 = vst [vmem:[#allocation4_spill] sm:$0xff] %v3308_v1  ;;  %v2372_v7 = vadd.f32 %v2371_v5, %v2370_v3  ;;  %v2333_v8 = vpop.f32.mrf.mxu0 }
 0x10b   : > { %v2373_v9 = vpop.f32.mrf.mxu1 }
 0x10c   : > { %v3310_v10 = vadd.f32 %v2372_v7, %v2332_v6  ;;  %v2334_v11 = vpop.f32.mrf.mxu0 }
 0x10d   : > { %v2374_v12 = vpop.f32.mrf.mxu1  ;;  %v2335_v3 = vadd.f32 %v2334_v11, %v2333_v8 }
 0x10e   : > { %v2392_v13 = vpop.f32.mrf.mxu0  ;;  %v2375_v5 = vadd.f32 %v2374_v12, %v2373_v9 }
 0x10f   : > { %v3312_v14 = vpop.f32.mrf.mxu1 }
 0x110   : > { %v2393_v15 = vpop.f32.mrf.mxu0 }
 0x111   : > { %v3314_v16 = vpop.f32.mrf.mxu1  ;;  %v2394_v6 = vadd.f32 %v2393_v15, %v2392_v13 }
 0x112   : > { %v2395_v17 = vpop.f32.mrf.mxu0  ;;  %v2434_v9 = vadd.f32 %v3314_v16, %v3312_v14 }
 0x113   : > { %v3316_v18 = vpop.f32.mrf.mxu1 }
 0x114   : > { %v2396_v19 = vpop.f32.mrf.mxu0 }
 0x115   : > { %v3318_v20 = vpop.f32.mrf.mxu1  ;;  %v2397_v7 = vadd.f32 %v2396_v19, %v2395_v17 }
 0x116   : > { %v2398_v21 = vpop.f32.mrf.mxu0  ;;  %v2437_v19 = vadd.f32 %v3318_v20, %v3316_v18 }
 0x117   : > { %v3320_v22 = vpop.f32.mrf.mxu1  ;;  %v1514_v1 = vadd.f32 %v2397_v7, %v3300_v37 }
 0x118   : > { %v2399_v23 = vpop.f32.mrf.mxu0 }
 0x119   : > { %v2439_v24 = vpop.f32.mrf.mxu1 }
 0x11a   : > { %v2401_v25 = vpop.f32.mrf.mxu0 }
 0x11b   : > { %v3322_v26 = vpop.f32.mrf.mxu1 }
 0x11c   : > { %v2402_v27 = vpop.f32.mrf.mxu0 }
 0x11d   : > { %v2442_v28 = vpop.f32.mrf.mxu1 }
 0x11e   : > { %v2404_v29 = vpop.f32.mrf.mxu0 }
 0x11f   : > { %v2444_v30 = vpop.f32.mrf.mxu1 }
 0x120   : > { %v2405_v31 = vpop.f32.mrf.mxu0 }
 0x121   : > { %v2445_v33 = vpop.f32.mrf.mxu1 }
 0x122   : > { %v2407_v34 = vpop.f32.mrf.mxu0 }
 0x123   : > { %v3324_v35 = vpop.f32.mrf.mxu1 }
 0x124   : > { %3481 = vst [vmem:[#allocation5_spill] sm:$0xff] %v3324_v35  ;;  %v2408_v36 = vpop.f32.mrf.mxu0 }
 0x125   : > { %v3326_v38 = vpop.f32.mrf.mxu1 }
 0x126   : > { %3482 = vst [vmem:[#allocation6_spill] sm:$0xff] %v3326_v38  ;;  %v2410_v39 = vpop.f32.mrf.mxu0 }
 0x127   : > { %v2450_v40 = vpop.f32.mrf.mxu1 }
 0x128   : > { %v2411_v41 = vpop.f32.mrf.mxu0 }
 0x129   : > { %v2451_v42 = vpop.f32.mrf.mxu1  ;;  %v2412_v35 = vadd.f32 %v2411_v41, %v2410_v39 }
 0x12a   : > { %v2413_v43 = vpop.f32.mrf.mxu0 }
 0x12b   : > { %v3328_v44 = vpop.f32.mrf.mxu1  ;;  %v1535_v37 = vadd.f32 %v2412_v35, %v3310_v10 }
 0x12c   : > { %3483 = vst [vmem:[#allocation7_spill] sm:$0xff] %v3328_v44  ;;  %v2414_v45 = vpop.f32.mrf.mxu0  ;;  %v1473_v44 = vadd.f32 %v2375_v5, %v2335_v3 }
 0x12d   : > { %v3330_v47 = vpop.f32.mrf.mxu1  ;;  %v2415_v15 = vadd.f32 %v2414_v45, %v2413_v43 }
 0x12e   : > { %3484 = vst [vmem:[#allocation8_spill] sm:$0xff] %v3330_v47  ;;  %v2472_v48 = vpop.f32.mrf.mxu0 }
 0x12f   : > { %v3332_v49 = vpop.f32.mrf.mxu1  ;;  %v1538_v18 = vadd.f32 %v2415_v15, %v1473_v44 }
 0x130   : > { %3485 = vst [vmem:[#allocation9_spill] sm:$0xff] %v3332_v49  ;;  %v2473_v50 = vpop.f32.mrf.mxu0  ;;  %v2403_v49 = vadd.f32 %v2402_v27, %v2401_v25  ;;  %v2446_v25 = vadd.f32 %v2445_v33, %v2444_v30  ;;  %v2409_v27 = vadd.f32 %v2408_v36, %v2407_v34 }
 0x131   : > { %v3334_v52 = vpop.f32.mrf.mxu1  ;;  %v2474_v14 = vadd.f32 %v2473_v50, %v2472_v48  ;;  %v3496_v50 = vld [vmem:[#allocation6_spill] sm:$0xff] }
 0x132   : > { %3486 = vst [vmem:[#allocation10_spill] sm:$0xff] %v3334_v52  ;;  %v3336_v53 = vpop.f32.mrf.mxu0  ;;  %v2400_v52 = vadd.f32 %v2399_v23, %v2398_v21  ;;  %v1522_v12 = vadd.f32 %v2403_v49, %v3304_v51  ;;  %v2443_v23 = vadd.f32 %v2442_v28, %v3322_v26  ;;  %v3491_v26 = vld [vmem:[#allocation4_spill] sm:$0xff] }
 0x133   : > { %3487 = vst [vmem:[#allocation11_spill] sm:$0xff] %v3336_v53  ;;  %v3338_v54 = vpop.f32.mrf.mxu1  ;;  %v1530_v28 = vadd.f32 %v2409_v27, %v3491_v26  ;;  %v3492_v30 = vld [vmem:[#allocation7_spill] sm:$0xff] }
 0x134   : > { %3488 = vst [vmem:[#allocation12_spill] sm:$0xff] %v3338_v54  ;;  %v2476_v55 = vpop.f32.mrf.mxu0  ;;  %v1519_v8 = vadd.f32 %v2400_v52, %v3302_v46  ;;  %v1587_v41 = vadd.f32 %v2443_v23, %v1522_v12 }
 0x135   : > { %v3340_v56 = vpop.f32.mrf.mxu1  ;;  %v3493_v33 = vld [vmem:[#allocation8_spill] sm:$0xff] }
 0x136   : > { %3489 = vst [vmem:[#allocation13_spill] sm:$0xff] %v3340_v56  ;;  %v2478_v57 = vpop.f32.mrf.mxu0  ;;  %v2406_v56 = vadd.f32 %v2405_v31, %v2404_v29  ;;  %v1579_v29 = vadd.f32 %v2437_v19, %v1514_v1  ;;  %v2452_v31 = vadd.f32 %v2451_v42, %v2450_v40  ;;  %v2455_v34 = vadd.f32 %v3493_v33, %v3492_v30  ;;  %v3495_v42 = vld [vmem:[#allocation5_spill] sm:$0xff] }
 0x137   : > { %v2518_v58 = vpop.f32.mrf.mxu1  ;;  %v2449_v52 = vadd.f32 %v3496_v50, %v3495_v42 }
 0x138   : > { %v2479_v59 = vpop.f32.mrf.mxu0  ;;  %v1527_v13 = vadd.f32 %v2406_v56, %v3306_v60 }
 0x139   : > { %v2519_v61 = vpop.f32.mrf.mxu1  ;;  %v2480_v21 = vadd.f32 %v2479_v59, %v2478_v57  ;;  %v1603_v59 = vadd.f32 %v2455_v34, %v1538_v18  ;;  %v1595_v12 = vadd.f32 %v2449_v52, %v1530_v28 }
 0x13a   : > { %v2481_v62 = vpop.f32.mrf.mxu0  ;;  %v1592_v43 = vadd.f32 %v2446_v25, %v1527_v13  ;;  %v3494_v1 = vld [vmem:[#allocation11_spill] sm:$0xff]  ;;  %v2520_v44 = vadd.f32 %v2519_v61, %v2518_v58 }
 0x13b   : > { %v3342_v63 = vpop.f32.mrf.mxu1  ;;  %v2477_v48 = vadd.f32 %v2476_v55, %v3494_v1 }
 0x13c   : > { %3490 = vst [vmem:[#allocation14_spill] sm:$0xff] %v3342_v63  ;;  %v2482_v0 = vpop.f32.mrf.mxu0  ;;  %v1511_v63 = vadd.f32 %v2394_v6, %v3298_v32  ;;  %v2440_v32 = vadd.f32 %v2439_v24, %v3320_v22  ;;  %v1600_v24 = vadd.f32 %v2452_v31, %v1535_v37 }
 0x13d   : > { %v3344_v2 = vpop.f32.mrf.mxu1  ;;  %v2483_v35 = vadd.f32 %v2482_v0, %v2481_v62  ;;  %v3497_v62 = vld [vmem:[#allocation9_spill] sm:$0xff]  ;;  %v1644_v13 = vadd.f32 %v2477_v48, %v1579_v29 }
 0x13e   : > { %v2484_v4 = vpop.f32.mrf.mxu0  ;;  %v1576_v51 = vadd.f32 %v2434_v9, %v1511_v63  ;;  %v1584_v60 = vadd.f32 %v2440_v32, %v1519_v8  ;;  %v3498_v63 = vld [vmem:[#allocation10_spill] sm:$0xff] }
 0x13f   : > { %v3346_v54 = vpop.f32.mrf.mxu1  ;;  %v2514_v0 = vadd.f32 %v3498_v63, %v3497_v62  ;;  %v1652_v6 = vadd.f32 %v2483_v35, %v1587_v41 }
 0x140   : > { %v2485_v38 = vpop.f32.mrf.mxu0  ;;  %v1649_v10 = vadd.f32 %v2480_v21, %v1584_v60  ;;  %v1641_v36 = vadd.f32 %v2474_v14, %v1576_v51  ;;  %v3501_v51 = vld [vmem:[#allocation13_spill] sm:$0xff] }
 0x141   : > { %v2525_v53 = vpop.f32.mrf.mxu1  ;;  %v2486_v20 = vadd.f32 %v2485_v38, %v2484_v4 }
 0x142   : > { %v2487_v47 = vpop.f32.mrf.mxu0  ;;  %v1714_v9 = vadd.f32 %v2520_v44, %v1649_v10  ;;  %v2526_v15 = vadd.f32 %v2525_v53, %v3346_v54  ;;  %v1706_v61 = vadd.f32 %v2514_v0, %v1641_v36 }
 0x143   : > { %v3351_v11 = vpop.f32.mrf.mxu1  ;;  %v1657_v3 = vadd.f32 %v2486_v20, %v1592_v43  ;;  %v3499_v19 = vld [vmem:[#allocation14_spill] sm:$0xff] }
 0x144   : > { %v2488_v17 = vpop.f32.mrf.mxu0  ;;  %v2523_v32 = vadd.f32 %v3344_v2, %v3499_v19 }
 0x145   : > { %v2528_v46 = vpop.f32.mrf.mxu1  ;;  %v2489_v4 = vadd.f32 %v2488_v17, %v2487_v47  ;;  %v1722_v14 = vadd.f32 %v2526_v15, %v1657_v3 }
 0x146   : > { %v2490_v16 = vpop.f32.mrf.mxu0  ;;  %v1717_v54 = vadd.f32 %v2523_v32, %v1652_v6  ;;  %v2529_v2 = vadd.f32 %v2528_v46, %v3351_v11  ;;  %v2795_v11 = vmov (%p1801_p4), 0.0  }
 0x147   : > { %v2530_v39 = vpop.f32.mrf.mxu1  ;;  %v1660_v17 = vadd.f32 %v2489_v4, %v1595_v12  ;;  %1807 = vst [vmem:[#allocation2] sm:$0x1] (%p1801_p4), %v2795_v11  ;;  %1808 = vst [vmem:[#allocation3] sm:$0x1] (%p1801_p4), %v2795_v11 }
 0x148   : > { %v2491_v22 = vpop.f32.mrf.mxu0 }
 0x149   : > { %v2492_v45 = vadd.f32 %v2491_v22, %v2490_v16  ;;  %v2531_v49 = vpop.f32.mrf.mxu1  ;;  %v3500_v16 = vld [vmem:[#allocation12_spill] sm:$0xff]  ;;  %v1725_v10 = vadd.f32 %v2529_v2, %v1660_v17 }
 0x14a   : > { %v2493_v40 = vpop.f32.mrf.mxu0  ;;  %v2532_v56 = vadd.f32 %v2531_v49, %v2530_v39  ;;  %v2517_v29 = vadd.f32 %v3501_v51, %v3500_v16 }
 0x14b   : > { %v1665_v38 = vadd.f32 %v2492_v45, %v1600_v24  ;;  %v2533_v57 = vpop.f32.mrf.mxu1 }
 0x14c   : > { %v2494_v5 = vpop.f32.mrf.mxu0  ;;  %v1709_v20 = vadd.f32 %v2517_v29, %v1644_v13 }
 0x14d   : > { %v2495_v7 = vadd.f32 %v2494_v5, %v2493_v40  ;;  %v2534_v8 = vpop.f32.mrf.mxu1  ;;  %v1730_v55 = vadd.f32 %v2532_v56, %v1665_v38 }
 0x14e   : > { %v2554_v58 = vpop.f32.mrf.mxu0  ;;  %v2535_v21 = vadd.f32 %v2534_v8, %v2533_v57 }
 0x14f   : > { %v1668_v37 = vadd.f32 %v2495_v7, %v1603_v59  ;;  %v3373_v23 = vadd.f32 %v2554_v58, %v1714_v9  ;;  %v2558_v47 = vpop.f32.mrf.mxu1 }
 0x150   : > { %v3375_v25 = vadd.f32 %v2558_v47, %v1730_v55  ;;  %v1770_v27 = vpop.f32.mrf.mxu0 }
 0x151   : > { %v3379_v60 = vadd.f32 %v1770_v27, %v1706_v61  ;;  %v1786_v53 = vpop.f32.mrf.mxu1  ;;  %v1733_v31 = vadd.f32 %v2535_v21, %v1668_v37 }
 0x152   : > { %v3382_v39 = vadd.f32 %v1786_v53, %v1722_v14  ;;  %v2555_v41 = vpop.f32.mrf.mxu0  ;;  %1806 = sbr.rel (!%p1801_p4) target bundleno = 343 (0x157), region = 40 }
 0x153   : > { %v3384_v43 = vadd.f32 %v2555_v41, %v1717_v54  ;;  %v2559_v18 = vpop.f32.mrf.mxu1 }
 0x154   : > { %v3386_v22 = vadd.f32 %v2559_v18, %v1733_v31  ;;  %v1773_v24 = vpop.f32.mrf.mxu0 }
 0x155   : > { %v3388_v35 = vadd.f32 %v1773_v24, %v1709_v20  ;;  %v1789_v45 = vpop.f32.mrf.mxu1 }
 0x156   : > { %v3390_v49 = vadd.f32 %v1789_v45, %v1725_v10 }
 0x157 PF: > { %p2211_p5 = scmp.ne.s32.totalorder %s2785_s15, 0 }
 0x159   : > { %1811 = sbr.rel (%p2211_p5) target bundleno = 381 (0x17d), region = 44 }
 0x15e   : > { %v1813_v46 = vadd.f32 %v3388_v35, %v3379_v60  ;;  %v1829_v26 = vmul.f32 %v3379_v60, %v3379_v60  ;;  %v1830_v28 = vmul.f32 %v3388_v35, %v3388_v35  ;;  %v1831_v30 = vmul.f32 %v3373_v23, %v3373_v23  ;;  %v1812_v32 = vld [vmem:[#allocation2] sm:$0x1]  ;;  %v1828_v47 = vld [vmem:[#allocation3] sm:$0x1] }
 0x15f   : > { %v1832_v34 = vmul.f32 %v3384_v43, %v3384_v43  ;;  %v2253_v1 = vpack.c.bf16 %v3388_v35, %v3379_v60  ;;  %v2258_v48 = vpack.c.bf16 %v3384_v43, %v3373_v23  ;;  %v2263_v40 = vpack.c.bf16 %v3390_v49, %v3382_v39 }
 0x160   : > { %v1814_v33 = vadd.f32 %v1813_v46, %v3373_v23  ;;  %v1837_v36 = vadd.f32 %v1830_v28, %v1829_v26  ;;  %v2268_v42 = vpack.c.bf16 %v3386_v22, %v3375_v25  ;;  %v1833_v52 = vmul.f32 %v3382_v39, %v3382_v39 }
 0x161   : > { %2254 = vst [vmem:[%s3479_s4] sm:$0xff] %v2253_v1   ;;  %2290 = vst [vmem:[%s3479_s4 + $0x8] sm:$0xff] %v2258_v48   ;;  %v1834_v56 = vmul.f32 %v3390_v49, %v3390_v49  ;;  %v1835_v62 = vmul.f32 %v3375_v25, %v3375_v25  ;;  %v1836_v3 = vmul.f32 %v3386_v22, %v3386_v22 }
 0x162   : > { %v1815_v50 = vadd.f32 %v1814_v33, %v3384_v43  ;;  %v1838_v44 = vadd.f32 %v1837_v36, %v1831_v30  ;;  %2291 = vst [vmem:[%s3479_s4 + $0x10] sm:$0xff] %v2263_v40   ;;  %2292 = vst [vmem:[%s3479_s4 + $0x18] sm:$0xff] %v2268_v42  }
 0x164   : > { %v1816_v38 = vadd.f32 %v1815_v50, %v3382_v39  ;;  %v1839_v57 = vadd.f32 %v1838_v44, %v1832_v34 }
 0x166   : > { %v1817_v59 = vadd.f32 %v1816_v38, %v3390_v49  ;;  %v1840_v63 = vadd.f32 %v1839_v57, %v1833_v52 }
 0x168   : > { %v1818_v0 = vadd.f32 %v1817_v59, %v3375_v25  ;;  %v1841_v4 = vadd.f32 %v1840_v63, %v1834_v56 }
 0x16a   : > { %v1819_v5 = vadd.f32 %v1818_v0, %v3386_v22  ;;  %v1842_v6 = vadd.f32 %v1841_v4, %v1835_v62 }
 0x16c   : > { %v1820_v7 = vrot.slane %v1819_v5, 4  ;;  %v1843_v8 = vadd.f32 %v1842_v6, %v1836_v3 }
 0x16e   : > { %v1821_v9 = vadd.f32 %v1820_v7, %v1819_v5  ;;  %v1844_v55 = vrot.slane %v1843_v8, 4 }
 0x170   : > { %v1822_v12 = vrot.slane %v1821_v9, 2  ;;  %v1845_v13 = vadd.f32 %v1844_v55, %v1843_v8 }
 0x172   : > { %v1823_v15 = vadd.f32 %v1822_v12, %v1821_v9  ;;  %v1846_v58 = vrot.slane %v1845_v13, 2 }
 0x174   : > { %v1824_v61 = vrot.slane %v1823_v15, 1  ;;  %v1847_v19 = vadd.f32 %v1846_v58, %v1845_v13 }
 0x176   : > { %v1825_v37 = vadd.f32 %v1824_v61, %v1823_v15  ;;  %v1848_v21 = vrot.slane %v1847_v19, 1 }
 0x178   : > { %v1826_v17 = vadd.f32 %v1825_v37, %v1812_v32  ;;  %v1849_v27 = vadd.f32 %v1848_v21, %v1847_v19 }
 0x17a   : > { %1827 = vst [vmem:[#allocation2] sm:$0x1] %v1826_v17  ;;  %v1850_v14 = vadd.f32 %v1849_v27, %v1828_v47 }
 0x17c   : > { %1851 = vst [vmem:[#allocation3] sm:$0x1] %v1850_v14 }
 0x17d PF: > { %p2220_p6 = scmp.ne.s32.totalorder %s2785_s15, 1 }
 0x17f   : > { %1895 = sbr.rel (%p2220_p6) target bundleno = 427 (0x1ab), region = 48 }
 0x184   : > { %v1896_v16 = vld [vmem:[#allocation2] sm:$0x1]  ;;  %v1898_v51 = vld [vmem:[#allocation3] sm:$0x1]  ;;  %v1910_v41 = vlaneseq }
 0x185   : > { %v1897_v29 = vmul.f32 0.02, %v1896_v16  ;;  %v1899_v53 = vmul.f32 0.02, %v1898_v51  ;;  %v1902_v20 = vld [vmem:[%s3477_s2] sm:$0x1] }
 0x186   : > { %v1911_v18 = vshrl.u32 %v1910_v41, 7  ;;  %v1906_v11 = vld [vmem:[%s3478_s3] sm:$0x1] }
 0x187   : > { %v1900_v54 = vmul.f32 %v1897_v29, %v1897_v29 }
 0x188   : > { %v1912_v24 = vsub.s32 0, %v1911_v18 }
 0x189   : > { %v1901_v31 = vsub.f32 %v1899_v53, %v1900_v54 }
 0x18b   : > { %v1903_v2 = vadd.f32 1e-05, %v1901_v31 }
 0x18d   : > { %2769 = vrsqrt.f32 %v1903_v2 }
 0x19a   : > { %v2770_v10 = vpop.eup %2769 }
 0x19b   : > { %v1905_v45 = vmul.f32 %v2770_v10, %v1902_v20 }
 0x19d   : > { %v1907_v46 = vmul.f32 %v1905_v45, %v1897_v29  ;;  %v1913_v26 = vrot.slane %v1905_v45, %v1912_v24 }
 0x19f   : > { %v1908_v28 = vsub.f32 %v1906_v11, %v1907_v46  ;;  %v1915_v30 = vmul.f32 %v1913_v26, %v3379_v60  ;;  %v1916_v33 = vmul.f32 %v1913_v26, %v3388_v35  ;;  %v1917_v34 = vmul.f32 %v1913_v26, %v3373_v23 }
 0x1a0   : > { %v1918_v36 = vmul.f32 %v1913_v26, %v3384_v43  ;;  %v1919_v1 = vmul.f32 %v1913_v26, %v3382_v39  ;;  %v1920_v48 = vmul.f32 %v1913_v26, %v3390_v49  ;;  %v1921_v40 = vmul.f32 %v1913_v26, %v3375_v25 }
 0x1a1   : > { %v1927_v42 = vrot.slane %v1908_v28, %v1912_v24  ;;  %v1922_v50 = vmul.f32 %v1913_v26, %v3386_v22 }
 0x1a3   : > { %v1929_v52 = vadd.f32 %v1927_v42, %v1915_v30  ;;  %v1930_v44 = vadd.f32 %v1927_v42, %v1916_v33  ;;  %v1931_v38 = vadd.f32 %v1927_v42, %v1917_v34  ;;  %v1932_v56 = vadd.f32 %v1927_v42, %v1918_v36 }
 0x1a4   : > { %v1933_v60 = vadd.f32 %v1927_v42, %v1919_v1  ;;  %v1934_v57 = vadd.f32 %v1927_v42, %v1920_v48  ;;  %v1935_v35 = vadd.f32 %v1927_v42, %v1921_v40  ;;  %v1936_v59 = vadd.f32 %v1927_v42, %v1922_v50 }
 0x1a5   : > { %v1937_v23 = vmax.f32 %v1929_v52, 0.0  ;;  %v1938_v62 = vmax.f32 %v1930_v44, 0.0  ;;  %v1939_v43 = vmax.f32 %v1931_v38, 0.0  ;;  %v1940_v63 = vmax.f32 %v1932_v56, 0.0 }
 0x1a6   : > { %v1941_v39 = vmax.f32 %v1933_v60, 0.0  ;;  %v1942_v0 = vmax.f32 %v1934_v57, 0.0  ;;  %v1943_v49 = vmax.f32 %v1935_v35, 0.0  ;;  %v1944_v3 = vmax.f32 %v1936_v59, 0.0 }
 0x1a7   : > { %v2273_v25 = vpack.c.bf16 %v1938_v62, %v1937_v23  ;;  %v2278_v4 = vpack.c.bf16 %v1940_v63, %v1939_v43 }
 0x1a8   : > { %v2283_v5 = vpack.c.bf16 %v1942_v0, %v1941_v39  ;;  %v2288_v22 = vpack.c.bf16 %v1944_v3, %v1943_v49 }
 0x1a9   : > { %2274 = vst [vmem:[%s3479_s4] sm:$0xff] %v2273_v25   ;;  %2293 = vst [vmem:[%s3479_s4 + $0x8] sm:$0xff] %v2278_v4  }
 0x1aa   : > { %2294 = vst [vmem:[%s3479_s4 + $0x10] sm:$0xff] %v2283_v5   ;;  %2295 = vst [vmem:[%s3479_s4 + $0x18] sm:$0xff] %v2288_v22  }
 0x1ab PF: > { %s14_s17 = sadd.s32 1, %s2793_s17   ;;  %s3502_s15 = smov %s2789_s16 }
 0x1ac   : > { %p11_p7 = scmp.ge.s32.totalorder %s14_s17, 4   ;;  %s3503_s16 = smov %s3505_s18 }
 0x1ae   :  { %13 = sbr.rel (!%p11_p7) target bundleno = 2 (0x2), region = 78 }

// kernel: critic_exp_forward.7
= control target key start
LH: loop header
LB: loop body
LE: loop exit
PB: predicated region body
PF: predicated region fallthrough
CT: control target
= control target key end

     0   :  { %v453_v27 = vlaneseq  ;;  %v3276_v35 = vmov 1966171168   ;;  %s4074_s0 = inlined_call_operand.vmem [shape: bf16[2,3200], index: 0, kind: input, shape index: {}]   ;;  %s4075_s1 = inlined_call_operand.vmem [shape: f32[2,1], index: 1, kind: input, shape index: {}]   ;;  %s4076_s2 = inlined_call_operand.vmem [shape: f32[2,1], index: 2, kind: input, shape index: {}]   ;;  %s4077_s3 = inlined_call_operand.vmem [shape: bf16[3200,128], index: 3, kind: input, shape index: {}]   ;;  %s4078_s4 = inlined_call_operand.vmem [shape: f32[1,128], index: 4, kind: input, shape index: {}]   ;;  %s4079_s5 = inlined_call_operand.vmem [shape: f32[1,128], index: 5, kind: input, shape index: {}]   ;;  %s4080_s6 = inlined_call_operand.vmem [shape: f32[1,128], index: 6, kind: input, shape index: {}]   ;;  %s4081_s7 = inlined_call_operand.vmem [shape: f32[128,2], index: 7, kind: input, shape index: {}]   ;;  %s4082_s8 = inlined_call_operand.vmem [shape: f32[1,2], index: 8, kind: input, shape index: {}]   ;;  %s4083_s9 = inlined_call_operand.hbm [shape: f32[2,2], index: 9, kind: output, shape index: {}]  }
   0x1   :  { %v3051_v0 = vld [vmem:[%s4077_s3 + $0x78] sm:$0xff]   ;;  %v3055_v4 = vld [vmem:[%s4077_s3 + $0x70] sm:$0xff]   ;;  %v3059_v8 = vld [vmem:[%s4077_s3 + $0x68] sm:$0xff]   ;;  %v451_v36 = vunpack.c.l.s4 %v3276_v35 }
   0x2   :  { %v3052_v1 = vld [vmem:[%s4077_s3 + $0x38] sm:$0xff]   ;;  %2700 = vmatprep.subr.bf16.mxu0 %v3051_v0  ;;  %v3056_v5 = vld [vmem:[%s4077_s3 + $0x30] sm:$0xff]   ;;  %v3060_v9 = vld [vmem:[%s4077_s3 + $0x28] sm:$0xff]   ;;  %v454_v32 = vshrl.u32 %v453_v27, 7 }
   0x3   :  { %v3053_v2 = vld [vmem:[%s4077_s3 + $0xf8] sm:$0xff]   ;;  %2701 = vmatpush3.bf16.msra.mxu0 %v3052_v1  ;;  %v3057_v6 = vld [vmem:[%s4077_s3 + $0xf0] sm:$0xff]   ;;  %v3061_v10 = vld [vmem:[%s4077_s3 + $0xe8] sm:$0xff]   ;;  %v452_v39 = vunpack.c.0.s8 %v451_v36 }
   0x4   :  { %v3054_v3 = vld [vmem:[%s4077_s3 + $0xb8] sm:$0xff]   ;;  %2722 = vmatprep.subr.bf16.mxu1 %v3053_v2  ;;  %2702 = vmatprep.subr.bf16.mxu0 %v3055_v4  ;;  %v3058_v7 = vld [vmem:[%s4077_s3 + $0xb0] sm:$0xff]   ;;  %v3062_v11 = vld [vmem:[%s4077_s3 + $0xa8] sm:$0xff]  }
   0x5   :  { %2723 = vmatpush3.bf16.msra.mxu1 %v3054_v3  ;;  %v3063_v12 = vld [vmem:[%s4077_s3 + $0x60] sm:$0xff]   ;;  %v3067_v16 = vld [vmem:[%s4077_s3 + $0x58] sm:$0xff]   ;;  %v3071_v20 = vld [vmem:[%s4077_s3 + $0x50] sm:$0xff]   ;;  %v3436_v41 = vsub.s32 %v452_v39, %v454_v32 }
   0x6   :  { %2724 = vmatprep.subr.bf16.mxu1 %v3057_v6  ;;  %v3064_v13 = vld [vmem:[%s4077_s3 + $0x20] sm:$0xff]   ;;  %v3068_v17 = vld [vmem:[%s4077_s3 + $0x18] sm:$0xff]   ;;  %v3072_v21 = vld [vmem:[%s4077_s3 + $0x10] sm:$0xff]  }
   0x7   :  { %2703 = vmatpush3.bf16.msra.mxu0 %v3056_v5  ;;  %v3065_v14 = vld [vmem:[%s4077_s3 + $0xe0] sm:$0xff]   ;;  %v3069_v18 = vld [vmem:[%s4077_s3 + $0xd8] sm:$0xff]   ;;  %v3073_v22 = vld [vmem:[%s4077_s3 + $0xd0] sm:$0xff]  }
   0x8   :  { %2704 = vmatprep.subr.bf16.mxu0 %v3059_v8  ;;  %v3066_v15 = vld [vmem:[%s4077_s3 + $0xa0] sm:$0xff]   ;;  %v3070_v19 = vld [vmem:[%s4077_s3 + $0x98] sm:$0xff]   ;;  %v3074_v23 = vld [vmem:[%s4077_s3 + $0x90] sm:$0xff]  }
   0x9   :  { %2725 = vmatpush3.bf16.msra.mxu1 %v3058_v7  ;;  %v3075_v24 = vld [vmem:[%s4077_s3 + $0x48] sm:$0xff]   ;;  %v3079_v29 = vld [vmem:[%s4077_s3 + $0x40] sm:$0xff]   ;;  %v3084_v37 = vld [vmem:[%s4077_s3 + $0x178] sm:$0xff]  }
   0xa   :  { %2726 = vmatprep.subr.bf16.mxu1 %v3061_v10  ;;  %v3076_v25 = vld [vmem:[%s4077_s3 + $0x8] sm:$0xff]   ;;  %v3080_v30 = vld [vmem:[%s4077_s3] sm:$0xff]   ;;  %v3086_v40 = vld [vmem:[%s4077_s3 + $0x1f8] sm:$0xff]  }
   0xb   :  { %2705 = vmatpush3.bf16.msra.mxu0 %v3060_v9  ;;  %v3077_v26 = vld [vmem:[%s4077_s3 + $0xc8] sm:$0xff]   ;;  %v3081_v31 = vld [vmem:[%s4077_s3 + $0xc0] sm:$0xff]   ;;  %v3085_v48 = vld [vmem:[%s4077_s3 + $0x138] sm:$0xff]  }
   0xc   :  { %2706 = vmatprep.subr.bf16.mxu0 %v3063_v12  ;;  %v3078_v28 = vld [vmem:[%s4077_s3 + $0x88] sm:$0xff]   ;;  %v34_v33 = vld [vmem:[%s4074_s0] sm:$0xff]  ;;  %v3088_v51 = vld [vmem:[%s4077_s3 + $0x170] sm:$0xff]  }
   0xd   :  { %2727 = vmatpush3.bf16.msra.mxu1 %v3062_v11  ;;  %v3083_v34 = vld [vmem:[%s4077_s3 + $0x80] sm:$0xff]   ;;  %v449_v38 = vcombine.high %v34_v33, %v34_v33  ;;  %v456_v42 = vrot.slane %v34_v33, %v3436_v41  ;;  %v3087_v53 = vld [vmem:[%s4077_s3 + $0x1b8] sm:$0xff]   ;;  %v3090_v54 = vld [vmem:[%s4077_s3 + $0x1f0] sm:$0xff]  }
   0xe   :  { %2728 = vmatprep.subr.bf16.mxu1 %v3065_v14  ;;  %v3089_v56 = vld [vmem:[%s4077_s3 + $0x130] sm:$0xff]   ;;  %v3092_v57 = vld [vmem:[%s4077_s3 + $0x168] sm:$0xff]   ;;  %v3096_v61 = vld [vmem:[%s4077_s3 + $0x160] sm:$0xff]  }
   0xf   :  { %2707 = vmatpush3.bf16.msra.mxu0 %v3064_v13  ;;  %v3440_v43 = vrot.slane %v449_v38, %v3436_v41  ;;  %v464_v44 = vcombine.high %v456_v42, %v456_v42  ;;  %v472_v45 = vrot.slane %v456_v42, %v3436_v41  ;;  %v3091_v58 = vld [vmem:[%s4077_s3 + $0x1b0] sm:$0xff]   ;;  %v3094_v59 = vld [vmem:[%s4077_s3 + $0x1e8] sm:$0xff]   ;;  %v3098_v63 = vld [vmem:[%s4077_s3 + $0x1e0] sm:$0xff]  }
  0x10   :  { %2708 = vmatprep.subr.bf16.mxu0 %v3067_v16  ;;  %v3093_v60 = vld [vmem:[%s4077_s3 + $0x128] sm:$0xff]   ;;  %v3097_v0 = vld [vmem:[%s4077_s3 + $0x120] sm:$0xff]   ;;  %v3100_v1 = vld [vmem:[%s4077_s3 + $0x158] sm:$0xff]  }
  0x11   :  { %2729 = vmatpush3.bf16.msra.mxu1 %v3066_v15  ;;  %v465_v46 = vcombine.high %v3440_v43, %v3440_v43  ;;  %v486_v47 = vrot.slane %v464_v44, %v3436_v41  ;;  %v494_v50 = vcombine.high %v472_v45, %v472_v45  ;;  %v3095_v62 = vld [vmem:[%s4077_s3 + $0x1a8] sm:$0xff]   ;;  %v3099_v2 = vld [vmem:[%s4077_s3 + $0x1a0] sm:$0xff]   ;;  %v3102_v3 = vld [vmem:[%s4077_s3 + $0x1d8] sm:$0xff]  }
  0x12   :  { %2730 = vmatprep.subr.bf16.mxu1 %v3069_v18  ;;  %v3101_v4 = vld [vmem:[%s4077_s3 + $0x118] sm:$0xff]   ;;  %v3104_v5 = vld [vmem:[%s4077_s3 + $0x150] sm:$0xff]   ;;  %v3108_v9 = vld [vmem:[%s4077_s3 + $0x148] sm:$0xff]  }
  0x13   :  { %2709 = vmatpush3.bf16.msra.mxu0 %v3068_v17  ;;  %v493_v49 = vrot.slane %v465_v46, %v3436_v41  ;;  %1867 = vmatprep.mubr.bf16.mxu0 %v486_v47  ;;  %v496_v52 = vcombine.high %v486_v47, %v486_v47  ;;  %v3103_v6 = vld [vmem:[%s4077_s3 + $0x198] sm:$0xff]   ;;  %v3106_v7 = vld [vmem:[%s4077_s3 + $0x1d0] sm:$0xff]   ;;  %v3110_v11 = vld [vmem:[%s4077_s3 + $0x1c8] sm:$0xff]   ;;  %v479_v17 = vrot.slane %v3440_v43, %v3436_v41 }
  0x14   :  { %2710 = vmatprep.subr.bf16.mxu0 %v3071_v20  ;;  %v3105_v8 = vld [vmem:[%s4077_s3 + $0x110] sm:$0xff]   ;;  %v3109_v12 = vld [vmem:[%s4077_s3 + $0x108] sm:$0xff]   ;;  %v3112_v13 = vld [vmem:[%s4077_s3 + $0x140] sm:$0xff]  }
  0x15   :  { %2731 = vmatpush3.bf16.msra.mxu1 %v3070_v19  ;;  %v497_v55 = vcombine.high %v493_v49, %v493_v49  ;;  %1907 = vmatprep.mubr.bf16.mxu1 %v496_v52  ;;  %v3107_v10 = vld [vmem:[%s4077_s3 + $0x190] sm:$0xff]   ;;  %v3111_v14 = vld [vmem:[%s4077_s3 + $0x188] sm:$0xff]   ;;  %v3114_v15 = vld [vmem:[%s4077_s3 + $0x1c0] sm:$0xff]  }
  0x16   :  { %2732 = vmatprep.subr.bf16.mxu1 %v3073_v22  ;;  %v3113_v16 = vld [vmem:[%s4077_s3 + $0x100] sm:$0xff]   ;;  %v3116_v18 = vld [vmem:[%s4077_s3 + $0x278] sm:$0xff]   ;;  %v495_v22 = vcombine.high %v479_v17, %v479_v17  ;;  %v3124_v27 = vld [vmem:[%s4077_s3 + $0x268] sm:$0xff]  }
  0x17   :  { %2711 = vmatpush3.bf16.msra.mxu0 %v3072_v21  ;;  %v3115_v19 = vld [vmem:[%s4077_s3 + $0x180] sm:$0xff]   ;;  %v3118_v20 = vld [vmem:[%s4077_s3 + $0x2f8] sm:$0xff]   ;;  %v3127_v32 = vld [vmem:[%s4077_s3 + $0x2a8] sm:$0xff]  }
  0x18   :  { %2712 = vmatprep.subr.bf16.mxu0 %v3075_v24  ;;  %v3117_v21 = vld [vmem:[%s4077_s3 + $0x238] sm:$0xff]   ;;  %v3130_v33 = vld [vmem:[%s4077_s3 + $0x2e0] sm:$0xff]   ;;  %v3136_v39 = vld [vmem:[%s4077_s3 + $0x250] sm:$0xff]  }
  0x19   :  { %2733 = vmatpush3.bf16.msra.mxu1 %v3074_v23  ;;  %v3120_v23 = vld [vmem:[%s4077_s3 + $0x270] sm:$0xff]   ;;  %v3119_v24 = vld [vmem:[%s4077_s3 + $0x2b8] sm:$0xff]   ;;  %v3131_v36 = vld [vmem:[%s4077_s3 + $0x2a0] sm:$0xff]  }
  0x1a   :  { %2734 = vmatprep.subr.bf16.mxu1 %v3077_v26  ;;  %v3121_v26 = vld [vmem:[%s4077_s3 + $0x230] sm:$0xff]   ;;  %v3132_v35 = vld [vmem:[%s4077_s3 + $0x258] sm:$0xff]   ;;  %v3140_v44 = vld [vmem:[%s4077_s3 + $0x248] sm:$0xff]  }
  0x1b   :  { %2713 = vmatpush3.bf16.msra.mxu0 %v3076_v25  ;;  %v3122_v25 = vld [vmem:[%s4077_s3 + $0x2f0] sm:$0xff]   ;;  %v3133_v38 = vld [vmem:[%s4077_s3 + $0x218] sm:$0xff]  }
  0x1c   :  { %2714 = vmatprep.subr.bf16.mxu0 %v3079_v29  ;;  %v3126_v29 = vld [vmem:[%s4077_s3 + $0x2e8] sm:$0xff]   ;;  %v3138_v42 = vld [vmem:[%s4077_s3 + $0x2d0] sm:$0xff]  }
  0x1d   :  { %2735 = vmatpush3.bf16.msra.mxu1 %v3078_v28  ;;  %v3123_v28 = vld [vmem:[%s4077_s3 + $0x2b0] sm:$0xff]  }
  0x1e   :  { %2736 = vmatprep.subr.bf16.mxu1 %v3081_v31  ;;  %v3128_v31 = vld [vmem:[%s4077_s3 + $0x260] sm:$0xff]   ;;  %v3137_v43 = vld [vmem:[%s4077_s3 + $0x210] sm:$0xff]  }
  0x1f   :  { %2715 = vmatpush3.bf16.msra.mxu0 %v3080_v30  ;;  %v3125_v30 = vld [vmem:[%s4077_s3 + $0x228] sm:$0xff]   ;;  %v3139_v46 = vld [vmem:[%s4077_s3 + $0x290] sm:$0xff]  }
  0x20   :  { %2744 = vmatprep.subr.bf16.mxu0 %v3084_v37  ;;  %v3134_v37 = vld [vmem:[%s4077_s3 + $0x2d8] sm:$0xff]  }
  0x21   :  { %2737 = vmatpush3.bf16.msra.mxu1 %v3083_v34  ;;  %v3129_v34 = vld [vmem:[%s4077_s3 + $0x220] sm:$0xff]  }
  0x22   :  { %2766 = vmatprep.subr.bf16.mxu1 %v3086_v40  ;;  %1868 = vmatmul.mubr.bf16.vlgmr.msra.gmra.mxu0 %v472_v45  ;;  %v3135_v40 = vld [vmem:[%s4077_s3 + $0x298] sm:$0xff]   ;;  %v35_v45 = vld [vmem:[%s4074_s0 + $0x8] sm:$0xff] }
  0x23   :  { %2745 = vmatpush3.bf16.msra.mxu0 %v3085_v48  ;;  %1947 = vmatprep.mubr.bf16.mxu0 %v493_v49  ;;  %v505_v47 = vrot.slane %v35_v45, %v3436_v41  ;;  %v498_v48 = vcombine.high %v35_v45, %v35_v45  ;;  %v3142_v49 = vld [vmem:[%s4077_s3 + $0x2c8] sm:$0xff]  }
  0x24   :  { %1908 = vmatmul.mubr.bf16.vlgmr.msra.gmra.mxu1 %v494_v50  ;;  %2746 = vmatprep.subr.bf16.mxu0 %v3088_v51  ;;  %v3141_v50 = vld [vmem:[%s4077_s3 + $0x208] sm:$0xff]  }
  0x25   :  { %2767 = vmatpush3.bf16.msra.mxu1 %v3087_v53  ;;  %1987 = vmatprep.mubr.bf16.mxu1 %v497_v55  ;;  %v513_v51 = vcombine.high %v505_v47, %v505_v47  ;;  %v3625_v52 = vrot.slane %v498_v48, %v3436_v41  ;;  %v3144_v53 = vld [vmem:[%s4077_s3 + $0x240] sm:$0xff]   ;;  %v3191_v45 = vld [vmem:[%s4077_s3 + $0x4e8] sm:$0xff]  }
  0x26   :  { %2768 = vmatprep.subr.bf16.mxu1 %v3090_v54  ;;  %v3143_v54 = vld [vmem:[%s4077_s3 + $0x288] sm:$0xff]  }
  0x27   :  { %2747 = vmatpush3.bf16.msra.mxu0 %v3089_v56  ;;  %v535_v55 = vrot.slane %v513_v51, %v3436_v41  ;;  %v514_v56 = vcombine.high %v3625_v52, %v3625_v52  ;;  %v3192_v48 = vld [vmem:[%s4077_s3 + $0x4a8] sm:$0xff]   ;;  %v3277_v51 = vmov 0  }
  0x28   :  { %2748 = vmatprep.subr.bf16.mxu0 %v3092_v57  ;;  %v3146_v57 = vld [vmem:[%s4077_s3 + $0x2c0] sm:$0xff]   ;;  %3050 = vset.pattern.permute.xlu0 %v3277_v51  ;;  %v3246_v51 = vld [vmem:[%s4077_s3 + $0x638] sm:$0xff]  }
  0x29   :  { %2769 = vmatpush3.bf16.msra.mxu1 %v3091_v58  ;;  %v3145_v58 = vld [vmem:[%s4077_s3 + $0x200] sm:$0xff]  }
  0x2a   :  { %2770 = vmatprep.subr.bf16.mxu1 %v3094_v59  ;;  %v545_v59 = vcombine.high %v535_v55, %v535_v55 }
  0x2b   :  { %2749 = vmatpush3.bf16.msra.mxu0 %v3093_v60  ;;  %v521_v60 = vrot.slane %v505_v47, %v3436_v41  ;;  %v3193_v47 = vld [vmem:[%s4077_s3 + $0x460] sm:$0xff]  }
  0x2c   :  { %2750 = vmatprep.subr.bf16.mxu0 %v3096_v61  ;;  %v3148_v61 = vld [vmem:[%s4077_s3 + $0x378] sm:$0xff]  }
  0x2d   :  { %2771 = vmatpush3.bf16.msra.mxu1 %v3095_v62  ;;  %v3147_v62 = vld [vmem:[%s4077_s3 + $0x280] sm:$0xff]  }
  0x2e   :  { %2772 = vmatprep.subr.bf16.mxu1 %v3098_v63  ;;  %v542_v63 = vrot.slane %v514_v56, %v3436_v41  ;;  %v3201_v56 = vld [vmem:[%s4077_s3 + $0x450] sm:$0xff]  }
  0x2f   :  { %2751 = vmatpush3.bf16.msra.mxu0 %v3097_v0  ;;  %v3150_v0 = vld [vmem:[%s4077_s3 + $0x3f8] sm:$0xff]  }
  0x30   :  { %2752 = vmatprep.subr.bf16.mxu0 %v3100_v1  ;;  %v3149_v1 = vld [vmem:[%s4077_s3 + $0x338] sm:$0xff]  }
  0x31   :  { %2773 = vmatpush3.bf16.msra.mxu1 %v3099_v2  ;;  %v543_v2 = vcombine.high %v521_v60, %v521_v60 }
  0x32   :  { %2774 = vmatprep.subr.bf16.mxu1 %v3102_v3  ;;  %v3152_v3 = vld [vmem:[%s4077_s3 + $0x370] sm:$0xff]  }
  0x33   :  { %2753 = vmatpush3.bf16.msra.mxu0 %v3101_v4  ;;  %v3151_v4 = vld [vmem:[%s4077_s3 + $0x3b8] sm:$0xff]  }
  0x34   :  { %2754 = vmatprep.subr.bf16.mxu0 %v3104_v5  ;;  %v546_v5 = vcombine.high %v542_v63, %v542_v63 }
  0x35   :  { %2775 = vmatpush3.bf16.msra.mxu1 %v3103_v6  ;;  %v3154_v6 = vld [vmem:[%s4077_s3 + $0x3f0] sm:$0xff]  }
  0x36   :  { %2776 = vmatprep.subr.bf16.mxu1 %v3106_v7  ;;  %v3153_v7 = vld [vmem:[%s4077_s3 + $0x330] sm:$0xff]  }
  0x37   :  { %2755 = vmatpush3.bf16.msra.mxu0 %v3105_v8  ;;  %v3156_v8 = vld [vmem:[%s4077_s3 + $0x368] sm:$0xff]  }
  0x38   :  { %2756 = vmatprep.subr.bf16.mxu0 %v3108_v9  ;;  %v3155_v9 = vld [vmem:[%s4077_s3 + $0x3b0] sm:$0xff]  }
  0x39   :  { %2777 = vmatpush3.bf16.msra.mxu1 %v3107_v10  ;;  %v3158_v10 = vld [vmem:[%s4077_s3 + $0x3e8] sm:$0xff]  }
  0x3a   :  { %2778 = vmatprep.subr.bf16.mxu1 %v3110_v11  ;;  %v3157_v11 = vld [vmem:[%s4077_s3 + $0x328] sm:$0xff]  }
  0x3b   :  { %2757 = vmatpush3.bf16.msra.mxu0 %v3109_v12  ;;  %v3160_v12 = vld [vmem:[%s4077_s3 + $0x360] sm:$0xff]  }
  0x3c   :  { %2758 = vmatprep.subr.bf16.mxu0 %v3112_v13  ;;  %v3159_v13 = vld [vmem:[%s4077_s3 + $0x3a8] sm:$0xff]  }
  0x3d   :  { %2779 = vmatpush3.bf16.msra.mxu1 %v3111_v14  ;;  %v3162_v14 = vld [vmem:[%s4077_s3 + $0x3e0] sm:$0xff]  }
  0x3e   :  { %2780 = vmatprep.subr.bf16.mxu1 %v3114_v15  ;;  %v3161_v15 = vld [vmem:[%s4077_s3 + $0x320] sm:$0xff]  }
  0x3f   :  { %2759 = vmatpush3.bf16.msra.mxu0 %v3113_v16  ;;  %v3164_v16 = vld [vmem:[%s4077_s3 + $0x358] sm:$0xff]  }
  0x40   :  { %2788 = vmatprep.subr.bf16.mxu0 %v3116_v18  ;;  %v3166_v18 = vld [vmem:[%s4077_s3 + $0x3d8] sm:$0xff]  }
  0x41   :  { %2781 = vmatpush3.bf16.msra.mxu1 %v3115_v19  ;;  %v3165_v19 = vld [vmem:[%s4077_s3 + $0x318] sm:$0xff]  }
  0x42   :  { %1948 = vmatmul.mubr.bf16.vlgmr.msra.gmra.mxu0 %v479_v17  ;;  %2810 = vmatprep.subr.bf16.mxu1 %v3118_v20  ;;  %v3163_v17 = vld [vmem:[%s4077_s3 + $0x3a0] sm:$0xff]   ;;  %v3168_v20 = vld [vmem:[%s4077_s3 + $0x350] sm:$0xff]  }
  0x43   :  { %2789 = vmatpush3.bf16.msra.mxu0 %v3117_v21  ;;  %2027 = vmatprep.mubr.bf16.mxu0 %v535_v55  ;;  %v3167_v21 = vld [vmem:[%s4077_s3 + $0x398] sm:$0xff]  }
  0x44   :  { %1988 = vmatmul.mubr.bf16.vlgmr.msra.gmra.mxu1 %v495_v22  ;;  %2790 = vmatprep.subr.bf16.mxu0 %v3120_v23  ;;  %v3170_v22 = vld [vmem:[%s4077_s3 + $0x3d0] sm:$0xff]   ;;  %v3198_v55 = vld [vmem:[%s4077_s3 + $0x418] sm:$0xff]  }
  0x45   :  { %2811 = vmatpush3.bf16.msra.mxu1 %v3119_v24  ;;  %2067 = vmatprep.mubr.bf16.mxu1 %v545_v59  ;;  %v3169_v23 = vld [vmem:[%s4077_s3 + $0x310] sm:$0xff]   ;;  %v3172_v24 = vld [vmem:[%s4077_s3 + $0x348] sm:$0xff]  }
  0x46   :  { %2812 = vmatprep.subr.bf16.mxu1 %v3122_v25  ;;  %v3171_v25 = vld [vmem:[%s4077_s3 + $0x390] sm:$0xff]  }
  0x47   :  { %2791 = vmatpush3.bf16.msra.mxu0 %v3121_v26  ;;  %v3174_v26 = vld [vmem:[%s4077_s3 + $0x3c8] sm:$0xff]   ;;  %v3202_v59 = vld [vmem:[%s4077_s3 + $0x410] sm:$0xff]  }
  0x48   :  { %2792 = vmatprep.subr.bf16.mxu0 %v3124_v27  ;;  %v3173_v27 = vld [vmem:[%s4077_s3 + $0x308] sm:$0xff]  }
  0x49   :  { %2813 = vmatpush3.bf16.msra.mxu1 %v3123_v28  ;;  %v3176_v28 = vld [vmem:[%s4077_s3 + $0x340] sm:$0xff]  }
  0x4a   :  { %2814 = vmatprep.subr.bf16.mxu1 %v3126_v29  ;;  %v3175_v29 = vld [vmem:[%s4077_s3 + $0x388] sm:$0xff]  }
  0x4b   :  { %2793 = vmatpush3.bf16.msra.mxu0 %v3125_v30  ;;  %v3178_v30 = vld [vmem:[%s4077_s3 + $0x3c0] sm:$0xff]  }
  0x4c   :  { %2794 = vmatprep.subr.bf16.mxu0 %v3128_v31  ;;  %v3177_v31 = vld [vmem:[%s4077_s3 + $0x300] sm:$0xff]  }
  0x4d   :  { %2815 = vmatpush3.bf16.msra.mxu1 %v3127_v32  ;;  %v528_v32 = vrot.slane %v3625_v52, %v3436_v41  ;;  %v3197_v52 = vld [vmem:[%s4077_s3 + $0x458] sm:$0xff]  }
  0x4e   :  { %2816 = vmatprep.subr.bf16.mxu1 %v3130_v33  ;;  %v3181_v33 = vld [vmem:[%s4077_s3 + $0x478] sm:$0xff]  }
  0x4f   :  { %2795 = vmatpush3.bf16.msra.mxu0 %v3129_v34  ;;  %v3180_v34 = vld [vmem:[%s4077_s3 + $0x380] sm:$0xff]  }
  0x50   :  { %2796 = vmatprep.subr.bf16.mxu0 %v3132_v35  ;;  %v3183_v35 = vld [vmem:[%s4077_s3 + $0x4f8] sm:$0xff]  }
  0x51   :  { %2817 = vmatpush3.bf16.msra.mxu1 %v3131_v36  ;;  %v3182_v36 = vld [vmem:[%s4077_s3 + $0x438] sm:$0xff]  }
  0x52   :  { %2818 = vmatprep.subr.bf16.mxu1 %v3134_v37  ;;  %v544_v37 = vcombine.high %v528_v32, %v528_v32 }
  0x53   :  { %2797 = vmatpush3.bf16.msra.mxu0 %v3133_v38  ;;  %v3185_v38 = vld [vmem:[%s4077_s3 + $0x470] sm:$0xff]  }
  0x54   :  { %2798 = vmatprep.subr.bf16.mxu0 %v3136_v39  ;;  %v3184_v39 = vld [vmem:[%s4077_s3 + $0x4b8] sm:$0xff]  }
  0x55   :  { %2819 = vmatpush3.bf16.msra.mxu1 %v3135_v40  ;;  %v3187_v40 = vld [vmem:[%s4077_s3 + $0x4f0] sm:$0xff]  }
  0x56   :  { %2820 = vmatprep.subr.bf16.mxu1 %v3138_v42  ;;  %v3186_v42 = vld [vmem:[%s4077_s3 + $0x430] sm:$0xff]  }
  0x57   :  { %2799 = vmatpush3.bf16.msra.mxu0 %v3137_v43  ;;  %v3189_v43 = vld [vmem:[%s4077_s3 + $0x468] sm:$0xff]  }
  0x58   :  { %2800 = vmatprep.subr.bf16.mxu0 %v3140_v44  ;;  %v3188_v44 = vld [vmem:[%s4077_s3 + $0x4b0] sm:$0xff]  }
  0x59   :  { %2821 = vmatpush3.bf16.msra.mxu1 %v3139_v46  ;;  %v3190_v46 = vld [vmem:[%s4077_s3 + $0x428] sm:$0xff]  }
  0x5a   :  { %2822 = vmatprep.subr.bf16.mxu1 %v3142_v49  ;;  %v3195_v49 = vld [vmem:[%s4077_s3 + $0x4e0] sm:$0xff]  }
  0x5b   :  { %2801 = vmatpush3.bf16.msra.mxu0 %v3141_v50  ;;  %v3194_v50 = vld [vmem:[%s4077_s3 + $0x420] sm:$0xff]  }
  0x5c   :  { %2802 = vmatprep.subr.bf16.mxu0 %v3144_v53  ;;  %v3196_v53 = vld [vmem:[%s4077_s3 + $0x4a0] sm:$0xff]  }
  0x5d   :  { %2823 = vmatpush3.bf16.msra.mxu1 %v3143_v54  ;;  %v3199_v54 = vld [vmem:[%s4077_s3 + $0x4d8] sm:$0xff]  }
  0x5e   :  { %2824 = vmatprep.subr.bf16.mxu1 %v3146_v57  ;;  %v3200_v57 = vld [vmem:[%s4077_s3 + $0x498] sm:$0xff]  }
  0x5f   :  { %2803 = vmatpush3.bf16.msra.mxu0 %v3145_v58  ;;  %v3203_v58 = vld [vmem:[%s4077_s3 + $0x4d0] sm:$0xff]  }
  0x60   :  { %2832 = vmatprep.subr.bf16.mxu0 %v3148_v61  ;;  %v36_v61 = vld [vmem:[%s4074_s0 + $0x10] sm:$0xff] }
  0x61   :  { %2825 = vmatpush3.bf16.msra.mxu1 %v3147_v62  ;;  %v3204_v62 = vld [vmem:[%s4077_s3 + $0x490] sm:$0xff]  }
  0x62   :  { %2028 = vmatmul.mubr.bf16.vlgmr.msra.gmra.mxu0 %v521_v60  ;;  %2854 = vmatprep.subr.bf16.mxu1 %v3150_v0  ;;  %v3205_v60 = vld [vmem:[%s4077_s3 + $0x448] sm:$0xff]   ;;  %v547_v0 = vcombine.high %v36_v61, %v36_v61 }
  0x63   :  { %2833 = vmatpush3.bf16.msra.mxu0 %v3149_v1  ;;  %2107 = vmatprep.mubr.bf16.mxu0 %v542_v63  ;;  %v554_v63 = vrot.slane %v36_v61, %v3436_v41  ;;  %v3207_v1 = vld [vmem:[%s4077_s3 + $0x4c8] sm:$0xff]  }
  0x64   :  { %2068 = vmatmul.mubr.bf16.vlgmr.msra.gmra.mxu1 %v543_v2  ;;  %2834 = vmatprep.subr.bf16.mxu0 %v3152_v3  ;;  %v3206_v2 = vld [vmem:[%s4077_s3 + $0x408] sm:$0xff]  }
  0x65   :  { %2855 = vmatpush3.bf16.msra.mxu1 %v3151_v4  ;;  %2147 = vmatprep.mubr.bf16.mxu1 %v546_v5  ;;  %v562_v3 = vcombine.high %v554_v63, %v554_v63  ;;  %v3831_v4 = vrot.slane %v547_v0, %v3436_v41  ;;  %v3209_v5 = vld [vmem:[%s4077_s3 + $0x440] sm:$0xff]  }
  0x66   :  { %2856 = vmatprep.subr.bf16.mxu1 %v3154_v6  ;;  %v3208_v6 = vld [vmem:[%s4077_s3 + $0x488] sm:$0xff]  }
  0x67   :  { %2835 = vmatpush3.bf16.msra.mxu0 %v3153_v7  ;;  %v584_v7 = vrot.slane %v562_v3, %v3436_v41 }
  0x68   :  { %2836 = vmatprep.subr.bf16.mxu0 %v3156_v8  ;;  %v563_v8 = vcombine.high %v3831_v4, %v3831_v4 }
  0x69   :  { %2857 = vmatpush3.bf16.msra.mxu1 %v3155_v9  ;;  %v3211_v9 = vld [vmem:[%s4077_s3 + $0x4c0] sm:$0xff]  }
  0x6a   :  { %2858 = vmatprep.subr.bf16.mxu1 %v3158_v10  ;;  %v3210_v10 = vld [vmem:[%s4077_s3 + $0x400] sm:$0xff]  }
  0x6b   :  { %2837 = vmatpush3.bf16.msra.mxu0 %v3157_v11  ;;  %v594_v11 = vcombine.high %v584_v7, %v584_v7 }
  0x6c   :  { %2838 = vmatprep.subr.bf16.mxu0 %v3160_v12  ;;  %v570_v12 = vrot.slane %v554_v63, %v3436_v41 }
  0x6d   :  { %2859 = vmatpush3.bf16.msra.mxu1 %v3159_v13  ;;  %v3213_v13 = vld [vmem:[%s4077_s3 + $0x578] sm:$0xff]  }
  0x6e   :  { %2860 = vmatprep.subr.bf16.mxu1 %v3162_v14  ;;  %v3212_v14 = vld [vmem:[%s4077_s3 + $0x480] sm:$0xff]  }
  0x6f   :  { %2839 = vmatpush3.bf16.msra.mxu0 %v3161_v15  ;;  %v591_v15 = vrot.slane %v563_v8, %v3436_v41 }
  0x70   :  { %2840 = vmatprep.subr.bf16.mxu0 %v3164_v16  ;;  %v3215_v16 = vld [vmem:[%s4077_s3 + $0x5f8] sm:$0xff]  }
  0x71   :  { %2861 = vmatpush3.bf16.msra.mxu1 %v3163_v17  ;;  %v3214_v17 = vld [vmem:[%s4077_s3 + $0x538] sm:$0xff]  }
  0x72   :  { %2862 = vmatprep.subr.bf16.mxu1 %v3166_v18  ;;  %v592_v18 = vcombine.high %v570_v12, %v570_v12 }
  0x73   :  { %2841 = vmatpush3.bf16.msra.mxu0 %v3165_v19  ;;  %v3217_v19 = vld [vmem:[%s4077_s3 + $0x570] sm:$0xff]  }
  0x74   :  { %2842 = vmatprep.subr.bf16.mxu0 %v3168_v20  ;;  %v3216_v20 = vld [vmem:[%s4077_s3 + $0x5b8] sm:$0xff]  }
  0x75   :  { %2863 = vmatpush3.bf16.msra.mxu1 %v3167_v21  ;;  %v595_v21 = vcombine.high %v591_v15, %v591_v15 }
  0x76   :  { %2864 = vmatprep.subr.bf16.mxu1 %v3170_v22  ;;  %v3219_v22 = vld [vmem:[%s4077_s3 + $0x5f0] sm:$0xff]  }
  0x77   :  { %2843 = vmatpush3.bf16.msra.mxu0 %v3169_v23  ;;  %v3218_v23 = vld [vmem:[%s4077_s3 + $0x530] sm:$0xff]  }
  0x78   :  { %2844 = vmatprep.subr.bf16.mxu0 %v3172_v24  ;;  %v3221_v24 = vld [vmem:[%s4077_s3 + $0x568] sm:$0xff]  }
  0x79   :  { %2865 = vmatpush3.bf16.msra.mxu1 %v3171_v25  ;;  %v3220_v25 = vld [vmem:[%s4077_s3 + $0x5b0] sm:$0xff]  }
  0x7a   :  { %2866 = vmatprep.subr.bf16.mxu1 %v3174_v26  ;;  %v3223_v26 = vld [vmem:[%s4077_s3 + $0x5e8] sm:$0xff]  }
  0x7b   :  { %2845 = vmatpush3.bf16.msra.mxu0 %v3173_v27  ;;  %v3222_v27 = vld [vmem:[%s4077_s3 + $0x528] sm:$0xff]  }
  0x7c   :  { %2846 = vmatprep.subr.bf16.mxu0 %v3176_v28  ;;  %v3225_v28 = vld [vmem:[%s4077_s3 + $0x560] sm:$0xff]  }
  0x7d   :  { %2867 = vmatpush3.bf16.msra.mxu1 %v3175_v29  ;;  %v3224_v29 = vld [vmem:[%s4077_s3 + $0x5a8] sm:$0xff]  }
  0x7e   :  { %2868 = vmatprep.subr.bf16.mxu1 %v3178_v30  ;;  %v3227_v30 = vld [vmem:[%s4077_s3 + $0x5e0] sm:$0xff]  }
  0x7f   :  { %2847 = vmatpush3.bf16.msra.mxu0 %v3177_v31  ;;  %v3226_v31 = vld [vmem:[%s4077_s3 + $0x520] sm:$0xff]  }
  0x80   :  { %2876 = vmatprep.subr.bf16.mxu0 %v3181_v33  ;;  %v3228_v33 = vld [vmem:[%s4077_s3 + $0x5a0] sm:$0xff]  }
  0x81   :  { %2869 = vmatpush3.bf16.msra.mxu1 %v3180_v34  ;;  %v3231_v34 = vld [vmem:[%s4077_s3 + $0x5d8] sm:$0xff]  }
  0x82   :  { %2108 = vmatmul.mubr.bf16.vlgmr.msra.gmra.mxu0 %v528_v32  ;;  %2898 = vmatprep.subr.bf16.mxu1 %v3183_v35  ;;  %v3229_v32 = vld [vmem:[%s4077_s3 + $0x558] sm:$0xff]  }
  0x83   :  { %2877 = vmatpush3.bf16.msra.mxu0 %v3182_v36  ;;  %2187 = vmatprep.mubr.bf16.mxu0 %v584_v7  ;;  %v3230_v35 = vld [vmem:[%s4077_s3 + $0x518] sm:$0xff]   ;;  %v3233_v36 = vld [vmem:[%s4077_s3 + $0x550] sm:$0xff]  }
  0x84   :  { %2148 = vmatmul.mubr.bf16.vlgmr.msra.gmra.mxu1 %v544_v37  ;;  %2878 = vmatprep.subr.bf16.mxu0 %v3185_v38  ;;  %v3232_v37 = vld [vmem:[%s4077_s3 + $0x598] sm:$0xff]   ;;  %v3235_v38 = vld [vmem:[%s4077_s3 + $0x5d0] sm:$0xff]  }
  0x85   :  { %2899 = vmatpush3.bf16.msra.mxu1 %v3184_v39  ;;  %2227 = vmatprep.mubr.bf16.mxu1 %v594_v11  ;;  %v3234_v39 = vld [vmem:[%s4077_s3 + $0x510] sm:$0xff]  }
  0x86   :  { %2900 = vmatprep.subr.bf16.mxu1 %v3187_v40  ;;  %v3237_v40 = vld [vmem:[%s4077_s3 + $0x548] sm:$0xff]  }
  0x87   :  { %2879 = vmatpush3.bf16.msra.mxu0 %v3186_v42  ;;  %v3236_v42 = vld [vmem:[%s4077_s3 + $0x590] sm:$0xff]  }
  0x88   :  { %2880 = vmatprep.subr.bf16.mxu0 %v3189_v43  ;;  %v3239_v43 = vld [vmem:[%s4077_s3 + $0x5c8] sm:$0xff]  }
  0x89   :  { %2901 = vmatpush3.bf16.msra.mxu1 %v3188_v44  ;;  %v3238_v44 = vld [vmem:[%s4077_s3 + $0x508] sm:$0xff]  }
  0x8a   :  { %2902 = vmatprep.subr.bf16.mxu1 %v3191_v45  ;;  %v3241_v45 = vld [vmem:[%s4077_s3 + $0x540] sm:$0xff]  }
  0x8b   :  { %2881 = vmatpush3.bf16.msra.mxu0 %v3190_v46  ;;  %v3240_v46 = vld [vmem:[%s4077_s3 + $0x588] sm:$0xff]  }
  0x8c   :  { %2882 = vmatprep.subr.bf16.mxu0 %v3193_v47  ;;  %v3243_v47 = vld [vmem:[%s4077_s3 + $0x5c0] sm:$0xff]  }
  0x8d   :  { %2903 = vmatpush3.bf16.msra.mxu1 %v3192_v48  ;;  %v3242_v48 = vld [vmem:[%s4077_s3 + $0x500] sm:$0xff]  }
  0x8e   :  { %2904 = vmatprep.subr.bf16.mxu1 %v3195_v49  ;;  %v577_v49 = vrot.slane %v3831_v4, %v3436_v41 }
  0x8f   :  { %2883 = vmatpush3.bf16.msra.mxu0 %v3194_v50  ;;  %v3245_v50 = vld [vmem:[%s4077_s3 + $0x580] sm:$0xff]  }
  0x90   :  { %2884 = vmatprep.subr.bf16.mxu0 %v3197_v52  ;;  %v2355_v52 = vld [vmem:[%s4075_s1] sm:$0x3] }
  0x91   :  { %2905 = vmatpush3.bf16.msra.mxu1 %v3196_v53 }
  0x92   :  { %2906 = vmatprep.subr.bf16.mxu1 %v3199_v54 }
  0x93   :  { %2885 = vmatpush3.bf16.msra.mxu0 %v3198_v55 }
  0x94   :  { %2886 = vmatprep.subr.bf16.mxu0 %v3201_v56 }
  0x95   :  { %2907 = vmatpush3.bf16.msra.mxu1 %v3200_v57 }
  0x96   :  { %2908 = vmatprep.subr.bf16.mxu1 %v3203_v58 }
  0x97   :  { %2887 = vmatpush3.bf16.msra.mxu0 %v3202_v59 }
  0x98   :  { %2888 = vmatprep.subr.bf16.mxu0 %v3205_v60 }
  0x99   :  { %2909 = vmatpush3.bf16.msra.mxu1 %v3204_v62 }
  0x9a   :  { %2910 = vmatprep.subr.bf16.mxu1 %v3207_v1 }
  0x9b   :  { %2889 = vmatpush3.bf16.msra.mxu0 %v3206_v2 }
  0x9c   :  { %2890 = vmatprep.subr.bf16.mxu0 %v3209_v5 }
  0x9d   :  { %2911 = vmatpush3.bf16.msra.mxu1 %v3208_v6 }
  0x9e   :  { %2912 = vmatprep.subr.bf16.mxu1 %v3211_v9 }
  0x9f   :  { %2891 = vmatpush3.bf16.msra.mxu0 %v3210_v10 }
  0xa0   :  { %2920 = vmatprep.subr.bf16.mxu0 %v3213_v13 }
  0xa1   :  { %2913 = vmatpush3.bf16.msra.mxu1 %v3212_v14 }
  0xa2   :  { %2188 = vmatmul.mubr.bf16.vlgmr.msra.gmra.mxu0 %v570_v12  ;;  %2942 = vmatprep.subr.bf16.mxu1 %v3215_v16 }
  0xa3   :  { %2921 = vmatpush3.bf16.msra.mxu0 %v3214_v17  ;;  %2267 = vmatprep.mubr.bf16.mxu0 %v591_v15 }
  0xa4   :  { %2228 = vmatmul.mubr.bf16.vlgmr.msra.gmra.mxu1 %v592_v18  ;;  %2922 = vmatprep.subr.bf16.mxu0 %v3217_v19 }
  0xa5   :  { %2943 = vmatpush3.bf16.msra.mxu1 %v3216_v20  ;;  %2307 = vmatprep.mubr.bf16.mxu1 %v595_v21 }
  0xa6   :  { %2944 = vmatprep.subr.bf16.mxu1 %v3219_v22 }
  0xa7   :  { %2923 = vmatpush3.bf16.msra.mxu0 %v3218_v23 }
  0xa8   :  { %2924 = vmatprep.subr.bf16.mxu0 %v3221_v24 }
  0xa9   :  { %2945 = vmatpush3.bf16.msra.mxu1 %v3220_v25 }
  0xaa   :  { %2946 = vmatprep.subr.bf16.mxu1 %v3223_v26 }
  0xab   :  { %2925 = vmatpush3.bf16.msra.mxu0 %v3222_v27 }
  0xac   :  { %2926 = vmatprep.subr.bf16.mxu0 %v3225_v28 }
  0xad   :  { %2947 = vmatpush3.bf16.msra.mxu1 %v3224_v29 }
  0xae   :  { %2948 = vmatprep.subr.bf16.mxu1 %v3227_v30 }
  0xaf   :  { %2927 = vmatpush3.bf16.msra.mxu0 %v3226_v31 }
  0xb0   :  { %2928 = vmatprep.subr.bf16.mxu0 %v3229_v32 }
  0xb1   :  { %2949 = vmatpush3.bf16.msra.mxu1 %v3228_v33 }
  0xb2   :  { %2950 = vmatprep.subr.bf16.mxu1 %v3231_v34 }
  0xb3   :  { %2929 = vmatpush3.bf16.msra.mxu0 %v3230_v35 }
  0xb4   :  { %2930 = vmatprep.subr.bf16.mxu0 %v3233_v36 }
  0xb5   :  { %2951 = vmatpush3.bf16.msra.mxu1 %v3232_v37 }
  0xb6   :  { %2952 = vmatprep.subr.bf16.mxu1 %v3235_v38 }
  0xb7   :  { %2931 = vmatpush3.bf16.msra.mxu0 %v3234_v39 }
  0xb8   :  { %2932 = vmatprep.subr.bf16.mxu0 %v3237_v40 }
  0xb9   :  { %2953 = vmatpush3.bf16.msra.mxu1 %v3236_v42 }
  0xba   :  { %2954 = vmatprep.subr.bf16.mxu1 %v3239_v43 }
  0xbb   :  { %2933 = vmatpush3.bf16.msra.mxu0 %v3238_v44 }
  0xbc   :  { %2934 = vmatprep.subr.bf16.mxu0 %v3241_v45 }
  0xbd   :  { %2955 = vmatpush3.bf16.msra.mxu1 %v3240_v46 }
  0xbe   :  { %2956 = vmatprep.subr.bf16.mxu1 %v3243_v47 }
  0xbf   :  { %2935 = vmatpush3.bf16.msra.mxu0 %v3242_v48 }
  0xc0   :  { %14 = vsyncpa [#allocation3], 0  ;;  %v3278_v53 = vmov 0.0   ;;  %v593_v54 = vcombine.high %v577_v49, %v577_v49  ;;  %2359 = vperm.xlu0 %3050, %v2355_v52   ;;  %v2370_v55 = vld [vmem:[%s4076_s2] sm:$0x3]  ;;  %v3247_v56 = vld [vmem:[%s4077_s3 + $0x630] sm:$0xff]  }
  0xc1   :  { %2990 = vmatprep.subr.bf16.mxu0 %v3278_v53  ;;  %2957 = vmatpush3.bf16.msra.mxu1 %v3245_v50  ;;  %vm3279_vm0 = vmmov 0   ;;  %v3248_v57 = vld [vmem:[%s4077_s3 + $0x628] sm:$0xff]   ;;  %v3249_v58 = vld [vmem:[%s4077_s3 + $0x620] sm:$0xff]   ;;  %v3250_v59 = vld [vmem:[%s4077_s3 + $0x618] sm:$0xff]   ;;  %vm2479_vm1 = vcmask 9216  }
  0xc2   :  { %2268 = vmatmul.mubr.bf16.vlgmr.msra.gmra.mxu0 %v577_v49  ;;  %3010 = vmatprep.subr.mxu1 %v3278_v53  ;;  %v3251_v60 = vld [vmem:[%s4077_s3 + $0x610] sm:$0xff]   ;;  %v3252_v61 = vld [vmem:[%s4077_s3 + $0x608] sm:$0xff]   ;;  %v3253_v62 = vld [vmem:[%s4077_s3 + $0x600] sm:$0xff]  }
  0xc3   :  { %2991 = vmatpush3.bf16.msra.mxu0 %v3246_v51  ;;  %3006 = vmatprep.mubr.msk.bf16.mxu0 %vm3279_vm0, %v3278_v53  ;;  %v2496_v63 = vld.sshfl [vmem:[%s4074_s0 + $0x18] sm:$0x1 pattern:$0x75316420]  ;;  %v2495_v2 = vld [vmem:[%s4078_s4] ss:$0 sm:$0xff] }
  0xc4   :  { %2308 = vmatmul.mubr.bf16.vlgmr.msra.gmra.mxu1 %v593_v54  ;;  %2992 = vmatprep.subr.bf16.mxu0 %v3278_v53  ;;  %v609_v0 = vrot.slane %v2496_v63, %v3436_v41  ;;  %v2401_v23 = vld [vmem:[%s4081_s7 + $0x78] sm:$0xff]  ;;  %v2400_v24 = vld [vmem:[%s4081_s7 + $0x70] sm:$0xff]  ;;  %v2399_v27 = vld [vmem:[%s4081_s7 + $0x68] sm:$0xff] }
  0xc5   :  { %2374 = vperm.xlu0 %3050, %v2370_v55   ;;  %3042 = vmatprep.mubr.msk.f32.mxu1 %vm3279_vm0, %v3278_v53  ;;  %v2398_v28 = vld [vmem:[%s4081_s7 + $0x60] sm:$0xff]  ;;  %v2397_v29 = vld [vmem:[%s4081_s7 + $0x58] sm:$0xff]  ;;  %v2396_v30 = vld [vmem:[%s4081_s7 + $0x50] sm:$0xff] }
  0xc6   :  { %3011 = vmatpush3.msra.mxu1 %v2401_v23  ;;  %v2395_v31 = vld [vmem:[%s4081_s7 + $0x48] sm:$0xff]  ;;  %v2394_v32 = vld [vmem:[%s4081_s7 + $0x40] sm:$0xff]  ;;  %v2393_v33 = vld [vmem:[%s4081_s7 + $0x38] sm:$0xff] }
  0xc7   :  { %2993 = vmatpush3.bf16.msra.mxu0 %v3247_v56  ;;  %3012 = vmatprep.subr.mxu1 %v3278_v53  ;;  %v2392_v34 = vld [vmem:[%s4081_s7 + $0x30] sm:$0xff]  ;;  %v2391_v35 = vld [vmem:[%s4081_s7 + $0x28] sm:$0xff]  ;;  %v2390_v36 = vld [vmem:[%s4081_s7 + $0x20] sm:$0xff] }
  0xc8   :  { %2994 = vmatprep.subr.bf16.mxu0 %v3278_v53  ;;  %3013 = vmatpush3.msra.mxu1 %v2400_v24  ;;  %v2389_v38 = vld [vmem:[%s4081_s7 + $0x18] sm:$0xff]  ;;  %v2388_v43 = vld [vmem:[%s4081_s7 + $0x10] sm:$0xff]  ;;  %v2387_v48 = vld [vmem:[%s4081_s7 + $0x8] sm:$0xff] }
  0xc9   :  { %3014 = vmatprep.subr.mxu1 %v3278_v53  ;;  %v2386_v52 = vld [vmem:[%s4081_s7] sm:$0xff] }
  0xca   :  { %3015 = vmatpush3.msra.mxu1 %v2399_v27  ;;  %v2698_v27 = vld [vmem:[%s4080_s6] ss:$0 sm:$0xff] }
  0xcb   :  { %2995 = vmatpush3.bf16.msra.mxu0 %v3248_v57  ;;  %3016 = vmatprep.subr.mxu1 %v3278_v53 }
  0xcc   :  { %2996 = vmatprep.subr.bf16.mxu0 %v3278_v53  ;;  %3017 = vmatpush3.msra.mxu1 %v2398_v28 }
  0xcd   :  { %3018 = vmatprep.subr.mxu1 %v3278_v53 }
  0xce   :  { %3019 = vmatpush3.msra.mxu1 %v2397_v29 }
  0xcf   :  { %2997 = vmatpush3.bf16.msra.mxu0 %v3249_v58  ;;  %3020 = vmatprep.subr.mxu1 %v3278_v53 }
  0xd0   :  { %2998 = vmatprep.subr.bf16.mxu0 %v3278_v53  ;;  %3021 = vmatpush3.msra.mxu1 %v2396_v30 }
  0xd1   :  { %3022 = vmatprep.subr.mxu1 %v3278_v53 }
  0xd2   :  { %3023 = vmatpush3.msra.mxu1 %v2395_v31 }
  0xd3   :  { %2999 = vmatpush3.bf16.msra.mxu0 %v3250_v59  ;;  %3024 = vmatprep.subr.mxu1 %v3278_v53 }
  0xd4   :  { %3000 = vmatprep.subr.bf16.mxu0 %v3278_v53  ;;  %3025 = vmatpush3.msra.mxu1 %v2394_v32 }
  0xd5   :  { %3026 = vmatprep.subr.mxu1 %v3278_v53 }
  0xd6   :  { %3027 = vmatpush3.msra.mxu1 %v2393_v33 }
  0xd7   :  { %3001 = vmatpush3.bf16.msra.mxu0 %v3251_v60  ;;  %3028 = vmatprep.subr.mxu1 %v3278_v53 }
  0xd8   :  { %3002 = vmatprep.subr.bf16.mxu0 %v3278_v53  ;;  %3029 = vmatpush3.msra.mxu1 %v2392_v34 }
  0xd9   :  { %3030 = vmatprep.subr.mxu1 %v3278_v53 }
  0xda   :  { %3031 = vmatpush3.msra.mxu1 %v2391_v35 }
  0xdb   :  { %3003 = vmatpush3.bf16.msra.mxu0 %v3252_v61  ;;  %3032 = vmatprep.subr.mxu1 %v3278_v53 }
  0xdc   :  { %3004 = vmatprep.subr.bf16.mxu0 %v3278_v53  ;;  %3033 = vmatpush3.msra.mxu1 %v2390_v36 }
  0xdd   :  { %3034 = vmatprep.subr.mxu1 %v3278_v53 }
  0xde   :  { %3035 = vmatpush3.msra.mxu1 %v2389_v38 }
  0xdf   :  { %3005 = vmatpush3.bf16.msra.mxu0 %v3253_v62  ;;  %3036 = vmatprep.subr.mxu1 %v3278_v53 }
  0xe0   :  { %3037 = vmatpush3.msra.mxu1 %v2388_v43 }
  0xe1   :  { %3038 = vmatprep.subr.mxu1 %v3278_v53 }
  0xe2   :  { %v2716_v1 = vpop.f32.mrf.mxu0  ;;  %3007 = vmatmul.mubr.bf16.vlgmr.msra.gmra.mxu0 %v609_v0  ;;  %3039 = vmatpush3.msra.mxu1 %v2387_v48 }
  0xe3   :  { %3040 = vmatprep.subr.mxu1 %v3278_v53 }
  0xe4   :  { %v2717_v3 = vpop.f32.mrf.mxu0  ;;  %v2738_v4 = vpop.f32.mrf.mxu1  ;;  %3041 = vmatpush3.msra.mxu1 %v2386_v52 }
  0xe5   :  { %v2718_v5 = vadd.f32 %v2717_v3, %v2716_v1 }
  0xe6   :  { %v2719_v6 = vpop.f32.mrf.mxu0  ;;  %v2739_v7 = vpop.f32.mrf.mxu1 }
  0xe7   :  { %v1870_v8 = vadd.f32 %v2718_v5, %v2495_v2  ;;  %v2740_v9 = vadd.f32 %v2739_v7, %v2738_v4 }
  0xe8   :  { %v2720_v10 = vpop.f32.mrf.mxu0  ;;  %v2741_v11 = vpop.f32.mrf.mxu1 }
  0xe9   :  { %v1910_v12 = vadd.f32 %v2740_v9, %v1870_v8 }
  0xea   :  { %v2742_v13 = vpop.f32.mrf.mxu1 }
 0x102   :  { %v2760_v14 = vpop.f32.mrf.mxu0 }
 0x104   :  { %v2761_v41 = vpop.f32.mrf.mxu0  ;;  %v2782_v15 = vpop.f32.mrf.mxu1 }
 0x105   :  { %v2762_v16 = vadd.f32 %v2761_v41, %v2760_v14 }
 0x106   :  { %v2763_v17 = vpop.f32.mrf.mxu0  ;;  %v2783_v18 = vpop.f32.mrf.mxu1 }
 0x107   :  { %v1950_v19 = vadd.f32 %v2762_v16, %v1910_v12  ;;  %v2784_v20 = vadd.f32 %v2783_v18, %v2782_v15 }
 0x108   :  { %v2764_v21 = vpop.f32.mrf.mxu0  ;;  %v2785_v22 = vpop.f32.mrf.mxu1 }
 0x109   :  { %v1990_v25 = vadd.f32 %v2784_v20, %v1950_v19 }
 0x10a   :  { %v2786_v26 = vpop.f32.mrf.mxu1 }
 0x122   :  { %v2804_v37 = vpop.f32.mrf.mxu0 }
 0x124   :  { %v2805_v39 = vpop.f32.mrf.mxu0  ;;  %v2826_v40 = vpop.f32.mrf.mxu1 }
 0x125   :  { %v2806_v42 = vadd.f32 %v2805_v39, %v2804_v37  ;;  %v2699_v39 = vld [vmem:[%s4082_s8] ss:$0 sm:$0xff] }
 0x126   :  { %v2807_v44 = vpop.f32.mrf.mxu0  ;;  %v2827_v45 = vpop.f32.mrf.mxu1 }
 0x127   :  { %v2030_v46 = vadd.f32 %v2806_v42, %v1990_v25  ;;  %v2828_v47 = vadd.f32 %v2827_v45, %v2826_v40  ;;  %v2697_v25 = vld [vmem:[%s4079_s5] ss:$0 sm:$0xff]  ;;  %s3280_s5 = smov [#allocation2]  }
 0x128   :  { %v2808_v49 = vpop.f32.mrf.mxu0  ;;  %v2829_v50 = vpop.f32.mrf.mxu1  ;;  %s2487_s29 = sshll.u32 %s3280_s5, 4  ;;  %s2488_s29 = int_to_ptr.vmem [resolvable:$true] %s2487_s29 }
 0x129   :  { %v2070_v51 = vadd.f32 %v2828_v47, %v2030_v46  ;;  %s3254_s6 = scalar_lea.vmem %s2488_s29, 32  ;;  %p3259_p1 = scmp.lt.s32.totalorder %s2488_s29, %s2488_s29 }
 0x12a   :  { %v2830_v54 = vpop.f32.mrf.mxu1  ;;  %p3255_p0 = scmp.ne.s32.totalorder %s2488_s29, %s3254_s6  ;;  %p3260_p2 = scmp.lt.s32.totalorder %s3254_s6, %s3254_s6 }
 0x12c   :  { %p3261_p3 = por %p3260_p2, %p3259_p1 }
 0x12e   :  { %p3262_p4 = pnand %p3261_p3, %p3255_p0 }
 0x13b   :  { %v2360_v22 = vpop.permute.xlu0 %2359 }
 0x13c   :  { %v2368_v30 = vmul.f32 %v2697_v25, %v2360_v22 }
 0x140   :  { %v2375_v28 = vpop.permute.xlu0 %2374 }
 0x141   :  { %v2383_v33 = vmul.f32 %v2698_v27, %v2375_v28 }
 0x142   :  { %v2848_v55 = vpop.f32.mrf.mxu0 }
 0x144   :  { %v2849_v56 = vpop.f32.mrf.mxu0  ;;  %v2870_v57 = vpop.f32.mrf.mxu1 }
 0x145   :  { %v2850_v58 = vadd.f32 %v2849_v56, %v2848_v55 }
 0x146   :  { %v2851_v59 = vpop.f32.mrf.mxu0  ;;  %v2871_v60 = vpop.f32.mrf.mxu1 }
 0x147   :  { %v2110_v61 = vadd.f32 %v2850_v58, %v2070_v51  ;;  %v2872_v62 = vadd.f32 %v2871_v60, %v2870_v57 }
 0x148   :  { %v2852_v63 = vpop.f32.mrf.mxu0  ;;  %v2873_v0 = vpop.f32.mrf.mxu1 }
 0x149   :  { %v2150_v1 = vadd.f32 %v2872_v62, %v2110_v61 }
 0x14a   :  { %v2874_v2 = vpop.f32.mrf.mxu1 }
 0x162   :  { %v2892_v3 = vpop.f32.mrf.mxu0 }
 0x164   :  { %v2893_v53 = vpop.f32.mrf.mxu0  ;;  %v2914_v4 = vpop.f32.mrf.mxu1 }
 0x165   :  { %v2894_v17 = vadd.f32 %v2893_v53, %v2892_v3 }
 0x166   :  { %v2895_v5 = vpop.f32.mrf.mxu0  ;;  %v2915_v6 = vpop.f32.mrf.mxu1 }
 0x167   :  { %v2190_v18 = vadd.f32 %v2894_v17, %v2150_v1  ;;  %v2916_v19 = vadd.f32 %v2915_v6, %v2914_v4 }
 0x168   :  { %v2896_v7 = vpop.f32.mrf.mxu0  ;;  %v2917_v8 = vpop.f32.mrf.mxu1 }
 0x169   :  { %v2230_v21 = vadd.f32 %v2916_v19, %v2190_v18 }
 0x16a   :  { %v2918_v9 = vpop.f32.mrf.mxu1 }
 0x182   :  { %v2936_v10 = vpop.f32.mrf.mxu0 }
 0x184   :  { %v2937_v11 = vpop.f32.mrf.mxu0  ;;  %v2958_v12 = vpop.f32.mrf.mxu1 }
 0x185   :  { %v2938_v20 = vadd.f32 %v2937_v11, %v2936_v10 }
 0x186   :  { %v2939_v13 = vpop.f32.mrf.mxu0  ;;  %v2959_v14 = vpop.f32.mrf.mxu1 }
 0x187   :  { %v2270_v23 = vadd.f32 %v2938_v20, %v2230_v21  ;;  %v2960_v24 = vadd.f32 %v2959_v14, %v2958_v12 }
 0x188   :  { %v2940_v41 = vpop.f32.mrf.mxu0  ;;  %v2961_v15 = vpop.f32.mrf.mxu1 }
 0x189   :  { %v2310_v26 = vadd.f32 %v2960_v24, %v2270_v23 }
 0x18a   :  { %v2962_v16 = vpop.f32.mrf.mxu1 }
 0x1a2   :  { %v2349_v29 = vpop.f32.mrf.mxu0 }
 0x1a3   :  { %v2350_v31 = vadd.f32 %v2349_v29, %v2310_v26 }
 0x1a4   :  { %v3008_v32 = vpop.f32.mrf.mxu0 }
 0x1a5   :  { %v2369_v34 = vadd.f32 %v2368_v30, %v2350_v31 }
 0x1a6   :  { %v2352_v35 = vpop.f32.mrf.mxu0 }
 0x1a7   :  { %v2384_v36 = vadd.f32 %v2383_v33, %v2369_v34 }
 0x1a8   :  { %v3009_v37 = vpop.f32.mrf.mxu0 }
 0x1a9   :  { %v2385_v38 = vmax.f32 %v2384_v36, 0.0 }
 0x1ab   :  { %3043 = vmatmul.mubr.f32.vlgmr.msra.gmra.mxu1 %v2385_v38 }
 0x26b   :  { %v2475_v40 = vpop.f32.mrf.mxu1 }
 0x26c   :  { %v2476_v42 = vadd.f32 %v2699_v39, %v2475_v40 }
 0x26d   :  { %v3044_v43 = vpop.f32.mrf.mxu1 }
 0x26e   :  { %2480 = vst.msk [vmem:[#allocation2] sm:$0x3] %vm2479_vm1, %v2476_v42 }
 0x26f   :  { %3265 = shalt.err (!%p3262_p4)
}
 0x270   :  { %2490 = dma.vmem_to_hbm [thread:$0]  %s2488_s29, 32, %s4083_s9, [#allocation3]  }
 0x271   :  { %3274 = dma.done.wait [#allocation3], 32  }
 0x272   :  { %3275 = vsyncadd [#allocation3], 4294967264 }
 0x273   :  { %2494 = vsyncpa [#allocation3], 1 }

</bundles_post_ra>
